<compile_context>
chip_gen: v6e
topology: v6e:2x2x1
jax: 0.10.0
libtpu: 0.0.40
codegen_flags: <defaults>
</compile_context>

<pallas_src>
import functools

import jax
import jax.numpy as jnp
from jax.experimental import pallas as pl
from jax.experimental.pallas import tpu as pltpu


# ------------------------------- the kernel ---------------------------------

def make_kernel(cfg, T, Bp, Vp_pad, Vw_pad, n_params):
    Lp, Lw = cfg["Lp"], cfg["Lw"]
    Hp, Hw = cfg["Hp"], cfg["Hw"]

    def kernel(*refs):
        p_emb_ref, w_emb_ref = refs[0], refs[1]
        prefs = refs[2:2 + n_params]
        (p_log_ref, w_log_ref,
         h_p_ref, c_p_ref, h_w_ref, c_w_ref,
         xp_buf, xw_buf) = refs[2 + n_params:]

        @pl.when(pl.program_id(0) == 0)
        def _init():
            h_p_ref[...] = jnp.zeros_like(h_p_ref)
            c_p_ref[...] = jnp.zeros_like(c_p_ref)
            h_w_ref[...] = jnp.zeros_like(h_w_ref)
            c_w_ref[...] = jnp.zeros_like(c_w_ref)

        # ---- structured view over the flat param-ref list ------------------
        it = iter(prefs)
        w2p_W_r, w2p_b_r = next(it), next(it)
        pos_layer_refs = []
        for l in range(Lp):
            if l == 0:
                pos_layer_refs.append(tuple(next(it) for _ in range(4)))  # Wp, Wwh, Whh, b
            else:
                pos_layer_refs.append(tuple(next(it) for _ in range(3)))  # Wih, Whh, b
        p2w_W_r, p2w_b_r = next(it), next(it)
        pproj_W_r, pproj_b_r = next(it), next(it)
        word_layer_refs = []
        for l in range(Lw):
            if l == 0:
                word_layer_refs.append(tuple(next(it) for _ in range(5)))  # Ww, Wp, Wph, Whh, b
            else:
                word_layer_refs.append(tuple(next(it) for _ in range(3)))
        wproj1_W_r, wproj1_b_r = next(it), next(it)
        wembT_r, wproj2_b_r = next(it), next(it)

        # ---- hoist: load every recurrently reused weight / bias ONCE -------
        w2p_W, w2p_b = w2p_W_r[...], w2p_b_r[...]
        p2w_W, p2w_b = p2w_W_r[...], p2w_b_r[...]
        pos_layers = [tuple(r[...] for r in layer) for layer in pos_layer_refs]
        word_layers = [tuple(r[...] for r in layer) for layer in word_layer_refs]

        def mm(a, w):
            # MXU matmul; downcast activation only if the weight was downcast,
            # accumulate in f32.
            if w.dtype != a.dtype:
                a = a.astype(w.dtype)
            return jnp.dot(a, w, preferred_element_type=jnp.float32)

        def log_softmax(x):
            m = jnp.max(x, axis=-1, keepdims=True)
            s = x - m
            return s - jnp.log(jnp.sum(jnp.exp(s), axis=-1, keepdims=True))

        def gates_to_hc(gates, c_prev, H):
            # PyTorch LSTMCell gate order: i, f, g, o (all math in f32)
            i = jax.nn.sigmoid(gates[:, 0 * H:1 * H])
            f = jax.nn.sigmoid(gates[:, 1 * H:2 * H])
            g = jnp.tanh(gates[:, 2 * H:3 * H])
            o = jax.nn.sigmoid(gates[:, 3 * H:4 * H])
            c_new = f * c_prev + i * g
            h_new = o * jnp.tanh(c_new)
            return h_new, c_new

        # ---------------- recurrent part: T steps per grid iteration --------
        # NOTE(ordering): h_w_ref[Lw-1] is read BEFORE the word LSTM updates
        # within a timestep (previous timestep's word hidden), matching the
        # reference semantics. Do not reorder.
        # TODO(synk): convert to lax.fori_loop(..., unroll=partial) if T grows
        # large enough that unrolled code size matters.
        for tt in range(T):
            p = p_emb_ref[tt]          # (Bp, Ep)
            w = w_emb_ref[tt]          # (Bp, Ew)

            # word -> pos conditioning (word hidden from previous time step)
            last_w_hid = jnp.tanh(mm(h_w_ref[Lw - 1], w2p_W) + w2p_b)

            # POS stacked LSTM; layer 0 consumes split inputs (no lane concat)
            x = None
            for l in range(Lp):
                if l == 0:
                    Wp, Wwh, Whh, b = pos_layers[0]
                    pre = mm(p, Wp) + mm(last_w_hid, Wwh)
                else:
                    Wih, Whh, b = pos_layers[l]
                    pre = mm(x, Wih)
                gates = pre + mm(h_p_ref[l], Whh) + b
                h_new, c_new = gates_to_hc(gates, c_p_ref[l], Hp)
                h_p_ref[l] = h_new
                c_p_ref[l] = c_new
                x = h_new                    # dropout=0.0 -> identity

            xp_buf[pl.ds(tt * Bp, Bp), :] = x     # stage pos top hidden

            # pos -> word conditioning (pos hidden from current time step)
            last_p_hid = jnp.tanh(mm(x, p2w_W) + p2w_b)

            # word stacked LSTM; layer 0 consumes split inputs (no lane concat)
            xw = None
            for l in range(Lw):
                if l == 0:
                    Ww, Wp2, Wph, Whh, b = word_layers[0]
                    pre = mm(w, Ww) + mm(p, Wp2) + mm(last_p_hid, Wph)
                else:
                    Wih, Whh, b = word_layers[l]
                    pre = mm(xw, Wih)
                gates = pre + mm(h_w_ref[l], Whh) + b
                h_new, c_new = gates_to_hc(gates, c_w_ref[l], Hw)
                h_w_ref[l] = h_new
                c_w_ref[l] = c_new
                xw = h_new

            xw_buf[pl.ds(tt * Bp, Bp), :] = xw    # stage word top hidden

        # ---------------- batched output heads (one pass over T steps) ------
        Xp = xp_buf[...]                                   # (T*Bp, Hp)
        Xw = xw_buf[...]                                   # (T*Bp, Hw)

        p_logits = mm(Xp, pproj_W_r[...]) + pproj_b_r[...]          # (T*Bp, Vp_pad)
        p_log_ref[...] = log_softmax(p_logits).reshape(T, Bp, Vp_pad)

        proj = mm(Xw, wproj1_W_r[...]) + wproj1_b_r[...]            # (T*Bp, Ew)
        # tied embedding, pre-transposed in the wrapper -> plain matmul
        w_logits = mm(proj, wembT_r[...]) + wproj2_b_r[...]         # (T*Bp, Vw_pad)
        # TODO(synk): tile this over Vw with a blocked two-pass log-softmax
        # for production vocabularies on v7x (64 MiB VMEM).
        w_log_ref[...] = log_softmax(w_logits).reshape(T, Bp, Vw_pad)

    return kernel


# ------------------------------ wrapper (glue) -------------------------------

def _round_up(x, m):
    return (x + m - 1) // m * m


def _const_spec(shape):
    zeros = (0,) * len(shape)
    # TODO(synk): pipeline_mode=pl.Buffered(1) (or one-shot DMA from pl.ANY)
    # would halve the VMEM footprint of these constant weights on v7x.
    return pl.BlockSpec(shape, lambda i, _z=zeros: _z)


def _nbytes(a):
    return int(a.size) * jnp.dtype(a.dtype).itemsize


def chain_pos_lm_forward(pos_ids, word_ids, P, cfg, time_chunk=8,
                         weights_dtype=jnp.float32):
    """pos_ids / word_ids: int32 (S, B).  P: param dict.  Returns
    ((p_log (S,B,Vp), w_log (S,B,Vw)), ((h_p, c_p), (h_w, c_w)))."""
    S, B = pos_ids.shape
    Ep, Ew = cfg["Ep"], cfg["Ew"]
    Hp, Hw = cfg["Hp"], cfg["Hw"]
    Lp, Lw = cfg["Lp"], cfg["Lw"]
    Vp, Vw = cfg["Vp"], cfg["Vw"]

    # Time-chunk: largest divisor of S that is <= time_chunk.
    T = 1
    for cand in range(min(time_chunk, S), 0, -1):
        if S % cand == 0:
            T = cand
            break

    Bp = _round_up(B, 8)          # sublane-pad the batch
    Vp_pad = _round_up(Vp, 128)   # lane-dense logit stores
    Vw_pad = _round_up(Vw, 128)
    NEG = -1e30

    # Embedding lookup (gather) is glue, done in plain JAX.
    p_emb = jnp.take(P["pos_emb"], pos_ids, axis=0).astype(jnp.float32)  # (S,B,Ep)
    w_emb = jnp.take(P["word_emb"], word_ids, axis=0).astype(jnp.float32)
    if Bp != B:
        p_emb = jnp.pad(p_emb, ((0, 0), (0, Bp - B), (0, 0)))
        w_emb = jnp.pad(w_emb, ((0, 0), (0, Bp - B), (0, 0)))

    wd = lambda a: a.astype(weights_dtype)

    # Flat ordered parameter list (same order the kernel unpacks).
    flat = [wd(P["w2p_W"]), P["w2p_b"]]
    for l in range(Lp):
        b = P["pos_bih"][l] + P["pos_bhh"][l]            # folded bias
        Wih = P["pos_Wih"][l]
        if l == 0:
            flat += [wd(Wih[:Ep]), wd(Wih[Ep:]), wd(P["pos_Whh"][l]), b]
        else:
            flat += [wd(Wih), wd(P["pos_Whh"][l]), b]
    flat += [wd(P["p2w_W"]), P["p2w_b"]]
    pproj_W = jnp.pad(P["pproj_W"], ((0, 0), (0, Vp_pad - Vp)))
    pproj_b = jnp.pad(P["pproj_b"], ((0, 0), (0, Vp_pad - Vp)), constant_values=NEG)
    flat += [wd(pproj_W), pproj_b]
    for l in range(Lw):
        b = P["word_bih"][l] + P["word_bhh"][l]
        Wih = P["word_Wih"][l]
        if l == 0:
            flat += [wd(Wih[:Ew]), wd(Wih[Ew:Ew + Ep]), wd(Wih[Ew + Ep:]),
                     wd(P["word_Whh"][l]), b]
        else:
            flat += [wd(Wih), wd(P["word_Whh"][l]), b]
    flat += [wd(P["wproj1_W"]), P["wproj1_b"]]
    # Tied embedding: pad vocab rows then transpose ONCE in the wrapper so the
    # kernel does a plain row-major matmul with Vw_pad as the lane-dense N dim.
    wembT = jnp.pad(P["word_emb"], ((0, Vw_pad - Vw), (0, 0))).T       # (Ew, Vw_pad)
    wproj2_b = jnp.pad(P["wproj2_b"], ((0, 0), (0, Vw_pad - Vw)), constant_values=NEG)
    flat += [wd(wembT), wproj2_b]

    n_params = len(flat)
    kernel = make_kernel(cfg, T, Bp, Vp_pad, Vw_pad, n_params)

    in_specs = ([pl.BlockSpec((T, Bp, Ep), lambda i: (i, 0, 0)),
                 pl.BlockSpec((T, Bp, Ew), lambda i: (i, 0, 0))]
                + [_const_spec(a.shape) for a in flat])

    out_shape = (
        jax.ShapeDtypeStruct((S, Bp, Vp_pad), jnp.float32),
        jax.ShapeDtypeStruct((S, Bp, Vw_pad), jnp.float32),
        jax.ShapeDtypeStruct((Lp, Bp, Hp), jnp.float32),
        jax.ShapeDtypeStruct((Lp, Bp, Hp), jnp.float32),
        jax.ShapeDtypeStruct((Lw, Bp, Hw), jnp.float32),
        jax.ShapeDtypeStruct((Lw, Bp, Hw), jnp.float32),
    )
    out_specs = (
        pl.BlockSpec((T, Bp, Vp_pad), lambda i: (i, 0, 0)),
        pl.BlockSpec((T, Bp, Vw_pad), lambda i: (i, 0, 0)),
        pl.BlockSpec((Lp, Bp, Hp), lambda i: (0, 0, 0)),   # resident carry
        pl.BlockSpec((Lp, Bp, Hp), lambda i: (0, 0, 0)),
        pl.BlockSpec((Lw, Bp, Hw), lambda i: (0, 0, 0)),
        pl.BlockSpec((Lw, Bp, Hw), lambda i: (0, 0, 0)),
    )

    scratch_shapes = [
        pltpu.VMEM((T * Bp, Hp), jnp.float32),   # staged pos top hidden
        pltpu.VMEM((T * Bp, Hw), jnp.float32),   # staged word top hidden
    ]

    # Explicit VMEM budget: resident weights (x2 for default const
    # double-buffering) + double-buffered I/O tiles + carries + scratch,
    # clamped to a value safe on every generation (<= v7x physical 64 MiB).
    est = 2 * sum(_nbytes(a) for a in flat)
    est += 2 * 4 * T * Bp * (Ep + Ew)                 # embedding input tiles
    est += 2 * 4 * T * Bp * (Vp_pad + Vw_pad)         # logit output tiles
    est += 2 * 4 * 2 * (Lp * Bp * Hp + Lw * Bp * Hw)  # carry outputs
    est += 4 * T * Bp * (Hp + Hw)                     # scratch
    vmem_limit = min(max(int(est * 1.5) + (1 << 20), 32 << 20), 64 << 20)

    outs = pl.pallas_call(
        kernel,
        out_shape=out_shape,
        grid_spec=pltpu.PrefetchScalarGridSpec(
            num_scalar_prefetch=0,
            grid=(S // T,),
            in_specs=in_specs,
            out_specs=out_specs,
            scratch_shapes=scratch_shapes,
        ),
        compiler_params=pltpu.CompilerParams(
            dimension_semantics=("arbitrary",),      # recurrent carry -> sequential
            vmem_limit_bytes=vmem_limit,
        ),
    )(p_emb, w_emb, *flat)

    p_log, w_log, h_p, c_p, h_w, c_w = outs
    # strip batch / vocab padding
    p_log = p_log[:, :B, :Vp]
    w_log = w_log[:, :B, :Vw]
    h_p, c_p = h_p[:, :B], c_p[:, :B]
    h_w, c_w = h_w[:, :B], c_w[:, :B]
    return (p_log, w_log), ((h_p, c_p), (h_w, c_w))


# -------------------------- pure-JAX reference -------------------------------

def reference_forward(pos_ids, word_ids, P, cfg):
    S, B = pos_ids.shape
    Hp, Hw, Lp, Lw = cfg["Hp"], cfg["Hw"], cfg["Lp"], cfg["Lw"]
    p_emb = jnp.take(P["pos_emb"], pos_ids, axis=0)
    w_emb = jnp.take(P["word_emb"], word_ids, axis=0)

    def cell(x, h, c, w_ih, b_ih, w_hh, b_hh, H):
        g = x @ w_ih + b_ih + h @ w_hh + b_hh
        i, f, gg, o = (jax.nn.sigmoid(g[:, :H]), jax.nn.sigmoid(g[:, H:2*H]),
                       jnp.tanh(g[:, 2*H:3*H]), jax.nn.sigmoid(g[:, 3*H:4*H]))
        c_new = f * c + i * gg
        return o * jnp.tanh(c_new), c_new

    h_p = jnp.zeros((Lp, B, Hp)); c_p = jnp.zeros((Lp, B, Hp))
    h_w = jnp.zeros((Lw, B, Hw)); c_w = jnp.zeros((Lw, B, Hw))
    p_logs, w_logs = [], []
    for t in range(S):
        p, w = p_emb[t], w_emb[t]
        lwh = jnp.tanh(h_w[-1] @ P["w2p_W"] + P["w2p_b"])
        x = jnp.concatenate([p, lwh], axis=1)
        new_hp, new_cp = [], []
        for l in range(Lp):
            hn, cn = cell(x, h_p[l], c_p[l], P["pos_Wih"][l], P["pos_bih"][l],
                          P["pos_Whh"][l], P["pos_bhh"][l], Hp)
            new_hp.append(hn); new_cp.append(cn); x = hn
        h_p, c_p = jnp.stack(new_hp), jnp.stack(new_cp)
        p_logs.append(jax.nn.log_softmax(x @ P["pproj_W"] + P["pproj_b"], axis=-1))
        lph = jnp.tanh(h_p[-1] @ P["p2w_W"] + P["p2w_b"])
        xw = jnp.concatenate([w, p, lph], axis=1)
        new_hw, new_cw = [], []
        for l in range(Lw):
            hn, cn = cell(xw, h_w[l], c_w[l], P["word_Wih"][l], P["word_bih"][l],
                          P["word_Whh"][l], P["word_bhh"][l], Hw)
            new_hw.append(hn); new_cw.append(cn); xw = hn
        h_w, c_w = jnp.stack(new_hw), jnp.stack(new_cw)
        proj = xw @ P["wproj1_W"] + P["wproj1_b"]
        w_logs.append(jax.nn.log_softmax(proj @ P["word_emb"].T + P["wproj2_b"], axis=-1))
    return (jnp.stack(p_logs), jnp.stack(w_logs)), ((h_p, c_p), (h_w, c_w))


# --------------------------------- main --------------------------------------

def init_params(key, cfg):
    Vp, Vw = cfg["Vp"], cfg["Vw"]
    Ep, Ew = cfg["Ep"], cfg["Ew"]
    Hp, Hw = cfg["Hp"], cfg["Hw"]
    Lp, Lw = cfg["Lp"], cfg["Lw"]
    ks = iter(jax.random.split(key, 64))
    n = lambda shape: (0.1 * jax.random.normal(next(ks), shape)).astype(jnp.float32)

    P = {
        "pos_emb": n((Vp, Ep)),
        "word_emb": n((Vw, Ew)),
        "w2p_W": n((Hw, Hw)), "w2p_b": n((1, Hw)),
        "p2w_W": n((Hp, Hp)), "p2w_b": n((1, Hp)),
        "pproj_W": n((Hp, Vp)), "pproj_b": n((1, Vp)),
        "wproj1_W": n((Hw, Ew)), "wproj1_b": n((1, Ew)),
        "wproj2_b": n((1, Vw)),
    }
    P["pos_Wih"] = [n(((Ep + Hw) if l == 0 else Hp, 4 * Hp)) for l in range(Lp)]
    P["pos_bih"] = [n((1, 4 * Hp)) for _ in range(Lp)]
    P["pos_Whh"] = [n((Hp, 4 * Hp)) for _ in range(Lp)]
    P["pos_bhh"] = [n((1, 4 * Hp)) for _ in range(Lp)]
    P["word_Wih"] = [n(((Ew + Ep + Hp) if l == 0 else Hw, 4 * Hw)) for l in range(Lw)]
    P["word_bih"] = [n((1, 4 * Hw)) for _ in range(Lw)]
    P["word_Whh"] = [n((Hw, 4 * Hw)) for _ in range(Lw)]
    P["word_bhh"] = [n((1, 4 * Hw)) for _ in range(Lw)]
    return P


if __name__ == "__main__":
    cfg = dict(Vp=16, Vw=32, Ep=8, Ew=16, Hp=16, Hw=32, Lp=2, Lw=2)
    S, B = 8, 4

    key = jax.random.PRNGKey(0)
    k_param, k_pos, k_word = jax.random.split(key, 3)
    P = init_params(k_param, cfg)

    pos_ids = jax.random.randint(k_pos, (S, B), 0, cfg["Vp"], dtype=jnp.int32)
    word_ids = jax.random.randint(k_word, (S, B), 0, cfg["Vw"], dtype=jnp.int32)

    # weights_dtype=jnp.bfloat16 is a nearly-free throughput/VMEM win on
    # v6e/v7x; kept f32 here so the tight reference check below stays valid.
    fwd = jax.jit(functools.partial(chain_pos_lm_forward, P=P, cfg=cfg,
                                    time_chunk=8, weights_dtype=jnp.float32))
    (p_log, w_log), ((h_p, c_p), (h_w, c_w)) = fwd(pos_ids, word_ids)
    jax.block_until_ready((p_log, w_log, h_p, c_p, h_w, c_w))

    # sanity check against pure-JAX reference (same semantics as PyTorch module)
    (p_ref, w_ref), ((hp_r, cp_r), (hw_r, cw_r)) = reference_forward(
        pos_ids, word_ids, P, cfg)
    for a, b in [(p_log, p_ref), (w_log, w_ref), (h_p, hp_r), (c_p, cp_r),
                 (h_w, hw_r), (c_w, cw_r)]:
        assert jnp.allclose(a, b, atol=1e-2, rtol=1e-2), "mismatch vs reference"

    print("KERNEL_OK")
</pallas_src>

<mosaic_0001>
module attributes {stable_mosaic.version = 11 : i64} {
  func.func @kernel(%arg0: i32, %arg1: memref<8x8x8xf32, #tpu.memory_space<vmem>>, %arg2: memref<8x8x16xf32, #tpu.memory_space<vmem>>, %arg3: memref<32x32xf32, #tpu.memory_space<vmem>>, %arg4: memref<1x32xf32, #tpu.memory_space<vmem>>, %arg5: memref<8x64xf32, #tpu.memory_space<vmem>>, %arg6: memref<32x64xf32, #tpu.memory_space<vmem>>, %arg7: memref<16x64xf32, #tpu.memory_space<vmem>>, %arg8: memref<1x64xf32, #tpu.memory_space<vmem>>, %arg9: memref<16x64xf32, #tpu.memory_space<vmem>>, %arg10: memref<16x64xf32, #tpu.memory_space<vmem>>, %arg11: memref<1x64xf32, #tpu.memory_space<vmem>>, %arg12: memref<16x16xf32, #tpu.memory_space<vmem>>, %arg13: memref<1x16xf32, #tpu.memory_space<vmem>>, %arg14: memref<16x128xf32, #tpu.memory_space<vmem>>, %arg15: memref<1x128xf32, #tpu.memory_space<vmem>>, %arg16: memref<16x128xf32, #tpu.memory_space<vmem>>, %arg17: memref<8x128xf32, #tpu.memory_space<vmem>>, %arg18: memref<16x128xf32, #tpu.memory_space<vmem>>, %arg19: memref<32x128xf32, #tpu.memory_space<vmem>>, %arg20: memref<1x128xf32, #tpu.memory_space<vmem>>, %arg21: memref<32x128xf32, #tpu.memory_space<vmem>>, %arg22: memref<32x128xf32, #tpu.memory_space<vmem>>, %arg23: memref<1x128xf32, #tpu.memory_space<vmem>>, %arg24: memref<32x16xf32, #tpu.memory_space<vmem>>, %arg25: memref<1x16xf32, #tpu.memory_space<vmem>>, %arg26: memref<16x128xf32, #tpu.memory_space<vmem>>, %arg27: memref<1x128xf32, #tpu.memory_space<vmem>>, %arg28: memref<8x8x128xf32, #tpu.memory_space<vmem>>, %arg29: memref<8x8x128xf32, #tpu.memory_space<vmem>>, %arg30: memref<2x8x16xf32, #tpu.memory_space<vmem>>, %arg31: memref<2x8x16xf32, #tpu.memory_space<vmem>>, %arg32: memref<2x8x32xf32, #tpu.memory_space<vmem>>, %arg33: memref<2x8x32xf32, #tpu.memory_space<vmem>>, %arg34: memref<64x16xf32, #tpu.memory_space<vmem>>, %arg35: memref<64x32xf32, #tpu.memory_space<vmem>>) attributes {dimension_semantics = [#tpu.dimension_semantics<arbitrary>], iteration_bounds = array<i64: 1>, scalar_prefetch = 0 : i64, scratch_operands = 2 : i64, tpu.core_type = #tpu.core_type<tc>, window_params = [{transform_indices = @transform_0, window_bounds = array<i64: 8, 8, 8>}, {transform_indices = @transform_1, window_bounds = array<i64: 8, 8, 16>}, {pipeline_mode = #tpu.pipeline_mode<synchronous>, transform_indices = @transform_2, window_bounds = array<i64: 32, 32>}, {pipeline_mode = #tpu.pipeline_mode<synchronous>, transform_indices = @transform_3, window_bounds = array<i64: 1, 32>}, {pipeline_mode = #tpu.pipeline_mode<synchronous>, transform_indices = @transform_4, window_bounds = array<i64: 8, 64>}, {pipeline_mode = #tpu.pipeline_mode<synchronous>, transform_indices = @transform_5, window_bounds = array<i64: 32, 64>}, {pipeline_mode = #tpu.pipeline_mode<synchronous>, transform_indices = @transform_6, window_bounds = array<i64: 16, 64>}, {pipeline_mode = #tpu.pipeline_mode<synchronous>, transform_indices = @transform_7, window_bounds = array<i64: 1, 64>}, {pipeline_mode = #tpu.pipeline_mode<synchronous>, transform_indices = @transform_8, window_bounds = array<i64: 16, 64>}, {pipeline_mode = #tpu.pipeline_mode<synchronous>, transform_indices = @transform_9, window_bounds = array<i64: 16, 64>}, {pipeline_mode = #tpu.pipeline_mode<synchronous>, transform_indices = @transform_10, window_bounds = array<i64: 1, 64>}, {pipeline_mode = #tpu.pipeline_mode<synchronous>, transform_indices = @transform_11, window_bounds = array<i64: 16, 16>}, {pipeline_mode = #tpu.pipeline_mode<synchronous>, transform_indices = @transform_12, window_bounds = array<i64: 1, 16>}, {pipeline_mode = #tpu.pipeline_mode<synchronous>, transform_indices = @transform_13, window_bounds = array<i64: 16, 128>}, {pipeline_mode = #tpu.pipeline_mode<synchronous>, transform_indices = @transform_14, window_bounds = array<i64: 1, 128>}, {pipeline_mode = #tpu.pipeline_mode<synchronous>, transform_indices = @transform_15, window_bounds = array<i64: 16, 128>}, {pipeline_mode = #tpu.pipeline_mode<synchronous>, transform_indices = @transform_16, window_bounds = array<i64: 8, 128>}, {pipeline_mode = #tpu.pipeline_mode<synchronous>, transform_indices = @transform_17, window_bounds = array<i64: 16, 128>}, {pipeline_mode = #tpu.pipeline_mode<synchronous>, transform_indices = @transform_18, window_bounds = array<i64: 32, 128>}, {pipeline_mode = #tpu.pipeline_mode<synchronous>, transform_indices = @transform_19, window_bounds = array<i64: 1, 128>}, {pipeline_mode = #tpu.pipeline_mode<synchronous>, transform_indices = @transform_20, window_bounds = array<i64: 32, 128>}, {pipeline_mode = #tpu.pipeline_mode<synchronous>, transform_indices = @transform_21, window_bounds = array<i64: 32, 128>}, {pipeline_mode = #tpu.pipeline_mode<synchronous>, transform_indices = @transform_22, window_bounds = array<i64: 1, 128>}, {pipeline_mode = #tpu.pipeline_mode<synchronous>, transform_indices = @transform_23, window_bounds = array<i64: 32, 16>}, {pipeline_mode = #tpu.pipeline_mode<synchronous>, transform_indices = @transform_24, window_bounds = array<i64: 1, 16>}, {pipeline_mode = #tpu.pipeline_mode<synchronous>, transform_indices = @transform_25, window_bounds = array<i64: 16, 128>}, {pipeline_mode = #tpu.pipeline_mode<synchronous>, transform_indices = @transform_26, window_bounds = array<i64: 1, 128>}, {transform_indices = @transform_27, window_bounds = array<i64: 8, 8, 128>}, {transform_indices = @transform_28, window_bounds = array<i64: 8, 8, 128>}, {pipeline_mode = #tpu.pipeline_mode<synchronous>, transform_indices = @transform_29, window_bounds = array<i64: 2, 8, 16>}, {pipeline_mode = #tpu.pipeline_mode<synchronous>, transform_indices = @transform_30, window_bounds = array<i64: 2, 8, 16>}, {pipeline_mode = #tpu.pipeline_mode<synchronous>, transform_indices = @transform_31, window_bounds = array<i64: 2, 8, 32>}, {pipeline_mode = #tpu.pipeline_mode<synchronous>, transform_indices = @transform_32, window_bounds = array<i64: 2, 8, 32>}]} {
    %c0_i32 = arith.constant 0 : i32
    %0 = arith.cmpi eq, %arg0, %c0_i32 : i32
    %1 = arith.extui %0 : i1 to i32
    %c0_i32_0 = arith.constant 0 : i32
    %2 = arith.cmpi ne, %1, %c0_i32_0 : i32
    scf.if %2 {
      %cst_740 = arith.constant 0.000000e+00 : f32
      %1519 = vector.broadcast %cst_740 : f32 to vector<2x8x16xf32>
      %c0_741 = arith.constant 0 : index
      %c0_742 = arith.constant 0 : index
      %c0_743 = arith.constant 0 : index
      %1520 = vector.load %arg30[%c0_741, %c0_742, %c0_743] : memref<2x8x16xf32, #tpu.memory_space<vmem>>, vector<2x8x16xf32>
      tpu.vector_store %arg30[%c0_741, %c0_742, %c0_743], %1519 {strides = array<i32>} : memref<2x8x16xf32, #tpu.memory_space<vmem>>, vector<2x8x16xf32>,
      %cst_744 = arith.constant 0.000000e+00 : f32
      %1521 = vector.broadcast %cst_744 : f32 to vector<2x8x16xf32>
      %c0_745 = arith.constant 0 : index
      %c0_746 = arith.constant 0 : index
      %c0_747 = arith.constant 0 : index
      %1522 = vector.load %arg31[%c0_745, %c0_746, %c0_747] : memref<2x8x16xf32, #tpu.memory_space<vmem>>, vector<2x8x16xf32>
      tpu.vector_store %arg31[%c0_745, %c0_746, %c0_747], %1521 {strides = array<i32>} : memref<2x8x16xf32, #tpu.memory_space<vmem>>, vector<2x8x16xf32>,
      %cst_748 = arith.constant 0.000000e+00 : f32
      %1523 = vector.broadcast %cst_748 : f32 to vector<2x8x32xf32>
      %c0_749 = arith.constant 0 : index
      %c0_750 = arith.constant 0 : index
      %c0_751 = arith.constant 0 : index
      %1524 = vector.load %arg32[%c0_749, %c0_750, %c0_751] : memref<2x8x32xf32, #tpu.memory_space<vmem>>, vector<2x8x32xf32>
      tpu.vector_store %arg32[%c0_749, %c0_750, %c0_751], %1523 {strides = array<i32>} : memref<2x8x32xf32, #tpu.memory_space<vmem>>, vector<2x8x32xf32>,
      %cst_752 = arith.constant 0.000000e+00 : f32
      %1525 = vector.broadcast %cst_752 : f32 to vector<2x8x32xf32>
      %c0_753 = arith.constant 0 : index
      %c0_754 = arith.constant 0 : index
      %c0_755 = arith.constant 0 : index
      %1526 = vector.load %arg33[%c0_753, %c0_754, %c0_755] : memref<2x8x32xf32, #tpu.memory_space<vmem>>, vector<2x8x32xf32>
      tpu.vector_store %arg33[%c0_753, %c0_754, %c0_755], %1525 {strides = array<i32>} : memref<2x8x32xf32, #tpu.memory_space<vmem>>, vector<2x8x32xf32>,
    } else {
    }
    %c0 = arith.constant 0 : index
    %c0_1 = arith.constant 0 : index
    %3 = vector.load %arg3[%c0, %c0_1] : memref<32x32xf32, #tpu.memory_space<vmem>>, vector<32x32xf32>
    %c0_2 = arith.constant 0 : index
    %c0_3 = arith.constant 0 : index
    %4 = vector.load %arg4[%c0_2, %c0_3] : memref<1x32xf32, #tpu.memory_space<vmem>>, vector<1x32xf32>
    %c0_4 = arith.constant 0 : index
    %c0_5 = arith.constant 0 : index
    %5 = vector.load %arg12[%c0_4, %c0_5] : memref<16x16xf32, #tpu.memory_space<vmem>>, vector<16x16xf32>
    %c0_6 = arith.constant 0 : index
    %c0_7 = arith.constant 0 : index
    %6 = vector.load %arg13[%c0_6, %c0_7] : memref<1x16xf32, #tpu.memory_space<vmem>>, vector<1x16xf32>
    %c0_8 = arith.constant 0 : index
    %c0_9 = arith.constant 0 : index
    %7 = vector.load %arg5[%c0_8, %c0_9] : memref<8x64xf32, #tpu.memory_space<vmem>>, vector<8x64xf32>
    %c0_10 = arith.constant 0 : index
    %c0_11 = arith.constant 0 : index
    %8 = vector.load %arg6[%c0_10, %c0_11] : memref<32x64xf32, #tpu.memory_space<vmem>>, vector<32x64xf32>
    %c0_12 = arith.constant 0 : index
    %c0_13 = arith.constant 0 : index
    %9 = vector.load %arg7[%c0_12, %c0_13] : memref<16x64xf32, #tpu.memory_space<vmem>>, vector<16x64xf32>
    %c0_14 = arith.constant 0 : index
    %c0_15 = arith.constant 0 : index
    %10 = vector.load %arg8[%c0_14, %c0_15] : memref<1x64xf32, #tpu.memory_space<vmem>>, vector<1x64xf32>
    %c0_16 = arith.constant 0 : index
    %c0_17 = arith.constant 0 : index
    %11 = vector.load %arg9[%c0_16, %c0_17] : memref<16x64xf32, #tpu.memory_space<vmem>>, vector<16x64xf32>
    %c0_18 = arith.constant 0 : index
    %c0_19 = arith.constant 0 : index
    %12 = vector.load %arg10[%c0_18, %c0_19] : memref<16x64xf32, #tpu.memory_space<vmem>>, vector<16x64xf32>
    %c0_20 = arith.constant 0 : index
    %c0_21 = arith.constant 0 : index
    %13 = vector.load %arg11[%c0_20, %c0_21] : memref<1x64xf32, #tpu.memory_space<vmem>>, vector<1x64xf32>
    %c0_22 = arith.constant 0 : index
    %c0_23 = arith.constant 0 : index
    %14 = vector.load %arg16[%c0_22, %c0_23] : memref<16x128xf32, #tpu.memory_space<vmem>>, vector<16x128xf32>
    %c0_24 = arith.constant 0 : index
    %c0_25 = arith.constant 0 : index
    %15 = vector.load %arg17[%c0_24, %c0_25] : memref<8x128xf32, #tpu.memory_space<vmem>>, vector<8x128xf32>
    %c0_26 = arith.constant 0 : index
    %c0_27 = arith.constant 0 : index
    %16 = vector.load %arg18[%c0_26, %c0_27] : memref<16x128xf32, #tpu.memory_space<vmem>>, vector<16x128xf32>
    %c0_28 = arith.constant 0 : index
    %c0_29 = arith.constant 0 : index
    %17 = vector.load %arg19[%c0_28, %c0_29] : memref<32x128xf32, #tpu.memory_space<vmem>>, vector<32x128xf32>
    %c0_30 = arith.constant 0 : index
    %c0_31 = arith.constant 0 : index
    %18 = vector.load %arg20[%c0_30, %c0_31] : memref<1x128xf32, #tpu.memory_space<vmem>>, vector<1x128xf32>
    %c0_32 = arith.constant 0 : index
    %c0_33 = arith.constant 0 : index
    %19 = vector.load %arg21[%c0_32, %c0_33] : memref<32x128xf32, #tpu.memory_space<vmem>>, vector<32x128xf32>
    %c0_34 = arith.constant 0 : index
    %c0_35 = arith.constant 0 : index
    %20 = vector.load %arg22[%c0_34, %c0_35] : memref<32x128xf32, #tpu.memory_space<vmem>>, vector<32x128xf32>
    %c0_36 = arith.constant 0 : index
    %c0_37 = arith.constant 0 : index
    %21 = vector.load %arg23[%c0_36, %c0_37] : memref<1x128xf32, #tpu.memory_space<vmem>>, vector<1x128xf32>
    %c0_38 = arith.constant 0 : index
    %c0_39 = arith.constant 0 : index
    %c0_40 = arith.constant 0 : index
    %22 = vector.load %arg1[%c0_38, %c0_39, %c0_40] : memref<8x8x8xf32, #tpu.memory_space<vmem>>, vector<1x8x8xf32>
    %23 = vector.shape_cast %22 : vector<1x8x8xf32> to vector<8x8xf32>
    %c0_41 = arith.constant 0 : index
    %c0_42 = arith.constant 0 : index
    %c0_43 = arith.constant 0 : index
    %24 = vector.load %arg2[%c0_41, %c0_42, %c0_43] : memref<8x8x16xf32, #tpu.memory_space<vmem>>, vector<1x8x16xf32>
    %25 = vector.shape_cast %24 : vector<1x8x16xf32> to vector<8x16xf32>
    %c1 = arith.constant 1 : index
    %c0_44 = arith.constant 0 : index
    %c0_45 = arith.constant 0 : index
    %26 = vector.load %arg32[%c1, %c0_44, %c0_45] : memref<2x8x32xf32, #tpu.memory_space<vmem>>, vector<1x8x32xf32>
    %27 = vector.shape_cast %26 : vector<1x8x32xf32> to vector<8x32xf32>
    %cst = arith.constant dense<0.000000e+00> : vector<8x32xf32>
    %28 = tpu.matmul %27, %3, %cst {dimension_numbers = #tpu.dot_dimension_numbers<[1], [0], [0], [1], [0, 0, 1, 1], [], []>} : vector<8x32xf32>, vector<32x32xf32>, vector<8x32xf32> -> vector<8x32xf32>
    %29 = vector.broadcast %4 : vector<1x32xf32> to vector<8x32xf32>
    %30 = arith.addf %28, %29 : vector<8x32xf32>
    %31 = math.tanh %30 : vector<8x32xf32>
    %cst_46 = arith.constant dense<0.000000e+00> : vector<8x64xf32>
    %32 = tpu.matmul %23, %7, %cst_46 {dimension_numbers = #tpu.dot_dimension_numbers<[1], [0], [0], [1], [0, 0, 1, 1], [], []>} : vector<8x8xf32>, vector<8x64xf32>, vector<8x64xf32> -> vector<8x64xf32>
    %cst_47 = arith.constant dense<0.000000e+00> : vector<8x64xf32>
    %33 = tpu.matmul %31, %8, %cst_47 {dimension_numbers = #tpu.dot_dimension_numbers<[1], [0], [0], [1], [0, 0, 1, 1], [], []>} : vector<8x32xf32>, vector<32x64xf32>, vector<8x64xf32> -> vector<8x64xf32>
    %34 = arith.addf %32, %33 : vector<8x64xf32>
    %c0_48 = arith.constant 0 : index
    %c0_49 = arith.constant 0 : index
    %c0_50 = arith.constant 0 : index
    %35 = vector.load %arg30[%c0_48, %c0_49, %c0_50] : memref<2x8x16xf32, #tpu.memory_space<vmem>>, vector<1x8x16xf32>
    %36 = vector.shape_cast %35 : vector<1x8x16xf32> to vector<8x16xf32>
    %cst_51 = arith.constant dense<0.000000e+00> : vector<8x64xf32>
    %37 = tpu.matmul %36, %9, %cst_51 {dimension_numbers = #tpu.dot_dimension_numbers<[1], [0], [0], [1], [0, 0, 1, 1], [], []>} : vector<8x16xf32>, vector<16x64xf32>, vector<8x64xf32> -> vector<8x64xf32>
    %38 = arith.addf %34, %37 : vector<8x64xf32>
    %39 = vector.broadcast %10 : vector<1x64xf32> to vector<8x64xf32>
    %40 = arith.addf %38, %39 : vector<8x64xf32>
    %c0_52 = arith.constant 0 : index
    %c0_53 = arith.constant 0 : index
    %c0_54 = arith.constant 0 : index
    %41 = vector.load %arg31[%c0_52, %c0_53, %c0_54] : memref<2x8x16xf32, #tpu.memory_space<vmem>>, vector<1x8x16xf32>
    %42 = vector.shape_cast %41 : vector<1x8x16xf32> to vector<8x16xf32>
    %43 = vector.extract_strided_slice %40 {offsets = [0, 0], sizes = [8, 16], strides = [1, 1]} : vector<8x64xf32> to vector<8x16xf32>
    %44 = arith.negf %43 : vector<8x16xf32>
    %45 = math.exp %44 : vector<8x16xf32>
    %cst_55 = arith.constant 1.000000e+00 : f32
    %46 = vector.broadcast %cst_55 : f32 to vector<8x16xf32>
    %47 = arith.addf %46, %45 : vector<8x16xf32>
    %48 = arith.divf %46, %47 : vector<8x16xf32>
    %49 = vector.extract_strided_slice %40 {offsets = [0, 16], sizes = [8, 16], strides = [1, 1]} : vector<8x64xf32> to vector<8x16xf32>
    %50 = arith.negf %49 : vector<8x16xf32>
    %51 = math.exp %50 : vector<8x16xf32>
    %cst_56 = arith.constant 1.000000e+00 : f32
    %52 = vector.broadcast %cst_56 : f32 to vector<8x16xf32>
    %53 = arith.addf %52, %51 : vector<8x16xf32>
    %54 = arith.divf %52, %53 : vector<8x16xf32>
    %55 = vector.extract_strided_slice %40 {offsets = [0, 32], sizes = [8, 16], strides = [1, 1]} : vector<8x64xf32> to vector<8x16xf32>
    %56 = math.tanh %55 : vector<8x16xf32>
    %57 = vector.extract_strided_slice %40 {offsets = [0, 48], sizes = [8, 16], strides = [1, 1]} : vector<8x64xf32> to vector<8x16xf32>
    %58 = arith.negf %57 : vector<8x16xf32>
    %59 = math.exp %58 : vector<8x16xf32>
    %cst_57 = arith.constant 1.000000e+00 : f32
    %60 = vector.broadcast %cst_57 : f32 to vector<8x16xf32>
    %61 = arith.addf %60, %59 : vector<8x16xf32>
    %62 = arith.divf %60, %61 : vector<8x16xf32>
    %63 = arith.mulf %54, %42 : vector<8x16xf32>
    %64 = arith.mulf %48, %56 : vector<8x16xf32>
    %65 = arith.addf %63, %64 : vector<8x16xf32>
    %66 = math.tanh %65 : vector<8x16xf32>
    %67 = arith.mulf %62, %66 : vector<8x16xf32>
    %c0_58 = arith.constant 0 : index
    %c0_59 = arith.constant 0 : index
    %c0_60 = arith.constant 0 : index
    %68 = vector.load %arg30[%c0_58, %c0_59, %c0_60] : memref<2x8x16xf32, #tpu.memory_space<vmem>>, vector<1x8x16xf32>
    %69 = vector.shape_cast %68 : vector<1x8x16xf32> to vector<8x16xf32>
    %70 = vector.shape_cast %67 : vector<8x16xf32> to vector<1x8x16xf32>
    tpu.vector_store %arg30[%c0_58, %c0_59, %c0_60], %70 {strides = array<i32>} : memref<2x8x16xf32, #tpu.memory_space<vmem>>, vector<1x8x16xf32>,
    %c0_61 = arith.constant 0 : index
    %c0_62 = arith.constant 0 : index
    %c0_63 = arith.constant 0 : index
    %71 = vector.load %arg31[%c0_61, %c0_62, %c0_63] : memref<2x8x16xf32, #tpu.memory_space<vmem>>, vector<1x8x16xf32>
    %72 = vector.shape_cast %71 : vector<1x8x16xf32> to vector<8x16xf32>
    %73 = vector.shape_cast %65 : vector<8x16xf32> to vector<1x8x16xf32>
    tpu.vector_store %arg31[%c0_61, %c0_62, %c0_63], %73 {strides = array<i32>} : memref<2x8x16xf32, #tpu.memory_space<vmem>>, vector<1x8x16xf32>,
    %cst_64 = arith.constant dense<0.000000e+00> : vector<8x64xf32>
    %74 = tpu.matmul %67, %11, %cst_64 {dimension_numbers = #tpu.dot_dimension_numbers<[1], [0], [0], [1], [0, 0, 1, 1], [], []>} : vector<8x16xf32>, vector<16x64xf32>, vector<8x64xf32> -> vector<8x64xf32>
    %c1_65 = arith.constant 1 : index
    %c0_66 = arith.constant 0 : index
    %c0_67 = arith.constant 0 : index
    %75 = vector.load %arg30[%c1_65, %c0_66, %c0_67] : memref<2x8x16xf32, #tpu.memory_space<vmem>>, vector<1x8x16xf32>
    %76 = vector.shape_cast %75 : vector<1x8x16xf32> to vector<8x16xf32>
    %cst_68 = arith.constant dense<0.000000e+00> : vector<8x64xf32>
    %77 = tpu.matmul %76, %12, %cst_68 {dimension_numbers = #tpu.dot_dimension_numbers<[1], [0], [0], [1], [0, 0, 1, 1], [], []>} : vector<8x16xf32>, vector<16x64xf32>, vector<8x64xf32> -> vector<8x64xf32>
    %78 = arith.addf %74, %77 : vector<8x64xf32>
    %79 = vector.broadcast %13 : vector<1x64xf32> to vector<8x64xf32>
    %80 = arith.addf %78, %79 : vector<8x64xf32>
    %c1_69 = arith.constant 1 : index
    %c0_70 = arith.constant 0 : index
    %c0_71 = arith.constant 0 : index
    %81 = vector.load %arg31[%c1_69, %c0_70, %c0_71] : memref<2x8x16xf32, #tpu.memory_space<vmem>>, vector<1x8x16xf32>
    %82 = vector.shape_cast %81 : vector<1x8x16xf32> to vector<8x16xf32>
    %83 = vector.extract_strided_slice %80 {offsets = [0, 0], sizes = [8, 16], strides = [1, 1]} : vector<8x64xf32> to vector<8x16xf32>
    %84 = arith.negf %83 : vector<8x16xf32>
    %85 = math.exp %84 : vector<8x16xf32>
    %cst_72 = arith.constant 1.000000e+00 : f32
    %86 = vector.broadcast %cst_72 : f32 to vector<8x16xf32>
    %87 = arith.addf %86, %85 : vector<8x16xf32>
    %88 = arith.divf %86, %87 : vector<8x16xf32>
    %89 = vector.extract_strided_slice %80 {offsets = [0, 16], sizes = [8, 16], strides = [1, 1]} : vector<8x64xf32> to vector<8x16xf32>
    %90 = arith.negf %89 : vector<8x16xf32>
    %91 = math.exp %90 : vector<8x16xf32>
    %cst_73 = arith.constant 1.000000e+00 : f32
    %92 = vector.broadcast %cst_73 : f32 to vector<8x16xf32>
    %93 = arith.addf %92, %91 : vector<8x16xf32>
    %94 = arith.divf %92, %93 : vector<8x16xf32>
    %95 = vector.extract_strided_slice %80 {offsets = [0, 32], sizes = [8, 16], strides = [1, 1]} : vector<8x64xf32> to vector<8x16xf32>
    %96 = math.tanh %95 : vector<8x16xf32>
    %97 = vector.extract_strided_slice %80 {offsets = [0, 48], sizes = [8, 16], strides = [1, 1]} : vector<8x64xf32> to vector<8x16xf32>
    %98 = arith.negf %97 : vector<8x16xf32>
    %99 = math.exp %98 : vector<8x16xf32>
    %cst_74 = arith.constant 1.000000e+00 : f32
    %100 = vector.broadcast %cst_74 : f32 to vector<8x16xf32>
    %101 = arith.addf %100, %99 : vector<8x16xf32>
    %102 = arith.divf %100, %101 : vector<8x16xf32>
    %103 = arith.mulf %94, %82 : vector<8x16xf32>
    %104 = arith.mulf %88, %96 : vector<8x16xf32>
    %105 = arith.addf %103, %104 : vector<8x16xf32>
    %106 = math.tanh %105 : vector<8x16xf32>
    %107 = arith.mulf %102, %106 : vector<8x16xf32>
    %c1_75 = arith.constant 1 : index
    %c0_76 = arith.constant 0 : index
    %c0_77 = arith.constant 0 : index
    %108 = vector.load %arg30[%c1_75, %c0_76, %c0_77] : memref<2x8x16xf32, #tpu.memory_space<vmem>>, vector<1x8x16xf32>
    %109 = vector.shape_cast %108 : vector<1x8x16xf32> to vector<8x16xf32>
    %110 = vector.shape_cast %107 : vector<8x16xf32> to vector<1x8x16xf32>
    tpu.vector_store %arg30[%c1_75, %c0_76, %c0_77], %110 {strides = array<i32>} : memref<2x8x16xf32, #tpu.memory_space<vmem>>, vector<1x8x16xf32>,
    %c1_78 = arith.constant 1 : index
    %c0_79 = arith.constant 0 : index
    %c0_80 = arith.constant 0 : index
    %111 = vector.load %arg31[%c1_78, %c0_79, %c0_80] : memref<2x8x16xf32, #tpu.memory_space<vmem>>, vector<1x8x16xf32>
    %112 = vector.shape_cast %111 : vector<1x8x16xf32> to vector<8x16xf32>
    %113 = vector.shape_cast %105 : vector<8x16xf32> to vector<1x8x16xf32>
    tpu.vector_store %arg31[%c1_78, %c0_79, %c0_80], %113 {strides = array<i32>} : memref<2x8x16xf32, #tpu.memory_space<vmem>>, vector<1x8x16xf32>,
    %c0_81 = arith.constant 0 : index
    %c0_82 = arith.constant 0 : index
    %114 = vector.load %arg34[%c0_81, %c0_82] : memref<64x16xf32, #tpu.memory_space<vmem>>, vector<8x16xf32>
    tpu.vector_store %arg34[%c0_81, %c0_82], %107 {strides = array<i32>} : memref<64x16xf32, #tpu.memory_space<vmem>>, vector<8x16xf32>,
    %cst_83 = arith.constant dense<0.000000e+00> : vector<8x16xf32>
    %115 = tpu.matmul %107, %5, %cst_83 {dimension_numbers = #tpu.dot_dimension_numbers<[1], [0], [0], [1], [0, 0, 1, 1], [], []>} : vector<8x16xf32>, vector<16x16xf32>, vector<8x16xf32> -> vector<8x16xf32>
    %116 = vector.broadcast %6 : vector<1x16xf32> to vector<8x16xf32>
    %117 = arith.addf %115, %116 : vector<8x16xf32>
    %118 = math.tanh %117 : vector<8x16xf32>
    %cst_84 = arith.constant dense<0.000000e+00> : vector<8x128xf32>
    %119 = tpu.matmul %25, %14, %cst_84 {dimension_numbers = #tpu.dot_dimension_numbers<[1], [0], [0], [1], [0, 0, 1, 1], [], []>} : vector<8x16xf32>, vector<16x128xf32>, vector<8x128xf32> -> vector<8x128xf32>
    %cst_85 = arith.constant dense<0.000000e+00> : vector<8x128xf32>
    %120 = tpu.matmul %23, %15, %cst_85 {dimension_numbers = #tpu.dot_dimension_numbers<[1], [0], [0], [1], [0, 0, 1, 1], [], []>} : vector<8x8xf32>, vector<8x128xf32>, vector<8x128xf32> -> vector<8x128xf32>
    %121 = arith.addf %119, %120 : vector<8x128xf32>
    %cst_86 = arith.constant dense<0.000000e+00> : vector<8x128xf32>
    %122 = tpu.matmul %118, %16, %cst_86 {dimension_numbers = #tpu.dot_dimension_numbers<[1], [0], [0], [1], [0, 0, 1, 1], [], []>} : vector<8x16xf32>, vector<16x128xf32>, vector<8x128xf32> -> vector<8x128xf32>
    %123 = arith.addf %121, %122 : vector<8x128xf32>
    %c0_87 = arith.constant 0 : index
    %c0_88 = arith.constant 0 : index
    %c0_89 = arith.constant 0 : index
    %124 = vector.load %arg32[%c0_87, %c0_88, %c0_89] : memref<2x8x32xf32, #tpu.memory_space<vmem>>, vector<1x8x32xf32>
    %125 = vector.shape_cast %124 : vector<1x8x32xf32> to vector<8x32xf32>
    %cst_90 = arith.constant dense<0.000000e+00> : vector<8x128xf32>
    %126 = tpu.matmul %125, %17, %cst_90 {dimension_numbers = #tpu.dot_dimension_numbers<[1], [0], [0], [1], [0, 0, 1, 1], [], []>} : vector<8x32xf32>, vector<32x128xf32>, vector<8x128xf32> -> vector<8x128xf32>
    %127 = arith.addf %123, %126 : vector<8x128xf32>
    %128 = vector.broadcast %18 : vector<1x128xf32> to vector<8x128xf32>
    %129 = arith.addf %127, %128 : vector<8x128xf32>
    %c0_91 = arith.constant 0 : index
    %c0_92 = arith.constant 0 : index
    %c0_93 = arith.constant 0 : index
    %130 = vector.load %arg33[%c0_91, %c0_92, %c0_93] : memref<2x8x32xf32, #tpu.memory_space<vmem>>, vector<1x8x32xf32>
    %131 = vector.shape_cast %130 : vector<1x8x32xf32> to vector<8x32xf32>
    %132 = vector.extract_strided_slice %129 {offsets = [0, 0], sizes = [8, 32], strides = [1, 1]} : vector<8x128xf32> to vector<8x32xf32>
    %133 = arith.negf %132 : vector<8x32xf32>
    %134 = math.exp %133 : vector<8x32xf32>
    %cst_94 = arith.constant 1.000000e+00 : f32
    %135 = vector.broadcast %cst_94 : f32 to vector<8x32xf32>
    %136 = arith.addf %135, %134 : vector<8x32xf32>
    %137 = arith.divf %135, %136 : vector<8x32xf32>
    %138 = vector.extract_strided_slice %129 {offsets = [0, 32], sizes = [8, 32], strides = [1, 1]} : vector<8x128xf32> to vector<8x32xf32>
    %139 = arith.negf %138 : vector<8x32xf32>
    %140 = math.exp %139 : vector<8x32xf32>
    %cst_95 = arith.constant 1.000000e+00 : f32
    %141 = vector.broadcast %cst_95 : f32 to vector<8x32xf32>
    %142 = arith.addf %141, %140 : vector<8x32xf32>
    %143 = arith.divf %141, %142 : vector<8x32xf32>
    %144 = vector.extract_strided_slice %129 {offsets = [0, 64], sizes = [8, 32], strides = [1, 1]} : vector<8x128xf32> to vector<8x32xf32>
    %145 = math.tanh %144 : vector<8x32xf32>
    %146 = vector.extract_strided_slice %129 {offsets = [0, 96], sizes = [8, 32], strides = [1, 1]} : vector<8x128xf32> to vector<8x32xf32>
    %147 = arith.negf %146 : vector<8x32xf32>
    %148 = math.exp %147 : vector<8x32xf32>
    %cst_96 = arith.constant 1.000000e+00 : f32
    %149 = vector.broadcast %cst_96 : f32 to vector<8x32xf32>
    %150 = arith.addf %149, %148 : vector<8x32xf32>
    %151 = arith.divf %149, %150 : vector<8x32xf32>
    %152 = arith.mulf %143, %131 : vector<8x32xf32>
    %153 = arith.mulf %137, %145 : vector<8x32xf32>
    %154 = arith.addf %152, %153 : vector<8x32xf32>
    %155 = math.tanh %154 : vector<8x32xf32>
    %156 = arith.mulf %151, %155 : vector<8x32xf32>
    %c0_97 = arith.constant 0 : index
    %c0_98 = arith.constant 0 : index
    %c0_99 = arith.constant 0 : index
    %157 = vector.load %arg32[%c0_97, %c0_98, %c0_99] : memref<2x8x32xf32, #tpu.memory_space<vmem>>, vector<1x8x32xf32>
    %158 = vector.shape_cast %157 : vector<1x8x32xf32> to vector<8x32xf32>
    %159 = vector.shape_cast %156 : vector<8x32xf32> to vector<1x8x32xf32>
    tpu.vector_store %arg32[%c0_97, %c0_98, %c0_99], %159 {strides = array<i32>} : memref<2x8x32xf32, #tpu.memory_space<vmem>>, vector<1x8x32xf32>,
    %c0_100 = arith.constant 0 : index
    %c0_101 = arith.constant 0 : index
    %c0_102 = arith.constant 0 : index
    %160 = vector.load %arg33[%c0_100, %c0_101, %c0_102] : memref<2x8x32xf32, #tpu.memory_space<vmem>>, vector<1x8x32xf32>
    %161 = vector.shape_cast %160 : vector<1x8x32xf32> to vector<8x32xf32>
    %162 = vector.shape_cast %154 : vector<8x32xf32> to vector<1x8x32xf32>
    tpu.vector_store %arg33[%c0_100, %c0_101, %c0_102], %162 {strides = array<i32>} : memref<2x8x32xf32, #tpu.memory_space<vmem>>, vector<1x8x32xf32>,
    %cst_103 = arith.constant dense<0.000000e+00> : vector<8x128xf32>
    %163 = tpu.matmul %156, %19, %cst_103 {dimension_numbers = #tpu.dot_dimension_numbers<[1], [0], [0], [1], [0, 0, 1, 1], [], []>} : vector<8x32xf32>, vector<32x128xf32>, vector<8x128xf32> -> vector<8x128xf32>
    %c1_104 = arith.constant 1 : index
    %c0_105 = arith.constant 0 : index
    %c0_106 = arith.constant 0 : index
    %164 = vector.load %arg32[%c1_104, %c0_105, %c0_106] : memref<2x8x32xf32, #tpu.memory_space<vmem>>, vector<1x8x32xf32>
    %165 = vector.shape_cast %164 : vector<1x8x32xf32> to vector<8x32xf32>
    %cst_107 = arith.constant dense<0.000000e+00> : vector<8x128xf32>
    %166 = tpu.matmul %165, %20, %cst_107 {dimension_numbers = #tpu.dot_dimension_numbers<[1], [0], [0], [1], [0, 0, 1, 1], [], []>} : vector<8x32xf32>, vector<32x128xf32>, vector<8x128xf32> -> vector<8x128xf32>
    %167 = arith.addf %163, %166 : vector<8x128xf32>
    %168 = vector.broadcast %21 : vector<1x128xf32> to vector<8x128xf32>
    %169 = arith.addf %167, %168 : vector<8x128xf32>
    %c1_108 = arith.constant 1 : index
    %c0_109 = arith.constant 0 : index
    %c0_110 = arith.constant 0 : index
    %170 = vector.load %arg33[%c1_108, %c0_109, %c0_110] : memref<2x8x32xf32, #tpu.memory_space<vmem>>, vector<1x8x32xf32>
    %171 = vector.shape_cast %170 : vector<1x8x32xf32> to vector<8x32xf32>
    %172 = vector.extract_strided_slice %169 {offsets = [0, 0], sizes = [8, 32], strides = [1, 1]} : vector<8x128xf32> to vector<8x32xf32>
    %173 = arith.negf %172 : vector<8x32xf32>
    %174 = math.exp %173 : vector<8x32xf32>
    %cst_111 = arith.constant 1.000000e+00 : f32
    %175 = vector.broadcast %cst_111 : f32 to vector<8x32xf32>
    %176 = arith.addf %175, %174 : vector<8x32xf32>
    %177 = arith.divf %175, %176 : vector<8x32xf32>
    %178 = vector.extract_strided_slice %169 {offsets = [0, 32], sizes = [8, 32], strides = [1, 1]} : vector<8x128xf32> to vector<8x32xf32>
    %179 = arith.negf %178 : vector<8x32xf32>
    %180 = math.exp %179 : vector<8x32xf32>
    %cst_112 = arith.constant 1.000000e+00 : f32
    %181 = vector.broadcast %cst_112 : f32 to vector<8x32xf32>
    %182 = arith.addf %181, %180 : vector<8x32xf32>
    %183 = arith.divf %181, %182 : vector<8x32xf32>
    %184 = vector.extract_strided_slice %169 {offsets = [0, 64], sizes = [8, 32], strides = [1, 1]} : vector<8x128xf32> to vector<8x32xf32>
    %185 = math.tanh %184 : vector<8x32xf32>
    %186 = vector.extract_strided_slice %169 {offsets = [0, 96], sizes = [8, 32], strides = [1, 1]} : vector<8x128xf32> to vector<8x32xf32>
    %187 = arith.negf %186 : vector<8x32xf32>
    %188 = math.exp %187 : vector<8x32xf32>
    %cst_113 = arith.constant 1.000000e+00 : f32
    %189 = vector.broadcast %cst_113 : f32 to vector<8x32xf32>
    %190 = arith.addf %189, %188 : vector<8x32xf32>
    %191 = arith.divf %189, %190 : vector<8x32xf32>
    %192 = arith.mulf %183, %171 : vector<8x32xf32>
    %193 = arith.mulf %177, %185 : vector<8x32xf32>
    %194 = arith.addf %192, %193 : vector<8x32xf32>
    %195 = math.tanh %194 : vector<8x32xf32>
    %196 = arith.mulf %191, %195 : vector<8x32xf32>
    %c1_114 = arith.constant 1 : index
    %c0_115 = arith.constant 0 : index
    %c0_116 = arith.constant 0 : index
    %197 = vector.load %arg32[%c1_114, %c0_115, %c0_116] : memref<2x8x32xf32, #tpu.memory_space<vmem>>, vector<1x8x32xf32>
    %198 = vector.shape_cast %197 : vector<1x8x32xf32> to vector<8x32xf32>
    %199 = vector.shape_cast %196 : vector<8x32xf32> to vector<1x8x32xf32>
    tpu.vector_store %arg32[%c1_114, %c0_115, %c0_116], %199 {strides = array<i32>} : memref<2x8x32xf32, #tpu.memory_space<vmem>>, vector<1x8x32xf32>,
    %c1_117 = arith.constant 1 : index
    %c0_118 = arith.constant 0 : index
    %c0_119 = arith.constant 0 : index
    %200 = vector.load %arg33[%c1_117, %c0_118, %c0_119] : memref<2x8x32xf32, #tpu.memory_space<vmem>>, vector<1x8x32xf32>
    %201 = vector.shape_cast %200 : vector<1x8x32xf32> to vector<8x32xf32>
    %202 = vector.shape_cast %194 : vector<8x32xf32> to vector<1x8x32xf32>
    tpu.vector_store %arg33[%c1_117, %c0_118, %c0_119], %202 {strides = array<i32>} : memref<2x8x32xf32, #tpu.memory_space<vmem>>, vector<1x8x32xf32>,
    %c0_120 = arith.constant 0 : index
    %c0_121 = arith.constant 0 : index
    %203 = vector.load %arg35[%c0_120, %c0_121] : memref<64x32xf32, #tpu.memory_space<vmem>>, vector<8x32xf32>
    tpu.vector_store %arg35[%c0_120, %c0_121], %196 {strides = array<i32>} : memref<64x32xf32, #tpu.memory_space<vmem>>, vector<8x32xf32>,
    %c1_122 = arith.constant 1 : index
    %c0_123 = arith.constant 0 : index
    %c0_124 = arith.constant 0 : index
    %204 = vector.load %arg1[%c1_122, %c0_123, %c0_124] : memref<8x8x8xf32, #tpu.memory_space<vmem>>, vector<1x8x8xf32>
    %205 = vector.shape_cast %204 : vector<1x8x8xf32> to vector<8x8xf32>
    %c1_125 = arith.constant 1 : index
    %c0_126 = arith.constant 0 : index
    %c0_127 = arith.constant 0 : index
    %206 = vector.load %arg2[%c1_125, %c0_126, %c0_127] : memref<8x8x16xf32, #tpu.memory_space<vmem>>, vector<1x8x16xf32>
    %207 = vector.shape_cast %206 : vector<1x8x16xf32> to vector<8x16xf32>
    %c1_128 = arith.constant 1 : index
    %c0_129 = arith.constant 0 : index
    %c0_130 = arith.constant 0 : index
    %208 = vector.load %arg32[%c1_128, %c0_129, %c0_130] : memref<2x8x32xf32, #tpu.memory_space<vmem>>, vector<1x8x32xf32>
    %209 = vector.shape_cast %208 : vector<1x8x32xf32> to vector<8x32xf32>
    %cst_131 = arith.constant dense<0.000000e+00> : vector<8x32xf32>
    %210 = tpu.matmul %209, %3, %cst_131 {dimension_numbers = #tpu.dot_dimension_numbers<[1], [0], [0], [1], [0, 0, 1, 1], [], []>} : vector<8x32xf32>, vector<32x32xf32>, vector<8x32xf32> -> vector<8x32xf32>
    %211 = vector.broadcast %4 : vector<1x32xf32> to vector<8x32xf32>
    %212 = arith.addf %210, %211 : vector<8x32xf32>
    %213 = math.tanh %212 : vector<8x32xf32>
    %cst_132 = arith.constant dense<0.000000e+00> : vector<8x64xf32>
    %214 = tpu.matmul %205, %7, %cst_132 {dimension_numbers = #tpu.dot_dimension_numbers<[1], [0], [0], [1], [0, 0, 1, 1], [], []>} : vector<8x8xf32>, vector<8x64xf32>, vector<8x64xf32> -> vector<8x64xf32>
    %cst_133 = arith.constant dense<0.000000e+00> : vector<8x64xf32>
    %215 = tpu.matmul %213, %8, %cst_133 {dimension_numbers = #tpu.dot_dimension_numbers<[1], [0], [0], [1], [0, 0, 1, 1], [], []>} : vector<8x32xf32>, vector<32x64xf32>, vector<8x64xf32> -> vector<8x64xf32>
    %216 = arith.addf %214, %215 : vector<8x64xf32>
    %c0_134 = arith.constant 0 : index
    %c0_135 = arith.constant 0 : index
    %c0_136 = arith.constant 0 : index
    %217 = vector.load %arg30[%c0_134, %c0_135, %c0_136] : memref<2x8x16xf32, #tpu.memory_space<vmem>>, vector<1x8x16xf32>
    %218 = vector.shape_cast %217 : vector<1x8x16xf32> to vector<8x16xf32>
    %cst_137 = arith.constant dense<0.000000e+00> : vector<8x64xf32>
    %219 = tpu.matmul %218, %9, %cst_137 {dimension_numbers = #tpu.dot_dimension_numbers<[1], [0], [0], [1], [0, 0, 1, 1], [], []>} : vector<8x16xf32>, vector<16x64xf32>, vector<8x64xf32> -> vector<8x64xf32>
    %220 = arith.addf %216, %219 : vector<8x64xf32>
    %221 = vector.broadcast %10 : vector<1x64xf32> to vector<8x64xf32>
    %222 = arith.addf %220, %221 : vector<8x64xf32>
    %c0_138 = arith.constant 0 : index
    %c0_139 = arith.constant 0 : index
    %c0_140 = arith.constant 0 : index
    %223 = vector.load %arg31[%c0_138, %c0_139, %c0_140] : memref<2x8x16xf32, #tpu.memory_space<vmem>>, vector<1x8x16xf32>
    %224 = vector.shape_cast %223 : vector<1x8x16xf32> to vector<8x16xf32>
    %225 = vector.extract_strided_slice %222 {offsets = [0, 0], sizes = [8, 16], strides = [1, 1]} : vector<8x64xf32> to vector<8x16xf32>
    %226 = arith.negf %225 : vector<8x16xf32>
    %227 = math.exp %226 : vector<8x16xf32>
    %cst_141 = arith.constant 1.000000e+00 : f32
    %228 = vector.broadcast %cst_141 : f32 to vector<8x16xf32>
    %229 = arith.addf %228, %227 : vector<8x16xf32>
    %230 = arith.divf %228, %229 : vector<8x16xf32>
    %231 = vector.extract_strided_slice %222 {offsets = [0, 16], sizes = [8, 16], strides = [1, 1]} : vector<8x64xf32> to vector<8x16xf32>
    %232 = arith.negf %231 : vector<8x16xf32>
    %233 = math.exp %232 : vector<8x16xf32>
    %cst_142 = arith.constant 1.000000e+00 : f32
    %234 = vector.broadcast %cst_142 : f32 to vector<8x16xf32>
    %235 = arith.addf %234, %233 : vector<8x16xf32>
    %236 = arith.divf %234, %235 : vector<8x16xf32>
    %237 = vector.extract_strided_slice %222 {offsets = [0, 32], sizes = [8, 16], strides = [1, 1]} : vector<8x64xf32> to vector<8x16xf32>
    %238 = math.tanh %237 : vector<8x16xf32>
    %239 = vector.extract_strided_slice %222 {offsets = [0, 48], sizes = [8, 16], strides = [1, 1]} : vector<8x64xf32> to vector<8x16xf32>
    %240 = arith.negf %239 : vector<8x16xf32>
    %241 = math.exp %240 : vector<8x16xf32>
    %cst_143 = arith.constant 1.000000e+00 : f32
    %242 = vector.broadcast %cst_143 : f32 to vector<8x16xf32>
    %243 = arith.addf %242, %241 : vector<8x16xf32>
    %244 = arith.divf %242, %243 : vector<8x16xf32>
    %245 = arith.mulf %236, %224 : vector<8x16xf32>
    %246 = arith.mulf %230, %238 : vector<8x16xf32>
    %247 = arith.addf %245, %246 : vector<8x16xf32>
    %248 = math.tanh %247 : vector<8x16xf32>
    %249 = arith.mulf %244, %248 : vector<8x16xf32>
    %c0_144 = arith.constant 0 : index
    %c0_145 = arith.constant 0 : index
    %c0_146 = arith.constant 0 : index
    %250 = vector.load %arg30[%c0_144, %c0_145, %c0_146] : memref<2x8x16xf32, #tpu.memory_space<vmem>>, vector<1x8x16xf32>
    %251 = vector.shape_cast %250 : vector<1x8x16xf32> to vector<8x16xf32>
    %252 = vector.shape_cast %249 : vector<8x16xf32> to vector<1x8x16xf32>
    tpu.vector_store %arg30[%c0_144, %c0_145, %c0_146], %252 {strides = array<i32>} : memref<2x8x16xf32, #tpu.memory_space<vmem>>, vector<1x8x16xf32>,
    %c0_147 = arith.constant 0 : index
    %c0_148 = arith.constant 0 : index
    %c0_149 = arith.constant 0 : index
    %253 = vector.load %arg31[%c0_147, %c0_148, %c0_149] : memref<2x8x16xf32, #tpu.memory_space<vmem>>, vector<1x8x16xf32>
    %254 = vector.shape_cast %253 : vector<1x8x16xf32> to vector<8x16xf32>
    %255 = vector.shape_cast %247 : vector<8x16xf32> to vector<1x8x16xf32>
    tpu.vector_store %arg31[%c0_147, %c0_148, %c0_149], %255 {strides = array<i32>} : memref<2x8x16xf32, #tpu.memory_space<vmem>>, vector<1x8x16xf32>,
    %cst_150 = arith.constant dense<0.000000e+00> : vector<8x64xf32>
    %256 = tpu.matmul %249, %11, %cst_150 {dimension_numbers = #tpu.dot_dimension_numbers<[1], [0], [0], [1], [0, 0, 1, 1], [], []>} : vector<8x16xf32>, vector<16x64xf32>, vector<8x64xf32> -> vector<8x64xf32>
    %c1_151 = arith.constant 1 : index
    %c0_152 = arith.constant 0 : index
    %c0_153 = arith.constant 0 : index
    %257 = vector.load %arg30[%c1_151, %c0_152, %c0_153] : memref<2x8x16xf32, #tpu.memory_space<vmem>>, vector<1x8x16xf32>
    %258 = vector.shape_cast %257 : vector<1x8x16xf32> to vector<8x16xf32>
    %cst_154 = arith.constant dense<0.000000e+00> : vector<8x64xf32>
    %259 = tpu.matmul %258, %12, %cst_154 {dimension_numbers = #tpu.dot_dimension_numbers<[1], [0], [0], [1], [0, 0, 1, 1], [], []>} : vector<8x16xf32>, vector<16x64xf32>, vector<8x64xf32> -> vector<8x64xf32>
    %260 = arith.addf %256, %259 : vector<8x64xf32>
    %261 = vector.broadcast %13 : vector<1x64xf32> to vector<8x64xf32>
    %262 = arith.addf %260, %261 : vector<8x64xf32>
    %c1_155 = arith.constant 1 : index
    %c0_156 = arith.constant 0 : index
    %c0_157 = arith.constant 0 : index
    %263 = vector.load %arg31[%c1_155, %c0_156, %c0_157] : memref<2x8x16xf32, #tpu.memory_space<vmem>>, vector<1x8x16xf32>
    %264 = vector.shape_cast %263 : vector<1x8x16xf32> to vector<8x16xf32>
    %265 = vector.extract_strided_slice %262 {offsets = [0, 0], sizes = [8, 16], strides = [1, 1]} : vector<8x64xf32> to vector<8x16xf32>
    %266 = arith.negf %265 : vector<8x16xf32>
    %267 = math.exp %266 : vector<8x16xf32>
    %cst_158 = arith.constant 1.000000e+00 : f32
    %268 = vector.broadcast %cst_158 : f32 to vector<8x16xf32>
    %269 = arith.addf %268, %267 : vector<8x16xf32>
    %270 = arith.divf %268, %269 : vector<8x16xf32>
    %271 = vector.extract_strided_slice %262 {offsets = [0, 16], sizes = [8, 16], strides = [1, 1]} : vector<8x64xf32> to vector<8x16xf32>
    %272 = arith.negf %271 : vector<8x16xf32>
    %273 = math.exp %272 : vector<8x16xf32>
    %cst_159 = arith.constant 1.000000e+00 : f32
    %274 = vector.broadcast %cst_159 : f32 to vector<8x16xf32>
    %275 = arith.addf %274, %273 : vector<8x16xf32>
    %276 = arith.divf %274, %275 : vector<8x16xf32>
    %277 = vector.extract_strided_slice %262 {offsets = [0, 32], sizes = [8, 16], strides = [1, 1]} : vector<8x64xf32> to vector<8x16xf32>
    %278 = math.tanh %277 : vector<8x16xf32>
    %279 = vector.extract_strided_slice %262 {offsets = [0, 48], sizes = [8, 16], strides = [1, 1]} : vector<8x64xf32> to vector<8x16xf32>
    %280 = arith.negf %279 : vector<8x16xf32>
    %281 = math.exp %280 : vector<8x16xf32>
    %cst_160 = arith.constant 1.000000e+00 : f32
    %282 = vector.broadcast %cst_160 : f32 to vector<8x16xf32>
    %283 = arith.addf %282, %281 : vector<8x16xf32>
    %284 = arith.divf %282, %283 : vector<8x16xf32>
    %285 = arith.mulf %276, %264 : vector<8x16xf32>
    %286 = arith.mulf %270, %278 : vector<8x16xf32>
    %287 = arith.addf %285, %286 : vector<8x16xf32>
    %288 = math.tanh %287 : vector<8x16xf32>
    %289 = arith.mulf %284, %288 : vector<8x16xf32>
    %c1_161 = arith.constant 1 : index
    %c0_162 = arith.constant 0 : index
    %c0_163 = arith.constant 0 : index
    %290 = vector.load %arg30[%c1_161, %c0_162, %c0_163] : memref<2x8x16xf32, #tpu.memory_space<vmem>>, vector<1x8x16xf32>
    %291 = vector.shape_cast %290 : vector<1x8x16xf32> to vector<8x16xf32>
    %292 = vector.shape_cast %289 : vector<8x16xf32> to vector<1x8x16xf32>
    tpu.vector_store %arg30[%c1_161, %c0_162, %c0_163], %292 {strides = array<i32>} : memref<2x8x16xf32, #tpu.memory_space<vmem>>, vector<1x8x16xf32>,
    %c1_164 = arith.constant 1 : index
    %c0_165 = arith.constant 0 : index
    %c0_166 = arith.constant 0 : index
    %293 = vector.load %arg31[%c1_164, %c0_165, %c0_166] : memref<2x8x16xf32, #tpu.memory_space<vmem>>, vector<1x8x16xf32>
    %294 = vector.shape_cast %293 : vector<1x8x16xf32> to vector<8x16xf32>
    %295 = vector.shape_cast %287 : vector<8x16xf32> to vector<1x8x16xf32>
    tpu.vector_store %arg31[%c1_164, %c0_165, %c0_166], %295 {strides = array<i32>} : memref<2x8x16xf32, #tpu.memory_space<vmem>>, vector<1x8x16xf32>,
    %c8 = arith.constant 8 : index
    %c0_167 = arith.constant 0 : index
    %296 = vector.load %arg34[%c8, %c0_167] : memref<64x16xf32, #tpu.memory_space<vmem>>, vector<8x16xf32>
    tpu.vector_store %arg34[%c8, %c0_167], %289 {strides = array<i32>} : memref<64x16xf32, #tpu.memory_space<vmem>>, vector<8x16xf32>,
    %cst_168 = arith.constant dense<0.000000e+00> : vector<8x16xf32>
    %297 = tpu.matmul %289, %5, %cst_168 {dimension_numbers = #tpu.dot_dimension_numbers<[1], [0], [0], [1], [0, 0, 1, 1], [], []>} : vector<8x16xf32>, vector<16x16xf32>, vector<8x16xf32> -> vector<8x16xf32>
    %298 = vector.broadcast %6 : vector<1x16xf32> to vector<8x16xf32>
    %299 = arith.addf %297, %298 : vector<8x16xf32>
    %300 = math.tanh %299 : vector<8x16xf32>
    %cst_169 = arith.constant dense<0.000000e+00> : vector<8x128xf32>
    %301 = tpu.matmul %207, %14, %cst_169 {dimension_numbers = #tpu.dot_dimension_numbers<[1], [0], [0], [1], [0, 0, 1, 1], [], []>} : vector<8x16xf32>, vector<16x128xf32>, vector<8x128xf32> -> vector<8x128xf32>
    %cst_170 = arith.constant dense<0.000000e+00> : vector<8x128xf32>
    %302 = tpu.matmul %205, %15, %cst_170 {dimension_numbers = #tpu.dot_dimension_numbers<[1], [0], [0], [1], [0, 0, 1, 1], [], []>} : vector<8x8xf32>, vector<8x128xf32>, vector<8x128xf32> -> vector<8x128xf32>
    %303 = arith.addf %301, %302 : vector<8x128xf32>
    %cst_171 = arith.constant dense<0.000000e+00> : vector<8x128xf32>
    %304 = tpu.matmul %300, %16, %cst_171 {dimension_numbers = #tpu.dot_dimension_numbers<[1], [0], [0], [1], [0, 0, 1, 1], [], []>} : vector<8x16xf32>, vector<16x128xf32>, vector<8x128xf32> -> vector<8x128xf32>
    %305 = arith.addf %303, %304 : vector<8x128xf32>
    %c0_172 = arith.constant 0 : index
    %c0_173 = arith.constant 0 : index
    %c0_174 = arith.constant 0 : index
    %306 = vector.load %arg32[%c0_172, %c0_173, %c0_174] : memref<2x8x32xf32, #tpu.memory_space<vmem>>, vector<1x8x32xf32>
    %307 = vector.shape_cast %306 : vector<1x8x32xf32> to vector<8x32xf32>
    %cst_175 = arith.constant dense<0.000000e+00> : vector<8x128xf32>
    %308 = tpu.matmul %307, %17, %cst_175 {dimension_numbers = #tpu.dot_dimension_numbers<[1], [0], [0], [1], [0, 0, 1, 1], [], []>} : vector<8x32xf32>, vector<32x128xf32>, vector<8x128xf32> -> vector<8x128xf32>
    %309 = arith.addf %305, %308 : vector<8x128xf32>
    %310 = vector.broadcast %18 : vector<1x128xf32> to vector<8x128xf32>
    %311 = arith.addf %309, %310 : vector<8x128xf32>
    %c0_176 = arith.constant 0 : index
    %c0_177 = arith.constant 0 : index
    %c0_178 = arith.constant 0 : index
    %312 = vector.load %arg33[%c0_176, %c0_177, %c0_178] : memref<2x8x32xf32, #tpu.memory_space<vmem>>, vector<1x8x32xf32>
    %313 = vector.shape_cast %312 : vector<1x8x32xf32> to vector<8x32xf32>
    %314 = vector.extract_strided_slice %311 {offsets = [0, 0], sizes = [8, 32], strides = [1, 1]} : vector<8x128xf32> to vector<8x32xf32>
    %315 = arith.negf %314 : vector<8x32xf32>
    %316 = math.exp %315 : vector<8x32xf32>
    %cst_179 = arith.constant 1.000000e+00 : f32
    %317 = vector.broadcast %cst_179 : f32 to vector<8x32xf32>
    %318 = arith.addf %317, %316 : vector<8x32xf32>
    %319 = arith.divf %317, %318 : vector<8x32xf32>
    %320 = vector.extract_strided_slice %311 {offsets = [0, 32], sizes = [8, 32], strides = [1, 1]} : vector<8x128xf32> to vector<8x32xf32>
    %321 = arith.negf %320 : vector<8x32xf32>
    %322 = math.exp %321 : vector<8x32xf32>
    %cst_180 = arith.constant 1.000000e+00 : f32
    %323 = vector.broadcast %cst_180 : f32 to vector<8x32xf32>
    %324 = arith.addf %323, %322 : vector<8x32xf32>
    %325 = arith.divf %323, %324 : vector<8x32xf32>
    %326 = vector.extract_strided_slice %311 {offsets = [0, 64], sizes = [8, 32], strides = [1, 1]} : vector<8x128xf32> to vector<8x32xf32>
    %327 = math.tanh %326 : vector<8x32xf32>
    %328 = vector.extract_strided_slice %311 {offsets = [0, 96], sizes = [8, 32], strides = [1, 1]} : vector<8x128xf32> to vector<8x32xf32>
    %329 = arith.negf %328 : vector<8x32xf32>
    %330 = math.exp %329 : vector<8x32xf32>
    %cst_181 = arith.constant 1.000000e+00 : f32
    %331 = vector.broadcast %cst_181 : f32 to vector<8x32xf32>
    %332 = arith.addf %331, %330 : vector<8x32xf32>
    %333 = arith.divf %331, %332 : vector<8x32xf32>
    %334 = arith.mulf %325, %313 : vector<8x32xf32>
    %335 = arith.mulf %319, %327 : vector<8x32xf32>
    %336 = arith.addf %334, %335 : vector<8x32xf32>
    %337 = math.tanh %336 : vector<8x32xf32>
    %338 = arith.mulf %333, %337 : vector<8x32xf32>
    %c0_182 = arith.constant 0 : index
    %c0_183 = arith.constant 0 : index
    %c0_184 = arith.constant 0 : index
    %339 = vector.load %arg32[%c0_182, %c0_183, %c0_184] : memref<2x8x32xf32, #tpu.memory_space<vmem>>, vector<1x8x32xf32>
    %340 = vector.shape_cast %339 : vector<1x8x32xf32> to vector<8x32xf32>
    %341 = vector.shape_cast %338 : vector<8x32xf32> to vector<1x8x32xf32>
    tpu.vector_store %arg32[%c0_182, %c0_183, %c0_184], %341 {strides = array<i32>} : memref<2x8x32xf32, #tpu.memory_space<vmem>>, vector<1x8x32xf32>,
    %c0_185 = arith.constant 0 : index
    %c0_186 = arith.constant 0 : index
    %c0_187 = arith.constant 0 : index
    %342 = vector.load %arg33[%c0_185, %c0_186, %c0_187] : memref<2x8x32xf32, #tpu.memory_space<vmem>>, vector<1x8x32xf32>
    %343 = vector.shape_cast %342 : vector<1x8x32xf32> to vector<8x32xf32>
    %344 = vector.shape_cast %336 : vector<8x32xf32> to vector<1x8x32xf32>
    tpu.vector_store %arg33[%c0_185, %c0_186, %c0_187], %344 {strides = array<i32>} : memref<2x8x32xf32, #tpu.memory_space<vmem>>, vector<1x8x32xf32>,
    %cst_188 = arith.constant dense<0.000000e+00> : vector<8x128xf32>
    %345 = tpu.matmul %338, %19, %cst_188 {dimension_numbers = #tpu.dot_dimension_numbers<[1], [0], [0], [1], [0, 0, 1, 1], [], []>} : vector<8x32xf32>, vector<32x128xf32>, vector<8x128xf32> -> vector<8x128xf32>
    %c1_189 = arith.constant 1 : index
    %c0_190 = arith.constant 0 : index
    %c0_191 = arith.constant 0 : index
    %346 = vector.load %arg32[%c1_189, %c0_190, %c0_191] : memref<2x8x32xf32, #tpu.memory_space<vmem>>, vector<1x8x32xf32>
    %347 = vector.shape_cast %346 : vector<1x8x32xf32> to vector<8x32xf32>
    %cst_192 = arith.constant dense<0.000000e+00> : vector<8x128xf32>
    %348 = tpu.matmul %347, %20, %cst_192 {dimension_numbers = #tpu.dot_dimension_numbers<[1], [0], [0], [1], [0, 0, 1, 1], [], []>} : vector<8x32xf32>, vector<32x128xf32>, vector<8x128xf32> -> vector<8x128xf32>
    %349 = arith.addf %345, %348 : vector<8x128xf32>
    %350 = vector.broadcast %21 : vector<1x128xf32> to vector<8x128xf32>
    %351 = arith.addf %349, %350 : vector<8x128xf32>
    %c1_193 = arith.constant 1 : index
    %c0_194 = arith.constant 0 : index
    %c0_195 = arith.constant 0 : index
    %352 = vector.load %arg33[%c1_193, %c0_194, %c0_195] : memref<2x8x32xf32, #tpu.memory_space<vmem>>, vector<1x8x32xf32>
    %353 = vector.shape_cast %352 : vector<1x8x32xf32> to vector<8x32xf32>
    %354 = vector.extract_strided_slice %351 {offsets = [0, 0], sizes = [8, 32], strides = [1, 1]} : vector<8x128xf32> to vector<8x32xf32>
    %355 = arith.negf %354 : vector<8x32xf32>
    %356 = math.exp %355 : vector<8x32xf32>
    %cst_196 = arith.constant 1.000000e+00 : f32
    %357 = vector.broadcast %cst_196 : f32 to vector<8x32xf32>
    %358 = arith.addf %357, %356 : vector<8x32xf32>
    %359 = arith.divf %357, %358 : vector<8x32xf32>
    %360 = vector.extract_strided_slice %351 {offsets = [0, 32], sizes = [8, 32], strides = [1, 1]} : vector<8x128xf32> to vector<8x32xf32>
    %361 = arith.negf %360 : vector<8x32xf32>
    %362 = math.exp %361 : vector<8x32xf32>
    %cst_197 = arith.constant 1.000000e+00 : f32
    %363 = vector.broadcast %cst_197 : f32 to vector<8x32xf32>
    %364 = arith.addf %363, %362 : vector<8x32xf32>
    %365 = arith.divf %363, %364 : vector<8x32xf32>
    %366 = vector.extract_strided_slice %351 {offsets = [0, 64], sizes = [8, 32], strides = [1, 1]} : vector<8x128xf32> to vector<8x32xf32>
    %367 = math.tanh %366 : vector<8x32xf32>
    %368 = vector.extract_strided_slice %351 {offsets = [0, 96], sizes = [8, 32], strides = [1, 1]} : vector<8x128xf32> to vector<8x32xf32>
    %369 = arith.negf %368 : vector<8x32xf32>
    %370 = math.exp %369 : vector<8x32xf32>
    %cst_198 = arith.constant 1.000000e+00 : f32
    %371 = vector.broadcast %cst_198 : f32 to vector<8x32xf32>
    %372 = arith.addf %371, %370 : vector<8x32xf32>
    %373 = arith.divf %371, %372 : vector<8x32xf32>
    %374 = arith.mulf %365, %353 : vector<8x32xf32>
    %375 = arith.mulf %359, %367 : vector<8x32xf32>
    %376 = arith.addf %374, %375 : vector<8x32xf32>
    %377 = math.tanh %376 : vector<8x32xf32>
    %378 = arith.mulf %373, %377 : vector<8x32xf32>
    %c1_199 = arith.constant 1 : index
    %c0_200 = arith.constant 0 : index
    %c0_201 = arith.constant 0 : index
    %379 = vector.load %arg32[%c1_199, %c0_200, %c0_201] : memref<2x8x32xf32, #tpu.memory_space<vmem>>, vector<1x8x32xf32>
    %380 = vector.shape_cast %379 : vector<1x8x32xf32> to vector<8x32xf32>
    %381 = vector.shape_cast %378 : vector<8x32xf32> to vector<1x8x32xf32>
    tpu.vector_store %arg32[%c1_199, %c0_200, %c0_201], %381 {strides = array<i32>} : memref<2x8x32xf32, #tpu.memory_space<vmem>>, vector<1x8x32xf32>,
    %c1_202 = arith.constant 1 : index
    %c0_203 = arith.constant 0 : index
    %c0_204 = arith.constant 0 : index
    %382 = vector.load %arg33[%c1_202, %c0_203, %c0_204] : memref<2x8x32xf32, #tpu.memory_space<vmem>>, vector<1x8x32xf32>
    %383 = vector.shape_cast %382 : vector<1x8x32xf32> to vector<8x32xf32>
    %384 = vector.shape_cast %376 : vector<8x32xf32> to vector<1x8x32xf32>
    tpu.vector_store %arg33[%c1_202, %c0_203, %c0_204], %384 {strides = array<i32>} : memref<2x8x32xf32, #tpu.memory_space<vmem>>, vector<1x8x32xf32>,
    %c8_205 = arith.constant 8 : index
    %c0_206 = arith.constant 0 : index
    %385 = vector.load %arg35[%c8_205, %c0_206] : memref<64x32xf32, #tpu.memory_space<vmem>>, vector<8x32xf32>
    tpu.vector_store %arg35[%c8_205, %c0_206], %378 {strides = array<i32>} : memref<64x32xf32, #tpu.memory_space<vmem>>, vector<8x32xf32>,
    %c2 = arith.constant 2 : index
    %c0_207 = arith.constant 0 : index
    %c0_208 = arith.constant 0 : index
    %386 = vector.load %arg1[%c2, %c0_207, %c0_208] : memref<8x8x8xf32, #tpu.memory_space<vmem>>, vector<1x8x8xf32>
    %387 = vector.shape_cast %386 : vector<1x8x8xf32> to vector<8x8xf32>
    %c2_209 = arith.constant 2 : index
    %c0_210 = arith.constant 0 : index
    %c0_211 = arith.constant 0 : index
    %388 = vector.load %arg2[%c2_209, %c0_210, %c0_211] : memref<8x8x16xf32, #tpu.memory_space<vmem>>, vector<1x8x16xf32>
    %389 = vector.shape_cast %388 : vector<1x8x16xf32> to vector<8x16xf32>
    %c1_212 = arith.constant 1 : index
    %c0_213 = arith.constant 0 : index
    %c0_214 = arith.constant 0 : index
    %390 = vector.load %arg32[%c1_212, %c0_213, %c0_214] : memref<2x8x32xf32, #tpu.memory_space<vmem>>, vector<1x8x32xf32>
    %391 = vector.shape_cast %390 : vector<1x8x32xf32> to vector<8x32xf32>
    %cst_215 = arith.constant dense<0.000000e+00> : vector<8x32xf32>
    %392 = tpu.matmul %391, %3, %cst_215 {dimension_numbers = #tpu.dot_dimension_numbers<[1], [0], [0], [1], [0, 0, 1, 1], [], []>} : vector<8x32xf32>, vector<32x32xf32>, vector<8x32xf32> -> vector<8x32xf32>
    %393 = vector.broadcast %4 : vector<1x32xf32> to vector<8x32xf32>
    %394 = arith.addf %392, %393 : vector<8x32xf32>
    %395 = math.tanh %394 : vector<8x32xf32>
    %cst_216 = arith.constant dense<0.000000e+00> : vector<8x64xf32>
    %396 = tpu.matmul %387, %7, %cst_216 {dimension_numbers = #tpu.dot_dimension_numbers<[1], [0], [0], [1], [0, 0, 1, 1], [], []>} : vector<8x8xf32>, vector<8x64xf32>, vector<8x64xf32> -> vector<8x64xf32>
    %cst_217 = arith.constant dense<0.000000e+00> : vector<8x64xf32>
    %397 = tpu.matmul %395, %8, %cst_217 {dimension_numbers = #tpu.dot_dimension_numbers<[1], [0], [0], [1], [0, 0, 1, 1], [], []>} : vector<8x32xf32>, vector<32x64xf32>, vector<8x64xf32> -> vector<8x64xf32>
    %398 = arith.addf %396, %397 : vector<8x64xf32>
    %c0_218 = arith.constant 0 : index
    %c0_219 = arith.constant 0 : index
    %c0_220 = arith.constant 0 : index
    %399 = vector.load %arg30[%c0_218, %c0_219, %c0_220] : memref<2x8x16xf32, #tpu.memory_space<vmem>>, vector<1x8x16xf32>
    %400 = vector.shape_cast %399 : vector<1x8x16xf32> to vector<8x16xf32>
    %cst_221 = arith.constant dense<0.000000e+00> : vector<8x64xf32>
    %401 = tpu.matmul %400, %9, %cst_221 {dimension_numbers = #tpu.dot_dimension_numbers<[1], [0], [0], [1], [0, 0, 1, 1], [], []>} : vector<8x16xf32>, vector<16x64xf32>, vector<8x64xf32> -> vector<8x64xf32>
    %402 = arith.addf %398, %401 : vector<8x64xf32>
    %403 = vector.broadcast %10 : vector<1x64xf32> to vector<8x64xf32>
    %404 = arith.addf %402, %403 : vector<8x64xf32>
    %c0_222 = arith.constant 0 : index
    %c0_223 = arith.constant 0 : index
    %c0_224 = arith.constant 0 : index
    %405 = vector.load %arg31[%c0_222, %c0_223, %c0_224] : memref<2x8x16xf32, #tpu.memory_space<vmem>>, vector<1x8x16xf32>
    %406 = vector.shape_cast %405 : vector<1x8x16xf32> to vector<8x16xf32>
    %407 = vector.extract_strided_slice %404 {offsets = [0, 0], sizes = [8, 16], strides = [1, 1]} : vector<8x64xf32> to vector<8x16xf32>
    %408 = arith.negf %407 : vector<8x16xf32>
    %409 = math.exp %408 : vector<8x16xf32>
    %cst_225 = arith.constant 1.000000e+00 : f32
    %410 = vector.broadcast %cst_225 : f32 to vector<8x16xf32>
    %411 = arith.addf %410, %409 : vector<8x16xf32>
    %412 = arith.divf %410, %411 : vector<8x16xf32>
    %413 = vector.extract_strided_slice %404 {offsets = [0, 16], sizes = [8, 16], strides = [1, 1]} : vector<8x64xf32> to vector<8x16xf32>
    %414 = arith.negf %413 : vector<8x16xf32>
    %415 = math.exp %414 : vector<8x16xf32>
    %cst_226 = arith.constant 1.000000e+00 : f32
    %416 = vector.broadcast %cst_226 : f32 to vector<8x16xf32>
    %417 = arith.addf %416, %415 : vector<8x16xf32>
    %418 = arith.divf %416, %417 : vector<8x16xf32>
    %419 = vector.extract_strided_slice %404 {offsets = [0, 32], sizes = [8, 16], strides = [1, 1]} : vector<8x64xf32> to vector<8x16xf32>
    %420 = math.tanh %419 : vector<8x16xf32>
    %421 = vector.extract_strided_slice %404 {offsets = [0, 48], sizes = [8, 16], strides = [1, 1]} : vector<8x64xf32> to vector<8x16xf32>
    %422 = arith.negf %421 : vector<8x16xf32>
    %423 = math.exp %422 : vector<8x16xf32>
    %cst_227 = arith.constant 1.000000e+00 : f32
    %424 = vector.broadcast %cst_227 : f32 to vector<8x16xf32>
    %425 = arith.addf %424, %423 : vector<8x16xf32>
    %426 = arith.divf %424, %425 : vector<8x16xf32>
    %427 = arith.mulf %418, %406 : vector<8x16xf32>
    %428 = arith.mulf %412, %420 : vector<8x16xf32>
    %429 = arith.addf %427, %428 : vector<8x16xf32>
    %430 = math.tanh %429 : vector<8x16xf32>
    %431 = arith.mulf %426, %430 : vector<8x16xf32>
    %c0_228 = arith.constant 0 : index
    %c0_229 = arith.constant 0 : index
    %c0_230 = arith.constant 0 : index
    %432 = vector.load %arg30[%c0_228, %c0_229, %c0_230] : memref<2x8x16xf32, #tpu.memory_space<vmem>>, vector<1x8x16xf32>
    %433 = vector.shape_cast %432 : vector<1x8x16xf32> to vector<8x16xf32>
    %434 = vector.shape_cast %431 : vector<8x16xf32> to vector<1x8x16xf32>
    tpu.vector_store %arg30[%c0_228, %c0_229, %c0_230], %434 {strides = array<i32>} : memref<2x8x16xf32, #tpu.memory_space<vmem>>, vector<1x8x16xf32>,
    %c0_231 = arith.constant 0 : index
    %c0_232 = arith.constant 0 : index
    %c0_233 = arith.constant 0 : index
    %435 = vector.load %arg31[%c0_231, %c0_232, %c0_233] : memref<2x8x16xf32, #tpu.memory_space<vmem>>, vector<1x8x16xf32>
    %436 = vector.shape_cast %435 : vector<1x8x16xf32> to vector<8x16xf32>
    %437 = vector.shape_cast %429 : vector<8x16xf32> to vector<1x8x16xf32>
    tpu.vector_store %arg31[%c0_231, %c0_232, %c0_233], %437 {strides = array<i32>} : memref<2x8x16xf32, #tpu.memory_space<vmem>>, vector<1x8x16xf32>,
    %cst_234 = arith.constant dense<0.000000e+00> : vector<8x64xf32>
    %438 = tpu.matmul %431, %11, %cst_234 {dimension_numbers = #tpu.dot_dimension_numbers<[1], [0], [0], [1], [0, 0, 1, 1], [], []>} : vector<8x16xf32>, vector<16x64xf32>, vector<8x64xf32> -> vector<8x64xf32>
    %c1_235 = arith.constant 1 : index
    %c0_236 = arith.constant 0 : index
    %c0_237 = arith.constant 0 : index
    %439 = vector.load %arg30[%c1_235, %c0_236, %c0_237] : memref<2x8x16xf32, #tpu.memory_space<vmem>>, vector<1x8x16xf32>
    %440 = vector.shape_cast %439 : vector<1x8x16xf32> to vector<8x16xf32>
    %cst_238 = arith.constant dense<0.000000e+00> : vector<8x64xf32>
    %441 = tpu.matmul %440, %12, %cst_238 {dimension_numbers = #tpu.dot_dimension_numbers<[1], [0], [0], [1], [0, 0, 1, 1], [], []>} : vector<8x16xf32>, vector<16x64xf32>, vector<8x64xf32> -> vector<8x64xf32>
    %442 = arith.addf %438, %441 : vector<8x64xf32>
    %443 = vector.broadcast %13 : vector<1x64xf32> to vector<8x64xf32>
    %444 = arith.addf %442, %443 : vector<8x64xf32>
    %c1_239 = arith.constant 1 : index
    %c0_240 = arith.constant 0 : index
    %c0_241 = arith.constant 0 : index
    %445 = vector.load %arg31[%c1_239, %c0_240, %c0_241] : memref<2x8x16xf32, #tpu.memory_space<vmem>>, vector<1x8x16xf32>
    %446 = vector.shape_cast %445 : vector<1x8x16xf32> to vector<8x16xf32>
    %447 = vector.extract_strided_slice %444 {offsets = [0, 0], sizes = [8, 16], strides = [1, 1]} : vector<8x64xf32> to vector<8x16xf32>
    %448 = arith.negf %447 : vector<8x16xf32>
    %449 = math.exp %448 : vector<8x16xf32>
    %cst_242 = arith.constant 1.000000e+00 : f32
    %450 = vector.broadcast %cst_242 : f32 to vector<8x16xf32>
    %451 = arith.addf %450, %449 : vector<8x16xf32>
    %452 = arith.divf %450, %451 : vector<8x16xf32>
    %453 = vector.extract_strided_slice %444 {offsets = [0, 16], sizes = [8, 16], strides = [1, 1]} : vector<8x64xf32> to vector<8x16xf32>
    %454 = arith.negf %453 : vector<8x16xf32>
    %455 = math.exp %454 : vector<8x16xf32>
    %cst_243 = arith.constant 1.000000e+00 : f32
    %456 = vector.broadcast %cst_243 : f32 to vector<8x16xf32>
    %457 = arith.addf %456, %455 : vector<8x16xf32>
    %458 = arith.divf %456, %457 : vector<8x16xf32>
    %459 = vector.extract_strided_slice %444 {offsets = [0, 32], sizes = [8, 16], strides = [1, 1]} : vector<8x64xf32> to vector<8x16xf32>
    %460 = math.tanh %459 : vector<8x16xf32>
    %461 = vector.extract_strided_slice %444 {offsets = [0, 48], sizes = [8, 16], strides = [1, 1]} : vector<8x64xf32> to vector<8x16xf32>
    %462 = arith.negf %461 : vector<8x16xf32>
    %463 = math.exp %462 : vector<8x16xf32>
    %cst_244 = arith.constant 1.000000e+00 : f32
    %464 = vector.broadcast %cst_244 : f32 to vector<8x16xf32>
    %465 = arith.addf %464, %463 : vector<8x16xf32>
    %466 = arith.divf %464, %465 : vector<8x16xf32>
    %467 = arith.mulf %458, %446 : vector<8x16xf32>
    %468 = arith.mulf %452, %460 : vector<8x16xf32>
    %469 = arith.addf %467, %468 : vector<8x16xf32>
    %470 = math.tanh %469 : vector<8x16xf32>
    %471 = arith.mulf %466, %470 : vector<8x16xf32>
    %c1_245 = arith.constant 1 : index
    %c0_246 = arith.constant 0 : index
    %c0_247 = arith.constant 0 : index
    %472 = vector.load %arg30[%c1_245, %c0_246, %c0_247] : memref<2x8x16xf32, #tpu.memory_space<vmem>>, vector<1x8x16xf32>
    %473 = vector.shape_cast %472 : vector<1x8x16xf32> to vector<8x16xf32>
    %474 = vector.shape_cast %471 : vector<8x16xf32> to vector<1x8x16xf32>
    tpu.vector_store %arg30[%c1_245, %c0_246, %c0_247], %474 {strides = array<i32>} : memref<2x8x16xf32, #tpu.memory_space<vmem>>, vector<1x8x16xf32>,
    %c1_248 = arith.constant 1 : index
    %c0_249 = arith.constant 0 : index
    %c0_250 = arith.constant 0 : index
    %475 = vector.load %arg31[%c1_248, %c0_249, %c0_250] : memref<2x8x16xf32, #tpu.memory_space<vmem>>, vector<1x8x16xf32>
    %476 = vector.shape_cast %475 : vector<1x8x16xf32> to vector<8x16xf32>
    %477 = vector.shape_cast %469 : vector<8x16xf32> to vector<1x8x16xf32>
    tpu.vector_store %arg31[%c1_248, %c0_249, %c0_250], %477 {strides = array<i32>} : memref<2x8x16xf32, #tpu.memory_space<vmem>>, vector<1x8x16xf32>,
    %c16 = arith.constant 16 : index
    %c0_251 = arith.constant 0 : index
    %478 = vector.load %arg34[%c16, %c0_251] : memref<64x16xf32, #tpu.memory_space<vmem>>, vector<8x16xf32>
    tpu.vector_store %arg34[%c16, %c0_251], %471 {strides = array<i32>} : memref<64x16xf32, #tpu.memory_space<vmem>>, vector<8x16xf32>,
    %cst_252 = arith.constant dense<0.000000e+00> : vector<8x16xf32>
    %479 = tpu.matmul %471, %5, %cst_252 {dimension_numbers = #tpu.dot_dimension_numbers<[1], [0], [0], [1], [0, 0, 1, 1], [], []>} : vector<8x16xf32>, vector<16x16xf32>, vector<8x16xf32> -> vector<8x16xf32>
    %480 = vector.broadcast %6 : vector<1x16xf32> to vector<8x16xf32>
    %481 = arith.addf %479, %480 : vector<8x16xf32>
    %482 = math.tanh %481 : vector<8x16xf32>
    %cst_253 = arith.constant dense<0.000000e+00> : vector<8x128xf32>
    %483 = tpu.matmul %389, %14, %cst_253 {dimension_numbers = #tpu.dot_dimension_numbers<[1], [0], [0], [1], [0, 0, 1, 1], [], []>} : vector<8x16xf32>, vector<16x128xf32>, vector<8x128xf32> -> vector<8x128xf32>
    %cst_254 = arith.constant dense<0.000000e+00> : vector<8x128xf32>
    %484 = tpu.matmul %387, %15, %cst_254 {dimension_numbers = #tpu.dot_dimension_numbers<[1], [0], [0], [1], [0, 0, 1, 1], [], []>} : vector<8x8xf32>, vector<8x128xf32>, vector<8x128xf32> -> vector<8x128xf32>
    %485 = arith.addf %483, %484 : vector<8x128xf32>
    %cst_255 = arith.constant dense<0.000000e+00> : vector<8x128xf32>
    %486 = tpu.matmul %482, %16, %cst_255 {dimension_numbers = #tpu.dot_dimension_numbers<[1], [0], [0], [1], [0, 0, 1, 1], [], []>} : vector<8x16xf32>, vector<16x128xf32>, vector<8x128xf32> -> vector<8x128xf32>
    %487 = arith.addf %485, %486 : vector<8x128xf32>
    %c0_256 = arith.constant 0 : index
    %c0_257 = arith.constant 0 : index
    %c0_258 = arith.constant 0 : index
    %488 = vector.load %arg32[%c0_256, %c0_257, %c0_258] : memref<2x8x32xf32, #tpu.memory_space<vmem>>, vector<1x8x32xf32>
    %489 = vector.shape_cast %488 : vector<1x8x32xf32> to vector<8x32xf32>
    %cst_259 = arith.constant dense<0.000000e+00> : vector<8x128xf32>
    %490 = tpu.matmul %489, %17, %cst_259 {dimension_numbers = #tpu.dot_dimension_numbers<[1], [0], [0], [1], [0, 0, 1, 1], [], []>} : vector<8x32xf32>, vector<32x128xf32>, vector<8x128xf32> -> vector<8x128xf32>
    %491 = arith.addf %487, %490 : vector<8x128xf32>
    %492 = vector.broadcast %18 : vector<1x128xf32> to vector<8x128xf32>
    %493 = arith.addf %491, %492 : vector<8x128xf32>
    %c0_260 = arith.constant 0 : index
    %c0_261 = arith.constant 0 : index
    %c0_262 = arith.constant 0 : index
    %494 = vector.load %arg33[%c0_260, %c0_261, %c0_262] : memref<2x8x32xf32, #tpu.memory_space<vmem>>, vector<1x8x32xf32>
    %495 = vector.shape_cast %494 : vector<1x8x32xf32> to vector<8x32xf32>
    %496 = vector.extract_strided_slice %493 {offsets = [0, 0], sizes = [8, 32], strides = [1, 1]} : vector<8x128xf32> to vector<8x32xf32>
    %497 = arith.negf %496 : vector<8x32xf32>
    %498 = math.exp %497 : vector<8x32xf32>
    %cst_263 = arith.constant 1.000000e+00 : f32
    %499 = vector.broadcast %cst_263 : f32 to vector<8x32xf32>
    %500 = arith.addf %499, %498 : vector<8x32xf32>
    %501 = arith.divf %499, %500 : vector<8x32xf32>
    %502 = vector.extract_strided_slice %493 {offsets = [0, 32], sizes = [8, 32], strides = [1, 1]} : vector<8x128xf32> to vector<8x32xf32>
    %503 = arith.negf %502 : vector<8x32xf32>
    %504 = math.exp %503 : vector<8x32xf32>
    %cst_264 = arith.constant 1.000000e+00 : f32
    %505 = vector.broadcast %cst_264 : f32 to vector<8x32xf32>
    %506 = arith.addf %505, %504 : vector<8x32xf32>
    %507 = arith.divf %505, %506 : vector<8x32xf32>
    %508 = vector.extract_strided_slice %493 {offsets = [0, 64], sizes = [8, 32], strides = [1, 1]} : vector<8x128xf32> to vector<8x32xf32>
    %509 = math.tanh %508 : vector<8x32xf32>
    %510 = vector.extract_strided_slice %493 {offsets = [0, 96], sizes = [8, 32], strides = [1, 1]} : vector<8x128xf32> to vector<8x32xf32>
    %511 = arith.negf %510 : vector<8x32xf32>
    %512 = math.exp %511 : vector<8x32xf32>
    %cst_265 = arith.constant 1.000000e+00 : f32
    %513 = vector.broadcast %cst_265 : f32 to vector<8x32xf32>
    %514 = arith.addf %513, %512 : vector<8x32xf32>
    %515 = arith.divf %513, %514 : vector<8x32xf32>
    %516 = arith.mulf %507, %495 : vector<8x32xf32>
    %517 = arith.mulf %501, %509 : vector<8x32xf32>
    %518 = arith.addf %516, %517 : vector<8x32xf32>
    %519 = math.tanh %518 : vector<8x32xf32>
    %520 = arith.mulf %515, %519 : vector<8x32xf32>
    %c0_266 = arith.constant 0 : index
    %c0_267 = arith.constant 0 : index
    %c0_268 = arith.constant 0 : index
    %521 = vector.load %arg32[%c0_266, %c0_267, %c0_268] : memref<2x8x32xf32, #tpu.memory_space<vmem>>, vector<1x8x32xf32>
    %522 = vector.shape_cast %521 : vector<1x8x32xf32> to vector<8x32xf32>
    %523 = vector.shape_cast %520 : vector<8x32xf32> to vector<1x8x32xf32>
    tpu.vector_store %arg32[%c0_266, %c0_267, %c0_268], %523 {strides = array<i32>} : memref<2x8x32xf32, #tpu.memory_space<vmem>>, vector<1x8x32xf32>,
    %c0_269 = arith.constant 0 : index
    %c0_270 = arith.constant 0 : index
    %c0_271 = arith.constant 0 : index
    %524 = vector.load %arg33[%c0_269, %c0_270, %c0_271] : memref<2x8x32xf32, #tpu.memory_space<vmem>>, vector<1x8x32xf32>
    %525 = vector.shape_cast %524 : vector<1x8x32xf32> to vector<8x32xf32>
    %526 = vector.shape_cast %518 : vector<8x32xf32> to vector<1x8x32xf32>
    tpu.vector_store %arg33[%c0_269, %c0_270, %c0_271], %526 {strides = array<i32>} : memref<2x8x32xf32, #tpu.memory_space<vmem>>, vector<1x8x32xf32>,
    %cst_272 = arith.constant dense<0.000000e+00> : vector<8x128xf32>
    %527 = tpu.matmul %520, %19, %cst_272 {dimension_numbers = #tpu.dot_dimension_numbers<[1], [0], [0], [1], [0, 0, 1, 1], [], []>} : vector<8x32xf32>, vector<32x128xf32>, vector<8x128xf32> -> vector<8x128xf32>
    %c1_273 = arith.constant 1 : index
    %c0_274 = arith.constant 0 : index
    %c0_275 = arith.constant 0 : index
    %528 = vector.load %arg32[%c1_273, %c0_274, %c0_275] : memref<2x8x32xf32, #tpu.memory_space<vmem>>, vector<1x8x32xf32>
    %529 = vector.shape_cast %528 : vector<1x8x32xf32> to vector<8x32xf32>
    %cst_276 = arith.constant dense<0.000000e+00> : vector<8x128xf32>
    %530 = tpu.matmul %529, %20, %cst_276 {dimension_numbers = #tpu.dot_dimension_numbers<[1], [0], [0], [1], [0, 0, 1, 1], [], []>} : vector<8x32xf32>, vector<32x128xf32>, vector<8x128xf32> -> vector<8x128xf32>
    %531 = arith.addf %527, %530 : vector<8x128xf32>
    %532 = vector.broadcast %21 : vector<1x128xf32> to vector<8x128xf32>
    %533 = arith.addf %531, %532 : vector<8x128xf32>
    %c1_277 = arith.constant 1 : index
    %c0_278 = arith.constant 0 : index
    %c0_279 = arith.constant 0 : index
    %534 = vector.load %arg33[%c1_277, %c0_278, %c0_279] : memref<2x8x32xf32, #tpu.memory_space<vmem>>, vector<1x8x32xf32>
    %535 = vector.shape_cast %534 : vector<1x8x32xf32> to vector<8x32xf32>
    %536 = vector.extract_strided_slice %533 {offsets = [0, 0], sizes = [8, 32], strides = [1, 1]} : vector<8x128xf32> to vector<8x32xf32>
    %537 = arith.negf %536 : vector<8x32xf32>
    %538 = math.exp %537 : vector<8x32xf32>
    %cst_280 = arith.constant 1.000000e+00 : f32
    %539 = vector.broadcast %cst_280 : f32 to vector<8x32xf32>
    %540 = arith.addf %539, %538 : vector<8x32xf32>
    %541 = arith.divf %539, %540 : vector<8x32xf32>
    %542 = vector.extract_strided_slice %533 {offsets = [0, 32], sizes = [8, 32], strides = [1, 1]} : vector<8x128xf32> to vector<8x32xf32>
    %543 = arith.negf %542 : vector<8x32xf32>
    %544 = math.exp %543 : vector<8x32xf32>
    %cst_281 = arith.constant 1.000000e+00 : f32
    %545 = vector.broadcast %cst_281 : f32 to vector<8x32xf32>
    %546 = arith.addf %545, %544 : vector<8x32xf32>
    %547 = arith.divf %545, %546 : vector<8x32xf32>
    %548 = vector.extract_strided_slice %533 {offsets = [0, 64], sizes = [8, 32], strides = [1, 1]} : vector<8x128xf32> to vector<8x32xf32>
    %549 = math.tanh %548 : vector<8x32xf32>
    %550 = vector.extract_strided_slice %533 {offsets = [0, 96], sizes = [8, 32], strides = [1, 1]} : vector<8x128xf32> to vector<8x32xf32>
    %551 = arith.negf %550 : vector<8x32xf32>
    %552 = math.exp %551 : vector<8x32xf32>
    %cst_282 = arith.constant 1.000000e+00 : f32
    %553 = vector.broadcast %cst_282 : f32 to vector<8x32xf32>
    %554 = arith.addf %553, %552 : vector<8x32xf32>
    %555 = arith.divf %553, %554 : vector<8x32xf32>
    %556 = arith.mulf %547, %535 : vector<8x32xf32>
    %557 = arith.mulf %541, %549 : vector<8x32xf32>
    %558 = arith.addf %556, %557 : vector<8x32xf32>
    %559 = math.tanh %558 : vector<8x32xf32>
    %560 = arith.mulf %555, %559 : vector<8x32xf32>
    %c1_283 = arith.constant 1 : index
    %c0_284 = arith.constant 0 : index
    %c0_285 = arith.constant 0 : index
    %561 = vector.load %arg32[%c1_283, %c0_284, %c0_285] : memref<2x8x32xf32, #tpu.memory_space<vmem>>, vector<1x8x32xf32>
    %562 = vector.shape_cast %561 : vector<1x8x32xf32> to vector<8x32xf32>
    %563 = vector.shape_cast %560 : vector<8x32xf32> to vector<1x8x32xf32>
    tpu.vector_store %arg32[%c1_283, %c0_284, %c0_285], %563 {strides = array<i32>} : memref<2x8x32xf32, #tpu.memory_space<vmem>>, vector<1x8x32xf32>,
    %c1_286 = arith.constant 1 : index
    %c0_287 = arith.constant 0 : index
    %c0_288 = arith.constant 0 : index
    %564 = vector.load %arg33[%c1_286, %c0_287, %c0_288] : memref<2x8x32xf32, #tpu.memory_space<vmem>>, vector<1x8x32xf32>
    %565 = vector.shape_cast %564 : vector<1x8x32xf32> to vector<8x32xf32>
    %566 = vector.shape_cast %558 : vector<8x32xf32> to vector<1x8x32xf32>
    tpu.vector_store %arg33[%c1_286, %c0_287, %c0_288], %566 {strides = array<i32>} : memref<2x8x32xf32, #tpu.memory_space<vmem>>, vector<1x8x32xf32>,
    %c16_289 = arith.constant 16 : index
    %c0_290 = arith.constant 0 : index
    %567 = vector.load %arg35[%c16_289, %c0_290] : memref<64x32xf32, #tpu.memory_space<vmem>>, vector<8x32xf32>
    tpu.vector_store %arg35[%c16_289, %c0_290], %560 {strides = array<i32>} : memref<64x32xf32, #tpu.memory_space<vmem>>, vector<8x32xf32>,
    %c3 = arith.constant 3 : index
    %c0_291 = arith.constant 0 : index
    %c0_292 = arith.constant 0 : index
    %568 = vector.load %arg1[%c3, %c0_291, %c0_292] : memref<8x8x8xf32, #tpu.memory_space<vmem>>, vector<1x8x8xf32>
    %569 = vector.shape_cast %568 : vector<1x8x8xf32> to vector<8x8xf32>
    %c3_293 = arith.constant 3 : index
    %c0_294 = arith.constant 0 : index
    %c0_295 = arith.constant 0 : index
    %570 = vector.load %arg2[%c3_293, %c0_294, %c0_295] : memref<8x8x16xf32, #tpu.memory_space<vmem>>, vector<1x8x16xf32>
    %571 = vector.shape_cast %570 : vector<1x8x16xf32> to vector<8x16xf32>
    %c1_296 = arith.constant 1 : index
    %c0_297 = arith.constant 0 : index
    %c0_298 = arith.constant 0 : index
    %572 = vector.load %arg32[%c1_296, %c0_297, %c0_298] : memref<2x8x32xf32, #tpu.memory_space<vmem>>, vector<1x8x32xf32>
    %573 = vector.shape_cast %572 : vector<1x8x32xf32> to vector<8x32xf32>
    %cst_299 = arith.constant dense<0.000000e+00> : vector<8x32xf32>
    %574 = tpu.matmul %573, %3, %cst_299 {dimension_numbers = #tpu.dot_dimension_numbers<[1], [0], [0], [1], [0, 0, 1, 1], [], []>} : vector<8x32xf32>, vector<32x32xf32>, vector<8x32xf32> -> vector<8x32xf32>
    %575 = vector.broadcast %4 : vector<1x32xf32> to vector<8x32xf32>
    %576 = arith.addf %574, %575 : vector<8x32xf32>
    %577 = math.tanh %576 : vector<8x32xf32>
    %cst_300 = arith.constant dense<0.000000e+00> : vector<8x64xf32>
    %578 = tpu.matmul %569, %7, %cst_300 {dimension_numbers = #tpu.dot_dimension_numbers<[1], [0], [0], [1], [0, 0, 1, 1], [], []>} : vector<8x8xf32>, vector<8x64xf32>, vector<8x64xf32> -> vector<8x64xf32>
    %cst_301 = arith.constant dense<0.000000e+00> : vector<8x64xf32>
    %579 = tpu.matmul %577, %8, %cst_301 {dimension_numbers = #tpu.dot_dimension_numbers<[1], [0], [0], [1], [0, 0, 1, 1], [], []>} : vector<8x32xf32>, vector<32x64xf32>, vector<8x64xf32> -> vector<8x64xf32>
    %580 = arith.addf %578, %579 : vector<8x64xf32>
    %c0_302 = arith.constant 0 : index
    %c0_303 = arith.constant 0 : index
    %c0_304 = arith.constant 0 : index
    %581 = vector.load %arg30[%c0_302, %c0_303, %c0_304] : memref<2x8x16xf32, #tpu.memory_space<vmem>>, vector<1x8x16xf32>
    %582 = vector.shape_cast %581 : vector<1x8x16xf32> to vector<8x16xf32>
    %cst_305 = arith.constant dense<0.000000e+00> : vector<8x64xf32>
    %583 = tpu.matmul %582, %9, %cst_305 {dimension_numbers = #tpu.dot_dimension_numbers<[1], [0], [0], [1], [0, 0, 1, 1], [], []>} : vector<8x16xf32>, vector<16x64xf32>, vector<8x64xf32> -> vector<8x64xf32>
    %584 = arith.addf %580, %583 : vector<8x64xf32>
    %585 = vector.broadcast %10 : vector<1x64xf32> to vector<8x64xf32>
    %586 = arith.addf %584, %585 : vector<8x64xf32>
    %c0_306 = arith.constant 0 : index
    %c0_307 = arith.constant 0 : index
    %c0_308 = arith.constant 0 : index
    %587 = vector.load %arg31[%c0_306, %c0_307, %c0_308] : memref<2x8x16xf32, #tpu.memory_space<vmem>>, vector<1x8x16xf32>
    %588 = vector.shape_cast %587 : vector<1x8x16xf32> to vector<8x16xf32>
    %589 = vector.extract_strided_slice %586 {offsets = [0, 0], sizes = [8, 16], strides = [1, 1]} : vector<8x64xf32> to vector<8x16xf32>
    %590 = arith.negf %589 : vector<8x16xf32>
    %591 = math.exp %590 : vector<8x16xf32>
    %cst_309 = arith.constant 1.000000e+00 : f32
    %592 = vector.broadcast %cst_309 : f32 to vector<8x16xf32>
    %593 = arith.addf %592, %591 : vector<8x16xf32>
    %594 = arith.divf %592, %593 : vector<8x16xf32>
    %595 = vector.extract_strided_slice %586 {offsets = [0, 16], sizes = [8, 16], strides = [1, 1]} : vector<8x64xf32> to vector<8x16xf32>
    %596 = arith.negf %595 : vector<8x16xf32>
    %597 = math.exp %596 : vector<8x16xf32>
    %cst_310 = arith.constant 1.000000e+00 : f32
    %598 = vector.broadcast %cst_310 : f32 to vector<8x16xf32>
    %599 = arith.addf %598, %597 : vector<8x16xf32>
    %600 = arith.divf %598, %599 : vector<8x16xf32>
    %601 = vector.extract_strided_slice %586 {offsets = [0, 32], sizes = [8, 16], strides = [1, 1]} : vector<8x64xf32> to vector<8x16xf32>
    %602 = math.tanh %601 : vector<8x16xf32>
    %603 = vector.extract_strided_slice %586 {offsets = [0, 48], sizes = [8, 16], strides = [1, 1]} : vector<8x64xf32> to vector<8x16xf32>
    %604 = arith.negf %603 : vector<8x16xf32>
    %605 = math.exp %604 : vector<8x16xf32>
    %cst_311 = arith.constant 1.000000e+00 : f32
    %606 = vector.broadcast %cst_311 : f32 to vector<8x16xf32>
    %607 = arith.addf %606, %605 : vector<8x16xf32>
    %608 = arith.divf %606, %607 : vector<8x16xf32>
    %609 = arith.mulf %600, %588 : vector<8x16xf32>
    %610 = arith.mulf %594, %602 : vector<8x16xf32>
    %611 = arith.addf %609, %610 : vector<8x16xf32>
    %612 = math.tanh %611 : vector<8x16xf32>
    %613 = arith.mulf %608, %612 : vector<8x16xf32>
    %c0_312 = arith.constant 0 : index
    %c0_313 = arith.constant 0 : index
    %c0_314 = arith.constant 0 : index
    %614 = vector.load %arg30[%c0_312, %c0_313, %c0_314] : memref<2x8x16xf32, #tpu.memory_space<vmem>>, vector<1x8x16xf32>
    %615 = vector.shape_cast %614 : vector<1x8x16xf32> to vector<8x16xf32>
    %616 = vector.shape_cast %613 : vector<8x16xf32> to vector<1x8x16xf32>
    tpu.vector_store %arg30[%c0_312, %c0_313, %c0_314], %616 {strides = array<i32>} : memref<2x8x16xf32, #tpu.memory_space<vmem>>, vector<1x8x16xf32>,
    %c0_315 = arith.constant 0 : index
    %c0_316 = arith.constant 0 : index
    %c0_317 = arith.constant 0 : index
    %617 = vector.load %arg31[%c0_315, %c0_316, %c0_317] : memref<2x8x16xf32, #tpu.memory_space<vmem>>, vector<1x8x16xf32>
    %618 = vector.shape_cast %617 : vector<1x8x16xf32> to vector<8x16xf32>
    %619 = vector.shape_cast %611 : vector<8x16xf32> to vector<1x8x16xf32>
    tpu.vector_store %arg31[%c0_315, %c0_316, %c0_317], %619 {strides = array<i32>} : memref<2x8x16xf32, #tpu.memory_space<vmem>>, vector<1x8x16xf32>,
    %cst_318 = arith.constant dense<0.000000e+00> : vector<8x64xf32>
    %620 = tpu.matmul %613, %11, %cst_318 {dimension_numbers = #tpu.dot_dimension_numbers<[1], [0], [0], [1], [0, 0, 1, 1], [], []>} : vector<8x16xf32>, vector<16x64xf32>, vector<8x64xf32> -> vector<8x64xf32>
    %c1_319 = arith.constant 1 : index
    %c0_320 = arith.constant 0 : index
    %c0_321 = arith.constant 0 : index
    %621 = vector.load %arg30[%c1_319, %c0_320, %c0_321] : memref<2x8x16xf32, #tpu.memory_space<vmem>>, vector<1x8x16xf32>
    %622 = vector.shape_cast %621 : vector<1x8x16xf32> to vector<8x16xf32>
    %cst_322 = arith.constant dense<0.000000e+00> : vector<8x64xf32>
    %623 = tpu.matmul %622, %12, %cst_322 {dimension_numbers = #tpu.dot_dimension_numbers<[1], [0], [0], [1], [0, 0, 1, 1], [], []>} : vector<8x16xf32>, vector<16x64xf32>, vector<8x64xf32> -> vector<8x64xf32>
    %624 = arith.addf %620, %623 : vector<8x64xf32>
    %625 = vector.broadcast %13 : vector<1x64xf32> to vector<8x64xf32>
    %626 = arith.addf %624, %625 : vector<8x64xf32>
    %c1_323 = arith.constant 1 : index
    %c0_324 = arith.constant 0 : index
    %c0_325 = arith.constant 0 : index
    %627 = vector.load %arg31[%c1_323, %c0_324, %c0_325] : memref<2x8x16xf32, #tpu.memory_space<vmem>>, vector<1x8x16xf32>
    %628 = vector.shape_cast %627 : vector<1x8x16xf32> to vector<8x16xf32>
    %629 = vector.extract_strided_slice %626 {offsets = [0, 0], sizes = [8, 16], strides = [1, 1]} : vector<8x64xf32> to vector<8x16xf32>
    %630 = arith.negf %629 : vector<8x16xf32>
    %631 = math.exp %630 : vector<8x16xf32>
    %cst_326 = arith.constant 1.000000e+00 : f32
    %632 = vector.broadcast %cst_326 : f32 to vector<8x16xf32>
    %633 = arith.addf %632, %631 : vector<8x16xf32>
    %634 = arith.divf %632, %633 : vector<8x16xf32>
    %635 = vector.extract_strided_slice %626 {offsets = [0, 16], sizes = [8, 16], strides = [1, 1]} : vector<8x64xf32> to vector<8x16xf32>
    %636 = arith.negf %635 : vector<8x16xf32>
    %637 = math.exp %636 : vector<8x16xf32>
    %cst_327 = arith.constant 1.000000e+00 : f32
    %638 = vector.broadcast %cst_327 : f32 to vector<8x16xf32>
    %639 = arith.addf %638, %637 : vector<8x16xf32>
    %640 = arith.divf %638, %639 : vector<8x16xf32>
    %641 = vector.extract_strided_slice %626 {offsets = [0, 32], sizes = [8, 16], strides = [1, 1]} : vector<8x64xf32> to vector<8x16xf32>
    %642 = math.tanh %641 : vector<8x16xf32>
    %643 = vector.extract_strided_slice %626 {offsets = [0, 48], sizes = [8, 16], strides = [1, 1]} : vector<8x64xf32> to vector<8x16xf32>
    %644 = arith.negf %643 : vector<8x16xf32>
    %645 = math.exp %644 : vector<8x16xf32>
    %cst_328 = arith.constant 1.000000e+00 : f32
    %646 = vector.broadcast %cst_328 : f32 to vector<8x16xf32>
    %647 = arith.addf %646, %645 : vector<8x16xf32>
    %648 = arith.divf %646, %647 : vector<8x16xf32>
    %649 = arith.mulf %640, %628 : vector<8x16xf32>
    %650 = arith.mulf %634, %642 : vector<8x16xf32>
    %651 = arith.addf %649, %650 : vector<8x16xf32>
    %652 = math.tanh %651 : vector<8x16xf32>
    %653 = arith.mulf %648, %652 : vector<8x16xf32>
    %c1_329 = arith.constant 1 : index
    %c0_330 = arith.constant 0 : index
    %c0_331 = arith.constant 0 : index
    %654 = vector.load %arg30[%c1_329, %c0_330, %c0_331] : memref<2x8x16xf32, #tpu.memory_space<vmem>>, vector<1x8x16xf32>
    %655 = vector.shape_cast %654 : vector<1x8x16xf32> to vector<8x16xf32>
    %656 = vector.shape_cast %653 : vector<8x16xf32> to vector<1x8x16xf32>
    tpu.vector_store %arg30[%c1_329, %c0_330, %c0_331], %656 {strides = array<i32>} : memref<2x8x16xf32, #tpu.memory_space<vmem>>, vector<1x8x16xf32>,
    %c1_332 = arith.constant 1 : index
    %c0_333 = arith.constant 0 : index
    %c0_334 = arith.constant 0 : index
    %657 = vector.load %arg31[%c1_332, %c0_333, %c0_334] : memref<2x8x16xf32, #tpu.memory_space<vmem>>, vector<1x8x16xf32>
    %658 = vector.shape_cast %657 : vector<1x8x16xf32> to vector<8x16xf32>
    %659 = vector.shape_cast %651 : vector<8x16xf32> to vector<1x8x16xf32>
    tpu.vector_store %arg31[%c1_332, %c0_333, %c0_334], %659 {strides = array<i32>} : memref<2x8x16xf32, #tpu.memory_space<vmem>>, vector<1x8x16xf32>,
    %c24 = arith.constant 24 : index
    %c0_335 = arith.constant 0 : index
    %660 = vector.load %arg34[%c24, %c0_335] : memref<64x16xf32, #tpu.memory_space<vmem>>, vector<8x16xf32>
    tpu.vector_store %arg34[%c24, %c0_335], %653 {strides = array<i32>} : memref<64x16xf32, #tpu.memory_space<vmem>>, vector<8x16xf32>,
    %cst_336 = arith.constant dense<0.000000e+00> : vector<8x16xf32>
    %661 = tpu.matmul %653, %5, %cst_336 {dimension_numbers = #tpu.dot_dimension_numbers<[1], [0], [0], [1], [0, 0, 1, 1], [], []>} : vector<8x16xf32>, vector<16x16xf32>, vector<8x16xf32> -> vector<8x16xf32>
    %662 = vector.broadcast %6 : vector<1x16xf32> to vector<8x16xf32>
    %663 = arith.addf %661, %662 : vector<8x16xf32>
    %664 = math.tanh %663 : vector<8x16xf32>
    %cst_337 = arith.constant dense<0.000000e+00> : vector<8x128xf32>
    %665 = tpu.matmul %571, %14, %cst_337 {dimension_numbers = #tpu.dot_dimension_numbers<[1], [0], [0], [1], [0, 0, 1, 1], [], []>} : vector<8x16xf32>, vector<16x128xf32>, vector<8x128xf32> -> vector<8x128xf32>
    %cst_338 = arith.constant dense<0.000000e+00> : vector<8x128xf32>
    %666 = tpu.matmul %569, %15, %cst_338 {dimension_numbers = #tpu.dot_dimension_numbers<[1], [0], [0], [1], [0, 0, 1, 1], [], []>} : vector<8x8xf32>, vector<8x128xf32>, vector<8x128xf32> -> vector<8x128xf32>
    %667 = arith.addf %665, %666 : vector<8x128xf32>
    %cst_339 = arith.constant dense<0.000000e+00> : vector<8x128xf32>
    %668 = tpu.matmul %664, %16, %cst_339 {dimension_numbers = #tpu.dot_dimension_numbers<[1], [0], [0], [1], [0, 0, 1, 1], [], []>} : vector<8x16xf32>, vector<16x128xf32>, vector<8x128xf32> -> vector<8x128xf32>
    %669 = arith.addf %667, %668 : vector<8x128xf32>
    %c0_340 = arith.constant 0 : index
    %c0_341 = arith.constant 0 : index
    %c0_342 = arith.constant 0 : index
    %670 = vector.load %arg32[%c0_340, %c0_341, %c0_342] : memref<2x8x32xf32, #tpu.memory_space<vmem>>, vector<1x8x32xf32>
    %671 = vector.shape_cast %670 : vector<1x8x32xf32> to vector<8x32xf32>
    %cst_343 = arith.constant dense<0.000000e+00> : vector<8x128xf32>
    %672 = tpu.matmul %671, %17, %cst_343 {dimension_numbers = #tpu.dot_dimension_numbers<[1], [0], [0], [1], [0, 0, 1, 1], [], []>} : vector<8x32xf32>, vector<32x128xf32>, vector<8x128xf32> -> vector<8x128xf32>
    %673 = arith.addf %669, %672 : vector<8x128xf32>
    %674 = vector.broadcast %18 : vector<1x128xf32> to vector<8x128xf32>
    %675 = arith.addf %673, %674 : vector<8x128xf32>
    %c0_344 = arith.constant 0 : index
    %c0_345 = arith.constant 0 : index
    %c0_346 = arith.constant 0 : index
    %676 = vector.load %arg33[%c0_344, %c0_345, %c0_346] : memref<2x8x32xf32, #tpu.memory_space<vmem>>, vector<1x8x32xf32>
    %677 = vector.shape_cast %676 : vector<1x8x32xf32> to vector<8x32xf32>
    %678 = vector.extract_strided_slice %675 {offsets = [0, 0], sizes = [8, 32], strides = [1, 1]} : vector<8x128xf32> to vector<8x32xf32>
    %679 = arith.negf %678 : vector<8x32xf32>
    %680 = math.exp %679 : vector<8x32xf32>
    %cst_347 = arith.constant 1.000000e+00 : f32
    %681 = vector.broadcast %cst_347 : f32 to vector<8x32xf32>
    %682 = arith.addf %681, %680 : vector<8x32xf32>
    %683 = arith.divf %681, %682 : vector<8x32xf32>
    %684 = vector.extract_strided_slice %675 {offsets = [0, 32], sizes = [8, 32], strides = [1, 1]} : vector<8x128xf32> to vector<8x32xf32>
    %685 = arith.negf %684 : vector<8x32xf32>
    %686 = math.exp %685 : vector<8x32xf32>
    %cst_348 = arith.constant 1.000000e+00 : f32
    %687 = vector.broadcast %cst_348 : f32 to vector<8x32xf32>
    %688 = arith.addf %687, %686 : vector<8x32xf32>
    %689 = arith.divf %687, %688 : vector<8x32xf32>
    %690 = vector.extract_strided_slice %675 {offsets = [0, 64], sizes = [8, 32], strides = [1, 1]} : vector<8x128xf32> to vector<8x32xf32>
    %691 = math.tanh %690 : vector<8x32xf32>
    %692 = vector.extract_strided_slice %675 {offsets = [0, 96], sizes = [8, 32], strides = [1, 1]} : vector<8x128xf32> to vector<8x32xf32>
    %693 = arith.negf %692 : vector<8x32xf32>
    %694 = math.exp %693 : vector<8x32xf32>
    %cst_349 = arith.constant 1.000000e+00 : f32
    %695 = vector.broadcast %cst_349 : f32 to vector<8x32xf32>
    %696 = arith.addf %695, %694 : vector<8x32xf32>
    %697 = arith.divf %695, %696 : vector<8x32xf32>
    %698 = arith.mulf %689, %677 : vector<8x32xf32>
    %699 = arith.mulf %683, %691 : vector<8x32xf32>
    %700 = arith.addf %698, %699 : vector<8x32xf32>
    %701 = math.tanh %700 : vector<8x32xf32>
    %702 = arith.mulf %697, %701 : vector<8x32xf32>
    %c0_350 = arith.constant 0 : index
    %c0_351 = arith.constant 0 : index
    %c0_352 = arith.constant 0 : index
    %703 = vector.load %arg32[%c0_350, %c0_351, %c0_352] : memref<2x8x32xf32, #tpu.memory_space<vmem>>, vector<1x8x32xf32>
    %704 = vector.shape_cast %703 : vector<1x8x32xf32> to vector<8x32xf32>
    %705 = vector.shape_cast %702 : vector<8x32xf32> to vector<1x8x32xf32>
    tpu.vector_store %arg32[%c0_350, %c0_351, %c0_352], %705 {strides = array<i32>} : memref<2x8x32xf32, #tpu.memory_space<vmem>>, vector<1x8x32xf32>,
    %c0_353 = arith.constant 0 : index
    %c0_354 = arith.constant 0 : index
    %c0_355 = arith.constant 0 : index
    %706 = vector.load %arg33[%c0_353, %c0_354, %c0_355] : memref<2x8x32xf32, #tpu.memory_space<vmem>>, vector<1x8x32xf32>
    %707 = vector.shape_cast %706 : vector<1x8x32xf32> to vector<8x32xf32>
    %708 = vector.shape_cast %700 : vector<8x32xf32> to vector<1x8x32xf32>
    tpu.vector_store %arg33[%c0_353, %c0_354, %c0_355], %708 {strides = array<i32>} : memref<2x8x32xf32, #tpu.memory_space<vmem>>, vector<1x8x32xf32>,
    %cst_356 = arith.constant dense<0.000000e+00> : vector<8x128xf32>
    %709 = tpu.matmul %702, %19, %cst_356 {dimension_numbers = #tpu.dot_dimension_numbers<[1], [0], [0], [1], [0, 0, 1, 1], [], []>} : vector<8x32xf32>, vector<32x128xf32>, vector<8x128xf32> -> vector<8x128xf32>
    %c1_357 = arith.constant 1 : index
    %c0_358 = arith.constant 0 : index
    %c0_359 = arith.constant 0 : index
    %710 = vector.load %arg32[%c1_357, %c0_358, %c0_359] : memref<2x8x32xf32, #tpu.memory_space<vmem>>, vector<1x8x32xf32>
    %711 = vector.shape_cast %710 : vector<1x8x32xf32> to vector<8x32xf32>
    %cst_360 = arith.constant dense<0.000000e+00> : vector<8x128xf32>
    %712 = tpu.matmul %711, %20, %cst_360 {dimension_numbers = #tpu.dot_dimension_numbers<[1], [0], [0], [1], [0, 0, 1, 1], [], []>} : vector<8x32xf32>, vector<32x128xf32>, vector<8x128xf32> -> vector<8x128xf32>
    %713 = arith.addf %709, %712 : vector<8x128xf32>
    %714 = vector.broadcast %21 : vector<1x128xf32> to vector<8x128xf32>
    %715 = arith.addf %713, %714 : vector<8x128xf32>
    %c1_361 = arith.constant 1 : index
    %c0_362 = arith.constant 0 : index
    %c0_363 = arith.constant 0 : index
    %716 = vector.load %arg33[%c1_361, %c0_362, %c0_363] : memref<2x8x32xf32, #tpu.memory_space<vmem>>, vector<1x8x32xf32>
    %717 = vector.shape_cast %716 : vector<1x8x32xf32> to vector<8x32xf32>
    %718 = vector.extract_strided_slice %715 {offsets = [0, 0], sizes = [8, 32], strides = [1, 1]} : vector<8x128xf32> to vector<8x32xf32>
    %719 = arith.negf %718 : vector<8x32xf32>
    %720 = math.exp %719 : vector<8x32xf32>
    %cst_364 = arith.constant 1.000000e+00 : f32
    %721 = vector.broadcast %cst_364 : f32 to vector<8x32xf32>
    %722 = arith.addf %721, %720 : vector<8x32xf32>
    %723 = arith.divf %721, %722 : vector<8x32xf32>
    %724 = vector.extract_strided_slice %715 {offsets = [0, 32], sizes = [8, 32], strides = [1, 1]} : vector<8x128xf32> to vector<8x32xf32>
    %725 = arith.negf %724 : vector<8x32xf32>
    %726 = math.exp %725 : vector<8x32xf32>
    %cst_365 = arith.constant 1.000000e+00 : f32
    %727 = vector.broadcast %cst_365 : f32 to vector<8x32xf32>
    %728 = arith.addf %727, %726 : vector<8x32xf32>
    %729 = arith.divf %727, %728 : vector<8x32xf32>
    %730 = vector.extract_strided_slice %715 {offsets = [0, 64], sizes = [8, 32], strides = [1, 1]} : vector<8x128xf32> to vector<8x32xf32>
    %731 = math.tanh %730 : vector<8x32xf32>
    %732 = vector.extract_strided_slice %715 {offsets = [0, 96], sizes = [8, 32], strides = [1, 1]} : vector<8x128xf32> to vector<8x32xf32>
    %733 = arith.negf %732 : vector<8x32xf32>
    %734 = math.exp %733 : vector<8x32xf32>
    %cst_366 = arith.constant 1.000000e+00 : f32
    %735 = vector.broadcast %cst_366 : f32 to vector<8x32xf32>
    %736 = arith.addf %735, %734 : vector<8x32xf32>
    %737 = arith.divf %735, %736 : vector<8x32xf32>
    %738 = arith.mulf %729, %717 : vector<8x32xf32>
    %739 = arith.mulf %723, %731 : vector<8x32xf32>
    %740 = arith.addf %738, %739 : vector<8x32xf32>
    %741 = math.tanh %740 : vector<8x32xf32>
    %742 = arith.mulf %737, %741 : vector<8x32xf32>
    %c1_367 = arith.constant 1 : index
    %c0_368 = arith.constant 0 : index
    %c0_369 = arith.constant 0 : index
    %743 = vector.load %arg32[%c1_367, %c0_368, %c0_369] : memref<2x8x32xf32, #tpu.memory_space<vmem>>, vector<1x8x32xf32>
    %744 = vector.shape_cast %743 : vector<1x8x32xf32> to vector<8x32xf32>
    %745 = vector.shape_cast %742 : vector<8x32xf32> to vector<1x8x32xf32>
    tpu.vector_store %arg32[%c1_367, %c0_368, %c0_369], %745 {strides = array<i32>} : memref<2x8x32xf32, #tpu.memory_space<vmem>>, vector<1x8x32xf32>,
    %c1_370 = arith.constant 1 : index
    %c0_371 = arith.constant 0 : index
    %c0_372 = arith.constant 0 : index
    %746 = vector.load %arg33[%c1_370, %c0_371, %c0_372] : memref<2x8x32xf32, #tpu.memory_space<vmem>>, vector<1x8x32xf32>
    %747 = vector.shape_cast %746 : vector<1x8x32xf32> to vector<8x32xf32>
    %748 = vector.shape_cast %740 : vector<8x32xf32> to vector<1x8x32xf32>
    tpu.vector_store %arg33[%c1_370, %c0_371, %c0_372], %748 {strides = array<i32>} : memref<2x8x32xf32, #tpu.memory_space<vmem>>, vector<1x8x32xf32>,
    %c24_373 = arith.constant 24 : index
    %c0_374 = arith.constant 0 : index
    %749 = vector.load %arg35[%c24_373, %c0_374] : memref<64x32xf32, #tpu.memory_space<vmem>>, vector<8x32xf32>
    tpu.vector_store %arg35[%c24_373, %c0_374], %742 {strides = array<i32>} : memref<64x32xf32, #tpu.memory_space<vmem>>, vector<8x32xf32>,
    %c4 = arith.constant 4 : index
    %c0_375 = arith.constant 0 : index
    %c0_376 = arith.constant 0 : index
    %750 = vector.load %arg1[%c4, %c0_375, %c0_376] : memref<8x8x8xf32, #tpu.memory_space<vmem>>, vector<1x8x8xf32>
    %751 = vector.shape_cast %750 : vector<1x8x8xf32> to vector<8x8xf32>
    %c4_377 = arith.constant 4 : index
    %c0_378 = arith.constant 0 : index
    %c0_379 = arith.constant 0 : index
    %752 = vector.load %arg2[%c4_377, %c0_378, %c0_379] : memref<8x8x16xf32, #tpu.memory_space<vmem>>, vector<1x8x16xf32>
    %753 = vector.shape_cast %752 : vector<1x8x16xf32> to vector<8x16xf32>
    %c1_380 = arith.constant 1 : index
    %c0_381 = arith.constant 0 : index
    %c0_382 = arith.constant 0 : index
    %754 = vector.load %arg32[%c1_380, %c0_381, %c0_382] : memref<2x8x32xf32, #tpu.memory_space<vmem>>, vector<1x8x32xf32>
    %755 = vector.shape_cast %754 : vector<1x8x32xf32> to vector<8x32xf32>
    %cst_383 = arith.constant dense<0.000000e+00> : vector<8x32xf32>
    %756 = tpu.matmul %755, %3, %cst_383 {dimension_numbers = #tpu.dot_dimension_numbers<[1], [0], [0], [1], [0, 0, 1, 1], [], []>} : vector<8x32xf32>, vector<32x32xf32>, vector<8x32xf32> -> vector<8x32xf32>
    %757 = vector.broadcast %4 : vector<1x32xf32> to vector<8x32xf32>
    %758 = arith.addf %756, %757 : vector<8x32xf32>
    %759 = math.tanh %758 : vector<8x32xf32>
    %cst_384 = arith.constant dense<0.000000e+00> : vector<8x64xf32>
    %760 = tpu.matmul %751, %7, %cst_384 {dimension_numbers = #tpu.dot_dimension_numbers<[1], [0], [0], [1], [0, 0, 1, 1], [], []>} : vector<8x8xf32>, vector<8x64xf32>, vector<8x64xf32> -> vector<8x64xf32>
    %cst_385 = arith.constant dense<0.000000e+00> : vector<8x64xf32>
    %761 = tpu.matmul %759, %8, %cst_385 {dimension_numbers = #tpu.dot_dimension_numbers<[1], [0], [0], [1], [0, 0, 1, 1], [], []>} : vector<8x32xf32>, vector<32x64xf32>, vector<8x64xf32> -> vector<8x64xf32>
    %762 = arith.addf %760, %761 : vector<8x64xf32>
    %c0_386 = arith.constant 0 : index
    %c0_387 = arith.constant 0 : index
    %c0_388 = arith.constant 0 : index
    %763 = vector.load %arg30[%c0_386, %c0_387, %c0_388] : memref<2x8x16xf32, #tpu.memory_space<vmem>>, vector<1x8x16xf32>
    %764 = vector.shape_cast %763 : vector<1x8x16xf32> to vector<8x16xf32>
    %cst_389 = arith.constant dense<0.000000e+00> : vector<8x64xf32>
    %765 = tpu.matmul %764, %9, %cst_389 {dimension_numbers = #tpu.dot_dimension_numbers<[1], [0], [0], [1], [0, 0, 1, 1], [], []>} : vector<8x16xf32>, vector<16x64xf32>, vector<8x64xf32> -> vector<8x64xf32>
    %766 = arith.addf %762, %765 : vector<8x64xf32>
    %767 = vector.broadcast %10 : vector<1x64xf32> to vector<8x64xf32>
    %768 = arith.addf %766, %767 : vector<8x64xf32>
    %c0_390 = arith.constant 0 : index
    %c0_391 = arith.constant 0 : index
    %c0_392 = arith.constant 0 : index
    %769 = vector.load %arg31[%c0_390, %c0_391, %c0_392] : memref<2x8x16xf32, #tpu.memory_space<vmem>>, vector<1x8x16xf32>
    %770 = vector.shape_cast %769 : vector<1x8x16xf32> to vector<8x16xf32>
    %771 = vector.extract_strided_slice %768 {offsets = [0, 0], sizes = [8, 16], strides = [1, 1]} : vector<8x64xf32> to vector<8x16xf32>
    %772 = arith.negf %771 : vector<8x16xf32>
    %773 = math.exp %772 : vector<8x16xf32>
    %cst_393 = arith.constant 1.000000e+00 : f32
    %774 = vector.broadcast %cst_393 : f32 to vector<8x16xf32>
    %775 = arith.addf %774, %773 : vector<8x16xf32>
    %776 = arith.divf %774, %775 : vector<8x16xf32>
    %777 = vector.extract_strided_slice %768 {offsets = [0, 16], sizes = [8, 16], strides = [1, 1]} : vector<8x64xf32> to vector<8x16xf32>
    %778 = arith.negf %777 : vector<8x16xf32>
    %779 = math.exp %778 : vector<8x16xf32>
    %cst_394 = arith.constant 1.000000e+00 : f32
    %780 = vector.broadcast %cst_394 : f32 to vector<8x16xf32>
    %781 = arith.addf %780, %779 : vector<8x16xf32>
    %782 = arith.divf %780, %781 : vector<8x16xf32>
    %783 = vector.extract_strided_slice %768 {offsets = [0, 32], sizes = [8, 16], strides = [1, 1]} : vector<8x64xf32> to vector<8x16xf32>
    %784 = math.tanh %783 : vector<8x16xf32>
    %785 = vector.extract_strided_slice %768 {offsets = [0, 48], sizes = [8, 16], strides = [1, 1]} : vector<8x64xf32> to vector<8x16xf32>
    %786 = arith.negf %785 : vector<8x16xf32>
    %787 = math.exp %786 : vector<8x16xf32>
    %cst_395 = arith.constant 1.000000e+00 : f32
    %788 = vector.broadcast %cst_395 : f32 to vector<8x16xf32>
    %789 = arith.addf %788, %787 : vector<8x16xf32>
    %790 = arith.divf %788, %789 : vector<8x16xf32>
    %791 = arith.mulf %782, %770 : vector<8x16xf32>
    %792 = arith.mulf %776, %784 : vector<8x16xf32>
    %793 = arith.addf %791, %792 : vector<8x16xf32>
    %794 = math.tanh %793 : vector<8x16xf32>
    %795 = arith.mulf %790, %794 : vector<8x16xf32>
    %c0_396 = arith.constant 0 : index
    %c0_397 = arith.constant 0 : index
    %c0_398 = arith.constant 0 : index
    %796 = vector.load %arg30[%c0_396, %c0_397, %c0_398] : memref<2x8x16xf32, #tpu.memory_space<vmem>>, vector<1x8x16xf32>
    %797 = vector.shape_cast %796 : vector<1x8x16xf32> to vector<8x16xf32>
    %798 = vector.shape_cast %795 : vector<8x16xf32> to vector<1x8x16xf32>
    tpu.vector_store %arg30[%c0_396, %c0_397, %c0_398], %798 {strides = array<i32>} : memref<2x8x16xf32, #tpu.memory_space<vmem>>, vector<1x8x16xf32>,
    %c0_399 = arith.constant 0 : index
    %c0_400 = arith.constant 0 : index
    %c0_401 = arith.constant 0 : index
    %799 = vector.load %arg31[%c0_399, %c0_400, %c0_401] : memref<2x8x16xf32, #tpu.memory_space<vmem>>, vector<1x8x16xf32>
    %800 = vector.shape_cast %799 : vector<1x8x16xf32> to vector<8x16xf32>
    %801 = vector.shape_cast %793 : vector<8x16xf32> to vector<1x8x16xf32>
    tpu.vector_store %arg31[%c0_399, %c0_400, %c0_401], %801 {strides = array<i32>} : memref<2x8x16xf32, #tpu.memory_space<vmem>>, vector<1x8x16xf32>,
    %cst_402 = arith.constant dense<0.000000e+00> : vector<8x64xf32>
    %802 = tpu.matmul %795, %11, %cst_402 {dimension_numbers = #tpu.dot_dimension_numbers<[1], [0], [0], [1], [0, 0, 1, 1], [], []>} : vector<8x16xf32>, vector<16x64xf32>, vector<8x64xf32> -> vector<8x64xf32>
    %c1_403 = arith.constant 1 : index
    %c0_404 = arith.constant 0 : index
    %c0_405 = arith.constant 0 : index
    %803 = vector.load %arg30[%c1_403, %c0_404, %c0_405] : memref<2x8x16xf32, #tpu.memory_space<vmem>>, vector<1x8x16xf32>
    %804 = vector.shape_cast %803 : vector<1x8x16xf32> to vector<8x16xf32>
    %cst_406 = arith.constant dense<0.000000e+00> : vector<8x64xf32>
    %805 = tpu.matmul %804, %12, %cst_406 {dimension_numbers = #tpu.dot_dimension_numbers<[1], [0], [0], [1], [0, 0, 1, 1], [], []>} : vector<8x16xf32>, vector<16x64xf32>, vector<8x64xf32> -> vector<8x64xf32>
    %806 = arith.addf %802, %805 : vector<8x64xf32>
    %807 = vector.broadcast %13 : vector<1x64xf32> to vector<8x64xf32>
    %808 = arith.addf %806, %807 : vector<8x64xf32>
    %c1_407 = arith.constant 1 : index
    %c0_408 = arith.constant 0 : index
    %c0_409 = arith.constant 0 : index
    %809 = vector.load %arg31[%c1_407, %c0_408, %c0_409] : memref<2x8x16xf32, #tpu.memory_space<vmem>>, vector<1x8x16xf32>
    %810 = vector.shape_cast %809 : vector<1x8x16xf32> to vector<8x16xf32>
    %811 = vector.extract_strided_slice %808 {offsets = [0, 0], sizes = [8, 16], strides = [1, 1]} : vector<8x64xf32> to vector<8x16xf32>
    %812 = arith.negf %811 : vector<8x16xf32>
    %813 = math.exp %812 : vector<8x16xf32>
    %cst_410 = arith.constant 1.000000e+00 : f32
    %814 = vector.broadcast %cst_410 : f32 to vector<8x16xf32>
    %815 = arith.addf %814, %813 : vector<8x16xf32>
    %816 = arith.divf %814, %815 : vector<8x16xf32>
    %817 = vector.extract_strided_slice %808 {offsets = [0, 16], sizes = [8, 16], strides = [1, 1]} : vector<8x64xf32> to vector<8x16xf32>
    %818 = arith.negf %817 : vector<8x16xf32>
    %819 = math.exp %818 : vector<8x16xf32>
    %cst_411 = arith.constant 1.000000e+00 : f32
    %820 = vector.broadcast %cst_411 : f32 to vector<8x16xf32>
    %821 = arith.addf %820, %819 : vector<8x16xf32>
    %822 = arith.divf %820, %821 : vector<8x16xf32>
    %823 = vector.extract_strided_slice %808 {offsets = [0, 32], sizes = [8, 16], strides = [1, 1]} : vector<8x64xf32> to vector<8x16xf32>
    %824 = math.tanh %823 : vector<8x16xf32>
    %825 = vector.extract_strided_slice %808 {offsets = [0, 48], sizes = [8, 16], strides = [1, 1]} : vector<8x64xf32> to vector<8x16xf32>
    %826 = arith.negf %825 : vector<8x16xf32>
    %827 = math.exp %826 : vector<8x16xf32>
    %cst_412 = arith.constant 1.000000e+00 : f32
    %828 = vector.broadcast %cst_412 : f32 to vector<8x16xf32>
    %829 = arith.addf %828, %827 : vector<8x16xf32>
    %830 = arith.divf %828, %829 : vector<8x16xf32>
    %831 = arith.mulf %822, %810 : vector<8x16xf32>
    %832 = arith.mulf %816, %824 : vector<8x16xf32>
    %833 = arith.addf %831, %832 : vector<8x16xf32>
    %834 = math.tanh %833 : vector<8x16xf32>
    %835 = arith.mulf %830, %834 : vector<8x16xf32>
    %c1_413 = arith.constant 1 : index
    %c0_414 = arith.constant 0 : index
    %c0_415 = arith.constant 0 : index
    %836 = vector.load %arg30[%c1_413, %c0_414, %c0_415] : memref<2x8x16xf32, #tpu.memory_space<vmem>>, vector<1x8x16xf32>
    %837 = vector.shape_cast %836 : vector<1x8x16xf32> to vector<8x16xf32>
    %838 = vector.shape_cast %835 : vector<8x16xf32> to vector<1x8x16xf32>
    tpu.vector_store %arg30[%c1_413, %c0_414, %c0_415], %838 {strides = array<i32>} : memref<2x8x16xf32, #tpu.memory_space<vmem>>, vector<1x8x16xf32>,
    %c1_416 = arith.constant 1 : index
    %c0_417 = arith.constant 0 : index
    %c0_418 = arith.constant 0 : index
    %839 = vector.load %arg31[%c1_416, %c0_417, %c0_418] : memref<2x8x16xf32, #tpu.memory_space<vmem>>, vector<1x8x16xf32>
    %840 = vector.shape_cast %839 : vector<1x8x16xf32> to vector<8x16xf32>
    %841 = vector.shape_cast %833 : vector<8x16xf32> to vector<1x8x16xf32>
    tpu.vector_store %arg31[%c1_416, %c0_417, %c0_418], %841 {strides = array<i32>} : memref<2x8x16xf32, #tpu.memory_space<vmem>>, vector<1x8x16xf32>,
    %c32 = arith.constant 32 : index
    %c0_419 = arith.constant 0 : index
    %842 = vector.load %arg34[%c32, %c0_419] : memref<64x16xf32, #tpu.memory_space<vmem>>, vector<8x16xf32>
    tpu.vector_store %arg34[%c32, %c0_419], %835 {strides = array<i32>} : memref<64x16xf32, #tpu.memory_space<vmem>>, vector<8x16xf32>,
    %cst_420 = arith.constant dense<0.000000e+00> : vector<8x16xf32>
    %843 = tpu.matmul %835, %5, %cst_420 {dimension_numbers = #tpu.dot_dimension_numbers<[1], [0], [0], [1], [0, 0, 1, 1], [], []>} : vector<8x16xf32>, vector<16x16xf32>, vector<8x16xf32> -> vector<8x16xf32>
    %844 = vector.broadcast %6 : vector<1x16xf32> to vector<8x16xf32>
    %845 = arith.addf %843, %844 : vector<8x16xf32>
    %846 = math.tanh %845 : vector<8x16xf32>
    %cst_421 = arith.constant dense<0.000000e+00> : vector<8x128xf32>
    %847 = tpu.matmul %753, %14, %cst_421 {dimension_numbers = #tpu.dot_dimension_numbers<[1], [0], [0], [1], [0, 0, 1, 1], [], []>} : vector<8x16xf32>, vector<16x128xf32>, vector<8x128xf32> -> vector<8x128xf32>
    %cst_422 = arith.constant dense<0.000000e+00> : vector<8x128xf32>
    %848 = tpu.matmul %751, %15, %cst_422 {dimension_numbers = #tpu.dot_dimension_numbers<[1], [0], [0], [1], [0, 0, 1, 1], [], []>} : vector<8x8xf32>, vector<8x128xf32>, vector<8x128xf32> -> vector<8x128xf32>
    %849 = arith.addf %847, %848 : vector<8x128xf32>
    %cst_423 = arith.constant dense<0.000000e+00> : vector<8x128xf32>
    %850 = tpu.matmul %846, %16, %cst_423 {dimension_numbers = #tpu.dot_dimension_numbers<[1], [0], [0], [1], [0, 0, 1, 1], [], []>} : vector<8x16xf32>, vector<16x128xf32>, vector<8x128xf32> -> vector<8x128xf32>
    %851 = arith.addf %849, %850 : vector<8x128xf32>
    %c0_424 = arith.constant 0 : index
    %c0_425 = arith.constant 0 : index
    %c0_426 = arith.constant 0 : index
    %852 = vector.load %arg32[%c0_424, %c0_425, %c0_426] : memref<2x8x32xf32, #tpu.memory_space<vmem>>, vector<1x8x32xf32>
    %853 = vector.shape_cast %852 : vector<1x8x32xf32> to vector<8x32xf32>
    %cst_427 = arith.constant dense<0.000000e+00> : vector<8x128xf32>
    %854 = tpu.matmul %853, %17, %cst_427 {dimension_numbers = #tpu.dot_dimension_numbers<[1], [0], [0], [1], [0, 0, 1, 1], [], []>} : vector<8x32xf32>, vector<32x128xf32>, vector<8x128xf32> -> vector<8x128xf32>
    %855 = arith.addf %851, %854 : vector<8x128xf32>
    %856 = vector.broadcast %18 : vector<1x128xf32> to vector<8x128xf32>
    %857 = arith.addf %855, %856 : vector<8x128xf32>
    %c0_428 = arith.constant 0 : index
    %c0_429 = arith.constant 0 : index
    %c0_430 = arith.constant 0 : index
    %858 = vector.load %arg33[%c0_428, %c0_429, %c0_430] : memref<2x8x32xf32, #tpu.memory_space<vmem>>, vector<1x8x32xf32>
    %859 = vector.shape_cast %858 : vector<1x8x32xf32> to vector<8x32xf32>
    %860 = vector.extract_strided_slice %857 {offsets = [0, 0], sizes = [8, 32], strides = [1, 1]} : vector<8x128xf32> to vector<8x32xf32>
    %861 = arith.negf %860 : vector<8x32xf32>
    %862 = math.exp %861 : vector<8x32xf32>
    %cst_431 = arith.constant 1.000000e+00 : f32
    %863 = vector.broadcast %cst_431 : f32 to vector<8x32xf32>
    %864 = arith.addf %863, %862 : vector<8x32xf32>
    %865 = arith.divf %863, %864 : vector<8x32xf32>
    %866 = vector.extract_strided_slice %857 {offsets = [0, 32], sizes = [8, 32], strides = [1, 1]} : vector<8x128xf32> to vector<8x32xf32>
    %867 = arith.negf %866 : vector<8x32xf32>
    %868 = math.exp %867 : vector<8x32xf32>
    %cst_432 = arith.constant 1.000000e+00 : f32
    %869 = vector.broadcast %cst_432 : f32 to vector<8x32xf32>
    %870 = arith.addf %869, %868 : vector<8x32xf32>
    %871 = arith.divf %869, %870 : vector<8x32xf32>
    %872 = vector.extract_strided_slice %857 {offsets = [0, 64], sizes = [8, 32], strides = [1, 1]} : vector<8x128xf32> to vector<8x32xf32>
    %873 = math.tanh %872 : vector<8x32xf32>
    %874 = vector.extract_strided_slice %857 {offsets = [0, 96], sizes = [8, 32], strides = [1, 1]} : vector<8x128xf32> to vector<8x32xf32>
    %875 = arith.negf %874 : vector<8x32xf32>
    %876 = math.exp %875 : vector<8x32xf32>
    %cst_433 = arith.constant 1.000000e+00 : f32
    %877 = vector.broadcast %cst_433 : f32 to vector<8x32xf32>
    %878 = arith.addf %877, %876 : vector<8x32xf32>
    %879 = arith.divf %877, %878 : vector<8x32xf32>
    %880 = arith.mulf %871, %859 : vector<8x32xf32>
    %881 = arith.mulf %865, %873 : vector<8x32xf32>
    %882 = arith.addf %880, %881 : vector<8x32xf32>
    %883 = math.tanh %882 : vector<8x32xf32>
    %884 = arith.mulf %879, %883 : vector<8x32xf32>
    %c0_434 = arith.constant 0 : index
    %c0_435 = arith.constant 0 : index
    %c0_436 = arith.constant 0 : index
    %885 = vector.load %arg32[%c0_434, %c0_435, %c0_436] : memref<2x8x32xf32, #tpu.memory_space<vmem>>, vector<1x8x32xf32>
    %886 = vector.shape_cast %885 : vector<1x8x32xf32> to vector<8x32xf32>
    %887 = vector.shape_cast %884 : vector<8x32xf32> to vector<1x8x32xf32>
    tpu.vector_store %arg32[%c0_434, %c0_435, %c0_436], %887 {strides = array<i32>} : memref<2x8x32xf32, #tpu.memory_space<vmem>>, vector<1x8x32xf32>,
    %c0_437 = arith.constant 0 : index
    %c0_438 = arith.constant 0 : index
    %c0_439 = arith.constant 0 : index
    %888 = vector.load %arg33[%c0_437, %c0_438, %c0_439] : memref<2x8x32xf32, #tpu.memory_space<vmem>>, vector<1x8x32xf32>
    %889 = vector.shape_cast %888 : vector<1x8x32xf32> to vector<8x32xf32>
    %890 = vector.shape_cast %882 : vector<8x32xf32> to vector<1x8x32xf32>
    tpu.vector_store %arg33[%c0_437, %c0_438, %c0_439], %890 {strides = array<i32>} : memref<2x8x32xf32, #tpu.memory_space<vmem>>, vector<1x8x32xf32>,
    %cst_440 = arith.constant dense<0.000000e+00> : vector<8x128xf32>
    %891 = tpu.matmul %884, %19, %cst_440 {dimension_numbers = #tpu.dot_dimension_numbers<[1], [0], [0], [1], [0, 0, 1, 1], [], []>} : vector<8x32xf32>, vector<32x128xf32>, vector<8x128xf32> -> vector<8x128xf32>
    %c1_441 = arith.constant 1 : index
    %c0_442 = arith.constant 0 : index
    %c0_443 = arith.constant 0 : index
    %892 = vector.load %arg32[%c1_441, %c0_442, %c0_443] : memref<2x8x32xf32, #tpu.memory_space<vmem>>, vector<1x8x32xf32>
    %893 = vector.shape_cast %892 : vector<1x8x32xf32> to vector<8x32xf32>
    %cst_444 = arith.constant dense<0.000000e+00> : vector<8x128xf32>
    %894 = tpu.matmul %893, %20, %cst_444 {dimension_numbers = #tpu.dot_dimension_numbers<[1], [0], [0], [1], [0, 0, 1, 1], [], []>} : vector<8x32xf32>, vector<32x128xf32>, vector<8x128xf32> -> vector<8x128xf32>
    %895 = arith.addf %891, %894 : vector<8x128xf32>
    %896 = vector.broadcast %21 : vector<1x128xf32> to vector<8x128xf32>
    %897 = arith.addf %895, %896 : vector<8x128xf32>
    %c1_445 = arith.constant 1 : index
    %c0_446 = arith.constant 0 : index
    %c0_447 = arith.constant 0 : index
    %898 = vector.load %arg33[%c1_445, %c0_446, %c0_447] : memref<2x8x32xf32, #tpu.memory_space<vmem>>, vector<1x8x32xf32>
    %899 = vector.shape_cast %898 : vector<1x8x32xf32> to vector<8x32xf32>
    %900 = vector.extract_strided_slice %897 {offsets = [0, 0], sizes = [8, 32], strides = [1, 1]} : vector<8x128xf32> to vector<8x32xf32>
    %901 = arith.negf %900 : vector<8x32xf32>
    %902 = math.exp %901 : vector<8x32xf32>
    %cst_448 = arith.constant 1.000000e+00 : f32
    %903 = vector.broadcast %cst_448 : f32 to vector<8x32xf32>
    %904 = arith.addf %903, %902 : vector<8x32xf32>
    %905 = arith.divf %903, %904 : vector<8x32xf32>
    %906 = vector.extract_strided_slice %897 {offsets = [0, 32], sizes = [8, 32], strides = [1, 1]} : vector<8x128xf32> to vector<8x32xf32>
    %907 = arith.negf %906 : vector<8x32xf32>
    %908 = math.exp %907 : vector<8x32xf32>
    %cst_449 = arith.constant 1.000000e+00 : f32
    %909 = vector.broadcast %cst_449 : f32 to vector<8x32xf32>
    %910 = arith.addf %909, %908 : vector<8x32xf32>
    %911 = arith.divf %909, %910 : vector<8x32xf32>
    %912 = vector.extract_strided_slice %897 {offsets = [0, 64], sizes = [8, 32], strides = [1, 1]} : vector<8x128xf32> to vector<8x32xf32>
    %913 = math.tanh %912 : vector<8x32xf32>
    %914 = vector.extract_strided_slice %897 {offsets = [0, 96], sizes = [8, 32], strides = [1, 1]} : vector<8x128xf32> to vector<8x32xf32>
    %915 = arith.negf %914 : vector<8x32xf32>
    %916 = math.exp %915 : vector<8x32xf32>
    %cst_450 = arith.constant 1.000000e+00 : f32
    %917 = vector.broadcast %cst_450 : f32 to vector<8x32xf32>
    %918 = arith.addf %917, %916 : vector<8x32xf32>
    %919 = arith.divf %917, %918 : vector<8x32xf32>
    %920 = arith.mulf %911, %899 : vector<8x32xf32>
    %921 = arith.mulf %905, %913 : vector<8x32xf32>
    %922 = arith.addf %920, %921 : vector<8x32xf32>
    %923 = math.tanh %922 : vector<8x32xf32>
    %924 = arith.mulf %919, %923 : vector<8x32xf32>
    %c1_451 = arith.constant 1 : index
    %c0_452 = arith.constant 0 : index
    %c0_453 = arith.constant 0 : index
    %925 = vector.load %arg32[%c1_451, %c0_452, %c0_453] : memref<2x8x32xf32, #tpu.memory_space<vmem>>, vector<1x8x32xf32>
    %926 = vector.shape_cast %925 : vector<1x8x32xf32> to vector<8x32xf32>
    %927 = vector.shape_cast %924 : vector<8x32xf32> to vector<1x8x32xf32>
    tpu.vector_store %arg32[%c1_451, %c0_452, %c0_453], %927 {strides = array<i32>} : memref<2x8x32xf32, #tpu.memory_space<vmem>>, vector<1x8x32xf32>,
    %c1_454 = arith.constant 1 : index
    %c0_455 = arith.constant 0 : index
    %c0_456 = arith.constant 0 : index
    %928 = vector.load %arg33[%c1_454, %c0_455, %c0_456] : memref<2x8x32xf32, #tpu.memory_space<vmem>>, vector<1x8x32xf32>
    %929 = vector.shape_cast %928 : vector<1x8x32xf32> to vector<8x32xf32>
    %930 = vector.shape_cast %922 : vector<8x32xf32> to vector<1x8x32xf32>
    tpu.vector_store %arg33[%c1_454, %c0_455, %c0_456], %930 {strides = array<i32>} : memref<2x8x32xf32, #tpu.memory_space<vmem>>, vector<1x8x32xf32>,
    %c32_457 = arith.constant 32 : index
    %c0_458 = arith.constant 0 : index
    %931 = vector.load %arg35[%c32_457, %c0_458] : memref<64x32xf32, #tpu.memory_space<vmem>>, vector<8x32xf32>
    tpu.vector_store %arg35[%c32_457, %c0_458], %924 {strides = array<i32>} : memref<64x32xf32, #tpu.memory_space<vmem>>, vector<8x32xf32>,
    %c5 = arith.constant 5 : index
    %c0_459 = arith.constant 0 : index
    %c0_460 = arith.constant 0 : index
    %932 = vector.load %arg1[%c5, %c0_459, %c0_460] : memref<8x8x8xf32, #tpu.memory_space<vmem>>, vector<1x8x8xf32>
    %933 = vector.shape_cast %932 : vector<1x8x8xf32> to vector<8x8xf32>
    %c5_461 = arith.constant 5 : index
    %c0_462 = arith.constant 0 : index
    %c0_463 = arith.constant 0 : index
    %934 = vector.load %arg2[%c5_461, %c0_462, %c0_463] : memref<8x8x16xf32, #tpu.memory_space<vmem>>, vector<1x8x16xf32>
    %935 = vector.shape_cast %934 : vector<1x8x16xf32> to vector<8x16xf32>
    %c1_464 = arith.constant 1 : index
    %c0_465 = arith.constant 0 : index
    %c0_466 = arith.constant 0 : index
    %936 = vector.load %arg32[%c1_464, %c0_465, %c0_466] : memref<2x8x32xf32, #tpu.memory_space<vmem>>, vector<1x8x32xf32>
    %937 = vector.shape_cast %936 : vector<1x8x32xf32> to vector<8x32xf32>
    %cst_467 = arith.constant dense<0.000000e+00> : vector<8x32xf32>
    %938 = tpu.matmul %937, %3, %cst_467 {dimension_numbers = #tpu.dot_dimension_numbers<[1], [0], [0], [1], [0, 0, 1, 1], [], []>} : vector<8x32xf32>, vector<32x32xf32>, vector<8x32xf32> -> vector<8x32xf32>
    %939 = vector.broadcast %4 : vector<1x32xf32> to vector<8x32xf32>
    %940 = arith.addf %938, %939 : vector<8x32xf32>
    %941 = math.tanh %940 : vector<8x32xf32>
    %cst_468 = arith.constant dense<0.000000e+00> : vector<8x64xf32>
    %942 = tpu.matmul %933, %7, %cst_468 {dimension_numbers = #tpu.dot_dimension_numbers<[1], [0], [0], [1], [0, 0, 1, 1], [], []>} : vector<8x8xf32>, vector<8x64xf32>, vector<8x64xf32> -> vector<8x64xf32>
    %cst_469 = arith.constant dense<0.000000e+00> : vector<8x64xf32>
    %943 = tpu.matmul %941, %8, %cst_469 {dimension_numbers = #tpu.dot_dimension_numbers<[1], [0], [0], [1], [0, 0, 1, 1], [], []>} : vector<8x32xf32>, vector<32x64xf32>, vector<8x64xf32> -> vector<8x64xf32>
    %944 = arith.addf %942, %943 : vector<8x64xf32>
    %c0_470 = arith.constant 0 : index
    %c0_471 = arith.constant 0 : index
    %c0_472 = arith.constant 0 : index
    %945 = vector.load %arg30[%c0_470, %c0_471, %c0_472] : memref<2x8x16xf32, #tpu.memory_space<vmem>>, vector<1x8x16xf32>
    %946 = vector.shape_cast %945 : vector<1x8x16xf32> to vector<8x16xf32>
    %cst_473 = arith.constant dense<0.000000e+00> : vector<8x64xf32>
    %947 = tpu.matmul %946, %9, %cst_473 {dimension_numbers = #tpu.dot_dimension_numbers<[1], [0], [0], [1], [0, 0, 1, 1], [], []>} : vector<8x16xf32>, vector<16x64xf32>, vector<8x64xf32> -> vector<8x64xf32>
    %948 = arith.addf %944, %947 : vector<8x64xf32>
    %949 = vector.broadcast %10 : vector<1x64xf32> to vector<8x64xf32>
    %950 = arith.addf %948, %949 : vector<8x64xf32>
    %c0_474 = arith.constant 0 : index
    %c0_475 = arith.constant 0 : index
    %c0_476 = arith.constant 0 : index
    %951 = vector.load %arg31[%c0_474, %c0_475, %c0_476] : memref<2x8x16xf32, #tpu.memory_space<vmem>>, vector<1x8x16xf32>
    %952 = vector.shape_cast %951 : vector<1x8x16xf32> to vector<8x16xf32>
    %953 = vector.extract_strided_slice %950 {offsets = [0, 0], sizes = [8, 16], strides = [1, 1]} : vector<8x64xf32> to vector<8x16xf32>
    %954 = arith.negf %953 : vector<8x16xf32>
    %955 = math.exp %954 : vector<8x16xf32>
    %cst_477 = arith.constant 1.000000e+00 : f32
    %956 = vector.broadcast %cst_477 : f32 to vector<8x16xf32>
    %957 = arith.addf %956, %955 : vector<8x16xf32>
    %958 = arith.divf %956, %957 : vector<8x16xf32>
    %959 = vector.extract_strided_slice %950 {offsets = [0, 16], sizes = [8, 16], strides = [1, 1]} : vector<8x64xf32> to vector<8x16xf32>
    %960 = arith.negf %959 : vector<8x16xf32>
    %961 = math.exp %960 : vector<8x16xf32>
    %cst_478 = arith.constant 1.000000e+00 : f32
    %962 = vector.broadcast %cst_478 : f32 to vector<8x16xf32>
    %963 = arith.addf %962, %961 : vector<8x16xf32>
    %964 = arith.divf %962, %963 : vector<8x16xf32>
    %965 = vector.extract_strided_slice %950 {offsets = [0, 32], sizes = [8, 16], strides = [1, 1]} : vector<8x64xf32> to vector<8x16xf32>
    %966 = math.tanh %965 : vector<8x16xf32>
    %967 = vector.extract_strided_slice %950 {offsets = [0, 48], sizes = [8, 16], strides = [1, 1]} : vector<8x64xf32> to vector<8x16xf32>
    %968 = arith.negf %967 : vector<8x16xf32>
    %969 = math.exp %968 : vector<8x16xf32>
    %cst_479 = arith.constant 1.000000e+00 : f32
    %970 = vector.broadcast %cst_479 : f32 to vector<8x16xf32>
    %971 = arith.addf %970, %969 : vector<8x16xf32>
    %972 = arith.divf %970, %971 : vector<8x16xf32>
    %973 = arith.mulf %964, %952 : vector<8x16xf32>
    %974 = arith.mulf %958, %966 : vector<8x16xf32>
    %975 = arith.addf %973, %974 : vector<8x16xf32>
    %976 = math.tanh %975 : vector<8x16xf32>
    %977 = arith.mulf %972, %976 : vector<8x16xf32>
    %c0_480 = arith.constant 0 : index
    %c0_481 = arith.constant 0 : index
    %c0_482 = arith.constant 0 : index
    %978 = vector.load %arg30[%c0_480, %c0_481, %c0_482] : memref<2x8x16xf32, #tpu.memory_space<vmem>>, vector<1x8x16xf32>
    %979 = vector.shape_cast %978 : vector<1x8x16xf32> to vector<8x16xf32>
    %980 = vector.shape_cast %977 : vector<8x16xf32> to vector<1x8x16xf32>
    tpu.vector_store %arg30[%c0_480, %c0_481, %c0_482], %980 {strides = array<i32>} : memref<2x8x16xf32, #tpu.memory_space<vmem>>, vector<1x8x16xf32>,
    %c0_483 = arith.constant 0 : index
    %c0_484 = arith.constant 0 : index
    %c0_485 = arith.constant 0 : index
    %981 = vector.load %arg31[%c0_483, %c0_484, %c0_485] : memref<2x8x16xf32, #tpu.memory_space<vmem>>, vector<1x8x16xf32>
    %982 = vector.shape_cast %981 : vector<1x8x16xf32> to vector<8x16xf32>
    %983 = vector.shape_cast %975 : vector<8x16xf32> to vector<1x8x16xf32>
    tpu.vector_store %arg31[%c0_483, %c0_484, %c0_485], %983 {strides = array<i32>} : memref<2x8x16xf32, #tpu.memory_space<vmem>>, vector<1x8x16xf32>,
    %cst_486 = arith.constant dense<0.000000e+00> : vector<8x64xf32>
    %984 = tpu.matmul %977, %11, %cst_486 {dimension_numbers = #tpu.dot_dimension_numbers<[1], [0], [0], [1], [0, 0, 1, 1], [], []>} : vector<8x16xf32>, vector<16x64xf32>, vector<8x64xf32> -> vector<8x64xf32>
    %c1_487 = arith.constant 1 : index
    %c0_488 = arith.constant 0 : index
    %c0_489 = arith.constant 0 : index
    %985 = vector.load %arg30[%c1_487, %c0_488, %c0_489] : memref<2x8x16xf32, #tpu.memory_space<vmem>>, vector<1x8x16xf32>
    %986 = vector.shape_cast %985 : vector<1x8x16xf32> to vector<8x16xf32>
    %cst_490 = arith.constant dense<0.000000e+00> : vector<8x64xf32>
    %987 = tpu.matmul %986, %12, %cst_490 {dimension_numbers = #tpu.dot_dimension_numbers<[1], [0], [0], [1], [0, 0, 1, 1], [], []>} : vector<8x16xf32>, vector<16x64xf32>, vector<8x64xf32> -> vector<8x64xf32>
    %988 = arith.addf %984, %987 : vector<8x64xf32>
    %989 = vector.broadcast %13 : vector<1x64xf32> to vector<8x64xf32>
    %990 = arith.addf %988, %989 : vector<8x64xf32>
    %c1_491 = arith.constant 1 : index
    %c0_492 = arith.constant 0 : index
    %c0_493 = arith.constant 0 : index
    %991 = vector.load %arg31[%c1_491, %c0_492, %c0_493] : memref<2x8x16xf32, #tpu.memory_space<vmem>>, vector<1x8x16xf32>
    %992 = vector.shape_cast %991 : vector<1x8x16xf32> to vector<8x16xf32>
    %993 = vector.extract_strided_slice %990 {offsets = [0, 0], sizes = [8, 16], strides = [1, 1]} : vector<8x64xf32> to vector<8x16xf32>
    %994 = arith.negf %993 : vector<8x16xf32>
    %995 = math.exp %994 : vector<8x16xf32>
    %cst_494 = arith.constant 1.000000e+00 : f32
    %996 = vector.broadcast %cst_494 : f32 to vector<8x16xf32>
    %997 = arith.addf %996, %995 : vector<8x16xf32>
    %998 = arith.divf %996, %997 : vector<8x16xf32>
    %999 = vector.extract_strided_slice %990 {offsets = [0, 16], sizes = [8, 16], strides = [1, 1]} : vector<8x64xf32> to vector<8x16xf32>
    %1000 = arith.negf %999 : vector<8x16xf32>
    %1001 = math.exp %1000 : vector<8x16xf32>
    %cst_495 = arith.constant 1.000000e+00 : f32
    %1002 = vector.broadcast %cst_495 : f32 to vector<8x16xf32>
    %1003 = arith.addf %1002, %1001 : vector<8x16xf32>
    %1004 = arith.divf %1002, %1003 : vector<8x16xf32>
    %1005 = vector.extract_strided_slice %990 {offsets = [0, 32], sizes = [8, 16], strides = [1, 1]} : vector<8x64xf32> to vector<8x16xf32>
    %1006 = math.tanh %1005 : vector<8x16xf32>
    %1007 = vector.extract_strided_slice %990 {offsets = [0, 48], sizes = [8, 16], strides = [1, 1]} : vector<8x64xf32> to vector<8x16xf32>
    %1008 = arith.negf %1007 : vector<8x16xf32>
    %1009 = math.exp %1008 : vector<8x16xf32>
    %cst_496 = arith.constant 1.000000e+00 : f32
    %1010 = vector.broadcast %cst_496 : f32 to vector<8x16xf32>
    %1011 = arith.addf %1010, %1009 : vector<8x16xf32>
    %1012 = arith.divf %1010, %1011 : vector<8x16xf32>
    %1013 = arith.mulf %1004, %992 : vector<8x16xf32>
    %1014 = arith.mulf %998, %1006 : vector<8x16xf32>
    %1015 = arith.addf %1013, %1014 : vector<8x16xf32>
    %1016 = math.tanh %1015 : vector<8x16xf32>
    %1017 = arith.mulf %1012, %1016 : vector<8x16xf32>
    %c1_497 = arith.constant 1 : index
    %c0_498 = arith.constant 0 : index
    %c0_499 = arith.constant 0 : index
    %1018 = vector.load %arg30[%c1_497, %c0_498, %c0_499] : memref<2x8x16xf32, #tpu.memory_space<vmem>>, vector<1x8x16xf32>
    %1019 = vector.shape_cast %1018 : vector<1x8x16xf32> to vector<8x16xf32>
    %1020 = vector.shape_cast %1017 : vector<8x16xf32> to vector<1x8x16xf32>
    tpu.vector_store %arg30[%c1_497, %c0_498, %c0_499], %1020 {strides = array<i32>} : memref<2x8x16xf32, #tpu.memory_space<vmem>>, vector<1x8x16xf32>,
    %c1_500 = arith.constant 1 : index
    %c0_501 = arith.constant 0 : index
    %c0_502 = arith.constant 0 : index
    %1021 = vector.load %arg31[%c1_500, %c0_501, %c0_502] : memref<2x8x16xf32, #tpu.memory_space<vmem>>, vector<1x8x16xf32>
    %1022 = vector.shape_cast %1021 : vector<1x8x16xf32> to vector<8x16xf32>
    %1023 = vector.shape_cast %1015 : vector<8x16xf32> to vector<1x8x16xf32>
    tpu.vector_store %arg31[%c1_500, %c0_501, %c0_502], %1023 {strides = array<i32>} : memref<2x8x16xf32, #tpu.memory_space<vmem>>, vector<1x8x16xf32>,
    %c40 = arith.constant 40 : index
    %c0_503 = arith.constant 0 : index
    %1024 = vector.load %arg34[%c40, %c0_503] : memref<64x16xf32, #tpu.memory_space<vmem>>, vector<8x16xf32>
    tpu.vector_store %arg34[%c40, %c0_503], %1017 {strides = array<i32>} : memref<64x16xf32, #tpu.memory_space<vmem>>, vector<8x16xf32>,
    %cst_504 = arith.constant dense<0.000000e+00> : vector<8x16xf32>
    %1025 = tpu.matmul %1017, %5, %cst_504 {dimension_numbers = #tpu.dot_dimension_numbers<[1], [0], [0], [1], [0, 0, 1, 1], [], []>} : vector<8x16xf32>, vector<16x16xf32>, vector<8x16xf32> -> vector<8x16xf32>
    %1026 = vector.broadcast %6 : vector<1x16xf32> to vector<8x16xf32>
    %1027 = arith.addf %1025, %1026 : vector<8x16xf32>
    %1028 = math.tanh %1027 : vector<8x16xf32>
    %cst_505 = arith.constant dense<0.000000e+00> : vector<8x128xf32>
    %1029 = tpu.matmul %935, %14, %cst_505 {dimension_numbers = #tpu.dot_dimension_numbers<[1], [0], [0], [1], [0, 0, 1, 1], [], []>} : vector<8x16xf32>, vector<16x128xf32>, vector<8x128xf32> -> vector<8x128xf32>
    %cst_506 = arith.constant dense<0.000000e+00> : vector<8x128xf32>
    %1030 = tpu.matmul %933, %15, %cst_506 {dimension_numbers = #tpu.dot_dimension_numbers<[1], [0], [0], [1], [0, 0, 1, 1], [], []>} : vector<8x8xf32>, vector<8x128xf32>, vector<8x128xf32> -> vector<8x128xf32>
    %1031 = arith.addf %1029, %1030 : vector<8x128xf32>
    %cst_507 = arith.constant dense<0.000000e+00> : vector<8x128xf32>
    %1032 = tpu.matmul %1028, %16, %cst_507 {dimension_numbers = #tpu.dot_dimension_numbers<[1], [0], [0], [1], [0, 0, 1, 1], [], []>} : vector<8x16xf32>, vector<16x128xf32>, vector<8x128xf32> -> vector<8x128xf32>
    %1033 = arith.addf %1031, %1032 : vector<8x128xf32>
    %c0_508 = arith.constant 0 : index
    %c0_509 = arith.constant 0 : index
    %c0_510 = arith.constant 0 : index
    %1034 = vector.load %arg32[%c0_508, %c0_509, %c0_510] : memref<2x8x32xf32, #tpu.memory_space<vmem>>, vector<1x8x32xf32>
    %1035 = vector.shape_cast %1034 : vector<1x8x32xf32> to vector<8x32xf32>
    %cst_511 = arith.constant dense<0.000000e+00> : vector<8x128xf32>
    %1036 = tpu.matmul %1035, %17, %cst_511 {dimension_numbers = #tpu.dot_dimension_numbers<[1], [0], [0], [1], [0, 0, 1, 1], [], []>} : vector<8x32xf32>, vector<32x128xf32>, vector<8x128xf32> -> vector<8x128xf32>
    %1037 = arith.addf %1033, %1036 : vector<8x128xf32>
    %1038 = vector.broadcast %18 : vector<1x128xf32> to vector<8x128xf32>
    %1039 = arith.addf %1037, %1038 : vector<8x128xf32>
    %c0_512 = arith.constant 0 : index
    %c0_513 = arith.constant 0 : index
    %c0_514 = arith.constant 0 : index
    %1040 = vector.load %arg33[%c0_512, %c0_513, %c0_514] : memref<2x8x32xf32, #tpu.memory_space<vmem>>, vector<1x8x32xf32>
    %1041 = vector.shape_cast %1040 : vector<1x8x32xf32> to vector<8x32xf32>
    %1042 = vector.extract_strided_slice %1039 {offsets = [0, 0], sizes = [8, 32], strides = [1, 1]} : vector<8x128xf32> to vector<8x32xf32>
    %1043 = arith.negf %1042 : vector<8x32xf32>
    %1044 = math.exp %1043 : vector<8x32xf32>
    %cst_515 = arith.constant 1.000000e+00 : f32
    %1045 = vector.broadcast %cst_515 : f32 to vector<8x32xf32>
    %1046 = arith.addf %1045, %1044 : vector<8x32xf32>
    %1047 = arith.divf %1045, %1046 : vector<8x32xf32>
    %1048 = vector.extract_strided_slice %1039 {offsets = [0, 32], sizes = [8, 32], strides = [1, 1]} : vector<8x128xf32> to vector<8x32xf32>
    %1049 = arith.negf %1048 : vector<8x32xf32>
    %1050 = math.exp %1049 : vector<8x32xf32>
    %cst_516 = arith.constant 1.000000e+00 : f32
    %1051 = vector.broadcast %cst_516 : f32 to vector<8x32xf32>
    %1052 = arith.addf %1051, %1050 : vector<8x32xf32>
    %1053 = arith.divf %1051, %1052 : vector<8x32xf32>
    %1054 = vector.extract_strided_slice %1039 {offsets = [0, 64], sizes = [8, 32], strides = [1, 1]} : vector<8x128xf32> to vector<8x32xf32>
    %1055 = math.tanh %1054 : vector<8x32xf32>
    %1056 = vector.extract_strided_slice %1039 {offsets = [0, 96], sizes = [8, 32], strides = [1, 1]} : vector<8x128xf32> to vector<8x32xf32>
    %1057 = arith.negf %1056 : vector<8x32xf32>
    %1058 = math.exp %1057 : vector<8x32xf32>
    %cst_517 = arith.constant 1.000000e+00 : f32
    %1059 = vector.broadcast %cst_517 : f32 to vector<8x32xf32>
    %1060 = arith.addf %1059, %1058 : vector<8x32xf32>
    %1061 = arith.divf %1059, %1060 : vector<8x32xf32>
    %1062 = arith.mulf %1053, %1041 : vector<8x32xf32>
    %1063 = arith.mulf %1047, %1055 : vector<8x32xf32>
    %1064 = arith.addf %1062, %1063 : vector<8x32xf32>
    %1065 = math.tanh %1064 : vector<8x32xf32>
    %1066 = arith.mulf %1061, %1065 : vector<8x32xf32>
    %c0_518 = arith.constant 0 : index
    %c0_519 = arith.constant 0 : index
    %c0_520 = arith.constant 0 : index
    %1067 = vector.load %arg32[%c0_518, %c0_519, %c0_520] : memref<2x8x32xf32, #tpu.memory_space<vmem>>, vector<1x8x32xf32>
    %1068 = vector.shape_cast %1067 : vector<1x8x32xf32> to vector<8x32xf32>
    %1069 = vector.shape_cast %1066 : vector<8x32xf32> to vector<1x8x32xf32>
    tpu.vector_store %arg32[%c0_518, %c0_519, %c0_520], %1069 {strides = array<i32>} : memref<2x8x32xf32, #tpu.memory_space<vmem>>, vector<1x8x32xf32>,
    %c0_521 = arith.constant 0 : index
    %c0_522 = arith.constant 0 : index
    %c0_523 = arith.constant 0 : index
    %1070 = vector.load %arg33[%c0_521, %c0_522, %c0_523] : memref<2x8x32xf32, #tpu.memory_space<vmem>>, vector<1x8x32xf32>
    %1071 = vector.shape_cast %1070 : vector<1x8x32xf32> to vector<8x32xf32>
    %1072 = vector.shape_cast %1064 : vector<8x32xf32> to vector<1x8x32xf32>
    tpu.vector_store %arg33[%c0_521, %c0_522, %c0_523], %1072 {strides = array<i32>} : memref<2x8x32xf32, #tpu.memory_space<vmem>>, vector<1x8x32xf32>,
    %cst_524 = arith.constant dense<0.000000e+00> : vector<8x128xf32>
    %1073 = tpu.matmul %1066, %19, %cst_524 {dimension_numbers = #tpu.dot_dimension_numbers<[1], [0], [0], [1], [0, 0, 1, 1], [], []>} : vector<8x32xf32>, vector<32x128xf32>, vector<8x128xf32> -> vector<8x128xf32>
    %c1_525 = arith.constant 1 : index
    %c0_526 = arith.constant 0 : index
    %c0_527 = arith.constant 0 : index
    %1074 = vector.load %arg32[%c1_525, %c0_526, %c0_527] : memref<2x8x32xf32, #tpu.memory_space<vmem>>, vector<1x8x32xf32>
    %1075 = vector.shape_cast %1074 : vector<1x8x32xf32> to vector<8x32xf32>
    %cst_528 = arith.constant dense<0.000000e+00> : vector<8x128xf32>
    %1076 = tpu.matmul %1075, %20, %cst_528 {dimension_numbers = #tpu.dot_dimension_numbers<[1], [0], [0], [1], [0, 0, 1, 1], [], []>} : vector<8x32xf32>, vector<32x128xf32>, vector<8x128xf32> -> vector<8x128xf32>
    %1077 = arith.addf %1073, %1076 : vector<8x128xf32>
    %1078 = vector.broadcast %21 : vector<1x128xf32> to vector<8x128xf32>
    %1079 = arith.addf %1077, %1078 : vector<8x128xf32>
    %c1_529 = arith.constant 1 : index
    %c0_530 = arith.constant 0 : index
    %c0_531 = arith.constant 0 : index
    %1080 = vector.load %arg33[%c1_529, %c0_530, %c0_531] : memref<2x8x32xf32, #tpu.memory_space<vmem>>, vector<1x8x32xf32>
    %1081 = vector.shape_cast %1080 : vector<1x8x32xf32> to vector<8x32xf32>
    %1082 = vector.extract_strided_slice %1079 {offsets = [0, 0], sizes = [8, 32], strides = [1, 1]} : vector<8x128xf32> to vector<8x32xf32>
    %1083 = arith.negf %1082 : vector<8x32xf32>
    %1084 = math.exp %1083 : vector<8x32xf32>
    %cst_532 = arith.constant 1.000000e+00 : f32
    %1085 = vector.broadcast %cst_532 : f32 to vector<8x32xf32>
    %1086 = arith.addf %1085, %1084 : vector<8x32xf32>
    %1087 = arith.divf %1085, %1086 : vector<8x32xf32>
    %1088 = vector.extract_strided_slice %1079 {offsets = [0, 32], sizes = [8, 32], strides = [1, 1]} : vector<8x128xf32> to vector<8x32xf32>
    %1089 = arith.negf %1088 : vector<8x32xf32>
    %1090 = math.exp %1089 : vector<8x32xf32>
    %cst_533 = arith.constant 1.000000e+00 : f32
    %1091 = vector.broadcast %cst_533 : f32 to vector<8x32xf32>
    %1092 = arith.addf %1091, %1090 : vector<8x32xf32>
    %1093 = arith.divf %1091, %1092 : vector<8x32xf32>
    %1094 = vector.extract_strided_slice %1079 {offsets = [0, 64], sizes = [8, 32], strides = [1, 1]} : vector<8x128xf32> to vector<8x32xf32>
    %1095 = math.tanh %1094 : vector<8x32xf32>
    %1096 = vector.extract_strided_slice %1079 {offsets = [0, 96], sizes = [8, 32], strides = [1, 1]} : vector<8x128xf32> to vector<8x32xf32>
    %1097 = arith.negf %1096 : vector<8x32xf32>
    %1098 = math.exp %1097 : vector<8x32xf32>
    %cst_534 = arith.constant 1.000000e+00 : f32
    %1099 = vector.broadcast %cst_534 : f32 to vector<8x32xf32>
    %1100 = arith.addf %1099, %1098 : vector<8x32xf32>
    %1101 = arith.divf %1099, %1100 : vector<8x32xf32>
    %1102 = arith.mulf %1093, %1081 : vector<8x32xf32>
    %1103 = arith.mulf %1087, %1095 : vector<8x32xf32>
    %1104 = arith.addf %1102, %1103 : vector<8x32xf32>
    %1105 = math.tanh %1104 : vector<8x32xf32>
    %1106 = arith.mulf %1101, %1105 : vector<8x32xf32>
    %c1_535 = arith.constant 1 : index
    %c0_536 = arith.constant 0 : index
    %c0_537 = arith.constant 0 : index
    %1107 = vector.load %arg32[%c1_535, %c0_536, %c0_537] : memref<2x8x32xf32, #tpu.memory_space<vmem>>, vector<1x8x32xf32>
    %1108 = vector.shape_cast %1107 : vector<1x8x32xf32> to vector<8x32xf32>
    %1109 = vector.shape_cast %1106 : vector<8x32xf32> to vector<1x8x32xf32>
    tpu.vector_store %arg32[%c1_535, %c0_536, %c0_537], %1109 {strides = array<i32>} : memref<2x8x32xf32, #tpu.memory_space<vmem>>, vector<1x8x32xf32>,
    %c1_538 = arith.constant 1 : index
    %c0_539 = arith.constant 0 : index
    %c0_540 = arith.constant 0 : index
    %1110 = vector.load %arg33[%c1_538, %c0_539, %c0_540] : memref<2x8x32xf32, #tpu.memory_space<vmem>>, vector<1x8x32xf32>
    %1111 = vector.shape_cast %1110 : vector<1x8x32xf32> to vector<8x32xf32>
    %1112 = vector.shape_cast %1104 : vector<8x32xf32> to vector<1x8x32xf32>
    tpu.vector_store %arg33[%c1_538, %c0_539, %c0_540], %1112 {strides = array<i32>} : memref<2x8x32xf32, #tpu.memory_space<vmem>>, vector<1x8x32xf32>,
    %c40_541 = arith.constant 40 : index
    %c0_542 = arith.constant 0 : index
    %1113 = vector.load %arg35[%c40_541, %c0_542] : memref<64x32xf32, #tpu.memory_space<vmem>>, vector<8x32xf32>
    tpu.vector_store %arg35[%c40_541, %c0_542], %1106 {strides = array<i32>} : memref<64x32xf32, #tpu.memory_space<vmem>>, vector<8x32xf32>,
    %c6 = arith.constant 6 : index
    %c0_543 = arith.constant 0 : index
    %c0_544 = arith.constant 0 : index
    %1114 = vector.load %arg1[%c6, %c0_543, %c0_544] : memref<8x8x8xf32, #tpu.memory_space<vmem>>, vector<1x8x8xf32>
    %1115 = vector.shape_cast %1114 : vector<1x8x8xf32> to vector<8x8xf32>
    %c6_545 = arith.constant 6 : index
    %c0_546 = arith.constant 0 : index
    %c0_547 = arith.constant 0 : index
    %1116 = vector.load %arg2[%c6_545, %c0_546, %c0_547] : memref<8x8x16xf32, #tpu.memory_space<vmem>>, vector<1x8x16xf32>
    %1117 = vector.shape_cast %1116 : vector<1x8x16xf32> to vector<8x16xf32>
    %c1_548 = arith.constant 1 : index
    %c0_549 = arith.constant 0 : index
    %c0_550 = arith.constant 0 : index
    %1118 = vector.load %arg32[%c1_548, %c0_549, %c0_550] : memref<2x8x32xf32, #tpu.memory_space<vmem>>, vector<1x8x32xf32>
    %1119 = vector.shape_cast %1118 : vector<1x8x32xf32> to vector<8x32xf32>
    %cst_551 = arith.constant dense<0.000000e+00> : vector<8x32xf32>
    %1120 = tpu.matmul %1119, %3, %cst_551 {dimension_numbers = #tpu.dot_dimension_numbers<[1], [0], [0], [1], [0, 0, 1, 1], [], []>} : vector<8x32xf32>, vector<32x32xf32>, vector<8x32xf32> -> vector<8x32xf32>
    %1121 = vector.broadcast %4 : vector<1x32xf32> to vector<8x32xf32>
    %1122 = arith.addf %1120, %1121 : vector<8x32xf32>
    %1123 = math.tanh %1122 : vector<8x32xf32>
    %cst_552 = arith.constant dense<0.000000e+00> : vector<8x64xf32>
    %1124 = tpu.matmul %1115, %7, %cst_552 {dimension_numbers = #tpu.dot_dimension_numbers<[1], [0], [0], [1], [0, 0, 1, 1], [], []>} : vector<8x8xf32>, vector<8x64xf32>, vector<8x64xf32> -> vector<8x64xf32>
    %cst_553 = arith.constant dense<0.000000e+00> : vector<8x64xf32>
    %1125 = tpu.matmul %1123, %8, %cst_553 {dimension_numbers = #tpu.dot_dimension_numbers<[1], [0], [0], [1], [0, 0, 1, 1], [], []>} : vector<8x32xf32>, vector<32x64xf32>, vector<8x64xf32> -> vector<8x64xf32>
    %1126 = arith.addf %1124, %1125 : vector<8x64xf32>
    %c0_554 = arith.constant 0 : index
    %c0_555 = arith.constant 0 : index
    %c0_556 = arith.constant 0 : index
    %1127 = vector.load %arg30[%c0_554, %c0_555, %c0_556] : memref<2x8x16xf32, #tpu.memory_space<vmem>>, vector<1x8x16xf32>
    %1128 = vector.shape_cast %1127 : vector<1x8x16xf32> to vector<8x16xf32>
    %cst_557 = arith.constant dense<0.000000e+00> : vector<8x64xf32>
    %1129 = tpu.matmul %1128, %9, %cst_557 {dimension_numbers = #tpu.dot_dimension_numbers<[1], [0], [0], [1], [0, 0, 1, 1], [], []>} : vector<8x16xf32>, vector<16x64xf32>, vector<8x64xf32> -> vector<8x64xf32>
    %1130 = arith.addf %1126, %1129 : vector<8x64xf32>
    %1131 = vector.broadcast %10 : vector<1x64xf32> to vector<8x64xf32>
    %1132 = arith.addf %1130, %1131 : vector<8x64xf32>
    %c0_558 = arith.constant 0 : index
    %c0_559 = arith.constant 0 : index
    %c0_560 = arith.constant 0 : index
    %1133 = vector.load %arg31[%c0_558, %c0_559, %c0_560] : memref<2x8x16xf32, #tpu.memory_space<vmem>>, vector<1x8x16xf32>
    %1134 = vector.shape_cast %1133 : vector<1x8x16xf32> to vector<8x16xf32>
    %1135 = vector.extract_strided_slice %1132 {offsets = [0, 0], sizes = [8, 16], strides = [1, 1]} : vector<8x64xf32> to vector<8x16xf32>
    %1136 = arith.negf %1135 : vector<8x16xf32>
    %1137 = math.exp %1136 : vector<8x16xf32>
    %cst_561 = arith.constant 1.000000e+00 : f32
    %1138 = vector.broadcast %cst_561 : f32 to vector<8x16xf32>
    %1139 = arith.addf %1138, %1137 : vector<8x16xf32>
    %1140 = arith.divf %1138, %1139 : vector<8x16xf32>
    %1141 = vector.extract_strided_slice %1132 {offsets = [0, 16], sizes = [8, 16], strides = [1, 1]} : vector<8x64xf32> to vector<8x16xf32>
    %1142 = arith.negf %1141 : vector<8x16xf32>
    %1143 = math.exp %1142 : vector<8x16xf32>
    %cst_562 = arith.constant 1.000000e+00 : f32
    %1144 = vector.broadcast %cst_562 : f32 to vector<8x16xf32>
    %1145 = arith.addf %1144, %1143 : vector<8x16xf32>
    %1146 = arith.divf %1144, %1145 : vector<8x16xf32>
    %1147 = vector.extract_strided_slice %1132 {offsets = [0, 32], sizes = [8, 16], strides = [1, 1]} : vector<8x64xf32> to vector<8x16xf32>
    %1148 = math.tanh %1147 : vector<8x16xf32>
    %1149 = vector.extract_strided_slice %1132 {offsets = [0, 48], sizes = [8, 16], strides = [1, 1]} : vector<8x64xf32> to vector<8x16xf32>
    %1150 = arith.negf %1149 : vector<8x16xf32>
    %1151 = math.exp %1150 : vector<8x16xf32>
    %cst_563 = arith.constant 1.000000e+00 : f32
    %1152 = vector.broadcast %cst_563 : f32 to vector<8x16xf32>
    %1153 = arith.addf %1152, %1151 : vector<8x16xf32>
    %1154 = arith.divf %1152, %1153 : vector<8x16xf32>
    %1155 = arith.mulf %1146, %1134 : vector<8x16xf32>
    %1156 = arith.mulf %1140, %1148 : vector<8x16xf32>
    %1157 = arith.addf %1155, %1156 : vector<8x16xf32>
    %1158 = math.tanh %1157 : vector<8x16xf32>
    %1159 = arith.mulf %1154, %1158 : vector<8x16xf32>
    %c0_564 = arith.constant 0 : index
    %c0_565 = arith.constant 0 : index
    %c0_566 = arith.constant 0 : index
    %1160 = vector.load %arg30[%c0_564, %c0_565, %c0_566] : memref<2x8x16xf32, #tpu.memory_space<vmem>>, vector<1x8x16xf32>
    %1161 = vector.shape_cast %1160 : vector<1x8x16xf32> to vector<8x16xf32>
    %1162 = vector.shape_cast %1159 : vector<8x16xf32> to vector<1x8x16xf32>
    tpu.vector_store %arg30[%c0_564, %c0_565, %c0_566], %1162 {strides = array<i32>} : memref<2x8x16xf32, #tpu.memory_space<vmem>>, vector<1x8x16xf32>,
    %c0_567 = arith.constant 0 : index
    %c0_568 = arith.constant 0 : index
    %c0_569 = arith.constant 0 : index
    %1163 = vector.load %arg31[%c0_567, %c0_568, %c0_569] : memref<2x8x16xf32, #tpu.memory_space<vmem>>, vector<1x8x16xf32>
    %1164 = vector.shape_cast %1163 : vector<1x8x16xf32> to vector<8x16xf32>
    %1165 = vector.shape_cast %1157 : vector<8x16xf32> to vector<1x8x16xf32>
    tpu.vector_store %arg31[%c0_567, %c0_568, %c0_569], %1165 {strides = array<i32>} : memref<2x8x16xf32, #tpu.memory_space<vmem>>, vector<1x8x16xf32>,
    %cst_570 = arith.constant dense<0.000000e+00> : vector<8x64xf32>
    %1166 = tpu.matmul %1159, %11, %cst_570 {dimension_numbers = #tpu.dot_dimension_numbers<[1], [0], [0], [1], [0, 0, 1, 1], [], []>} : vector<8x16xf32>, vector<16x64xf32>, vector<8x64xf32> -> vector<8x64xf32>
    %c1_571 = arith.constant 1 : index
    %c0_572 = arith.constant 0 : index
    %c0_573 = arith.constant 0 : index
    %1167 = vector.load %arg30[%c1_571, %c0_572, %c0_573] : memref<2x8x16xf32, #tpu.memory_space<vmem>>, vector<1x8x16xf32>
    %1168 = vector.shape_cast %1167 : vector<1x8x16xf32> to vector<8x16xf32>
    %cst_574 = arith.constant dense<0.000000e+00> : vector<8x64xf32>
    %1169 = tpu.matmul %1168, %12, %cst_574 {dimension_numbers = #tpu.dot_dimension_numbers<[1], [0], [0], [1], [0, 0, 1, 1], [], []>} : vector<8x16xf32>, vector<16x64xf32>, vector<8x64xf32> -> vector<8x64xf32>
    %1170 = arith.addf %1166, %1169 : vector<8x64xf32>
    %1171 = vector.broadcast %13 : vector<1x64xf32> to vector<8x64xf32>
    %1172 = arith.addf %1170, %1171 : vector<8x64xf32>
    %c1_575 = arith.constant 1 : index
    %c0_576 = arith.constant 0 : index
    %c0_577 = arith.constant 0 : index
    %1173 = vector.load %arg31[%c1_575, %c0_576, %c0_577] : memref<2x8x16xf32, #tpu.memory_space<vmem>>, vector<1x8x16xf32>
    %1174 = vector.shape_cast %1173 : vector<1x8x16xf32> to vector<8x16xf32>
    %1175 = vector.extract_strided_slice %1172 {offsets = [0, 0], sizes = [8, 16], strides = [1, 1]} : vector<8x64xf32> to vector<8x16xf32>
    %1176 = arith.negf %1175 : vector<8x16xf32>
    %1177 = math.exp %1176 : vector<8x16xf32>
    %cst_578 = arith.constant 1.000000e+00 : f32
    %1178 = vector.broadcast %cst_578 : f32 to vector<8x16xf32>
    %1179 = arith.addf %1178, %1177 : vector<8x16xf32>
    %1180 = arith.divf %1178, %1179 : vector<8x16xf32>
    %1181 = vector.extract_strided_slice %1172 {offsets = [0, 16], sizes = [8, 16], strides = [1, 1]} : vector<8x64xf32> to vector<8x16xf32>
    %1182 = arith.negf %1181 : vector<8x16xf32>
    %1183 = math.exp %1182 : vector<8x16xf32>
    %cst_579 = arith.constant 1.000000e+00 : f32
    %1184 = vector.broadcast %cst_579 : f32 to vector<8x16xf32>
    %1185 = arith.addf %1184, %1183 : vector<8x16xf32>
    %1186 = arith.divf %1184, %1185 : vector<8x16xf32>
    %1187 = vector.extract_strided_slice %1172 {offsets = [0, 32], sizes = [8, 16], strides = [1, 1]} : vector<8x64xf32> to vector<8x16xf32>
    %1188 = math.tanh %1187 : vector<8x16xf32>
    %1189 = vector.extract_strided_slice %1172 {offsets = [0, 48], sizes = [8, 16], strides = [1, 1]} : vector<8x64xf32> to vector<8x16xf32>
    %1190 = arith.negf %1189 : vector<8x16xf32>
    %1191 = math.exp %1190 : vector<8x16xf32>
    %cst_580 = arith.constant 1.000000e+00 : f32
    %1192 = vector.broadcast %cst_580 : f32 to vector<8x16xf32>
    %1193 = arith.addf %1192, %1191 : vector<8x16xf32>
    %1194 = arith.divf %1192, %1193 : vector<8x16xf32>
    %1195 = arith.mulf %1186, %1174 : vector<8x16xf32>
    %1196 = arith.mulf %1180, %1188 : vector<8x16xf32>
    %1197 = arith.addf %1195, %1196 : vector<8x16xf32>
    %1198 = math.tanh %1197 : vector<8x16xf32>
    %1199 = arith.mulf %1194, %1198 : vector<8x16xf32>
    %c1_581 = arith.constant 1 : index
    %c0_582 = arith.constant 0 : index
    %c0_583 = arith.constant 0 : index
    %1200 = vector.load %arg30[%c1_581, %c0_582, %c0_583] : memref<2x8x16xf32, #tpu.memory_space<vmem>>, vector<1x8x16xf32>
    %1201 = vector.shape_cast %1200 : vector<1x8x16xf32> to vector<8x16xf32>
    %1202 = vector.shape_cast %1199 : vector<8x16xf32> to vector<1x8x16xf32>
    tpu.vector_store %arg30[%c1_581, %c0_582, %c0_583], %1202 {strides = array<i32>} : memref<2x8x16xf32, #tpu.memory_space<vmem>>, vector<1x8x16xf32>,
    %c1_584 = arith.constant 1 : index
    %c0_585 = arith.constant 0 : index
    %c0_586 = arith.constant 0 : index
    %1203 = vector.load %arg31[%c1_584, %c0_585, %c0_586] : memref<2x8x16xf32, #tpu.memory_space<vmem>>, vector<1x8x16xf32>
    %1204 = vector.shape_cast %1203 : vector<1x8x16xf32> to vector<8x16xf32>
    %1205 = vector.shape_cast %1197 : vector<8x16xf32> to vector<1x8x16xf32>
    tpu.vector_store %arg31[%c1_584, %c0_585, %c0_586], %1205 {strides = array<i32>} : memref<2x8x16xf32, #tpu.memory_space<vmem>>, vector<1x8x16xf32>,
    %c48 = arith.constant 48 : index
    %c0_587 = arith.constant 0 : index
    %1206 = vector.load %arg34[%c48, %c0_587] : memref<64x16xf32, #tpu.memory_space<vmem>>, vector<8x16xf32>
    tpu.vector_store %arg34[%c48, %c0_587], %1199 {strides = array<i32>} : memref<64x16xf32, #tpu.memory_space<vmem>>, vector<8x16xf32>,
    %cst_588 = arith.constant dense<0.000000e+00> : vector<8x16xf32>
    %1207 = tpu.matmul %1199, %5, %cst_588 {dimension_numbers = #tpu.dot_dimension_numbers<[1], [0], [0], [1], [0, 0, 1, 1], [], []>} : vector<8x16xf32>, vector<16x16xf32>, vector<8x16xf32> -> vector<8x16xf32>
    %1208 = vector.broadcast %6 : vector<1x16xf32> to vector<8x16xf32>
    %1209 = arith.addf %1207, %1208 : vector<8x16xf32>
    %1210 = math.tanh %1209 : vector<8x16xf32>
    %cst_589 = arith.constant dense<0.000000e+00> : vector<8x128xf32>
    %1211 = tpu.matmul %1117, %14, %cst_589 {dimension_numbers = #tpu.dot_dimension_numbers<[1], [0], [0], [1], [0, 0, 1, 1], [], []>} : vector<8x16xf32>, vector<16x128xf32>, vector<8x128xf32> -> vector<8x128xf32>
    %cst_590 = arith.constant dense<0.000000e+00> : vector<8x128xf32>
    %1212 = tpu.matmul %1115, %15, %cst_590 {dimension_numbers = #tpu.dot_dimension_numbers<[1], [0], [0], [1], [0, 0, 1, 1], [], []>} : vector<8x8xf32>, vector<8x128xf32>, vector<8x128xf32> -> vector<8x128xf32>
    %1213 = arith.addf %1211, %1212 : vector<8x128xf32>
    %cst_591 = arith.constant dense<0.000000e+00> : vector<8x128xf32>
    %1214 = tpu.matmul %1210, %16, %cst_591 {dimension_numbers = #tpu.dot_dimension_numbers<[1], [0], [0], [1], [0, 0, 1, 1], [], []>} : vector<8x16xf32>, vector<16x128xf32>, vector<8x128xf32> -> vector<8x128xf32>
    %1215 = arith.addf %1213, %1214 : vector<8x128xf32>
    %c0_592 = arith.constant 0 : index
    %c0_593 = arith.constant 0 : index
    %c0_594 = arith.constant 0 : index
    %1216 = vector.load %arg32[%c0_592, %c0_593, %c0_594] : memref<2x8x32xf32, #tpu.memory_space<vmem>>, vector<1x8x32xf32>
    %1217 = vector.shape_cast %1216 : vector<1x8x32xf32> to vector<8x32xf32>
    %cst_595 = arith.constant dense<0.000000e+00> : vector<8x128xf32>
    %1218 = tpu.matmul %1217, %17, %cst_595 {dimension_numbers = #tpu.dot_dimension_numbers<[1], [0], [0], [1], [0, 0, 1, 1], [], []>} : vector<8x32xf32>, vector<32x128xf32>, vector<8x128xf32> -> vector<8x128xf32>
    %1219 = arith.addf %1215, %1218 : vector<8x128xf32>
    %1220 = vector.broadcast %18 : vector<1x128xf32> to vector<8x128xf32>
    %1221 = arith.addf %1219, %1220 : vector<8x128xf32>
    %c0_596 = arith.constant 0 : index
    %c0_597 = arith.constant 0 : index
    %c0_598 = arith.constant 0 : index
    %1222 = vector.load %arg33[%c0_596, %c0_597, %c0_598] : memref<2x8x32xf32, #tpu.memory_space<vmem>>, vector<1x8x32xf32>
    %1223 = vector.shape_cast %1222 : vector<1x8x32xf32> to vector<8x32xf32>
    %1224 = vector.extract_strided_slice %1221 {offsets = [0, 0], sizes = [8, 32], strides = [1, 1]} : vector<8x128xf32> to vector<8x32xf32>
    %1225 = arith.negf %1224 : vector<8x32xf32>
    %1226 = math.exp %1225 : vector<8x32xf32>
    %cst_599 = arith.constant 1.000000e+00 : f32
    %1227 = vector.broadcast %cst_599 : f32 to vector<8x32xf32>
    %1228 = arith.addf %1227, %1226 : vector<8x32xf32>
    %1229 = arith.divf %1227, %1228 : vector<8x32xf32>
    %1230 = vector.extract_strided_slice %1221 {offsets = [0, 32], sizes = [8, 32], strides = [1, 1]} : vector<8x128xf32> to vector<8x32xf32>
    %1231 = arith.negf %1230 : vector<8x32xf32>
    %1232 = math.exp %1231 : vector<8x32xf32>
    %cst_600 = arith.constant 1.000000e+00 : f32
    %1233 = vector.broadcast %cst_600 : f32 to vector<8x32xf32>
    %1234 = arith.addf %1233, %1232 : vector<8x32xf32>
    %1235 = arith.divf %1233, %1234 : vector<8x32xf32>
    %1236 = vector.extract_strided_slice %1221 {offsets = [0, 64], sizes = [8, 32], strides = [1, 1]} : vector<8x128xf32> to vector<8x32xf32>
    %1237 = math.tanh %1236 : vector<8x32xf32>
    %1238 = vector.extract_strided_slice %1221 {offsets = [0, 96], sizes = [8, 32], strides = [1, 1]} : vector<8x128xf32> to vector<8x32xf32>
    %1239 = arith.negf %1238 : vector<8x32xf32>
    %1240 = math.exp %1239 : vector<8x32xf32>
    %cst_601 = arith.constant 1.000000e+00 : f32
    %1241 = vector.broadcast %cst_601 : f32 to vector<8x32xf32>
    %1242 = arith.addf %1241, %1240 : vector<8x32xf32>
    %1243 = arith.divf %1241, %1242 : vector<8x32xf32>
    %1244 = arith.mulf %1235, %1223 : vector<8x32xf32>
    %1245 = arith.mulf %1229, %1237 : vector<8x32xf32>
    %1246 = arith.addf %1244, %1245 : vector<8x32xf32>
    %1247 = math.tanh %1246 : vector<8x32xf32>
    %1248 = arith.mulf %1243, %1247 : vector<8x32xf32>
    %c0_602 = arith.constant 0 : index
    %c0_603 = arith.constant 0 : index
    %c0_604 = arith.constant 0 : index
    %1249 = vector.load %arg32[%c0_602, %c0_603, %c0_604] : memref<2x8x32xf32, #tpu.memory_space<vmem>>, vector<1x8x32xf32>
    %1250 = vector.shape_cast %1249 : vector<1x8x32xf32> to vector<8x32xf32>
    %1251 = vector.shape_cast %1248 : vector<8x32xf32> to vector<1x8x32xf32>
    tpu.vector_store %arg32[%c0_602, %c0_603, %c0_604], %1251 {strides = array<i32>} : memref<2x8x32xf32, #tpu.memory_space<vmem>>, vector<1x8x32xf32>,
    %c0_605 = arith.constant 0 : index
    %c0_606 = arith.constant 0 : index
    %c0_607 = arith.constant 0 : index
    %1252 = vector.load %arg33[%c0_605, %c0_606, %c0_607] : memref<2x8x32xf32, #tpu.memory_space<vmem>>, vector<1x8x32xf32>
    %1253 = vector.shape_cast %1252 : vector<1x8x32xf32> to vector<8x32xf32>
    %1254 = vector.shape_cast %1246 : vector<8x32xf32> to vector<1x8x32xf32>
    tpu.vector_store %arg33[%c0_605, %c0_606, %c0_607], %1254 {strides = array<i32>} : memref<2x8x32xf32, #tpu.memory_space<vmem>>, vector<1x8x32xf32>,
    %cst_608 = arith.constant dense<0.000000e+00> : vector<8x128xf32>
    %1255 = tpu.matmul %1248, %19, %cst_608 {dimension_numbers = #tpu.dot_dimension_numbers<[1], [0], [0], [1], [0, 0, 1, 1], [], []>} : vector<8x32xf32>, vector<32x128xf32>, vector<8x128xf32> -> vector<8x128xf32>
    %c1_609 = arith.constant 1 : index
    %c0_610 = arith.constant 0 : index
    %c0_611 = arith.constant 0 : index
    %1256 = vector.load %arg32[%c1_609, %c0_610, %c0_611] : memref<2x8x32xf32, #tpu.memory_space<vmem>>, vector<1x8x32xf32>
    %1257 = vector.shape_cast %1256 : vector<1x8x32xf32> to vector<8x32xf32>
    %cst_612 = arith.constant dense<0.000000e+00> : vector<8x128xf32>
    %1258 = tpu.matmul %1257, %20, %cst_612 {dimension_numbers = #tpu.dot_dimension_numbers<[1], [0], [0], [1], [0, 0, 1, 1], [], []>} : vector<8x32xf32>, vector<32x128xf32>, vector<8x128xf32> -> vector<8x128xf32>
    %1259 = arith.addf %1255, %1258 : vector<8x128xf32>
    %1260 = vector.broadcast %21 : vector<1x128xf32> to vector<8x128xf32>
    %1261 = arith.addf %1259, %1260 : vector<8x128xf32>
    %c1_613 = arith.constant 1 : index
    %c0_614 = arith.constant 0 : index
    %c0_615 = arith.constant 0 : index
    %1262 = vector.load %arg33[%c1_613, %c0_614, %c0_615] : memref<2x8x32xf32, #tpu.memory_space<vmem>>, vector<1x8x32xf32>
    %1263 = vector.shape_cast %1262 : vector<1x8x32xf32> to vector<8x32xf32>
    %1264 = vector.extract_strided_slice %1261 {offsets = [0, 0], sizes = [8, 32], strides = [1, 1]} : vector<8x128xf32> to vector<8x32xf32>
    %1265 = arith.negf %1264 : vector<8x32xf32>
    %1266 = math.exp %1265 : vector<8x32xf32>
    %cst_616 = arith.constant 1.000000e+00 : f32
    %1267 = vector.broadcast %cst_616 : f32 to vector<8x32xf32>
    %1268 = arith.addf %1267, %1266 : vector<8x32xf32>
    %1269 = arith.divf %1267, %1268 : vector<8x32xf32>
    %1270 = vector.extract_strided_slice %1261 {offsets = [0, 32], sizes = [8, 32], strides = [1, 1]} : vector<8x128xf32> to vector<8x32xf32>
    %1271 = arith.negf %1270 : vector<8x32xf32>
    %1272 = math.exp %1271 : vector<8x32xf32>
    %cst_617 = arith.constant 1.000000e+00 : f32
    %1273 = vector.broadcast %cst_617 : f32 to vector<8x32xf32>
    %1274 = arith.addf %1273, %1272 : vector<8x32xf32>
    %1275 = arith.divf %1273, %1274 : vector<8x32xf32>
    %1276 = vector.extract_strided_slice %1261 {offsets = [0, 64], sizes = [8, 32], strides = [1, 1]} : vector<8x128xf32> to vector<8x32xf32>
    %1277 = math.tanh %1276 : vector<8x32xf32>
    %1278 = vector.extract_strided_slice %1261 {offsets = [0, 96], sizes = [8, 32], strides = [1, 1]} : vector<8x128xf32> to vector<8x32xf32>
    %1279 = arith.negf %1278 : vector<8x32xf32>
    %1280 = math.exp %1279 : vector<8x32xf32>
    %cst_618 = arith.constant 1.000000e+00 : f32
    %1281 = vector.broadcast %cst_618 : f32 to vector<8x32xf32>
    %1282 = arith.addf %1281, %1280 : vector<8x32xf32>
    %1283 = arith.divf %1281, %1282 : vector<8x32xf32>
    %1284 = arith.mulf %1275, %1263 : vector<8x32xf32>
    %1285 = arith.mulf %1269, %1277 : vector<8x32xf32>
    %1286 = arith.addf %1284, %1285 : vector<8x32xf32>
    %1287 = math.tanh %1286 : vector<8x32xf32>
    %1288 = arith.mulf %1283, %1287 : vector<8x32xf32>
    %c1_619 = arith.constant 1 : index
    %c0_620 = arith.constant 0 : index
    %c0_621 = arith.constant 0 : index
    %1289 = vector.load %arg32[%c1_619, %c0_620, %c0_621] : memref<2x8x32xf32, #tpu.memory_space<vmem>>, vector<1x8x32xf32>
    %1290 = vector.shape_cast %1289 : vector<1x8x32xf32> to vector<8x32xf32>
    %1291 = vector.shape_cast %1288 : vector<8x32xf32> to vector<1x8x32xf32>
    tpu.vector_store %arg32[%c1_619, %c0_620, %c0_621], %1291 {strides = array<i32>} : memref<2x8x32xf32, #tpu.memory_space<vmem>>, vector<1x8x32xf32>,
    %c1_622 = arith.constant 1 : index
    %c0_623 = arith.constant 0 : index
    %c0_624 = arith.constant 0 : index
    %1292 = vector.load %arg33[%c1_622, %c0_623, %c0_624] : memref<2x8x32xf32, #tpu.memory_space<vmem>>, vector<1x8x32xf32>
    %1293 = vector.shape_cast %1292 : vector<1x8x32xf32> to vector<8x32xf32>
    %1294 = vector.shape_cast %1286 : vector<8x32xf32> to vector<1x8x32xf32>
    tpu.vector_store %arg33[%c1_622, %c0_623, %c0_624], %1294 {strides = array<i32>} : memref<2x8x32xf32, #tpu.memory_space<vmem>>, vector<1x8x32xf32>,
    %c48_625 = arith.constant 48 : index
    %c0_626 = arith.constant 0 : index
    %1295 = vector.load %arg35[%c48_625, %c0_626] : memref<64x32xf32, #tpu.memory_space<vmem>>, vector<8x32xf32>
    tpu.vector_store %arg35[%c48_625, %c0_626], %1288 {strides = array<i32>} : memref<64x32xf32, #tpu.memory_space<vmem>>, vector<8x32xf32>,
    %c7 = arith.constant 7 : index
    %c0_627 = arith.constant 0 : index
    %c0_628 = arith.constant 0 : index
    %1296 = vector.load %arg1[%c7, %c0_627, %c0_628] : memref<8x8x8xf32, #tpu.memory_space<vmem>>, vector<1x8x8xf32>
    %1297 = vector.shape_cast %1296 : vector<1x8x8xf32> to vector<8x8xf32>
    %c7_629 = arith.constant 7 : index
    %c0_630 = arith.constant 0 : index
    %c0_631 = arith.constant 0 : index
    %1298 = vector.load %arg2[%c7_629, %c0_630, %c0_631] : memref<8x8x16xf32, #tpu.memory_space<vmem>>, vector<1x8x16xf32>
    %1299 = vector.shape_cast %1298 : vector<1x8x16xf32> to vector<8x16xf32>
    %c1_632 = arith.constant 1 : index
    %c0_633 = arith.constant 0 : index
    %c0_634 = arith.constant 0 : index
    %1300 = vector.load %arg32[%c1_632, %c0_633, %c0_634] : memref<2x8x32xf32, #tpu.memory_space<vmem>>, vector<1x8x32xf32>
    %1301 = vector.shape_cast %1300 : vector<1x8x32xf32> to vector<8x32xf32>
    %cst_635 = arith.constant dense<0.000000e+00> : vector<8x32xf32>
    %1302 = tpu.matmul %1301, %3, %cst_635 {dimension_numbers = #tpu.dot_dimension_numbers<[1], [0], [0], [1], [0, 0, 1, 1], [], []>} : vector<8x32xf32>, vector<32x32xf32>, vector<8x32xf32> -> vector<8x32xf32>
    %1303 = vector.broadcast %4 : vector<1x32xf32> to vector<8x32xf32>
    %1304 = arith.addf %1302, %1303 : vector<8x32xf32>
    %1305 = math.tanh %1304 : vector<8x32xf32>
    %cst_636 = arith.constant dense<0.000000e+00> : vector<8x64xf32>
    %1306 = tpu.matmul %1297, %7, %cst_636 {dimension_numbers = #tpu.dot_dimension_numbers<[1], [0], [0], [1], [0, 0, 1, 1], [], []>} : vector<8x8xf32>, vector<8x64xf32>, vector<8x64xf32> -> vector<8x64xf32>
    %cst_637 = arith.constant dense<0.000000e+00> : vector<8x64xf32>
    %1307 = tpu.matmul %1305, %8, %cst_637 {dimension_numbers = #tpu.dot_dimension_numbers<[1], [0], [0], [1], [0, 0, 1, 1], [], []>} : vector<8x32xf32>, vector<32x64xf32>, vector<8x64xf32> -> vector<8x64xf32>
    %1308 = arith.addf %1306, %1307 : vector<8x64xf32>
    %c0_638 = arith.constant 0 : index
    %c0_639 = arith.constant 0 : index
    %c0_640 = arith.constant 0 : index
    %1309 = vector.load %arg30[%c0_638, %c0_639, %c0_640] : memref<2x8x16xf32, #tpu.memory_space<vmem>>, vector<1x8x16xf32>
    %1310 = vector.shape_cast %1309 : vector<1x8x16xf32> to vector<8x16xf32>
    %cst_641 = arith.constant dense<0.000000e+00> : vector<8x64xf32>
    %1311 = tpu.matmul %1310, %9, %cst_641 {dimension_numbers = #tpu.dot_dimension_numbers<[1], [0], [0], [1], [0, 0, 1, 1], [], []>} : vector<8x16xf32>, vector<16x64xf32>, vector<8x64xf32> -> vector<8x64xf32>
    %1312 = arith.addf %1308, %1311 : vector<8x64xf32>
    %1313 = vector.broadcast %10 : vector<1x64xf32> to vector<8x64xf32>
    %1314 = arith.addf %1312, %1313 : vector<8x64xf32>
    %c0_642 = arith.constant 0 : index
    %c0_643 = arith.constant 0 : index
    %c0_644 = arith.constant 0 : index
    %1315 = vector.load %arg31[%c0_642, %c0_643, %c0_644] : memref<2x8x16xf32, #tpu.memory_space<vmem>>, vector<1x8x16xf32>
    %1316 = vector.shape_cast %1315 : vector<1x8x16xf32> to vector<8x16xf32>
    %1317 = vector.extract_strided_slice %1314 {offsets = [0, 0], sizes = [8, 16], strides = [1, 1]} : vector<8x64xf32> to vector<8x16xf32>
    %1318 = arith.negf %1317 : vector<8x16xf32>
    %1319 = math.exp %1318 : vector<8x16xf32>
    %cst_645 = arith.constant 1.000000e+00 : f32
    %1320 = vector.broadcast %cst_645 : f32 to vector<8x16xf32>
    %1321 = arith.addf %1320, %1319 : vector<8x16xf32>
    %1322 = arith.divf %1320, %1321 : vector<8x16xf32>
    %1323 = vector.extract_strided_slice %1314 {offsets = [0, 16], sizes = [8, 16], strides = [1, 1]} : vector<8x64xf32> to vector<8x16xf32>
    %1324 = arith.negf %1323 : vector<8x16xf32>
    %1325 = math.exp %1324 : vector<8x16xf32>
    %cst_646 = arith.constant 1.000000e+00 : f32
    %1326 = vector.broadcast %cst_646 : f32 to vector<8x16xf32>
    %1327 = arith.addf %1326, %1325 : vector<8x16xf32>
    %1328 = arith.divf %1326, %1327 : vector<8x16xf32>
    %1329 = vector.extract_strided_slice %1314 {offsets = [0, 32], sizes = [8, 16], strides = [1, 1]} : vector<8x64xf32> to vector<8x16xf32>
    %1330 = math.tanh %1329 : vector<8x16xf32>
    %1331 = vector.extract_strided_slice %1314 {offsets = [0, 48], sizes = [8, 16], strides = [1, 1]} : vector<8x64xf32> to vector<8x16xf32>
    %1332 = arith.negf %1331 : vector<8x16xf32>
    %1333 = math.exp %1332 : vector<8x16xf32>
    %cst_647 = arith.constant 1.000000e+00 : f32
    %1334 = vector.broadcast %cst_647 : f32 to vector<8x16xf32>
    %1335 = arith.addf %1334, %1333 : vector<8x16xf32>
    %1336 = arith.divf %1334, %1335 : vector<8x16xf32>
    %1337 = arith.mulf %1328, %1316 : vector<8x16xf32>
    %1338 = arith.mulf %1322, %1330 : vector<8x16xf32>
    %1339 = arith.addf %1337, %1338 : vector<8x16xf32>
    %1340 = math.tanh %1339 : vector<8x16xf32>
    %1341 = arith.mulf %1336, %1340 : vector<8x16xf32>
    %c0_648 = arith.constant 0 : index
    %c0_649 = arith.constant 0 : index
    %c0_650 = arith.constant 0 : index
    %1342 = vector.load %arg30[%c0_648, %c0_649, %c0_650] : memref<2x8x16xf32, #tpu.memory_space<vmem>>, vector<1x8x16xf32>
    %1343 = vector.shape_cast %1342 : vector<1x8x16xf32> to vector<8x16xf32>
    %1344 = vector.shape_cast %1341 : vector<8x16xf32> to vector<1x8x16xf32>
    tpu.vector_store %arg30[%c0_648, %c0_649, %c0_650], %1344 {strides = array<i32>} : memref<2x8x16xf32, #tpu.memory_space<vmem>>, vector<1x8x16xf32>,
    %c0_651 = arith.constant 0 : index
    %c0_652 = arith.constant 0 : index
    %c0_653 = arith.constant 0 : index
    %1345 = vector.load %arg31[%c0_651, %c0_652, %c0_653] : memref<2x8x16xf32, #tpu.memory_space<vmem>>, vector<1x8x16xf32>
    %1346 = vector.shape_cast %1345 : vector<1x8x16xf32> to vector<8x16xf32>
    %1347 = vector.shape_cast %1339 : vector<8x16xf32> to vector<1x8x16xf32>
    tpu.vector_store %arg31[%c0_651, %c0_652, %c0_653], %1347 {strides = array<i32>} : memref<2x8x16xf32, #tpu.memory_space<vmem>>, vector<1x8x16xf32>,
    %cst_654 = arith.constant dense<0.000000e+00> : vector<8x64xf32>
    %1348 = tpu.matmul %1341, %11, %cst_654 {dimension_numbers = #tpu.dot_dimension_numbers<[1], [0], [0], [1], [0, 0, 1, 1], [], []>} : vector<8x16xf32>, vector<16x64xf32>, vector<8x64xf32> -> vector<8x64xf32>
    %c1_655 = arith.constant 1 : index
    %c0_656 = arith.constant 0 : index
    %c0_657 = arith.constant 0 : index
    %1349 = vector.load %arg30[%c1_655, %c0_656, %c0_657] : memref<2x8x16xf32, #tpu.memory_space<vmem>>, vector<1x8x16xf32>
    %1350 = vector.shape_cast %1349 : vector<1x8x16xf32> to vector<8x16xf32>
    %cst_658 = arith.constant dense<0.000000e+00> : vector<8x64xf32>
    %1351 = tpu.matmul %1350, %12, %cst_658 {dimension_numbers = #tpu.dot_dimension_numbers<[1], [0], [0], [1], [0, 0, 1, 1], [], []>} : vector<8x16xf32>, vector<16x64xf32>, vector<8x64xf32> -> vector<8x64xf32>
    %1352 = arith.addf %1348, %1351 : vector<8x64xf32>
    %1353 = vector.broadcast %13 : vector<1x64xf32> to vector<8x64xf32>
    %1354 = arith.addf %1352, %1353 : vector<8x64xf32>
    %c1_659 = arith.constant 1 : index
    %c0_660 = arith.constant 0 : index
    %c0_661 = arith.constant 0 : index
    %1355 = vector.load %arg31[%c1_659, %c0_660, %c0_661] : memref<2x8x16xf32, #tpu.memory_space<vmem>>, vector<1x8x16xf32>
    %1356 = vector.shape_cast %1355 : vector<1x8x16xf32> to vector<8x16xf32>
    %1357 = vector.extract_strided_slice %1354 {offsets = [0, 0], sizes = [8, 16], strides = [1, 1]} : vector<8x64xf32> to vector<8x16xf32>
    %1358 = arith.negf %1357 : vector<8x16xf32>
    %1359 = math.exp %1358 : vector<8x16xf32>
    %cst_662 = arith.constant 1.000000e+00 : f32
    %1360 = vector.broadcast %cst_662 : f32 to vector<8x16xf32>
    %1361 = arith.addf %1360, %1359 : vector<8x16xf32>
    %1362 = arith.divf %1360, %1361 : vector<8x16xf32>
    %1363 = vector.extract_strided_slice %1354 {offsets = [0, 16], sizes = [8, 16], strides = [1, 1]} : vector<8x64xf32> to vector<8x16xf32>
    %1364 = arith.negf %1363 : vector<8x16xf32>
    %1365 = math.exp %1364 : vector<8x16xf32>
    %cst_663 = arith.constant 1.000000e+00 : f32
    %1366 = vector.broadcast %cst_663 : f32 to vector<8x16xf32>
    %1367 = arith.addf %1366, %1365 : vector<8x16xf32>
    %1368 = arith.divf %1366, %1367 : vector<8x16xf32>
    %1369 = vector.extract_strided_slice %1354 {offsets = [0, 32], sizes = [8, 16], strides = [1, 1]} : vector<8x64xf32> to vector<8x16xf32>
    %1370 = math.tanh %1369 : vector<8x16xf32>
    %1371 = vector.extract_strided_slice %1354 {offsets = [0, 48], sizes = [8, 16], strides = [1, 1]} : vector<8x64xf32> to vector<8x16xf32>
    %1372 = arith.negf %1371 : vector<8x16xf32>
    %1373 = math.exp %1372 : vector<8x16xf32>
    %cst_664 = arith.constant 1.000000e+00 : f32
    %1374 = vector.broadcast %cst_664 : f32 to vector<8x16xf32>
    %1375 = arith.addf %1374, %1373 : vector<8x16xf32>
    %1376 = arith.divf %1374, %1375 : vector<8x16xf32>
    %1377 = arith.mulf %1368, %1356 : vector<8x16xf32>
    %1378 = arith.mulf %1362, %1370 : vector<8x16xf32>
    %1379 = arith.addf %1377, %1378 : vector<8x16xf32>
    %1380 = math.tanh %1379 : vector<8x16xf32>
    %1381 = arith.mulf %1376, %1380 : vector<8x16xf32>
    %c1_665 = arith.constant 1 : index
    %c0_666 = arith.constant 0 : index
    %c0_667 = arith.constant 0 : index
    %1382 = vector.load %arg30[%c1_665, %c0_666, %c0_667] : memref<2x8x16xf32, #tpu.memory_space<vmem>>, vector<1x8x16xf32>
    %1383 = vector.shape_cast %1382 : vector<1x8x16xf32> to vector<8x16xf32>
    %1384 = vector.shape_cast %1381 : vector<8x16xf32> to vector<1x8x16xf32>
    tpu.vector_store %arg30[%c1_665, %c0_666, %c0_667], %1384 {strides = array<i32>} : memref<2x8x16xf32, #tpu.memory_space<vmem>>, vector<1x8x16xf32>,
    %c1_668 = arith.constant 1 : index
    %c0_669 = arith.constant 0 : index
    %c0_670 = arith.constant 0 : index
    %1385 = vector.load %arg31[%c1_668, %c0_669, %c0_670] : memref<2x8x16xf32, #tpu.memory_space<vmem>>, vector<1x8x16xf32>
    %1386 = vector.shape_cast %1385 : vector<1x8x16xf32> to vector<8x16xf32>
    %1387 = vector.shape_cast %1379 : vector<8x16xf32> to vector<1x8x16xf32>
    tpu.vector_store %arg31[%c1_668, %c0_669, %c0_670], %1387 {strides = array<i32>} : memref<2x8x16xf32, #tpu.memory_space<vmem>>, vector<1x8x16xf32>,
    %c56 = arith.constant 56 : index
    %c0_671 = arith.constant 0 : index
    %1388 = vector.load %arg34[%c56, %c0_671] : memref<64x16xf32, #tpu.memory_space<vmem>>, vector<8x16xf32>
    tpu.vector_store %arg34[%c56, %c0_671], %1381 {strides = array<i32>} : memref<64x16xf32, #tpu.memory_space<vmem>>, vector<8x16xf32>,
    %cst_672 = arith.constant dense<0.000000e+00> : vector<8x16xf32>
    %1389 = tpu.matmul %1381, %5, %cst_672 {dimension_numbers = #tpu.dot_dimension_numbers<[1], [0], [0], [1], [0, 0, 1, 1], [], []>} : vector<8x16xf32>, vector<16x16xf32>, vector<8x16xf32> -> vector<8x16xf32>
    %1390 = vector.broadcast %6 : vector<1x16xf32> to vector<8x16xf32>
    %1391 = arith.addf %1389, %1390 : vector<8x16xf32>
    %1392 = math.tanh %1391 : vector<8x16xf32>
    %cst_673 = arith.constant dense<0.000000e+00> : vector<8x128xf32>
    %1393 = tpu.matmul %1299, %14, %cst_673 {dimension_numbers = #tpu.dot_dimension_numbers<[1], [0], [0], [1], [0, 0, 1, 1], [], []>} : vector<8x16xf32>, vector<16x128xf32>, vector<8x128xf32> -> vector<8x128xf32>
    %cst_674 = arith.constant dense<0.000000e+00> : vector<8x128xf32>
    %1394 = tpu.matmul %1297, %15, %cst_674 {dimension_numbers = #tpu.dot_dimension_numbers<[1], [0], [0], [1], [0, 0, 1, 1], [], []>} : vector<8x8xf32>, vector<8x128xf32>, vector<8x128xf32> -> vector<8x128xf32>
    %1395 = arith.addf %1393, %1394 : vector<8x128xf32>
    %cst_675 = arith.constant dense<0.000000e+00> : vector<8x128xf32>
    %1396 = tpu.matmul %1392, %16, %cst_675 {dimension_numbers = #tpu.dot_dimension_numbers<[1], [0], [0], [1], [0, 0, 1, 1], [], []>} : vector<8x16xf32>, vector<16x128xf32>, vector<8x128xf32> -> vector<8x128xf32>
    %1397 = arith.addf %1395, %1396 : vector<8x128xf32>
    %c0_676 = arith.constant 0 : index
    %c0_677 = arith.constant 0 : index
    %c0_678 = arith.constant 0 : index
    %1398 = vector.load %arg32[%c0_676, %c0_677, %c0_678] : memref<2x8x32xf32, #tpu.memory_space<vmem>>, vector<1x8x32xf32>
    %1399 = vector.shape_cast %1398 : vector<1x8x32xf32> to vector<8x32xf32>
    %cst_679 = arith.constant dense<0.000000e+00> : vector<8x128xf32>
    %1400 = tpu.matmul %1399, %17, %cst_679 {dimension_numbers = #tpu.dot_dimension_numbers<[1], [0], [0], [1], [0, 0, 1, 1], [], []>} : vector<8x32xf32>, vector<32x128xf32>, vector<8x128xf32> -> vector<8x128xf32>
    %1401 = arith.addf %1397, %1400 : vector<8x128xf32>
    %1402 = vector.broadcast %18 : vector<1x128xf32> to vector<8x128xf32>
    %1403 = arith.addf %1401, %1402 : vector<8x128xf32>
    %c0_680 = arith.constant 0 : index
    %c0_681 = arith.constant 0 : index
    %c0_682 = arith.constant 0 : index
    %1404 = vector.load %arg33[%c0_680, %c0_681, %c0_682] : memref<2x8x32xf32, #tpu.memory_space<vmem>>, vector<1x8x32xf32>
    %1405 = vector.shape_cast %1404 : vector<1x8x32xf32> to vector<8x32xf32>
    %1406 = vector.extract_strided_slice %1403 {offsets = [0, 0], sizes = [8, 32], strides = [1, 1]} : vector<8x128xf32> to vector<8x32xf32>
    %1407 = arith.negf %1406 : vector<8x32xf32>
    %1408 = math.exp %1407 : vector<8x32xf32>
    %cst_683 = arith.constant 1.000000e+00 : f32
    %1409 = vector.broadcast %cst_683 : f32 to vector<8x32xf32>
    %1410 = arith.addf %1409, %1408 : vector<8x32xf32>
    %1411 = arith.divf %1409, %1410 : vector<8x32xf32>
    %1412 = vector.extract_strided_slice %1403 {offsets = [0, 32], sizes = [8, 32], strides = [1, 1]} : vector<8x128xf32> to vector<8x32xf32>
    %1413 = arith.negf %1412 : vector<8x32xf32>
    %1414 = math.exp %1413 : vector<8x32xf32>
    %cst_684 = arith.constant 1.000000e+00 : f32
    %1415 = vector.broadcast %cst_684 : f32 to vector<8x32xf32>
    %1416 = arith.addf %1415, %1414 : vector<8x32xf32>
    %1417 = arith.divf %1415, %1416 : vector<8x32xf32>
    %1418 = vector.extract_strided_slice %1403 {offsets = [0, 64], sizes = [8, 32], strides = [1, 1]} : vector<8x128xf32> to vector<8x32xf32>
    %1419 = math.tanh %1418 : vector<8x32xf32>
    %1420 = vector.extract_strided_slice %1403 {offsets = [0, 96], sizes = [8, 32], strides = [1, 1]} : vector<8x128xf32> to vector<8x32xf32>
    %1421 = arith.negf %1420 : vector<8x32xf32>
    %1422 = math.exp %1421 : vector<8x32xf32>
    %cst_685 = arith.constant 1.000000e+00 : f32
    %1423 = vector.broadcast %cst_685 : f32 to vector<8x32xf32>
    %1424 = arith.addf %1423, %1422 : vector<8x32xf32>
    %1425 = arith.divf %1423, %1424 : vector<8x32xf32>
    %1426 = arith.mulf %1417, %1405 : vector<8x32xf32>
    %1427 = arith.mulf %1411, %1419 : vector<8x32xf32>
    %1428 = arith.addf %1426, %1427 : vector<8x32xf32>
    %1429 = math.tanh %1428 : vector<8x32xf32>
    %1430 = arith.mulf %1425, %1429 : vector<8x32xf32>
    %c0_686 = arith.constant 0 : index
    %c0_687 = arith.constant 0 : index
    %c0_688 = arith.constant 0 : index
    %1431 = vector.load %arg32[%c0_686, %c0_687, %c0_688] : memref<2x8x32xf32, #tpu.memory_space<vmem>>, vector<1x8x32xf32>
    %1432 = vector.shape_cast %1431 : vector<1x8x32xf32> to vector<8x32xf32>
    %1433 = vector.shape_cast %1430 : vector<8x32xf32> to vector<1x8x32xf32>
    tpu.vector_store %arg32[%c0_686, %c0_687, %c0_688], %1433 {strides = array<i32>} : memref<2x8x32xf32, #tpu.memory_space<vmem>>, vector<1x8x32xf32>,
    %c0_689 = arith.constant 0 : index
    %c0_690 = arith.constant 0 : index
    %c0_691 = arith.constant 0 : index
    %1434 = vector.load %arg33[%c0_689, %c0_690, %c0_691] : memref<2x8x32xf32, #tpu.memory_space<vmem>>, vector<1x8x32xf32>
    %1435 = vector.shape_cast %1434 : vector<1x8x32xf32> to vector<8x32xf32>
    %1436 = vector.shape_cast %1428 : vector<8x32xf32> to vector<1x8x32xf32>
    tpu.vector_store %arg33[%c0_689, %c0_690, %c0_691], %1436 {strides = array<i32>} : memref<2x8x32xf32, #tpu.memory_space<vmem>>, vector<1x8x32xf32>,
    %cst_692 = arith.constant dense<0.000000e+00> : vector<8x128xf32>
    %1437 = tpu.matmul %1430, %19, %cst_692 {dimension_numbers = #tpu.dot_dimension_numbers<[1], [0], [0], [1], [0, 0, 1, 1], [], []>} : vector<8x32xf32>, vector<32x128xf32>, vector<8x128xf32> -> vector<8x128xf32>
    %c1_693 = arith.constant 1 : index
    %c0_694 = arith.constant 0 : index
    %c0_695 = arith.constant 0 : index
    %1438 = vector.load %arg32[%c1_693, %c0_694, %c0_695] : memref<2x8x32xf32, #tpu.memory_space<vmem>>, vector<1x8x32xf32>
    %1439 = vector.shape_cast %1438 : vector<1x8x32xf32> to vector<8x32xf32>
    %cst_696 = arith.constant dense<0.000000e+00> : vector<8x128xf32>
    %1440 = tpu.matmul %1439, %20, %cst_696 {dimension_numbers = #tpu.dot_dimension_numbers<[1], [0], [0], [1], [0, 0, 1, 1], [], []>} : vector<8x32xf32>, vector<32x128xf32>, vector<8x128xf32> -> vector<8x128xf32>
    %1441 = arith.addf %1437, %1440 : vector<8x128xf32>
    %1442 = vector.broadcast %21 : vector<1x128xf32> to vector<8x128xf32>
    %1443 = arith.addf %1441, %1442 : vector<8x128xf32>
    %c1_697 = arith.constant 1 : index
    %c0_698 = arith.constant 0 : index
    %c0_699 = arith.constant 0 : index
    %1444 = vector.load %arg33[%c1_697, %c0_698, %c0_699] : memref<2x8x32xf32, #tpu.memory_space<vmem>>, vector<1x8x32xf32>
    %1445 = vector.shape_cast %1444 : vector<1x8x32xf32> to vector<8x32xf32>
    %1446 = vector.extract_strided_slice %1443 {offsets = [0, 0], sizes = [8, 32], strides = [1, 1]} : vector<8x128xf32> to vector<8x32xf32>
    %1447 = arith.negf %1446 : vector<8x32xf32>
    %1448 = math.exp %1447 : vector<8x32xf32>
    %cst_700 = arith.constant 1.000000e+00 : f32
    %1449 = vector.broadcast %cst_700 : f32 to vector<8x32xf32>
    %1450 = arith.addf %1449, %1448 : vector<8x32xf32>
    %1451 = arith.divf %1449, %1450 : vector<8x32xf32>
    %1452 = vector.extract_strided_slice %1443 {offsets = [0, 32], sizes = [8, 32], strides = [1, 1]} : vector<8x128xf32> to vector<8x32xf32>
    %1453 = arith.negf %1452 : vector<8x32xf32>
    %1454 = math.exp %1453 : vector<8x32xf32>
    %cst_701 = arith.constant 1.000000e+00 : f32
    %1455 = vector.broadcast %cst_701 : f32 to vector<8x32xf32>
    %1456 = arith.addf %1455, %1454 : vector<8x32xf32>
    %1457 = arith.divf %1455, %1456 : vector<8x32xf32>
    %1458 = vector.extract_strided_slice %1443 {offsets = [0, 64], sizes = [8, 32], strides = [1, 1]} : vector<8x128xf32> to vector<8x32xf32>
    %1459 = math.tanh %1458 : vector<8x32xf32>
    %1460 = vector.extract_strided_slice %1443 {offsets = [0, 96], sizes = [8, 32], strides = [1, 1]} : vector<8x128xf32> to vector<8x32xf32>
    %1461 = arith.negf %1460 : vector<8x32xf32>
    %1462 = math.exp %1461 : vector<8x32xf32>
    %cst_702 = arith.constant 1.000000e+00 : f32
    %1463 = vector.broadcast %cst_702 : f32 to vector<8x32xf32>
    %1464 = arith.addf %1463, %1462 : vector<8x32xf32>
    %1465 = arith.divf %1463, %1464 : vector<8x32xf32>
    %1466 = arith.mulf %1457, %1445 : vector<8x32xf32>
    %1467 = arith.mulf %1451, %1459 : vector<8x32xf32>
    %1468 = arith.addf %1466, %1467 : vector<8x32xf32>
    %1469 = math.tanh %1468 : vector<8x32xf32>
    %1470 = arith.mulf %1465, %1469 : vector<8x32xf32>
    %c1_703 = arith.constant 1 : index
    %c0_704 = arith.constant 0 : index
    %c0_705 = arith.constant 0 : index
    %1471 = vector.load %arg32[%c1_703, %c0_704, %c0_705] : memref<2x8x32xf32, #tpu.memory_space<vmem>>, vector<1x8x32xf32>
    %1472 = vector.shape_cast %1471 : vector<1x8x32xf32> to vector<8x32xf32>
    %1473 = vector.shape_cast %1470 : vector<8x32xf32> to vector<1x8x32xf32>
    tpu.vector_store %arg32[%c1_703, %c0_704, %c0_705], %1473 {strides = array<i32>} : memref<2x8x32xf32, #tpu.memory_space<vmem>>, vector<1x8x32xf32>,
    %c1_706 = arith.constant 1 : index
    %c0_707 = arith.constant 0 : index
    %c0_708 = arith.constant 0 : index
    %1474 = vector.load %arg33[%c1_706, %c0_707, %c0_708] : memref<2x8x32xf32, #tpu.memory_space<vmem>>, vector<1x8x32xf32>
    %1475 = vector.shape_cast %1474 : vector<1x8x32xf32> to vector<8x32xf32>
    %1476 = vector.shape_cast %1468 : vector<8x32xf32> to vector<1x8x32xf32>
    tpu.vector_store %arg33[%c1_706, %c0_707, %c0_708], %1476 {strides = array<i32>} : memref<2x8x32xf32, #tpu.memory_space<vmem>>, vector<1x8x32xf32>,
    %c56_709 = arith.constant 56 : index
    %c0_710 = arith.constant 0 : index
    %1477 = vector.load %arg35[%c56_709, %c0_710] : memref<64x32xf32, #tpu.memory_space<vmem>>, vector<8x32xf32>
    tpu.vector_store %arg35[%c56_709, %c0_710], %1470 {strides = array<i32>} : memref<64x32xf32, #tpu.memory_space<vmem>>, vector<8x32xf32>,
    %c0_711 = arith.constant 0 : index
    %c0_712 = arith.constant 0 : index
    %1478 = vector.load %arg34[%c0_711, %c0_712] : memref<64x16xf32, #tpu.memory_space<vmem>>, vector<64x16xf32>
    %c0_713 = arith.constant 0 : index
    %c0_714 = arith.constant 0 : index
    %1479 = vector.load %arg35[%c0_713, %c0_714] : memref<64x32xf32, #tpu.memory_space<vmem>>, vector<64x32xf32>
    %c0_715 = arith.constant 0 : index
    %c0_716 = arith.constant 0 : index
    %1480 = vector.load %arg14[%c0_715, %c0_716] : memref<16x128xf32, #tpu.memory_space<vmem>>, vector<16x128xf32>
    %cst_717 = arith.constant dense<0.000000e+00> : vector<64x128xf32>
    %1481 = tpu.matmul %1478, %1480, %cst_717 {dimension_numbers = #tpu.dot_dimension_numbers<[1], [0], [0], [1], [0, 0, 1, 1], [], []>} : vector<64x16xf32>, vector<16x128xf32>, vector<64x128xf32> -> vector<64x128xf32>
    %c0_718 = arith.constant 0 : index
    %c0_719 = arith.constant 0 : index
    %1482 = vector.load %arg15[%c0_718, %c0_719] : memref<1x128xf32, #tpu.memory_space<vmem>>, vector<1x128xf32>
    %1483 = vector.broadcast %1482 : vector<1x128xf32> to vector<64x128xf32>
    %1484 = arith.addf %1481, %1483 : vector<64x128xf32>
    %cst_720 = arith.constant dense<0xFF800000> : vector<64xf32>
    %1485 = vector.multi_reduction <maximumf>, %1484, %cst_720 [1] : vector<64x128xf32> to vector<64xf32>
    %1486 = vector.shape_cast %1485 : vector<64xf32> to vector<64x1xf32>
    %1487 = vector.broadcast %1486 : vector<64x1xf32> to vector<64x128xf32>
    %1488 = arith.subf %1484, %1487 : vector<64x128xf32>
    %1489 = math.exp %1488 : vector<64x128xf32>
    %cst_721 = arith.constant dense<0.000000e+00> : vector<64xf32>
    %1490 = vector.multi_reduction <add>, %1489, %cst_721 [1] : vector<64x128xf32> to vector<64xf32>
    %1491 = vector.shape_cast %1490 : vector<64xf32> to vector<64x1xf32>
    %1492 = math.log %1491 : vector<64x1xf32>
    %1493 = vector.broadcast %1492 : vector<64x1xf32> to vector<64x128xf32>
    %1494 = arith.subf %1488, %1493 : vector<64x128xf32>
    %1495 = vector.shape_cast %1494 : vector<64x128xf32> to vector<8x8x128xf32>
    %c0_722 = arith.constant 0 : index
    %c0_723 = arith.constant 0 : index
    %c0_724 = arith.constant 0 : index
    %1496 = vector.load %arg28[%c0_722, %c0_723, %c0_724] : memref<8x8x128xf32, #tpu.memory_space<vmem>>, vector<8x8x128xf32>
    tpu.vector_store %arg28[%c0_722, %c0_723, %c0_724], %1495 {strides = array<i32>} : memref<8x8x128xf32, #tpu.memory_space<vmem>>, vector<8x8x128xf32>,
    %c0_725 = arith.constant 0 : index
    %c0_726 = arith.constant 0 : index
    %1497 = vector.load %arg24[%c0_725, %c0_726] : memref<32x16xf32, #tpu.memory_space<vmem>>, vector<32x16xf32>
    %cst_727 = arith.constant dense<0.000000e+00> : vector<64x16xf32>
    %1498 = tpu.matmul %1479, %1497, %cst_727 {dimension_numbers = #tpu.dot_dimension_numbers<[1], [0], [0], [1], [0, 0, 1, 1], [], []>} : vector<64x32xf32>, vector<32x16xf32>, vector<64x16xf32> -> vector<64x16xf32>
    %c0_728 = arith.constant 0 : index
    %c0_729 = arith.constant 0 : index
    %1499 = vector.load %arg25[%c0_728, %c0_729] : memref<1x16xf32, #tpu.memory_space<vmem>>, vector<1x16xf32>
    %1500 = vector.broadcast %1499 : vector<1x16xf32> to vector<64x16xf32>
    %1501 = arith.addf %1498, %1500 : vector<64x16xf32>
    %c0_730 = arith.constant 0 : index
    %c0_731 = arith.constant 0 : index
    %1502 = vector.load %arg26[%c0_730, %c0_731] : memref<16x128xf32, #tpu.memory_space<vmem>>, vector<16x128xf32>
    %cst_732 = arith.constant dense<0.000000e+00> : vector<64x128xf32>
    %1503 = tpu.matmul %1501, %1502, %cst_732 {dimension_numbers = #tpu.dot_dimension_numbers<[1], [0], [0], [1], [0, 0, 1, 1], [], []>} : vector<64x16xf32>, vector<16x128xf32>, vector<64x128xf32> -> vector<64x128xf32>
    %c0_733 = arith.constant 0 : index
    %c0_734 = arith.constant 0 : index
    %1504 = vector.load %arg27[%c0_733, %c0_734] : memref<1x128xf32, #tpu.memory_space<vmem>>, vector<1x128xf32>
    %1505 = vector.broadcast %1504 : vector<1x128xf32> to vector<64x128xf32>
    %1506 = arith.addf %1503, %1505 : vector<64x128xf32>
    %cst_735 = arith.constant dense<0xFF800000> : vector<64xf32>
    %1507 = vector.multi_reduction <maximumf>, %1506, %cst_735 [1] : vector<64x128xf32> to vector<64xf32>
    %1508 = vector.shape_cast %1507 : vector<64xf32> to vector<64x1xf32>
    %1509 = vector.broadcast %1508 : vector<64x1xf32> to vector<64x128xf32>
    %1510 = arith.subf %1506, %1509 : vector<64x128xf32>
    %1511 = math.exp %1510 : vector<64x128xf32>
    %cst_736 = arith.constant dense<0.000000e+00> : vector<64xf32>
    %1512 = vector.multi_reduction <add>, %1511, %cst_736 [1] : vector<64x128xf32> to vector<64xf32>
    %1513 = vector.shape_cast %1512 : vector<64xf32> to vector<64x1xf32>
    %1514 = math.log %1513 : vector<64x1xf32>
    %1515 = vector.broadcast %1514 : vector<64x1xf32> to vector<64x128xf32>
    %1516 = arith.subf %1510, %1515 : vector<64x128xf32>
    %1517 = vector.shape_cast %1516 : vector<64x128xf32> to vector<8x8x128xf32>
    %c0_737 = arith.constant 0 : index
    %c0_738 = arith.constant 0 : index
    %c0_739 = arith.constant 0 : index
    %1518 = vector.load %arg29[%c0_737, %c0_738, %c0_739] : memref<8x8x128xf32, #tpu.memory_space<vmem>>, vector<8x8x128xf32>
    tpu.vector_store %arg29[%c0_737, %c0_738, %c0_739], %1517 {strides = array<i32>} : memref<8x8x128xf32, #tpu.memory_space<vmem>>, vector<8x8x128xf32>,
    return
  }
  func.func @transform_0(%arg0: i32) -> (i32, i32, i32) {
    %c0_i32 = arith.constant 0 : i32
    %c0_i32_0 = arith.constant 0 : i32
    %c0_i32_1 = arith.constant 0 : i32
    return %arg0, %c0_i32, %c0_i32_0 : i32, i32, i32
  }
  func.func @transform_1(%arg0: i32) -> (i32, i32, i32) {
    %c0_i32 = arith.constant 0 : i32
    %c0_i32_0 = arith.constant 0 : i32
    %c0_i32_1 = arith.constant 0 : i32
    return %arg0, %c0_i32, %c0_i32_0 : i32, i32, i32
  }
  func.func @transform_2(%arg0: i32) -> (i32, i32) {
    %c0_i32 = arith.constant 0 : i32
    %c0_i32_0 = arith.constant 0 : i32
    %c0_i32_1 = arith.constant 0 : i32
    return %c0_i32, %c0_i32_0 : i32, i32
  }
  func.func @transform_3(%arg0: i32) -> (i32, i32) {
    %c0_i32 = arith.constant 0 : i32
    %c0_i32_0 = arith.constant 0 : i32
    %c0_i32_1 = arith.constant 0 : i32
    return %c0_i32, %c0_i32_0 : i32, i32
  }
  func.func @transform_4(%arg0: i32) -> (i32, i32) {
    %c0_i32 = arith.constant 0 : i32
    %c0_i32_0 = arith.constant 0 : i32
    %c0_i32_1 = arith.constant 0 : i32
    return %c0_i32, %c0_i32_0 : i32, i32
  }
  func.func @transform_5(%arg0: i32) -> (i32, i32) {
    %c0_i32 = arith.constant 0 : i32
    %c0_i32_0 = arith.constant 0 : i32
    %c0_i32_1 = arith.constant 0 : i32
    return %c0_i32, %c0_i32_0 : i32, i32
  }
  func.func @transform_6(%arg0: i32) -> (i32, i32) {
    %c0_i32 = arith.constant 0 : i32
    %c0_i32_0 = arith.constant 0 : i32
    %c0_i32_1 = arith.constant 0 : i32
    return %c0_i32, %c0_i32_0 : i32, i32
  }
  func.func @transform_7(%arg0: i32) -> (i32, i32) {
    %c0_i32 = arith.constant 0 : i32
    %c0_i32_0 = arith.constant 0 : i32
    %c0_i32_1 = arith.constant 0 : i32
    return %c0_i32, %c0_i32_0 : i32, i32
  }
  func.func @transform_8(%arg0: i32) -> (i32, i32) {
    %c0_i32 = arith.constant 0 : i32
    %c0_i32_0 = arith.constant 0 : i32
    %c0_i32_1 = arith.constant 0 : i32
    return %c0_i32, %c0_i32_0 : i32, i32
  }
  func.func @transform_9(%arg0: i32) -> (i32, i32) {
    %c0_i32 = arith.constant 0 : i32
    %c0_i32_0 = arith.constant 0 : i32
    %c0_i32_1 = arith.constant 0 : i32
    return %c0_i32, %c0_i32_0 : i32, i32
  }
  func.func @transform_10(%arg0: i32) -> (i32, i32) {
    %c0_i32 = arith.constant 0 : i32
    %c0_i32_0 = arith.constant 0 : i32
    %c0_i32_1 = arith.constant 0 : i32
    return %c0_i32, %c0_i32_0 : i32, i32
  }
  func.func @transform_11(%arg0: i32) -> (i32, i32) {
    %c0_i32 = arith.constant 0 : i32
    %c0_i32_0 = arith.constant 0 : i32
    %c0_i32_1 = arith.constant 0 : i32
    return %c0_i32, %c0_i32_0 : i32, i32
  }
  func.func @transform_12(%arg0: i32) -> (i32, i32) {
    %c0_i32 = arith.constant 0 : i32
    %c0_i32_0 = arith.constant 0 : i32
    %c0_i32_1 = arith.constant 0 : i32
    return %c0_i32, %c0_i32_0 : i32, i32
  }
  func.func @transform_13(%arg0: i32) -> (i32, i32) {
    %c0_i32 = arith.constant 0 : i32
    %c0_i32_0 = arith.constant 0 : i32
    %c0_i32_1 = arith.constant 0 : i32
    return %c0_i32, %c0_i32_0 : i32, i32
  }
  func.func @transform_14(%arg0: i32) -> (i32, i32) {
    %c0_i32 = arith.constant 0 : i32
    %c0_i32_0 = arith.constant 0 : i32
    %c0_i32_1 = arith.constant 0 : i32
    return %c0_i32, %c0_i32_0 : i32, i32
  }
  func.func @transform_15(%arg0: i32) -> (i32, i32) {
    %c0_i32 = arith.constant 0 : i32
    %c0_i32_0 = arith.constant 0 : i32
    %c0_i32_1 = arith.constant 0 : i32
    return %c0_i32, %c0_i32_0 : i32, i32
  }
  func.func @transform_16(%arg0: i32) -> (i32, i32) {
    %c0_i32 = arith.constant 0 : i32
    %c0_i32_0 = arith.constant 0 : i32
    %c0_i32_1 = arith.constant 0 : i32
    return %c0_i32, %c0_i32_0 : i32, i32
  }
  func.func @transform_17(%arg0: i32) -> (i32, i32) {
    %c0_i32 = arith.constant 0 : i32
    %c0_i32_0 = arith.constant 0 : i32
    %c0_i32_1 = arith.constant 0 : i32
    return %c0_i32, %c0_i32_0 : i32, i32
  }
  func.func @transform_18(%arg0: i32) -> (i32, i32) {
    %c0_i32 = arith.constant 0 : i32
    %c0_i32_0 = arith.constant 0 : i32
    %c0_i32_1 = arith.constant 0 : i32
    return %c0_i32, %c0_i32_0 : i32, i32
  }
  func.func @transform_19(%arg0: i32) -> (i32, i32) {
    %c0_i32 = arith.constant 0 : i32
    %c0_i32_0 = arith.constant 0 : i32
    %c0_i32_1 = arith.constant 0 : i32
    return %c0_i32, %c0_i32_0 : i32, i32
  }
  func.func @transform_20(%arg0: i32) -> (i32, i32) {
    %c0_i32 = arith.constant 0 : i32
    %c0_i32_0 = arith.constant 0 : i32
    %c0_i32_1 = arith.constant 0 : i32
    return %c0_i32, %c0_i32_0 : i32, i32
  }
  func.func @transform_21(%arg0: i32) -> (i32, i32) {
    %c0_i32 = arith.constant 0 : i32
    %c0_i32_0 = arith.constant 0 : i32
    %c0_i32_1 = arith.constant 0 : i32
    return %c0_i32, %c0_i32_0 : i32, i32
  }
  func.func @transform_22(%arg0: i32) -> (i32, i32) {
    %c0_i32 = arith.constant 0 : i32
    %c0_i32_0 = arith.constant 0 : i32
    %c0_i32_1 = arith.constant 0 : i32
    return %c0_i32, %c0_i32_0 : i32, i32
  }
  func.func @transform_23(%arg0: i32) -> (i32, i32) {
    %c0_i32 = arith.constant 0 : i32
    %c0_i32_0 = arith.constant 0 : i32
    %c0_i32_1 = arith.constant 0 : i32
    return %c0_i32, %c0_i32_0 : i32, i32
  }
  func.func @transform_24(%arg0: i32) -> (i32, i32) {
    %c0_i32 = arith.constant 0 : i32
    %c0_i32_0 = arith.constant 0 : i32
    %c0_i32_1 = arith.constant 0 : i32
    return %c0_i32, %c0_i32_0 : i32, i32
  }
  func.func @transform_25(%arg0: i32) -> (i32, i32) {
    %c0_i32 = arith.constant 0 : i32
    %c0_i32_0 = arith.constant 0 : i32
    %c0_i32_1 = arith.constant 0 : i32
    return %c0_i32, %c0_i32_0 : i32, i32
  }
  func.func @transform_26(%arg0: i32) -> (i32, i32) {
    %c0_i32 = arith.constant 0 : i32
    %c0_i32_0 = arith.constant 0 : i32
    %c0_i32_1 = arith.constant 0 : i32
    return %c0_i32, %c0_i32_0 : i32, i32
  }
  func.func @transform_27(%arg0: i32) -> (i32, i32, i32) {
    %c0_i32 = arith.constant 0 : i32
    %c0_i32_0 = arith.constant 0 : i32
    %c0_i32_1 = arith.constant 0 : i32
    return %arg0, %c0_i32, %c0_i32_0 : i32, i32, i32
  }
  func.func @transform_28(%arg0: i32) -> (i32, i32, i32) {
    %c0_i32 = arith.constant 0 : i32
    %c0_i32_0 = arith.constant 0 : i32
    %c0_i32_1 = arith.constant 0 : i32
    return %arg0, %c0_i32, %c0_i32_0 : i32, i32, i32
  }
  func.func @transform_29(%arg0: i32) -> (i32, i32, i32) {
    %c0_i32 = arith.constant 0 : i32
    %c0_i32_0 = arith.constant 0 : i32
    %c0_i32_1 = arith.constant 0 : i32
    %c0_i32_2 = arith.constant 0 : i32
    return %c0_i32, %c0_i32_0, %c0_i32_1 : i32, i32, i32
  }
  func.func @transform_30(%arg0: i32) -> (i32, i32, i32) {
    %c0_i32 = arith.constant 0 : i32
    %c0_i32_0 = arith.constant 0 : i32
    %c0_i32_1 = arith.constant 0 : i32
    %c0_i32_2 = arith.constant 0 : i32
    return %c0_i32, %c0_i32_0, %c0_i32_1 : i32, i32, i32
  }
  func.func @transform_31(%arg0: i32) -> (i32, i32, i32) {
    %c0_i32 = arith.constant 0 : i32
    %c0_i32_0 = arith.constant 0 : i32
    %c0_i32_1 = arith.constant 0 : i32
    %c0_i32_2 = arith.constant 0 : i32
    return %c0_i32, %c0_i32_0, %c0_i32_1 : i32, i32, i32
  }
  func.func @transform_32(%arg0: i32) -> (i32, i32, i32) {
    %c0_i32 = arith.constant 0 : i32
    %c0_i32_0 = arith.constant 0 : i32
    %c0_i32_1 = arith.constant 0 : i32
    %c0_i32_2 = arith.constant 0 : i32
    return %c0_i32, %c0_i32_0, %c0_i32_1 : i32, i32, i32
  }
}

</mosaic_0001>

<bundles_post_ra>
// kernel: chain_pos_lm_forward.1
= control target key start
LH: loop header
LB: loop body
LE: loop exit
PB: predicated region body
PF: predicated region fallthrough
CT: control target
= control target key end

     0   :  { %v11917_v0 = vmov 0.0   ;;  %s11918_s3 = smov 2   ;;  %vm11919_vm0 = vmmov 0   ;;  %s11920_s7 = smov 31   ;;  %vm134_vm1 = vcmask 261120   ;;  %vm129_vm2 = vcmask 130048   ;;  %s14281_s0 = inlined_call_operand.smem [shape: u32[33], index: -1, kind: input, shape index: {}] }
   0x1   :  { %14294 = sst [smem:[#allocation4_spill]] %s14281_s0  ;;  %10499 = vmatprep.subr.mxu0 %v11917_v0  ;;  %10507 = vmatprep.mubr.msk.f32.mxu0 %vm11919_vm0, %v11917_v0  ;;  %s11921_s11 = smov 5   ;;  %vm337_vm3 = vcmask 64512  }
   0x2   :  { %s11964_s6 = sld [smem:[%s14281_s0 + %s11918_s3]]   ;;  %10510 = vmatprep.subr.mxu1 %v11917_v0  ;;  %10518 = vmatprep.mubr.msk.f32.mxu1 %vm11919_vm0, %v11917_v0  ;;  %s11922_s15 = smov 4  }
   0x3   :  { %s11971_s10 = sld [smem:[%s14281_s0 + %s11920_s7]]   ;;  %s11923_s19 = smov 29  }
   0x4   :  { %s12012_s14 = sld [smem:[%s14281_s0 + %s11921_s11]]   ;;  %s11924_s26 = smov 3  }
   0x5   :  { %s12017_s18 = sld [smem:[%s14281_s0 + %s11922_s15]]   ;;  %s11925_s30 = smov 6  }
   0x6   :  { %s12022_s22 = sld [smem:[%s14281_s0 + %s11923_s19]]   ;;  %s11926_s4 = smov 30  }
   0x7   :  { %s12037_s25 = sld [smem:[%s14281_s0]]   ;;  %s11927_s9 = smov 7  }
   0x8   :  { %v11977_v1 = vld [vmem:[%s11964_s6 + $0x18] sm:$0xff]  ;;  %v11980_v2 = vld [vmem:[%s11964_s6 + $0x10] sm:$0xff]  ;;  %v11991_v3 = vld [vmem:[%s11964_s6 + $0x8] sm:$0xff]  ;;  %s12070_s29 = sld [smem:[%s14281_s0 + %s11924_s26]]   ;;  %s14284_s15 = smov 96  }
   0x9   :  { %10500 = vmatpush3.msra.mxu0 %v11977_v1  ;;  %136 = vst.msk [vmem:[%s11971_s10 + $0x8] sm:$0xff] %vm134_vm1, %v11917_v0  ;;  %135 = vst.msk [vmem:[%s11971_s10] sm:$0xff] %vm134_vm1, %v11917_v0  ;;  %v11996_v4 = vld [vmem:[%s11964_s6] sm:$0xff]  ;;  %s12079_s3 = sld [smem:[%s14281_s0 + %s11925_s30]]   ;;  %s14286_s16 = smov 16  }
   0xa   :  { %10501 = vmatprep.subr.mxu0 %v11917_v0  ;;  %v12025_v6 = vld [vmem:[%s12012_s14 + $0x18] sm:$0xff]  ;;  %v12028_v7 = vld [vmem:[%s12012_s14 + $0x10] sm:$0xff]  ;;  %v12041_v9 = vld [vmem:[%s12012_s14 + $0x8] sm:$0xff]  ;;  %s12101_s8 = sld [smem:[%s14281_s0 + %s11926_s4]]   ;;  %s11930_s17 = smov 9  }
   0xb   :  { %10502 = vmatpush3.msra.mxu0 %v11980_v2  ;;  %10511 = vmatpush3.msra.mxu1 %v12025_v6  ;;  %v12032_v8 = vld [vmem:[%s12017_s18] sm:$0xff]  ;;  %s12112_s13 = sld [smem:[%s14281_s0 + %s11927_s9]]   ;;  %s11931_s23 = smov 8  }
   0xc   :  { %10503 = vmatprep.subr.mxu0 %v11917_v0  ;;  %10512 = vmatprep.subr.mxu1 %v11917_v0  ;;  %v12048_v10 = vld [vmem:[%s12012_s14] sm:$0xff]  ;;  %130 = vst.msk [vmem:[%s12022_s22] sm:$0xff] %vm129_vm2, %v11917_v0  ;;  %131 = vst.msk [vmem:[%s12022_s22 + $0x8] sm:$0xff] %vm129_vm2, %v11917_v0  ;;  %s12128_s21 = sld [smem:[%s14281_s0 + %s11930_s17]]   ;;  %s14288_s28 = smov 32  }
   0xd   :  { %10504 = vmatpush3.msra.mxu0 %v11991_v3  ;;  %10513 = vmatpush3.msra.mxu1 %v12028_v7  ;;  %v12060_v11 = vld [vmem:[%s12037_s25] sm:$0xff]  ;;  %s12133_s27 = sld [smem:[%s14281_s0 + %s11931_s23]]   ;;  %s14282_s30 = smov 80  }
   0xe   :  { %10505 = vmatprep.subr.mxu0 %v11917_v0  ;;  %10514 = vmatprep.subr.mxu1 %v11917_v0  ;;  %v12073_v12 = vld [vmem:[%s12070_s29] ss:$0 sm:$0xff]  ;;  %s11934_s1 = smov 10   ;;  %s11935_s7 = smov 11  }
   0xf   :  { %10506 = vmatpush3.msra.mxu0 %v11996_v4  ;;  %10515 = vmatpush3.msra.mxu1 %v12041_v9  ;;  %v12082_v16 = vld [vmem:[%s12079_s3 + $0x8] sm:$0xff]  ;;  %v12086_v18 = vld [vmem:[%s12079_s3] sm:$0xff]  ;;  %s12171_s5 = sld [smem:[%s14281_s0 + %s11934_s1]]   ;;  %s11936_s17 = smov 15  }
  0x10   :  { %v12002_v5 = vld [vmem:[%s11971_s10 + $0x8] sm:$0xff]  ;;  %10521 = vmatprep.subr.mxu0 %v11917_v0  ;;  %10516 = vmatprep.subr.mxu1 %v11917_v0  ;;  %132 = vst.msk [vmem:[%s12101_s8] sm:$0xff] %vm129_vm2, %v11917_v0  ;;  %133 = vst.msk [vmem:[%s12101_s8 + $0x8] sm:$0xff] %vm129_vm2, %v11917_v0  ;;  %s12185_s12 = sld [smem:[%s14281_s0 + %s11935_s7]]   ;;  %s11937_s2 = smov 1  }
  0x11   :  { %10508 = vmatmul.mubr.msk.f32.vlgmr.msra.gmra.mxu0 %vm134_vm1, %v12002_v5  ;;  %10517 = vmatpush3.msra.mxu1 %v12048_v10  ;;  %v12115_v25 = vld [vmem:[%s12112_s13] ss:$0 sm:$0xff]  ;;  %s12208_s23 = sld [smem:[%s14281_s0 + %s11936_s17]]   ;;  %s11938_s11 = smov 18  }
  0x12   :  { %10523 = vmatprep.mubr.msk.f32.mxu0 %vm11919_vm0, %v11917_v0  ;;  %10522 = vmatpush3.msra.mxu0 %v12032_v8  ;;  %v12136_v42 = vld [vmem:[%s12128_s21 + $0x8] sm:$0xff]  ;;  %v12139_v43 = vld [vmem:[%s12128_s21] sm:$0xff]  ;;  %s12214_s1 = sld [smem:[%s14281_s0 + %s14286_s16]]   ;;  %s11939_s24 = smov 17  }
  0x13   :  { %10533 = vmatprep.subr.mxu0 %v11917_v0  ;;  %10526 = vmatprep.subr.mxu1 %v11917_v0  ;;  %v411_v19 = vld [vmem:[%s12022_s22] sm:$0xff]  ;;  %v12143_v44 = vld [vmem:[%s12133_s27 + $0x8] sm:$0xff]  ;;  %s12219_s9 = sld [smem:[%s14281_s0 + %s11937_s2]]   ;;  %s11940_s19 = smov 12  }
  0x14   :  { %v9844_v45 = vld [vmem:[%s12022_s22 + $0x8] sm:$0xff]  ;;  %v12149_v46 = vld [vmem:[%s12133_s27] sm:$0xff]  ;;  %s12230_s20 = sld [smem:[%s14281_s0 + %s11938_s11]]   ;;  %s11941_s7 = smov 19  }
  0x15   :  { %10524 = vmatmul.mubr.msk.f32.vlgmr.msra.gmra.mxu0 %vm337_vm3, %v12060_v11  ;;  %v12174_v54 = vld [vmem:[%s12171_s5] ss:$0 sm:$0xff]  ;;  %s12236_s2 = sld [smem:[%s14281_s0 + %s11939_s24]]   ;;  %s14290_s26 = smov 64  }
  0x16   :  { %10537 = vmatprep.mubr.msk.f32.mxu0 %vm11919_vm0, %v11917_v0  ;;  %10534 = vmatpush3.msra.mxu0 %v12136_v42  ;;  %s12286_s17 = sld [smem:[%s14281_s0 + %s14288_s28]]   ;;  %s14298_s11 = smov 96  }
  0x17   :  { %v494_v31 = vld [vmem:[%s12101_s8] sm:$0xff]  ;;  %10535 = vmatprep.subr.mxu0 %v11917_v0  ;;  %v9848_v50 = vld [vmem:[%s12101_s8 + $0x8] sm:$0xff]  ;;  %s12305_s4 = sld [smem:[%s14281_s0 + %s11940_s19]]  }
  0x18   :  { %10536 = vmatpush3.msra.mxu0 %v12139_v43  ;;  %s12317_s24 = sld [smem:[%s14281_s0 + %s11941_s7]]   ;;  %s11943_s7 = smov 21  }
  0x19   :  { %10538 = vmatmul.mubr.msk.f32.vlgmr.msra.gmra.mxu0 %vm129_vm2, %v9844_v45  ;;  %10547 = vmatprep.subr.mxu0 %v11917_v0 }
  0x1a   :  { %10551 = vmatprep.mubr.msk.f32.mxu0 %vm11919_vm0, %v11917_v0 }
  0x1c   :  { %137 = vst.msk [vmem:[%s12286_s17] sm:$0xff] %vm134_vm1, %v11917_v0  ;;  %138 = vst.msk [vmem:[%s12286_s17 + $0x8] sm:$0xff] %vm134_vm1, %v11917_v0 }
  0xd1   :  { %v259_v13 = vpop.f32.mrf.mxu0 }
  0xd2   :  { %v260_v14 = vadd.f32 %v12073_v12, %v259_v13 }
  0xd3   :  { %v10509_v15 = vpop.f32.mrf.mxu0 }
  0xd4   :  { %11445 = vtanh.f32 %v260_v14 }
  0xd5   :  { %v407_v20 = vpop.f32.mrf.mxu0 }
  0xd7   :  { %v10525_v21 = vpop.f32.mrf.mxu0 }
  0xd8   :  { %v12188_v21 = vld [vmem:[%s12185_s12 + $0x8] sm:$0xff] }
  0xd9   :  { %v604_v51 = vpop.f32.mrf.mxu0  ;;  %10548 = vmatpush3.msra.mxu0 %v12188_v21 }
  0xda   :  { %10549 = vmatprep.subr.mxu0 %v11917_v0 }
  0xdb   :  { %v10539_v52 = vpop.f32.mrf.mxu0 }
  0xe1   :  { %v11446_v17 = vpop.eup %11445 }
  0xe2   :  { %10519 = vmatmul.mubr.msk.f32.vlgmr.msra.gmra.mxu1 %vm134_vm1, %v11446_v17 }
  0xe3   :  { %10527 = vmatpush3.msra.mxu1 %v12082_v16  ;;  %10530 = vmatprep.mubr.msk.f32.mxu1 %vm11919_vm0, %v11917_v0 }
  0xe4   :  { %10528 = vmatprep.subr.mxu1 %v11917_v0 }
  0xe5   :  { %10529 = vmatpush3.msra.mxu1 %v12086_v18 }
  0xe6   :  { %10531 = vmatmul.mubr.msk.f32.vlgmr.msra.gmra.mxu1 %vm129_vm2, %v411_v19  ;;  %10540 = vmatprep.subr.mxu1 %v11917_v0 }
  0xe7   :  { %10544 = vmatprep.mubr.msk.f32.mxu1 %vm11919_vm0, %v11917_v0  ;;  %10541 = vmatpush3.msra.mxu1 %v12143_v44 }
  0xe8   :  { %10542 = vmatprep.subr.mxu1 %v11917_v0 }
  0xe9   :  { %10543 = vmatpush3.msra.mxu1 %v12149_v46 }
  0xea   :  { %10554 = vmatprep.subr.mxu1 %v11917_v0 }
 0x1a2   :  { %v333_v22 = vpop.f32.mrf.mxu1 }
 0x1a3   :  { %v408_v24 = vadd.f32 %v407_v20, %v333_v22  ;;  %v12191_v22 = vld [vmem:[%s12185_s12] sm:$0xff] }
 0x1a4   :  { %v10520_v23 = vpop.f32.mrf.mxu1  ;;  %10550 = vmatpush3.msra.mxu0 %v12191_v22 }
 0x1a5   :  { %10559 = vmatprep.subr.mxu0 %v11917_v0 }
 0x1a6   :  { %v482_v26 = vpop.f32.mrf.mxu1 }
 0x1a7   :  { %v486_v27 = vadd.f32 %v482_v26, %v408_v24 }
 0x1a8   :  { %v10532_v28 = vpop.f32.mrf.mxu1 }
 0x1a9   :  { %v493_v29 = vadd.f32 %v12115_v25, %v486_v27  ;;  %v12222_v28 = vld [vmem:[%s12208_s23 + $0x8] sm:$0xff] }
 0x1ab   :  { %11447 = vtanh.f32 %v493_v29  ;;  %v9843_v32 = vmul.f32 -1.442695, %v493_v29  ;;  %v12225_v29 = vld [vmem:[%s12208_s23] sm:$0xff] }
 0x1ad   :  { %11449 = vpow2.f32 %v9843_v32  ;;  %v12248_v32 = vld [vmem:[%s12230_s20 + $0x18] sm:$0xff] }
 0x1b8   :  { %v11448_v30 = vpop.eup %11447 }
 0x1b9   :  { %508 = vrot.lane.b32.xlu0 %v11448_v30, %s14284_s15  ;;  %v12241_v30 = vld [vmem:[%s12214_s1] sm:$0xff] }
 0x1ba   :  { %v11450_v33 = vpop.eup %11449 }
 0x1bb   :  { %v498_v34 = vadd.f32 1.0, %v11450_v33  ;;  %v12253_v33 = vld [vmem:[%s12230_s20 + $0x10] sm:$0xff] }
 0x1bd   :  { %503 = vrot.lane.b32.xlu0 %v494_v31, %s14286_s16  ;;  %11451 = vrcp.f32 %v498_v34  ;;  %v180_v31 = vld [vmem:[%s12219_s9] sm:$0xff]  ;;  %v12258_v34 = vld [vmem:[%s12236_s2 + $0x8] sm:$0xff] }
 0x1ca   :  { %v11452_v35 = vpop.eup %11451 }
 0x22b   :  { %v509_v36 = vpop.permute.xlu0 %508 }
 0x22c   :  { %v511_v37 = vmul.f32 %v11452_v35, %v509_v36  ;;  %v12266_v36 = vld [vmem:[%s12230_s20 + $0x8] sm:$0xff] }
 0x22e   :  { %513 = vrot.lane.b32.xlu1 %v511_v37, %s14286_s16  ;;  %v1024_v37 = vld [vmem:[%s11971_s10] sm:$0xff] }
 0x22f   :  { %v504_v38 = vpop.permute.xlu0 %503 }
 0x230   :  { %v506_v39 = vmul.f32 %v11452_v35, %v504_v38  ;;  %v1106_v38 = vld [vmem:[%s12286_s17] sm:$0xff] }
 0x2a0   :  { %v514_v40 = vpop.permute.xlu1 %513 }
 0x2a1   :  { %v12122_v41 = vadd.f32 %v514_v40, %v506_v39  ;;  %v12308_v39 = vld [vmem:[%s12305_s4] ss:$0 sm:$0xff] }
 0x2a3   :  { %11453 = vtanh.f32 %v12122_v41 }
 0x2b0   :  { %v11454_v47 = vpop.eup %11453 }
 0x2b1   :  { %519 = vrot.lane.b32.xlu1 %v11454_v47, %s14288_s28 }
 0x323   :  { %v520_v48 = vpop.permute.xlu1 %519 }
 0x324   :  { %v522_v49 = vmul.f32 %v11452_v35, %v520_v48  ;;  %v12261_v35 = vld [vmem:[%s12236_s2] sm:$0xff] }
 0x326   :  { %524 = vrot.lane.b32.xlu0 %v522_v49, %s14282_s30 }
 0x32a   :  { %697 = vrot.lane.b32.xlu0 %v9848_v50, %s14286_s16 }
 0x398   :  { %v525_v53 = vpop.permute.xlu0 %524 }
 0x399   :  { %527 = vst.msk [vmem:[%s12022_s22] sm:$0xff] %vm129_vm2, %v525_v53  ;;  %10545 = vmatmul.mubr.msk.f32.vlgmr.msra.gmra.mxu1 %vm129_vm2, %v525_v53 }
 0x39a   :  { %10556 = vmatprep.mubr.msk.f32.mxu1 %vm11919_vm0, %v11917_v0  ;;  %10555 = vmatpush3.msra.mxu1 %v12241_v30 }
 0x39b   :  { %10566 = vmatprep.subr.mxu1 %v11917_v0 }
 0x39c   :  { %v698_v15 = vpop.permute.xlu0 %697 }
 0x39d   :  { %10557 = vmatmul.mubr.msk.f32.vlgmr.msra.gmra.mxu1 %vm337_vm3, %v12060_v11  ;;  %v12273_v11 = vld [vmem:[%s12230_s20] sm:$0xff] }
 0x39e   :  { %10567 = vmatpush3.msra.mxu1 %v12258_v34  ;;  %10570 = vmatprep.mubr.msk.f32.mxu1 %vm11919_vm0, %v11917_v0 }
 0x39f   :  { %10568 = vmatprep.subr.mxu1 %v11917_v0 }
 0x3a0   :  { %10569 = vmatpush3.msra.mxu1 %v12261_v35 }
 0x3a1   :  { %10584 = vmatprep.subr.mxu1 %v11917_v0 }
 0x459   :  { %v676_v55 = vpop.f32.mrf.mxu1 }
 0x45a   :  { %v677_v56 = vadd.f32 %v676_v55, %v604_v51 }
 0x45b   :  { %v10546_v57 = vpop.f32.mrf.mxu1 }
 0x45c   :  { %v686_v58 = vadd.f32 %v12174_v54, %v677_v56 }
 0x45d   :  { %v873_v50 = vpop.f32.mrf.mxu1 }
 0x45e   :  { %11455 = vtanh.f32 %v686_v58  ;;  %v9849_v60 = vmul.f32 -1.442695, %v686_v58 }
 0x45f   :  { %v10558_v53 = vpop.f32.mrf.mxu1 }
 0x460   :  { %11457 = vpow2.f32 %v9849_v60 }
 0x46b   :  { %v11456_v59 = vpop.eup %11455 }
 0x46c   :  { %702 = vrot.lane.b32.xlu1 %v11456_v59, %s14284_s15  ;;  %v12320_v59 = vld [vmem:[%s12317_s24] ss:$0 sm:$0xff]  ;;  %s11944_s15 = smov 20  }
 0x46d   :  { %v11458_v61 = vpop.eup %11457 }
 0x46e   :  { %v692_v62 = vadd.f32 1.0, %v11458_v61 }
 0x470   :  { %11459 = vrcp.f32 %v692_v62 }
 0x47d   :  { %v11460_v63 = vpop.eup %11459 }
 0x47e   :  { %v700_v17 = vmul.f32 %v11460_v63, %v698_v15 }
 0x4de   :  { %v703_v13 = vpop.permute.xlu1 %702 }
 0x4df   :  { %v705_v14 = vmul.f32 %v11460_v63, %v703_v13 }
 0x4e1   :  { %707 = vrot.lane.b32.xlu1 %v705_v14, %s14286_s16  ;;  %s14296_s16 = smov 32  }
 0x553   :  { %v708_v19 = vpop.permute.xlu1 %707 }
 0x554   :  { %v12179_v20 = vadd.f32 %v708_v19, %v700_v17 }
 0x556   :  { %11461 = vtanh.f32 %v12179_v20 }
 0x563   :  { %v11462_v23 = vpop.eup %11461 }
 0x564   :  { %713 = vrot.lane.b32.xlu0 %v11462_v23, %s14288_s28 }
 0x5d6   :  { %v714_v24 = vpop.permute.xlu0 %713 }
 0x5d7   :  { %v716_v26 = vmul.f32 %v11460_v63, %v714_v24 }
 0x5d9   :  { %718 = vrot.lane.b32.xlu1 %v716_v26, %s14282_s30  ;;  %s12331_s30 = sld [smem:[%s14281_s0 + %s11943_s7]]   ;;  %s14297_s7 = smov 16  }
 0x5dd   :  { %1115 = vrot.lane.b32.xlu1 %v1106_v38, %s14288_s28 }
 0x5df   :  { %v12342_v38 = vld [vmem:[%s12331_s30 + $0x10] sm:$0xff] }
 0x64b   :  { %v719_v27 = vpop.permute.xlu1 %718 }
 0x64c   :  { %9850 = vst.msk [vmem:[%s12022_s22 + $0x8] sm:$0xff] %vm129_vm2, %v719_v27  ;;  %727 = vst.msk [vmem:[#allocation2] sm:$0xff] %vm129_vm2, %v719_v27  ;;  %10552 = vmatmul.mubr.msk.f32.vlgmr.msra.gmra.mxu0 %vm129_vm2, %v719_v27 }
 0x64d   :  { %10563 = vmatprep.mubr.msk.f32.mxu0 %vm11919_vm0, %v11917_v0  ;;  %10560 = vmatpush3.msra.mxu0 %v12222_v28 }
 0x64e   :  { %10561 = vmatprep.subr.mxu0 %v11917_v0 }
 0x64f   :  { %10562 = vmatpush3.msra.mxu0 %v12225_v29  ;;  %v1116_v24 = vpop.permute.xlu1 %1115 }
 0x650   :  { %10573 = vmatprep.subr.mxu0 %v11917_v0  ;;  %10564 = vmatmul.mubr.msk.f32.vlgmr.msra.gmra.mxu0 %vm129_vm2, %v180_v31 }
 0x651   :  { %10574 = vmatpush3.msra.mxu0 %v12248_v32  ;;  %10581 = vmatprep.mubr.msk.f32.mxu0 %vm11919_vm0, %v11917_v0 }
 0x652   :  { %10575 = vmatprep.subr.mxu0 %v11917_v0 }
 0x653   :  { %10576 = vmatpush3.msra.mxu0 %v12253_v33 }
 0x654   :  { %10577 = vmatprep.subr.mxu0 %v11917_v0 }
 0x655   :  { %10578 = vmatpush3.msra.mxu0 %v12266_v36 }
 0x656   :  { %10579 = vmatprep.subr.mxu0 %v11917_v0 }
 0x657   :  { %10580 = vmatpush3.msra.mxu0 %v12273_v11 }
 0x658   :  { %10582 = vmatmul.mubr.msk.f32.vlgmr.msra.gmra.mxu0 %vm134_vm1, %v1024_v37  ;;  %10595 = vmatprep.subr.mxu0 %v11917_v0  ;;  %v12339_v37 = vld [vmem:[%s12331_s30 + $0x18] sm:$0xff] }
 0x659   :  { %10603 = vmatprep.mubr.msk.f32.mxu0 %vm11919_vm0, %v11917_v0 }
 0x70c   :  { %v802_v40 = vpop.f32.mrf.mxu0 }
 0x70d   :  { %v803_v45 = vadd.f32 %v12308_v39, %v802_v40 }
 0x70e   :  { %v10553_v47 = vpop.f32.mrf.mxu0 }
 0x70f   :  { %11463 = vtanh.f32 %v803_v45  ;;  %v12351_v45 = vld [vmem:[%s12331_s30 + $0x8] sm:$0xff] }
 0x710   :  { %v946_v49 = vpop.f32.mrf.mxu0 }
 0x711   :  { %v947_v51 = vadd.f32 %v946_v49, %v873_v50  ;;  %v12361_v49 = vld [vmem:[%s12331_s30] sm:$0xff] }
 0x712   :  { %v10565_v52 = vpop.f32.mrf.mxu0 }
 0x713   :  { %v9864_v52 = vld [vmem:[%s12286_s17 + $0x8] sm:$0xff] }
 0x718   :  { %v1094_v55 = vpop.f32.mrf.mxu0 }
 0x71a   :  { %v10583_v56 = vpop.f32.mrf.mxu0 }
 0x71c   :  { %v11464_v48 = vpop.eup %11463 }
 0x71d   :  { %10571 = vmatmul.mubr.msk.f32.vlgmr.msra.gmra.mxu1 %vm129_vm2, %v11464_v48 }
 0x71e   :  { %10592 = vmatprep.mubr.msk.f32.mxu1 %vm11919_vm0, %v11917_v0  ;;  %10585 = vmatpush3.msra.mxu1 %v12339_v37 }
 0x71f   :  { %10586 = vmatprep.subr.mxu1 %v11917_v0 }
 0x720   :  { %10587 = vmatpush3.msra.mxu1 %v12342_v38 }
 0x721   :  { %10588 = vmatprep.subr.mxu1 %v11917_v0 }
 0x722   :  { %10589 = vmatpush3.msra.mxu1 %v12351_v45 }
 0x723   :  { %10590 = vmatprep.subr.mxu1 %v11917_v0 }
 0x724   :  { %10591 = vmatpush3.msra.mxu1 %v12361_v49 }
 0x725   :  { %10593 = vmatmul.mubr.msk.f32.vlgmr.msra.gmra.mxu1 %vm134_vm1, %v12002_v5  ;;  %10606 = vmatprep.subr.mxu1 %v11917_v0 }
 0x726   :  { %10607 = vmatpush3.msra.mxu1 %v11977_v1  ;;  %10614 = vmatprep.mubr.msk.f32.mxu1 %vm11919_vm0, %v11917_v0 }
 0x727   :  { %10608 = vmatprep.subr.mxu1 %v11917_v0 }
 0x728   :  { %10609 = vmatpush3.msra.mxu1 %v11980_v2 }
 0x729   :  { %10610 = vmatprep.subr.mxu1 %v11917_v0 }
 0x72a   :  { %10611 = vmatpush3.msra.mxu1 %v11991_v3 }
 0x72b   :  { %10612 = vmatprep.subr.mxu1 %v11917_v0 }
 0x72c   :  { %10613 = vmatpush3.msra.mxu1 %v11996_v4 }
 0x72d   :  { %10628 = vmatprep.subr.mxu1 %v11917_v0 }
 0x7dd   :  { %v1019_v57 = vpop.f32.mrf.mxu1 }
 0x7de   :  { %v1023_v58 = vadd.f32 %v1019_v57, %v947_v51 }
 0x7df   :  { %v10572_v60 = vpop.f32.mrf.mxu1 }
 0x7e0   :  { %v1098_v61 = vadd.f32 %v1094_v55, %v1023_v58 }
 0x7e2   :  { %v1105_v62 = vadd.f32 %v12320_v59, %v1098_v61 }
 0x7e4   :  { %11465 = vtanh.f32 %v1105_v62  ;;  %v9859_v13 = vmul.f32 -1.442695, %v1105_v62 }
 0x7e5   :  { %v1215_v53 = vpop.f32.mrf.mxu1 }
 0x7e6   :  { %11467 = vpow2.f32 %v9859_v13 }
 0x7e7   :  { %v10594_v55 = vpop.f32.mrf.mxu1 }
 0x7f1   :  { %v11466_v63 = vpop.eup %11465 }
 0x7f2   :  { %1120 = vrot.lane.b32.xlu0 %v11466_v63, %s14290_s26  ;;  %s12336_s26 = sld [smem:[%s14281_s0 + %s11944_s15]]   ;;  %s14295_s15 = smov 64  }
 0x7f3   :  { %v11468_v14 = vpop.eup %11467 }
 0x7f4   :  { %v1110_v15 = vadd.f32 1.0, %v11468_v14 }
 0x7f6   :  { %11469 = vrcp.f32 %v1110_v15 }
 0x7f8   :  { %v12346_v40 = vld [vmem:[%s12336_s26 + $0x18] sm:$0xff]  ;;  %v12354_v47 = vld [vmem:[%s12336_s26 + $0x10] sm:$0xff]  ;;  %v12364_v50 = vld [vmem:[%s12336_s26 + $0x8] sm:$0xff] }
 0x7f9   :  { %10596 = vmatpush3.msra.mxu0 %v12346_v40  ;;  %v12371_v51 = vld [vmem:[%s12336_s26] sm:$0xff] }
 0x7fa   :  { %10597 = vmatprep.subr.mxu0 %v11917_v0 }
 0x7fb   :  { %10598 = vmatpush3.msra.mxu0 %v12354_v47 }
 0x7fc   :  { %10599 = vmatprep.subr.mxu0 %v11917_v0 }
 0x7fd   :  { %10600 = vmatpush3.msra.mxu0 %v12364_v50 }
 0x7fe   :  { %10601 = vmatprep.subr.mxu0 %v11917_v0 }
 0x7ff   :  { %10602 = vmatpush3.msra.mxu0 %v12371_v51 }
 0x800   :  { %10617 = vmatprep.subr.mxu0 %v11917_v0 }
 0x803   :  { %v11470_v17 = vpop.eup %11469 }
 0x804   :  { %v1118_v26 = vmul.f32 %v11470_v17, %v1116_v24 }
 0x864   :  { %v1121_v19 = vpop.permute.xlu0 %1120 }
 0x865   :  { %v1123_v23 = vmul.f32 %v11470_v17, %v1121_v19 }
 0x867   :  { %1125 = vrot.lane.b32.xlu0 %v1123_v23, %s14288_s28  ;;  %s11945_s28 = smov 22  }
 0x868   :  { %s12410_s19 = sld [smem:[%s14281_s0 + %s11945_s28]]   ;;  %s11946_s28 = smov 112  }
 0x869   :  { %s14299_s0 = smov 80  }
 0x86e   :  { %v12413_v3 = vld [vmem:[%s12410_s19] ss:$0 sm:$0xff] }
 0x8d9   :  { %v1126_v27 = vpop.permute.xlu0 %1125 }
 0x8da   :  { %v12325_v31 = vadd.f32 %v1126_v27, %v1118_v26 }
 0x8dc   :  { %11471 = vtanh.f32 %v12325_v31 }
 0x8e9   :  { %v11472_v48 = vpop.eup %11471 }
 0x8ea   :  { %1131 = vrot.lane.b32.xlu1 %v11472_v48, %s14295_s15 }
 0x95c   :  { %v1132_v1 = vpop.permute.xlu1 %1131 }
 0x95d   :  { %v1134_v5 = vmul.f32 %v11470_v17, %v1132_v1 }
 0x95f   :  { %1136 = vrot.lane.b32.xlu0 %v1134_v5, %s14296_s16 }
 0x963   :  { %1308 = vrot.lane.b32.xlu0 %v9864_v52, %s14296_s16 }
 0x9d1   :  { %v1137_v2 = vpop.permute.xlu0 %1136 }
 0x9d2   :  { %1139 = vst.msk [vmem:[%s11971_s10] sm:$0xff] %vm134_vm1, %v1137_v2  ;;  %10604 = vmatmul.mubr.msk.f32.vlgmr.msra.gmra.mxu0 %vm134_vm1, %v1137_v2 }
 0x9d3   :  { %10618 = vmatpush3.msra.mxu0 %v12025_v6  ;;  %10625 = vmatprep.mubr.msk.f32.mxu0 %vm11919_vm0, %v11917_v0 }
 0x9d4   :  { %10619 = vmatprep.subr.mxu0 %v11917_v0 }
 0x9d5   :  { %10620 = vmatpush3.msra.mxu0 %v12028_v7  ;;  %v1309_v63 = vpop.permute.xlu0 %1308 }
 0x9d6   :  { %10621 = vmatprep.subr.mxu0 %v11917_v0 }
 0x9d7   :  { %10622 = vmatpush3.msra.mxu0 %v12041_v9 }
 0x9d8   :  { %10623 = vmatprep.subr.mxu0 %v11917_v0 }
 0x9d9   :  { %10624 = vmatpush3.msra.mxu0 %v12048_v10 }
 0x9da   :  { %10640 = vmatprep.subr.mxu0 %v11917_v0 }
 0xa92   :  { %v1287_v4 = vpop.f32.mrf.mxu0 }
 0xa93   :  { %v1288_v6 = vadd.f32 %v1287_v4, %v1215_v53 }
 0xa94   :  { %v10605_v7 = vpop.f32.mrf.mxu0 }
 0xa95   :  { %v1297_v9 = vadd.f32 %v12413_v3, %v1288_v6 }
 0xa97   :  { %11473 = vtanh.f32 %v1297_v9  ;;  %v9865_v10 = vmul.f32 -1.442695, %v1297_v9 }
 0xa99   :  { %11475 = vpow2.f32 %v9865_v10 }
 0xaa4   :  { %v11474_v56 = vpop.eup %11473 }
 0xaa5   :  { %1313 = vrot.lane.b32.xlu1 %v11474_v56, %s14295_s15 }
 0xaa6   :  { %v11476_v57 = vpop.eup %11475 }
 0xaa7   :  { %v1303_v58 = vadd.f32 1.0, %v11476_v57 }
 0xaa9   :  { %11477 = vrcp.f32 %v1303_v58 }
 0xab6   :  { %v11478_v60 = vpop.eup %11477 }
 0xab7   :  { %v1311_v13 = vmul.f32 %v11478_v60, %v1309_v63 }
 0xb17   :  { %v1314_v61 = vpop.permute.xlu1 %1313 }
 0xb18   :  { %v1316_v62 = vmul.f32 %v11478_v60, %v1314_v61 }
 0xb1a   :  { %1318 = vrot.lane.b32.xlu1 %v1316_v62, %s14296_s16 }
 0xb8c   :  { %v1319_v14 = vpop.permute.xlu1 %1318 }
 0xb8d   :  { %v12418_v15 = vadd.f32 %v1319_v14, %v1311_v13 }
 0xb8f   :  { %11479 = vtanh.f32 %v12418_v15 }
 0xb9c   :  { %v11480_v17 = vpop.eup %11479 }
 0xb9d   :  { %1324 = vrot.lane.b32.xlu0 %v11480_v17, %s14295_s15 }
 0xba1   :  { %529 = vrot.lane.b32.xlu0 %v12122_v41, %s11946_s28  ;;  %v12441_v41 = vld [vmem:[%s12037_s25 + $0x8] sm:$0xff] }
 0xc0f   :  { %v1325_v19 = vpop.permute.xlu0 %1324 }
 0xc10   :  { %v1327_v23 = vmul.f32 %v11478_v60, %v1325_v19 }
 0xc12   :  { %1329 = vrot.lane.b32.xlu1 %v1327_v23, %s14296_s16 }
 0xc13   :  { %v530_v24 = vpop.permute.xlu0 %529 }
 0xc14   :  { %532 = vst.msk [vmem:[%s12101_s8] sm:$0xff] %vm129_vm2, %v530_v24 }
 0xc1b   :  { %v1640_v26 = vld [vmem:[%s12101_s8] sm:$0xff] }
 0xc1c   :  { %1649 = vrot.lane.b32.xlu0 %v1640_v26, %s14297_s7 }
 0xc84   :  { %v1330_v27 = vpop.permute.xlu1 %1329 }
 0xc85   :  { %9866 = vst.msk [vmem:[%s11971_s10 + $0x8] sm:$0xff] %vm134_vm1, %v1330_v27  ;;  %1338 = vst.msk [vmem:[#allocation3] sm:$0xff] %vm134_vm1, %v1330_v27 }
 0xc8c   :  { %v12433_v48 = vld [vmem:[%s11971_s10 + $0x8] sm:$0xff] }
 0xc8d   :  { %10615 = vmatmul.mubr.msk.f32.vlgmr.msra.gmra.mxu1 %vm134_vm1, %v12433_v48 }
 0xc8e   :  { %10629 = vmatpush3.msra.mxu1 %v12032_v8  ;;  %10630 = vmatprep.mubr.msk.f32.mxu1 %vm11919_vm0, %v11917_v0  ;;  %v1564_v8 = vld [vmem:[%s12022_s22] sm:$0xff]  ;;  %v1650_v62 = vpop.permute.xlu0 %1649 }
 0xc8f   :  { %10633 = vmatprep.subr.mxu1 %v11917_v0 }
 0xc91   :  { %10631 = vmatmul.mubr.msk.f32.vlgmr.msra.gmra.mxu1 %vm337_vm3, %v12441_v41 }
 0xc92   :  { %10634 = vmatpush3.msra.mxu1 %v12082_v16  ;;  %10637 = vmatprep.mubr.msk.f32.mxu1 %vm11919_vm0, %v11917_v0 }
 0xc93   :  { %10635 = vmatprep.subr.mxu1 %v11917_v0 }
 0xc94   :  { %10636 = vmatpush3.msra.mxu1 %v12086_v18 }
 0xc95   :  { %10638 = vmatmul.mubr.msk.f32.vlgmr.msra.gmra.mxu1 %vm129_vm2, %v1564_v8  ;;  %10647 = vmatprep.subr.mxu1 %v11917_v0 }
 0xc96   :  { %10648 = vmatpush3.msra.mxu1 %v12143_v44  ;;  %10651 = vmatprep.mubr.msk.f32.mxu1 %vm11919_vm0, %v11917_v0 }
 0xc97   :  { %10649 = vmatprep.subr.mxu1 %v11917_v0 }
 0xc98   :  { %10650 = vmatpush3.msra.mxu1 %v12149_v46  ;;  %v9876_v46 = vld [vmem:[%s12022_s22 + $0x8] sm:$0xff] }
 0xc99   :  { %10661 = vmatprep.subr.mxu1 %v11917_v0 }
 0xd4d   :  { %v1413_v16 = vpop.f32.mrf.mxu1 }
 0xd4e   :  { %v1414_v18 = vadd.f32 %v12073_v12, %v1413_v16 }
 0xd4f   :  { %v10616_v1 = vpop.f32.mrf.mxu1 }
 0xd50   :  { %11481 = vtanh.f32 %v1414_v18 }
 0xd51   :  { %v1560_v5 = vpop.f32.mrf.mxu1 }
 0xd53   :  { %v10632_v52 = vpop.f32.mrf.mxu1 }
 0xd55   :  { %v1634_v53 = vpop.f32.mrf.mxu1 }
 0xd57   :  { %v10639_v55 = vpop.f32.mrf.mxu1 }
 0xd5d   :  { %v11482_v44 = vpop.eup %11481 }
 0xd5e   :  { %10626 = vmatmul.mubr.msk.f32.vlgmr.msra.gmra.mxu0 %vm134_vm1, %v11482_v44 }
 0xd5f   :  { %10641 = vmatpush3.msra.mxu0 %v12136_v42  ;;  %10644 = vmatprep.mubr.msk.f32.mxu0 %vm11919_vm0, %v11917_v0 }
 0xd60   :  { %10642 = vmatprep.subr.mxu0 %v11917_v0 }
 0xd61   :  { %10643 = vmatpush3.msra.mxu0 %v12139_v43 }
 0xd62   :  { %10645 = vmatmul.mubr.msk.f32.vlgmr.msra.gmra.mxu0 %vm129_vm2, %v9876_v46  ;;  %10654 = vmatprep.subr.mxu0 %v11917_v0 }
 0xd63   :  { %10655 = vmatpush3.msra.mxu0 %v12188_v21  ;;  %10658 = vmatprep.mubr.msk.f32.mxu0 %vm11919_vm0, %v11917_v0 }
 0xd64   :  { %10656 = vmatprep.subr.mxu0 %v11917_v0 }
 0xd65   :  { %10657 = vmatpush3.msra.mxu0 %v12191_v22 }
 0xd66   :  { %10666 = vmatprep.subr.mxu0 %v11917_v0 }
 0xe1e   :  { %v1487_v12 = vpop.f32.mrf.mxu0 }
 0xe1f   :  { %v1561_v42 = vadd.f32 %v1560_v5, %v1487_v12 }
 0xe20   :  { %v10627_v2 = vpop.f32.mrf.mxu0 }
 0xe21   :  { %v1638_v43 = vadd.f32 %v1634_v53, %v1561_v42 }
 0xe22   :  { %v1749_v4 = vpop.f32.mrf.mxu0 }
 0xe23   :  { %v1639_v6 = vadd.f32 %v12115_v25, %v1638_v43 }
 0xe24   :  { %v10646_v7 = vpop.f32.mrf.mxu0 }
 0xe25   :  { %11483 = vtanh.f32 %v1639_v6  ;;  %v9875_v56 = vmul.f32 -1.442695, %v1639_v6 }
 0xe27   :  { %11485 = vpow2.f32 %v9875_v56 }
 0xe32   :  { %v11484_v9 = vpop.eup %11483 }
 0xe33   :  { %1654 = vrot.lane.b32.xlu1 %v11484_v9, %s14298_s11 }
 0xe34   :  { %v11486_v10 = vpop.eup %11485 }
 0xe35   :  { %v1644_v57 = vadd.f32 1.0, %v11486_v10 }
 0xe37   :  { %11487 = vrcp.f32 %v1644_v57 }
 0xe44   :  { %v11488_v58 = vpop.eup %11487 }
 0xe45   :  { %v1652_v25 = vmul.f32 %v11488_v58, %v1650_v62 }
 0xea5   :  { %v1655_v60 = vpop.permute.xlu1 %1654 }
 0xea6   :  { %v1657_v61 = vmul.f32 %v11488_v58, %v1655_v60 }
 0xea8   :  { %1659 = vrot.lane.b32.xlu1 %v1657_v61, %s14297_s7 }
 0xf1a   :  { %v1660_v63 = vpop.permute.xlu1 %1659 }
 0xf1b   :  { %v12479_v13 = vadd.f32 %v1660_v63, %v1652_v25 }
 0xf1d   :  { %11489 = vtanh.f32 %v12479_v13 }
 0xf2a   :  { %v11490_v14 = vpop.eup %11489 }
 0xf2b   :  { %1665 = vrot.lane.b32.xlu0 %v11490_v14, %s14296_s16 }
 0xf2f   :  { %723 = vrot.lane.b32.xlu0 %v12179_v20, %s11946_s28 }
 0xf9d   :  { %v1666_v17 = vpop.permute.xlu0 %1665 }
 0xf9e   :  { %v1668_v19 = vmul.f32 %v11488_v58, %v1666_v17 }
 0xfa0   :  { %1670 = vrot.lane.b32.xlu1 %v1668_v19, %s14299_s0 }
 0xfa1   :  { %v724_v23 = vpop.permute.xlu0 %723 }
 0xfa2   :  { %9851 = vst.msk [vmem:[%s12101_s8 + $0x8] sm:$0xff] %vm129_vm2, %v724_v23 }
 0xfa9   :  { %v9879_v24 = vld [vmem:[%s12101_s8 + $0x8] sm:$0xff] }
 0xfaa   :  { %1835 = vrot.lane.b32.xlu0 %v9879_v24, %s14297_s7 }
0x1012   :  { %v1671_v26 = vpop.permute.xlu1 %1670 }
0x1013   :  { %1673 = vst.msk [vmem:[%s12022_s22] sm:$0xff] %vm129_vm2, %v1671_v26  ;;  %10652 = vmatmul.mubr.msk.f32.vlgmr.msra.gmra.mxu1 %vm129_vm2, %v1671_v26 }
0x1014   :  { %10662 = vmatpush3.msra.mxu1 %v12241_v30  ;;  %10663 = vmatprep.mubr.msk.f32.mxu1 %vm11919_vm0, %v11917_v0 }
0x1015   :  { %10673 = vmatprep.subr.mxu1 %v11917_v0 }
0x1017   :  { %10664 = vmatmul.mubr.msk.f32.vlgmr.msra.gmra.mxu1 %vm337_vm3, %v12441_v41 }
0x1018   :  { %10674 = vmatpush3.msra.mxu1 %v12258_v34  ;;  %10677 = vmatprep.mubr.msk.f32.mxu1 %vm11919_vm0, %v11917_v0 }
0x1019   :  { %10675 = vmatprep.subr.mxu1 %v11917_v0 }
0x101a   :  { %10676 = vmatpush3.msra.mxu1 %v12261_v35 }
0x101b   :  { %10691 = vmatprep.subr.mxu1 %v11917_v0 }
0x101c   :  { %v1836_v55 = vpop.permute.xlu0 %1835 }
0x10d3   :  { %v1821_v20 = vpop.f32.mrf.mxu1 }
0x10d4   :  { %v1822_v30 = vadd.f32 %v1821_v20, %v1749_v4 }
0x10d5   :  { %v10653_v27 = vpop.f32.mrf.mxu1 }
0x10d6   :  { %v1825_v8 = vadd.f32 %v12174_v54, %v1822_v30 }
0x10d8   :  { %11491 = vtanh.f32 %v1825_v8  ;;  %v9880_v41 = vmul.f32 -1.442695, %v1825_v8 }
0x10da   :  { %11493 = vpow2.f32 %v9880_v41 }
0x10e5   :  { %v11492_v16 = vpop.eup %11491 }
0x10e6   :  { %1840 = vrot.lane.b32.xlu1 %v11492_v16, %s14298_s11 }
0x10e7   :  { %v11494_v18 = vpop.eup %11493 }
0x10e8   :  { %v1830_v1 = vadd.f32 1.0, %v11494_v18 }
0x10ea   :  { %11495 = vrcp.f32 %v1830_v1 }
0x10f7   :  { %v11496_v5 = vpop.eup %11495 }
0x10f8   :  { %v1838_v44 = vmul.f32 %v11496_v5, %v1836_v55  ;;  %v12607_v55 = vld [vmem:[%s12012_s14 + $0x18] sm:$0xff] }
0x1158   :  { %v1841_v52 = vpop.permute.xlu1 %1840 }
0x1159   :  { %v1843_v53 = vmul.f32 %v11496_v5, %v1841_v52 }
0x115b   :  { %1845 = vrot.lane.b32.xlu1 %v1843_v53, %s14297_s7 }
0x11cd   :  { %v1846_v54 = vpop.permute.xlu1 %1845 }
0x11ce   :  { %v12508_v46 = vadd.f32 %v1846_v54, %v1838_v44  ;;  %v12619_v44 = vld [vmem:[%s12012_s14 + $0x8] sm:$0xff]  ;;  %v12624_v54 = vld [vmem:[%s12012_s14] sm:$0xff] }
0x11d0   :  { %11497 = vtanh.f32 %v12508_v46 }
0x11dd   :  { %v11498_v12 = vpop.eup %11497 }
0x11de   :  { %1851 = vrot.lane.b32.xlu0 %v11498_v12, %s14296_s16 }
0x11e2   :  { %1141 = vrot.lane.b32.xlu0 %v12325_v31, %s14298_s11  ;;  %v9869_v31 = vld [vmem:[%s12219_s9 + $0x8] sm:$0xff] }
0x1250   :  { %v1852_v42 = vpop.permute.xlu0 %1851 }
0x1251   :  { %v1854_v2 = vmul.f32 %v11496_v5, %v1852_v42 }
0x1253   :  { %1856 = vrot.lane.b32.xlu1 %v1854_v2, %s14299_s0 }
0x1254   :  { %v1142_v43 = vpop.permute.xlu0 %1141 }
0x1255   :  { %1144 = vst.msk [vmem:[%s12286_s17] sm:$0xff] %vm134_vm1, %v1142_v43 }
0x125c   :  { %v2232_v4 = vld [vmem:[%s12286_s17] sm:$0xff] }
0x125d   :  { %2241 = vrot.lane.b32.xlu0 %v2232_v4, %s14296_s16 }
0x12c5   :  { %v1857_v6 = vpop.permute.xlu1 %1856 }
0x12c6   :  { %9881 = vst.msk [vmem:[%s12022_s22 + $0x8] sm:$0xff] %vm129_vm2, %v1857_v6  ;;  %1865 = vst.msk [vmem:[#allocation2 + $0x8] sm:$0xff] %vm129_vm2, %v1857_v6  ;;  %10659 = vmatmul.mubr.msk.f32.vlgmr.msra.gmra.mxu0 %vm129_vm2, %v1857_v6 }
0x12c7   :  { %10667 = vmatpush3.msra.mxu0 %v12222_v28  ;;  %10670 = vmatprep.mubr.msk.f32.mxu0 %vm11919_vm0, %v11917_v0  ;;  %v2156_v28 = vld [vmem:[%s11971_s10] sm:$0xff] }
0x12c8   :  { %10668 = vmatprep.subr.mxu0 %v11917_v0 }
0x12c9   :  { %10669 = vmatpush3.msra.mxu0 %v12225_v29  ;;  %v2005_v29 = vpop.f32.mrf.mxu1 }
0x12ca   :  { %10680 = vmatprep.subr.mxu0 %v11917_v0  ;;  %10671 = vmatmul.mubr.msk.f32.vlgmr.msra.gmra.mxu0 %vm129_vm2, %v9869_v31 }
0x12cb   :  { %10681 = vmatpush3.msra.mxu0 %v12248_v32  ;;  %10688 = vmatprep.mubr.msk.f32.mxu0 %vm11919_vm0, %v11917_v0  ;;  %v10665_v32 = vpop.f32.mrf.mxu1 }
0x12cc   :  { %10682 = vmatprep.subr.mxu0 %v11917_v0 }
0x12cd   :  { %10683 = vmatpush3.msra.mxu0 %v12253_v33 }
0x12ce   :  { %10684 = vmatprep.subr.mxu0 %v11917_v0 }
0x12cf   :  { %10685 = vmatpush3.msra.mxu0 %v12266_v36  ;;  %v2242_v27 = vpop.permute.xlu0 %2241 }
0x12d0   :  { %10686 = vmatprep.subr.mxu0 %v11917_v0 }
0x12d1   :  { %10687 = vmatpush3.msra.mxu0 %v12273_v11 }
0x12d2   :  { %10689 = vmatmul.mubr.msk.f32.vlgmr.msra.gmra.mxu0 %vm134_vm1, %v2156_v28  ;;  %10702 = vmatprep.subr.mxu0 %v11917_v0 }
0x12d3   :  { %10703 = vmatpush3.msra.mxu0 %v12346_v40  ;;  %10710 = vmatprep.mubr.msk.f32.mxu0 %vm11919_vm0, %v11917_v0 }
0x12d4   :  { %10704 = vmatprep.subr.mxu0 %v11917_v0 }
0x12d5   :  { %10705 = vmatpush3.msra.mxu0 %v12354_v47 }
0x12d6   :  { %10706 = vmatprep.subr.mxu0 %v11917_v0 }
0x12d7   :  { %10707 = vmatpush3.msra.mxu0 %v12364_v50 }
0x12d8   :  { %10708 = vmatprep.subr.mxu0 %v11917_v0 }
0x12d9   :  { %10709 = vmatpush3.msra.mxu0 %v12371_v51 }
0x12da   :  { %10724 = vmatprep.subr.mxu0 %v11917_v0 }
0x1386   :  { %v1934_v33 = vpop.f32.mrf.mxu0 }
0x1387   :  { %v1935_v36 = vadd.f32 %v12308_v39, %v1934_v33  ;;  %v12568_v39 = vld [vmem:[%s11964_s6 + $0x18] sm:$0xff] }
0x1388   :  { %v10660_v11 = vpop.f32.mrf.mxu0 }
0x1389   :  { %11499 = vtanh.f32 %v1935_v36 }
0x138a   :  { %v2078_v7 = vpop.f32.mrf.mxu0 }
0x138c   :  { %v10672_v9 = vpop.f32.mrf.mxu0 }
0x1392   :  { %v2226_v56 = vpop.f32.mrf.mxu0 }
0x1394   :  { %v10690_v10 = vpop.f32.mrf.mxu0 }
0x1396   :  { %v11500_v57 = vpop.eup %11499 }
0x1397   :  { %10678 = vmatmul.mubr.msk.f32.vlgmr.msra.gmra.mxu1 %vm129_vm2, %v11500_v57 }
0x1398   :  { %10692 = vmatpush3.msra.mxu1 %v12339_v37  ;;  %10699 = vmatprep.mubr.msk.f32.mxu1 %vm11919_vm0, %v11917_v0  ;;  %v12575_v37 = vld [vmem:[%s11964_s6 + $0x10] sm:$0xff] }
0x1399   :  { %10693 = vmatprep.subr.mxu1 %v11917_v0 }
0x139a   :  { %10694 = vmatpush3.msra.mxu1 %v12342_v38  ;;  %v12580_v38 = vld [vmem:[%s11964_s6 + $0x8] sm:$0xff] }
0x139b   :  { %10695 = vmatprep.subr.mxu1 %v11917_v0 }
0x139c   :  { %10696 = vmatpush3.msra.mxu1 %v12351_v45  ;;  %v12585_v45 = vld [vmem:[%s11964_s6] sm:$0xff] }
0x139d   :  { %10697 = vmatprep.subr.mxu1 %v11917_v0 }
0x139e   :  { %10698 = vmatpush3.msra.mxu1 %v12361_v49 }
0x139f   :  { %10700 = vmatmul.mubr.msk.f32.vlgmr.msra.gmra.mxu1 %vm134_vm1, %v12433_v48  ;;  %10713 = vmatprep.subr.mxu1 %v11917_v0  ;;  %v2079_v48 = vadd.f32 %v2078_v7, %v2005_v29 }
0x13a0   :  { %10714 = vmatpush3.msra.mxu1 %v12568_v39  ;;  %10721 = vmatprep.mubr.msk.f32.mxu1 %vm11919_vm0, %v11917_v0 }
0x13a1   :  { %10715 = vmatprep.subr.mxu1 %v11917_v0 }
0x13a2   :  { %10716 = vmatpush3.msra.mxu1 %v12575_v37 }
0x13a3   :  { %10717 = vmatprep.subr.mxu1 %v11917_v0 }
0x13a4   :  { %10718 = vmatpush3.msra.mxu1 %v12580_v38 }
0x13a5   :  { %10719 = vmatprep.subr.mxu1 %v11917_v0 }
0x13a6   :  { %10720 = vmatpush3.msra.mxu1 %v12585_v45 }
0x13a7   :  { %10735 = vmatprep.subr.mxu1 %v11917_v0 }
0x1457   :  { %v2151_v58 = vpop.f32.mrf.mxu1 }
0x1458   :  { %v2155_v60 = vadd.f32 %v2151_v58, %v2079_v48 }
0x1459   :  { %v10679_v61 = vpop.f32.mrf.mxu1 }
0x145a   :  { %v2230_v62 = vadd.f32 %v2226_v56, %v2155_v60  ;;  %v12651_v60 = vld [vmem:[%s12017_s18] sm:$0xff]  ;;  %v12657_v61 = vld [vmem:[%s12037_s25 + $0x10] sm:$0xff] }
0x145c   :  { %v2231_v25 = vadd.f32 %v12320_v59, %v2230_v62  ;;  %v12663_v62 = vld [vmem:[%s12079_s3 + $0x8] sm:$0xff] }
0x145e   :  { %11501 = vtanh.f32 %v2231_v25  ;;  %v9888_v19 = vmul.f32 -1.442695, %v2231_v25  ;;  %v12670_v25 = vld [vmem:[%s12079_s3] sm:$0xff] }
0x145f   :  { %v2341_v63 = vpop.f32.mrf.mxu1 }
0x1460   :  { %11503 = vpow2.f32 %v9888_v19 }
0x1461   :  { %v10701_v14 = vpop.f32.mrf.mxu1 }
0x1462   :  { %v12677_v14 = vld [vmem:[%s12133_s27 + $0x8] sm:$0xff] }
0x146b   :  { %v11502_v17 = vpop.eup %11501 }
0x146c   :  { %2246 = vrot.lane.b32.xlu1 %v11502_v17, %s14295_s15  ;;  %v12684_v17 = vld [vmem:[%s12133_s27] sm:$0xff] }
0x146d   :  { %v11504_v23 = vpop.eup %11503 }
0x146e   :  { %v2236_v24 = vadd.f32 1.0, %v11504_v23  ;;  %v12689_v23 = vld [vmem:[%s12070_s29] ss:$0 sm:$0xff] }
0x1470   :  { %11505 = vrcp.f32 %v2236_v24 }
0x147d   :  { %v11506_v26 = vpop.eup %11505 }
0x147e   :  { %v2244_v59 = vmul.f32 %v11506_v26, %v2242_v27 }
0x14de   :  { %v2247_v20 = vpop.permute.xlu1 %2246 }
0x14df   :  { %v2249_v30 = vmul.f32 %v11506_v26, %v2247_v20 }
0x14e1   :  { %2251 = vrot.lane.b32.xlu1 %v2249_v30, %s14296_s16 }
0x1553   :  { %v2252_v8 = vpop.permute.xlu1 %2251 }
0x1554   :  { %v12592_v16 = vadd.f32 %v2252_v8, %v2244_v59 }
0x1556   :  { %11507 = vtanh.f32 %v12592_v16 }
0x1563   :  { %v11508_v41 = vpop.eup %11507 }
0x1564   :  { %2257 = vrot.lane.b32.xlu0 %v11508_v41, %s14295_s15  ;;  %v12694_v41 = vld [vmem:[%s12128_s21 + $0x8] sm:$0xff] }
0x1568   :  { %1334 = vrot.lane.b32.xlu0 %v12418_v15, %s14298_s11  ;;  %v12614_v15 = vld [vmem:[%s12012_s14 + $0x10] sm:$0xff] }
0x15d6   :  { %v2258_v18 = vpop.permute.xlu0 %2257 }
0x15d7   :  { %v2260_v1 = vmul.f32 %v11506_v26, %v2258_v18  ;;  %v12701_v18 = vld [vmem:[%s12128_s21] sm:$0xff] }
0x15d9   :  { %2262 = vrot.lane.b32.xlu1 %v2260_v1, %s14296_s16  ;;  %v9904_v1 = vld [vmem:[%s12022_s22 + $0x8] sm:$0xff] }
0x15da   :  { %v1335_v5 = vpop.permute.xlu0 %1334 }
0x15db   :  { %9867 = vst.msk [vmem:[%s12286_s17 + $0x8] sm:$0xff] %vm134_vm1, %v1335_v5 }
0x15e2   :  { %v9892_v52 = vld [vmem:[%s12286_s17 + $0x8] sm:$0xff] }
0x15e3   :  { %2427 = vrot.lane.b32.xlu0 %v9892_v52, %s14296_s16 }
0x164b   :  { %v2263_v53 = vpop.permute.xlu1 %2262 }
0x164c   :  { %2265 = vst.msk [vmem:[%s11971_s10] sm:$0xff] %vm134_vm1, %v2263_v53  ;;  %10711 = vmatmul.mubr.msk.f32.vlgmr.msra.gmra.mxu0 %vm134_vm1, %v2263_v53 }
0x164d   :  { %10725 = vmatpush3.msra.mxu0 %v12607_v55  ;;  %10732 = vmatprep.mubr.msk.f32.mxu0 %vm11919_vm0, %v11917_v0 }
0x164e   :  { %10726 = vmatprep.subr.mxu0 %v11917_v0 }
0x164f   :  { %10727 = vmatpush3.msra.mxu0 %v12614_v15 }
0x1650   :  { %10728 = vmatprep.subr.mxu0 %v11917_v0 }
0x1651   :  { %10729 = vmatpush3.msra.mxu0 %v12619_v44 }
0x1652   :  { %10730 = vmatprep.subr.mxu0 %v11917_v0 }
0x1653   :  { %10731 = vmatpush3.msra.mxu0 %v12624_v54 }
0x1654   :  { %10747 = vmatprep.subr.mxu0 %v11917_v0 }
0x1655   :  { %v2428_v36 = vpop.permute.xlu0 %2427 }
0x170c   :  { %v2413_v12 = vpop.f32.mrf.mxu0 }
0x170d   :  { %v2414_v42 = vadd.f32 %v2413_v12, %v2341_v63  ;;  %v2683_v63 = vld [vmem:[%s12022_s22] sm:$0xff] }
0x170e   :  { %v10712_v2 = vpop.f32.mrf.mxu0 }
0x170f   :  { %v2417_v43 = vadd.f32 %v12413_v3, %v2414_v42  ;;  %v12714_v2 = vld [vmem:[%s12112_s13] ss:$0 sm:$0xff] }
0x1711   :  { %11509 = vtanh.f32 %v2417_v43  ;;  %v9893_v6 = vmul.f32 -1.442695, %v2417_v43 }
0x1713   :  { %11511 = vpow2.f32 %v9893_v6 }
0x171e   :  { %v11510_v4 = vpop.eup %11509 }
0x171f   :  { %2432 = vrot.lane.b32.xlu1 %v11510_v4, %s14295_s15 }
0x1720   :  { %v11512_v31 = vpop.eup %11511 }
0x1721   :  { %v2422_v28 = vadd.f32 1.0, %v11512_v31 }
0x1723   :  { %11513 = vrcp.f32 %v2422_v28 }
0x1730   :  { %v11514_v29 = vpop.eup %11513 }
0x1731   :  { %v2430_v11 = vmul.f32 %v11514_v29, %v2428_v36 }
0x1791   :  { %v2433_v32 = vpop.permute.xlu1 %2432 }
0x1792   :  { %v2435_v33 = vmul.f32 %v11514_v29, %v2433_v32 }
0x1794   :  { %2437 = vrot.lane.b32.xlu1 %v2435_v33, %s14296_s16 }
0x1806   :  { %v2438_v3 = vpop.permute.xlu1 %2437 }
0x1807   :  { %v12631_v7 = vadd.f32 %v2438_v3, %v2430_v11 }
0x1809   :  { %11515 = vtanh.f32 %v12631_v7 }
0x1816   :  { %v11516_v9 = vpop.eup %11515 }
0x1817   :  { %2443 = vrot.lane.b32.xlu0 %v11516_v9, %s14295_s15 }
0x181b   :  { %1675 = vrot.lane.b32.xlu0 %v12479_v13, %s11946_s28 }
0x1889   :  { %v2444_v56 = vpop.permute.xlu0 %2443 }
0x188a   :  { %v2446_v10 = vmul.f32 %v11514_v29, %v2444_v56 }
0x188c   :  { %2448 = vrot.lane.b32.xlu1 %v2446_v10, %s14296_s16 }
0x188d   :  { %v1676_v57 = vpop.permute.xlu0 %1675 }
0x188e   :  { %1678 = vst.msk [vmem:[%s12101_s8] sm:$0xff] %vm129_vm2, %v1676_v57 }
0x1895   :  { %v2759_v48 = vld [vmem:[%s12101_s8] sm:$0xff] }
0x1896   :  { %2768 = vrot.lane.b32.xlu0 %v2759_v48, %s14297_s7 }
0x18fe   :  { %v2449_v58 = vpop.permute.xlu1 %2448 }
0x18ff   :  { %9894 = vst.msk [vmem:[%s11971_s10 + $0x8] sm:$0xff] %vm134_vm1, %v2449_v58  ;;  %2457 = vst.msk [vmem:[#allocation3 + $0x8] sm:$0xff] %vm134_vm1, %v2449_v58 }
0x1906   :  { %v12646_v13 = vld [vmem:[%s11971_s10 + $0x8] sm:$0xff] }
0x1907   :  { %10722 = vmatmul.mubr.msk.f32.vlgmr.msra.gmra.mxu1 %vm134_vm1, %v12646_v13 }
0x1908   :  { %10736 = vmatpush3.msra.mxu1 %v12651_v60  ;;  %10737 = vmatprep.mubr.msk.f32.mxu1 %vm11919_vm0, %v11917_v0  ;;  %v2769_v33 = vpop.permute.xlu0 %2768 }
0x1909   :  { %10740 = vmatprep.subr.mxu1 %v11917_v0 }
0x190b   :  { %10738 = vmatmul.mubr.msk.f32.vlgmr.msra.gmra.mxu1 %vm337_vm3, %v12657_v61 }
0x190c   :  { %10741 = vmatpush3.msra.mxu1 %v12663_v62  ;;  %10744 = vmatprep.mubr.msk.f32.mxu1 %vm11919_vm0, %v11917_v0 }
0x190d   :  { %10742 = vmatprep.subr.mxu1 %v11917_v0 }
0x190e   :  { %10743 = vmatpush3.msra.mxu1 %v12670_v25 }
0x190f   :  { %10745 = vmatmul.mubr.msk.f32.vlgmr.msra.gmra.mxu1 %vm129_vm2, %v2683_v63  ;;  %10754 = vmatprep.subr.mxu1 %v11917_v0  ;;  %v12734_v63 = vld [vmem:[%s12214_s1] sm:$0xff] }
0x1910   :  { %10755 = vmatpush3.msra.mxu1 %v12677_v14  ;;  %10758 = vmatprep.mubr.msk.f32.mxu1 %vm11919_vm0, %v11917_v0 }
0x1911   :  { %10756 = vmatprep.subr.mxu1 %v11917_v0 }
0x1912   :  { %10757 = vmatpush3.msra.mxu1 %v12684_v17 }
0x1913   :  { %10768 = vmatprep.subr.mxu1 %v11917_v0 }
0x19c7   :  { %v2532_v19 = vpop.f32.mrf.mxu1 }
0x19c8   :  { %v2533_v24 = vadd.f32 %v12689_v23, %v2532_v19 }
0x19c9   :  { %v10723_v26 = vpop.f32.mrf.mxu1 }
0x19ca   :  { %11517 = vtanh.f32 %v2533_v24  ;;  %v12749_v26 = vld [vmem:[%s12171_s5] ss:$0 sm:$0xff] }
0x19cb   :  { %v2679_v20 = vpop.f32.mrf.mxu1 }
0x19cd   :  { %v10739_v30 = vpop.f32.mrf.mxu1 }
0x19cf   :  { %v2753_v27 = vpop.f32.mrf.mxu1 }
0x19d1   :  { %v10746_v59 = vpop.f32.mrf.mxu1 }
0x19d7   :  { %v11518_v8 = vpop.eup %11517 }
0x19d8   :  { %10733 = vmatmul.mubr.msk.f32.vlgmr.msra.gmra.mxu0 %vm134_vm1, %v11518_v8 }
0x19d9   :  { %10748 = vmatpush3.msra.mxu0 %v12694_v41  ;;  %10751 = vmatprep.mubr.msk.f32.mxu0 %vm11919_vm0, %v11917_v0 }
0x19da   :  { %10749 = vmatprep.subr.mxu0 %v11917_v0 }
0x19db   :  { %10750 = vmatpush3.msra.mxu0 %v12701_v18 }
0x19dc   :  { %10752 = vmatmul.mubr.msk.f32.vlgmr.msra.gmra.mxu0 %vm129_vm2, %v9904_v1  ;;  %10761 = vmatprep.subr.mxu0 %v11917_v0 }
0x19dd   :  { %10762 = vmatpush3.msra.mxu0 %v12188_v21  ;;  %10765 = vmatprep.mubr.msk.f32.mxu0 %vm11919_vm0, %v11917_v0 }
0x19de   :  { %10763 = vmatprep.subr.mxu0 %v11917_v0 }
0x19df   :  { %10764 = vmatpush3.msra.mxu0 %v12191_v22 }
0x19e0   :  { %10773 = vmatprep.subr.mxu0 %v11917_v0 }
0x1a98   :  { %v2606_v5 = vpop.f32.mrf.mxu0 }
0x1a99   :  { %v2680_v52 = vadd.f32 %v2679_v20, %v2606_v5 }
0x1a9a   :  { %v10734_v53 = vpop.f32.mrf.mxu0 }
0x1a9b   :  { %v2757_v12 = vadd.f32 %v2753_v27, %v2680_v52 }
0x1a9c   :  { %v2868_v42 = vpop.f32.mrf.mxu0 }
0x1a9d   :  { %v2758_v43 = vadd.f32 %v12714_v2, %v2757_v12 }
0x1a9e   :  { %v10753_v4 = vpop.f32.mrf.mxu0 }
0x1a9f   :  { %11519 = vtanh.f32 %v2758_v43  ;;  %v9903_v6 = vmul.f32 -1.442695, %v2758_v43 }
0x1aa1   :  { %11521 = vpow2.f32 %v9903_v6 }
0x1aac   :  { %v11520_v21 = vpop.eup %11519 }
0x1aad   :  { %2773 = vrot.lane.b32.xlu1 %v11520_v21, %s14298_s11 }
0x1aae   :  { %v11522_v31 = vpop.eup %11521 }
0x1aaf   :  { %v2763_v22 = vadd.f32 1.0, %v11522_v31  ;;  %v9897_v31 = vld [vmem:[%s12219_s9 + $0x10] sm:$0xff] }
0x1ab1   :  { %11523 = vrcp.f32 %v2763_v22  ;;  %v12778_v22 = vld [vmem:[%s12208_s23] sm:$0xff] }
0x1abe   :  { %v11524_v28 = vpop.eup %11523 }
0x1abf   :  { %v2771_v36 = vmul.f32 %v11524_v28, %v2769_v33  ;;  %v12801_v33 = vld [vmem:[%s12230_s20] sm:$0xff] }
0x1b1f   :  { %v2774_v29 = vpop.permute.xlu1 %2773 }
0x1b20   :  { %v2776_v32 = vmul.f32 %v11524_v28, %v2774_v29  ;;  %v12791_v29 = vld [vmem:[%s12230_s20 + $0x10] sm:$0xff] }
0x1b22   :  { %2778 = vrot.lane.b32.xlu1 %v2776_v32, %s14297_s7  ;;  %v12796_v32 = vld [vmem:[%s12230_s20 + $0x8] sm:$0xff] }
0x1b94   :  { %v2779_v11 = vpop.permute.xlu1 %2778 }
0x1b95   :  { %v12719_v3 = vadd.f32 %v2779_v11, %v2771_v36  ;;  %v3275_v36 = vld [vmem:[%s11971_s10] sm:$0xff] }
0x1b97   :  { %11525 = vtanh.f32 %v12719_v3 }
0x1ba4   :  { %v11526_v9 = vpop.eup %11525 }
0x1ba5   :  { %2784 = vrot.lane.b32.xlu0 %v11526_v9, %s14296_s16 }
0x1ba9   :  { %1861 = vrot.lane.b32.xlu0 %v12508_v46, %s11946_s28 }
0x1c17   :  { %v2785_v56 = vpop.permute.xlu0 %2784 }
0x1c18   :  { %v2787_v10 = vmul.f32 %v11524_v28, %v2785_v56  ;;  %v12784_v28 = vld [vmem:[%s12230_s20 + $0x18] sm:$0xff]  ;;  %v12818_v56 = vld [vmem:[%s12305_s4] ss:$0 sm:$0xff] }
0x1c1a   :  { %2789 = vrot.lane.b32.xlu1 %v2787_v10, %s14299_s0 }
0x1c1b   :  { %v1862_v57 = vpop.permute.xlu0 %1861 }
0x1c1c   :  { %9882 = vst.msk [vmem:[%s12101_s8 + $0x8] sm:$0xff] %vm129_vm2, %v1862_v57 }
0x1c23   :  { %v9907_v48 = vld [vmem:[%s12101_s8 + $0x8] sm:$0xff] }
0x1c24   :  { %2954 = vrot.lane.b32.xlu0 %v9907_v48, %s14297_s7 }
0x1c8c   :  { %v2790_v58 = vpop.permute.xlu1 %2789 }
0x1c8d   :  { %2792 = vst.msk [vmem:[%s12022_s22] sm:$0xff] %vm129_vm2, %v2790_v58  ;;  %10759 = vmatmul.mubr.msk.f32.vlgmr.msra.gmra.mxu1 %vm129_vm2, %v2790_v58 }
0x1c8e   :  { %10769 = vmatpush3.msra.mxu1 %v12734_v63  ;;  %10770 = vmatprep.mubr.msk.f32.mxu1 %vm11919_vm0, %v11917_v0 }
0x1c8f   :  { %10780 = vmatprep.subr.mxu1 %v11917_v0 }
0x1c91   :  { %10771 = vmatmul.mubr.msk.f32.vlgmr.msra.gmra.mxu1 %vm337_vm3, %v12657_v61 }
0x1c92   :  { %10781 = vmatpush3.msra.mxu1 %v12258_v34  ;;  %10784 = vmatprep.mubr.msk.f32.mxu1 %vm11919_vm0, %v11917_v0 }
0x1c93   :  { %10782 = vmatprep.subr.mxu1 %v11917_v0 }
0x1c94   :  { %10783 = vmatpush3.msra.mxu1 %v12261_v35 }
0x1c95   :  { %10798 = vmatprep.subr.mxu1 %v11917_v0 }
0x1c96   :  { %v2955_v1 = vpop.permute.xlu0 %2954 }
0x1d4d   :  { %v2940_v46 = vpop.f32.mrf.mxu1 }
0x1d4e   :  { %v2941_v19 = vadd.f32 %v2940_v46, %v2868_v42 }
0x1d4f   :  { %v10760_v24 = vpop.f32.mrf.mxu1 }
0x1d50   :  { %v2944_v20 = vadd.f32 %v12749_v26, %v2941_v19  ;;  %v12830_v19 = vld [vmem:[%s12331_s30 + $0x10] sm:$0xff]  ;;  %v12835_v24 = vld [vmem:[%s12331_s30 + $0x8] sm:$0xff] }
0x1d51   :  { %v3124_v11 = vpop.f32.mrf.mxu1 }
0x1d52   :  { %11527 = vtanh.f32 %v2944_v20  ;;  %v9908_v34 = vmul.f32 -1.442695, %v2944_v20 }
0x1d54   :  { %11529 = vpow2.f32 %v9908_v34  ;;  %v12854_v34 = vld [vmem:[%s12317_s24] ss:$0 sm:$0xff] }
0x1d5f   :  { %v11528_v61 = vpop.eup %11527 }
0x1d60   :  { %2959 = vrot.lane.b32.xlu1 %v11528_v61, %s14298_s11 }
0x1d61   :  { %v11530_v30 = vpop.eup %11529 }
0x1d62   :  { %v2949_v27 = vadd.f32 1.0, %v11530_v30 }
0x1d64   :  { %11531 = vrcp.f32 %v2949_v27 }
0x1d71   :  { %v11532_v59 = vpop.eup %11531 }
0x1d72   :  { %v2957_v5 = vmul.f32 %v11532_v59, %v2955_v1 }
0x1dd2   :  { %v2960_v35 = vpop.permute.xlu1 %2959 }
0x1dd3   :  { %v2962_v8 = vmul.f32 %v11532_v59, %v2960_v35 }
0x1dd5   :  { %2964 = vrot.lane.b32.xlu1 %v2962_v8, %s14297_s7 }
0x1e47   :  { %v2965_v52 = vpop.permute.xlu1 %2964 }
0x1e48   :  { %v12754_v53 = vadd.f32 %v2965_v52, %v2957_v5 }
0x1e4a   :  { %11533 = vtanh.f32 %v12754_v53 }
0x1e57   :  { %v11534_v12 = vpop.eup %11533 }
0x1e58   :  { %2970 = vrot.lane.b32.xlu0 %v11534_v12, %s14296_s16 }
0x1e5c   :  { %2267 = vrot.lane.b32.xlu0 %v12592_v16, %s14298_s11  ;;  %v12770_v16 = vld [vmem:[%s12208_s23 + $0x8] sm:$0xff] }
0x1eca   :  { %v2971_v42 = vpop.permute.xlu0 %2970 }
0x1ecb   :  { %v2973_v43 = vmul.f32 %v11532_v59, %v2971_v42 }
0x1ecd   :  { %2975 = vrot.lane.b32.xlu1 %v2973_v43, %s14299_s0 }
0x1ece   :  { %v2268_v4 = vpop.permute.xlu0 %2267 }
0x1ecf   :  { %2270 = vst.msk [vmem:[%s12286_s17] sm:$0xff] %vm134_vm1, %v2268_v4 }
0x1ed6   :  { %v3351_v21 = vld [vmem:[%s12286_s17] sm:$0xff] }
0x1ed7   :  { %3360 = vrot.lane.b32.xlu0 %v3351_v21, %s14296_s16 }
0x1f3f   :  { %v2976_v6 = vpop.permute.xlu1 %2975 }
0x1f40   :  { %9909 = vst.msk [vmem:[%s12022_s22 + $0x8] sm:$0xff] %vm129_vm2, %v2976_v6  ;;  %2984 = vst.msk [vmem:[#allocation2 + $0x10] sm:$0xff] %vm129_vm2, %v2976_v6  ;;  %10766 = vmatmul.mubr.msk.f32.vlgmr.msra.gmra.mxu0 %vm129_vm2, %v2976_v6 }
0x1f41   :  { %10774 = vmatpush3.msra.mxu0 %v12770_v16  ;;  %10777 = vmatprep.mubr.msk.f32.mxu0 %vm11919_vm0, %v11917_v0 }
0x1f42   :  { %10775 = vmatprep.subr.mxu0 %v11917_v0 }
0x1f43   :  { %10776 = vmatpush3.msra.mxu0 %v12778_v22 }
0x1f44   :  { %10787 = vmatprep.subr.mxu0 %v11917_v0  ;;  %10778 = vmatmul.mubr.msk.f32.vlgmr.msra.gmra.mxu0 %vm129_vm2, %v9897_v31 }
0x1f45   :  { %10788 = vmatpush3.msra.mxu0 %v12784_v28  ;;  %10795 = vmatprep.mubr.msk.f32.mxu0 %vm11919_vm0, %v11917_v0 }
0x1f46   :  { %10789 = vmatprep.subr.mxu0 %v11917_v0 }
0x1f47   :  { %10790 = vmatpush3.msra.mxu0 %v12791_v29 }
0x1f48   :  { %10791 = vmatprep.subr.mxu0 %v11917_v0 }
0x1f49   :  { %10792 = vmatpush3.msra.mxu0 %v12796_v32  ;;  %v3361_v52 = vpop.permute.xlu0 %3360 }
0x1f4a   :  { %10793 = vmatprep.subr.mxu0 %v11917_v0 }
0x1f4b   :  { %10794 = vmatpush3.msra.mxu0 %v12801_v33 }
0x1f4c   :  { %10796 = vmatmul.mubr.msk.f32.vlgmr.msra.gmra.mxu0 %vm134_vm1, %v3275_v36  ;;  %10809 = vmatprep.subr.mxu0 %v11917_v0 }
0x1f4d   :  { %10810 = vmatpush3.msra.mxu0 %v12346_v40  ;;  %10817 = vmatprep.mubr.msk.f32.mxu0 %vm11919_vm0, %v11917_v0  ;;  %v10772_v40 = vpop.f32.mrf.mxu1 }
0x1f4e   :  { %10811 = vmatprep.subr.mxu0 %v11917_v0 }
0x1f4f   :  { %10812 = vmatpush3.msra.mxu0 %v12354_v47 }
0x1f50   :  { %10813 = vmatprep.subr.mxu0 %v11917_v0 }
0x1f51   :  { %10814 = vmatpush3.msra.mxu0 %v12364_v50 }
0x1f52   :  { %10815 = vmatprep.subr.mxu0 %v11917_v0 }
0x1f53   :  { %10816 = vmatpush3.msra.mxu0 %v12371_v51  ;;  %v12823_v51 = vld [vmem:[%s12331_s30 + $0x18] sm:$0xff] }
0x1f54   :  { %10831 = vmatprep.subr.mxu0 %v11917_v0 }
0x2000   :  { %v3053_v9 = vpop.f32.mrf.mxu0 }
0x2001   :  { %v3054_v10 = vadd.f32 %v12818_v56, %v3053_v9  ;;  %v12884_v9 = vld [vmem:[%s12410_s19] ss:$0 sm:$0xff] }
0x2002   :  { %v10767_v47 = vpop.f32.mrf.mxu0 }
0x2003   :  { %11535 = vtanh.f32 %v3054_v10 }
0x2004   :  { %v3197_v57 = vpop.f32.mrf.mxu0 }
0x2006   :  { %v10779_v50 = vpop.f32.mrf.mxu0 }
0x200c   :  { %v3345_v48 = vpop.f32.mrf.mxu0 }
0x200e   :  { %v10797_v58 = vpop.f32.mrf.mxu0 }
0x2010   :  { %v11536_v46 = vpop.eup %11535 }
0x2011   :  { %10785 = vmatmul.mubr.msk.f32.vlgmr.msra.gmra.mxu1 %vm129_vm2, %v11536_v46 }
0x2012   :  { %10799 = vmatpush3.msra.mxu1 %v12823_v51  ;;  %10806 = vmatprep.mubr.msk.f32.mxu1 %vm11919_vm0, %v11917_v0 }
0x2013   :  { %10800 = vmatprep.subr.mxu1 %v11917_v0 }
0x2014   :  { %10801 = vmatpush3.msra.mxu1 %v12830_v19 }
0x2015   :  { %10802 = vmatprep.subr.mxu1 %v11917_v0 }
0x2016   :  { %10803 = vmatpush3.msra.mxu1 %v12835_v24 }
0x2017   :  { %10804 = vmatprep.subr.mxu1 %v11917_v0 }
0x2018   :  { %10805 = vmatpush3.msra.mxu1 %v12361_v49  ;;  %v3198_v49 = vadd.f32 %v3197_v57, %v3124_v11 }
0x2019   :  { %10807 = vmatmul.mubr.msk.f32.vlgmr.msra.gmra.mxu1 %vm134_vm1, %v12646_v13  ;;  %10820 = vmatprep.subr.mxu1 %v11917_v0 }
0x201a   :  { %10821 = vmatpush3.msra.mxu1 %v12568_v39  ;;  %10828 = vmatprep.mubr.msk.f32.mxu1 %vm11919_vm0, %v11917_v0 }
0x201b   :  { %10822 = vmatprep.subr.mxu1 %v11917_v0 }
0x201c   :  { %10823 = vmatpush3.msra.mxu1 %v12575_v37 }
0x201d   :  { %10824 = vmatprep.subr.mxu1 %v11917_v0 }
0x201e   :  { %10825 = vmatpush3.msra.mxu1 %v12580_v38 }
0x201f   :  { %10826 = vmatprep.subr.mxu1 %v11917_v0 }
0x2020   :  { %10827 = vmatpush3.msra.mxu1 %v12585_v45 }
0x2021   :  { %10842 = vmatprep.subr.mxu1 %v11917_v0 }
0x20d1   :  { %v3270_v13 = vpop.f32.mrf.mxu1 }
0x20d2   :  { %v3274_v39 = vadd.f32 %v3270_v13, %v3198_v49 }
0x20d3   :  { %v10786_v20 = vpop.f32.mrf.mxu1 }
0x20d4   :  { %v3349_v61 = vadd.f32 %v3345_v48, %v3274_v39 }
0x20d6   :  { %v3350_v30 = vadd.f32 %v12854_v34, %v3349_v61 }
0x20d8   :  { %11537 = vtanh.f32 %v3350_v30  ;;  %v9916_v38 = vmul.f32 -1.442695, %v3350_v30 }
0x20d9   :  { %v3460_v37 = vpop.f32.mrf.mxu1 }
0x20da   :  { %11539 = vpow2.f32 %v9916_v38 }
0x20db   :  { %v10808_v27 = vpop.f32.mrf.mxu1 }
0x20e5   :  { %v11538_v59 = vpop.eup %11537 }
0x20e6   :  { %3365 = vrot.lane.b32.xlu1 %v11538_v59, %s14295_s15 }
0x20e7   :  { %v11540_v45 = vpop.eup %11539 }
0x20e8   :  { %v3355_v35 = vadd.f32 1.0, %v11540_v45 }
0x20ea   :  { %11541 = vrcp.f32 %v3355_v35 }
0x20f7   :  { %v11542_v8 = vpop.eup %11541 }
0x20f8   :  { %v3363_v12 = vmul.f32 %v11542_v8, %v3361_v52 }
0x2158   :  { %v3366_v1 = vpop.permute.xlu1 %3365 }
0x2159   :  { %v3368_v5 = vmul.f32 %v11542_v8, %v3366_v1 }
0x215b   :  { %3370 = vrot.lane.b32.xlu1 %v3368_v5, %s14296_s16 }
0x21cd   :  { %v3371_v42 = vpop.permute.xlu1 %3370 }
0x21ce   :  { %v12859_v43 = vadd.f32 %v3371_v42, %v3363_v12 }
0x21d0   :  { %11543 = vtanh.f32 %v12859_v43 }
0x21dd   :  { %v11544_v4 = vpop.eup %11543 }
0x21de   :  { %3376 = vrot.lane.b32.xlu0 %v11544_v4, %s14295_s15 }
0x21e2   :  { %2453 = vrot.lane.b32.xlu0 %v12631_v7, %s14298_s11 }
0x2250   :  { %v3377_v21 = vpop.permute.xlu0 %3376 }
0x2251   :  { %v3379_v6 = vmul.f32 %v11542_v8, %v3377_v21 }
0x2253   :  { %3381 = vrot.lane.b32.xlu1 %v3379_v6, %s14296_s16 }
0x2254   :  { %v2454_v31 = vpop.permute.xlu0 %2453 }
0x2255   :  { %9895 = vst.msk [vmem:[%s12286_s17 + $0x8] sm:$0xff] %vm134_vm1, %v2454_v31 }
0x225c   :  { %v9920_v36 = vld [vmem:[%s12286_s17 + $0x8] sm:$0xff] }
0x225d   :  { %3546 = vrot.lane.b32.xlu0 %v9920_v36, %s14296_s16 }
0x22c5   :  { %v3382_v11 = vpop.permute.xlu1 %3381 }
0x22c6   :  { %3384 = vst.msk [vmem:[%s11971_s10] sm:$0xff] %vm134_vm1, %v3382_v11  ;;  %10818 = vmatmul.mubr.msk.f32.vlgmr.msra.gmra.mxu0 %vm134_vm1, %v3382_v11 }
0x22c7   :  { %10832 = vmatpush3.msra.mxu0 %v12607_v55  ;;  %10839 = vmatprep.mubr.msk.f32.mxu0 %vm11919_vm0, %v11917_v0 }
0x22c8   :  { %10833 = vmatprep.subr.mxu0 %v11917_v0 }
0x22c9   :  { %10834 = vmatpush3.msra.mxu0 %v12614_v15 }
0x22ca   :  { %10835 = vmatprep.subr.mxu0 %v11917_v0 }
0x22cb   :  { %10836 = vmatpush3.msra.mxu0 %v12619_v44 }
0x22cc   :  { %10837 = vmatprep.subr.mxu0 %v11917_v0 }
0x22cd   :  { %10838 = vmatpush3.msra.mxu0 %v12624_v54 }
0x22ce   :  { %10854 = vmatprep.subr.mxu0 %v11917_v0 }
0x22cf   :  { %v3547_v58 = vpop.permute.xlu0 %3546 }
0x2386   :  { %v3532_v7 = vpop.f32.mrf.mxu0 }
0x2387   :  { %v3533_v40 = vadd.f32 %v3532_v7, %v3460_v37 }
0x2388   :  { %v10819_v55 = vpop.f32.mrf.mxu0 }
0x2389   :  { %v3536_v10 = vadd.f32 %v12884_v9, %v3533_v40 }
0x238b   :  { %11545 = vtanh.f32 %v3536_v10  ;;  %v9921_v15 = vmul.f32 -1.442695, %v3536_v10 }
0x238d   :  { %11547 = vpow2.f32 %v9921_v15 }
0x2398   :  { %v11546_v47 = vpop.eup %11545 }
0x2399   :  { %3551 = vrot.lane.b32.xlu1 %v11546_v47, %s14295_s15 }
0x239a   :  { %v11548_v44 = vpop.eup %11547 }
0x239b   :  { %v3541_v57 = vadd.f32 1.0, %v11548_v44 }
0x239d   :  { %11549 = vrcp.f32 %v3541_v57 }
0x23aa   :  { %v11550_v50 = vpop.eup %11549 }
0x23ab   :  { %v3549_v46 = vmul.f32 %v11550_v50, %v3547_v58 }
0x240b   :  { %v3552_v54 = vpop.permute.xlu1 %3551 }
0x240c   :  { %v3554_v48 = vmul.f32 %v11550_v50, %v3552_v54 }
0x240e   :  { %3556 = vrot.lane.b32.xlu1 %v3554_v48, %s14296_s16 }
0x2480   :  { %v3557_v49 = vpop.permute.xlu1 %3556 }
0x2481   :  { %v12889_v13 = vadd.f32 %v3557_v49, %v3549_v46  ;;  %v12984_v46 = vld [vmem:[%s12236_s2] sm:$0xff] }
0x2483   :  { %11551 = vtanh.f32 %v12889_v13 }
0x2490   :  { %v11552_v39 = vpop.eup %11551 }
0x2491   :  { %3562 = vrot.lane.b32.xlu0 %v11552_v39, %s14295_s15 }
0x2495   :  { %2794 = vrot.lane.b32.xlu0 %v12719_v3, %s11946_s28  ;;  %v12912_v3 = vld [vmem:[%s12037_s25 + $0x18] sm:$0xff] }
0x2503   :  { %v3563_v20 = vpop.permute.xlu0 %3562 }
0x2504   :  { %v3565_v61 = vmul.f32 %v11550_v50, %v3563_v20 }
0x2506   :  { %3567 = vrot.lane.b32.xlu1 %v3565_v61, %s14296_s16 }
0x2507   :  { %v2795_v30 = vpop.permute.xlu0 %2794 }
0x2508   :  { %2797 = vst.msk [vmem:[%s12101_s8] sm:$0xff] %vm129_vm2, %v2795_v30 }
0x250f   :  { %v3878_v37 = vld [vmem:[%s12101_s8] sm:$0xff] }
0x2510   :  { %3887 = vrot.lane.b32.xlu0 %v3878_v37, %s14297_s7 }
0x2578   :  { %v3568_v27 = vpop.permute.xlu1 %3567 }
0x2579   :  { %9922 = vst.msk [vmem:[%s11971_s10 + $0x8] sm:$0xff] %vm134_vm1, %v3568_v27  ;;  %3576 = vst.msk [vmem:[#allocation3 + $0x10] sm:$0xff] %vm134_vm1, %v3568_v27 }
0x2580   :  { %v12904_v59 = vld [vmem:[%s11971_s10 + $0x8] sm:$0xff] }
0x2581   :  { %10829 = vmatmul.mubr.msk.f32.vlgmr.msra.gmra.mxu1 %vm134_vm1, %v12904_v59 }
0x2582   :  { %10843 = vmatpush3.msra.mxu1 %v12651_v60  ;;  %10844 = vmatprep.mubr.msk.f32.mxu1 %vm11919_vm0, %v11917_v0  ;;  %v3802_v60 = vld [vmem:[%s12022_s22] sm:$0xff]  ;;  %v3888_v10 = vpop.permute.xlu0 %3887 }
0x2583   :  { %10847 = vmatprep.subr.mxu1 %v11917_v0 }
0x2585   :  { %10845 = vmatmul.mubr.msk.f32.vlgmr.msra.gmra.mxu1 %vm337_vm3, %v12912_v3 }
0x2586   :  { %10848 = vmatpush3.msra.mxu1 %v12663_v62  ;;  %10851 = vmatprep.mubr.msk.f32.mxu1 %vm11919_vm0, %v11917_v0 }
0x2587   :  { %10849 = vmatprep.subr.mxu1 %v11917_v0 }
0x2588   :  { %10850 = vmatpush3.msra.mxu1 %v12670_v25 }
0x2589   :  { %10852 = vmatmul.mubr.msk.f32.vlgmr.msra.gmra.mxu1 %vm129_vm2, %v3802_v60  ;;  %10861 = vmatprep.subr.mxu1 %v11917_v0 }
0x258a   :  { %10862 = vmatpush3.msra.mxu1 %v12677_v14  ;;  %10865 = vmatprep.mubr.msk.f32.mxu1 %vm11919_vm0, %v11917_v0 }
0x258b   :  { %10863 = vmatprep.subr.mxu1 %v11917_v0 }
0x258c   :  { %10864 = vmatpush3.msra.mxu1 %v12684_v17  ;;  %v9932_v17 = vld [vmem:[%s12022_s22 + $0x8] sm:$0xff] }
0x258d   :  { %10875 = vmatprep.subr.mxu1 %v11917_v0 }
0x2641   :  { %v3651_v62 = vpop.f32.mrf.mxu1 }
0x2642   :  { %v3652_v25 = vadd.f32 %v12689_v23, %v3651_v62  ;;  %v12942_v23 = vld [vmem:[%s12185_s12 + $0x8] sm:$0xff] }
0x2643   :  { %v10830_v38 = vpop.f32.mrf.mxu1 }
0x2644   :  { %11553 = vtanh.f32 %v3652_v25 }
0x2645   :  { %v3798_v45 = vpop.f32.mrf.mxu1 }
0x2647   :  { %v10846_v35 = vpop.f32.mrf.mxu1 }
0x2649   :  { %v3872_v14 = vpop.f32.mrf.mxu1 }
0x264b   :  { %v10853_v8 = vpop.f32.mrf.mxu1 }
0x2651   :  { %v11554_v1 = vpop.eup %11553 }
0x2652   :  { %10840 = vmatmul.mubr.msk.f32.vlgmr.msra.gmra.mxu0 %vm134_vm1, %v11554_v1 }
0x2653   :  { %10855 = vmatpush3.msra.mxu0 %v12694_v41  ;;  %10858 = vmatprep.mubr.msk.f32.mxu0 %vm11919_vm0, %v11917_v0  ;;  %v12949_v41 = vld [vmem:[%s12185_s12] sm:$0xff] }
0x2654   :  { %10856 = vmatprep.subr.mxu0 %v11917_v0 }
0x2655   :  { %10857 = vmatpush3.msra.mxu0 %v12701_v18 }
0x2656   :  { %10859 = vmatmul.mubr.msk.f32.vlgmr.msra.gmra.mxu0 %vm129_vm2, %v9932_v17  ;;  %10868 = vmatprep.subr.mxu0 %v11917_v0 }
0x2657   :  { %10869 = vmatpush3.msra.mxu0 %v12942_v23  ;;  %10872 = vmatprep.mubr.msk.f32.mxu0 %vm11919_vm0, %v11917_v0 }
0x2658   :  { %10870 = vmatprep.subr.mxu0 %v11917_v0 }
0x2659   :  { %10871 = vmatpush3.msra.mxu0 %v12949_v41 }
0x265a   :  { %10880 = vmatprep.subr.mxu0 %v11917_v0 }
0x2712   :  { %v3725_v18 = vpop.f32.mrf.mxu0 }
0x2713   :  { %v3799_v5 = vadd.f32 %v3798_v45, %v3725_v18 }
0x2714   :  { %v10841_v52 = vpop.f32.mrf.mxu0 }
0x2715   :  { %v3876_v12 = vadd.f32 %v3872_v14, %v3799_v5 }
0x2716   :  { %v3987_v42 = vpop.f32.mrf.mxu0 }
0x2717   :  { %v3877_v4 = vadd.f32 %v12714_v2, %v3876_v12 }
0x2718   :  { %v10860_v21 = vpop.f32.mrf.mxu0 }
0x2719   :  { %11555 = vtanh.f32 %v3877_v4  ;;  %v9931_v31 = vmul.f32 -1.442695, %v3877_v4 }
0x271b   :  { %11557 = vpow2.f32 %v9931_v31 }
0x2726   :  { %v11556_v6 = vpop.eup %11555 }
0x2727   :  { %3892 = vrot.lane.b32.xlu1 %v11556_v6, %s14298_s11 }
0x2728   :  { %v11558_v36 = vpop.eup %11557 }
0x2729   :  { %v3882_v11 = vadd.f32 1.0, %v11558_v36 }
0x272b   :  { %11559 = vrcp.f32 %v3882_v11 }
0x2738   :  { %v11560_v7 = vpop.eup %11559 }
0x2739   :  { %v3890_v2 = vmul.f32 %v11560_v7, %v3888_v10 }
0x2799   :  { %v3893_v40 = vpop.permute.xlu1 %3892 }
0x279a   :  { %v3895_v55 = vmul.f32 %v11560_v7, %v3893_v40 }
0x279c   :  { %3897 = vrot.lane.b32.xlu1 %v3895_v55, %s14297_s7 }
0x280e   :  { %v3898_v47 = vpop.permute.xlu1 %3897 }
0x280f   :  { %v12956_v15 = vadd.f32 %v3898_v47, %v3890_v2 }
0x2811   :  { %11561 = vtanh.f32 %v12956_v15 }
0x281e   :  { %v11562_v44 = vpop.eup %11561 }
0x281f   :  { %3903 = vrot.lane.b32.xlu0 %v11562_v44, %s14296_s16 }
0x2823   :  { %2980 = vrot.lane.b32.xlu0 %v12754_v53, %s11946_s28  ;;  %v12977_v53 = vld [vmem:[%s12236_s2 + $0x8] sm:$0xff] }
0x2891   :  { %v3904_v57 = vpop.permute.xlu0 %3903 }
0x2892   :  { %v3906_v50 = vmul.f32 %v11560_v7, %v3904_v57 }
0x2894   :  { %3908 = vrot.lane.b32.xlu1 %v3906_v50, %s14299_s0 }
0x2895   :  { %v2981_v54 = vpop.permute.xlu0 %2980 }
0x2896   :  { %9910 = vst.msk [vmem:[%s12101_s8 + $0x8] sm:$0xff] %vm129_vm2, %v2981_v54 }
0x289d   :  { %v9935_v48 = vld [vmem:[%s12101_s8 + $0x8] sm:$0xff] }
0x289e   :  { %4073 = vrot.lane.b32.xlu0 %v9935_v48, %s14297_s7 }
0x2906   :  { %v3909_v58 = vpop.permute.xlu1 %3908 }
0x2907   :  { %3911 = vst.msk [vmem:[%s12022_s22] sm:$0xff] %vm129_vm2, %v3909_v58  ;;  %10866 = vmatmul.mubr.msk.f32.vlgmr.msra.gmra.mxu1 %vm129_vm2, %v3909_v58 }
0x2908   :  { %10876 = vmatpush3.msra.mxu1 %v12734_v63  ;;  %10877 = vmatprep.mubr.msk.f32.mxu1 %vm11919_vm0, %v11917_v0 }
0x2909   :  { %10887 = vmatprep.subr.mxu1 %v11917_v0 }
0x290b   :  { %10878 = vmatmul.mubr.msk.f32.vlgmr.msra.gmra.mxu1 %vm337_vm3, %v12912_v3 }
0x290c   :  { %10888 = vmatpush3.msra.mxu1 %v12977_v53  ;;  %10891 = vmatprep.mubr.msk.f32.mxu1 %vm11919_vm0, %v11917_v0 }
0x290d   :  { %10889 = vmatprep.subr.mxu1 %v11917_v0 }
0x290e   :  { %10890 = vmatpush3.msra.mxu1 %v12984_v46 }
0x290f   :  { %10905 = vmatprep.subr.mxu1 %v11917_v0 }
0x2910   :  { %v4074_v25 = vpop.permute.xlu0 %4073 }
0x29c7   :  { %v4059_v63 = vpop.f32.mrf.mxu1 }
0x29c8   :  { %v4060_v49 = vadd.f32 %v4059_v63, %v3987_v42 }
0x29c9   :  { %v10867_v39 = vpop.f32.mrf.mxu1 }
0x29ca   :  { %v4063_v20 = vadd.f32 %v12749_v26, %v4060_v49 }
0x29cc   :  { %11563 = vtanh.f32 %v4063_v20  ;;  %v9936_v30 = vmul.f32 -1.442695, %v4063_v20 }
0x29ce   :  { %11565 = vpow2.f32 %v9936_v30 }
0x29d9   :  { %v11564_v61 = vpop.eup %11563 }
0x29da   :  { %4078 = vrot.lane.b32.xlu1 %v11564_v61, %s14298_s11 }
0x29db   :  { %v11566_v37 = vpop.eup %11565 }
0x29dc   :  { %v4068_v27 = vadd.f32 1.0, %v11566_v37 }
0x29de   :  { %11567 = vrcp.f32 %v4068_v27 }
0x29eb   :  { %v11568_v3 = vpop.eup %11567 }
0x29ec   :  { %v4076_v38 = vmul.f32 %v11568_v3, %v4074_v25  ;;  %v13105_v25 = vld [vmem:[%s12012_s14 + $0x18] sm:$0xff] }
0x2a4c   :  { %v4079_v60 = vpop.permute.xlu1 %4078 }
0x2a4d   :  { %v4081_v62 = vmul.f32 %v11568_v3, %v4079_v60 }
0x2a4f   :  { %4083 = vrot.lane.b32.xlu1 %v4081_v62, %s14297_s7 }
0x2ac1   :  { %v4084_v26 = vpop.permute.xlu1 %4083 }
0x2ac2   :  { %v12991_v45 = vadd.f32 %v4084_v26, %v4076_v38  ;;  %v13117_v38 = vld [vmem:[%s12012_s14 + $0x8] sm:$0xff]  ;;  %v13122_v26 = vld [vmem:[%s12012_s14] sm:$0xff] }
0x2ac4   :  { %11569 = vtanh.f32 %v12991_v45 }
0x2ad1   :  { %v11570_v35 = vpop.eup %11569 }
0x2ad2   :  { %4089 = vrot.lane.b32.xlu0 %v11570_v35, %s14296_s16 }
0x2ad6   :  { %3386 = vrot.lane.b32.xlu0 %v12859_v43, %s14298_s11  ;;  %v9925_v43 = vld [vmem:[%s12219_s9 + $0x18] sm:$0xff] }
0x2b44   :  { %v4090_v14 = vpop.permute.xlu0 %4089 }
0x2b45   :  { %v4092_v8 = vmul.f32 %v11568_v3, %v4090_v14 }
0x2b47   :  { %4094 = vrot.lane.b32.xlu1 %v4092_v8, %s14299_s0 }
0x2b48   :  { %v3387_v1 = vpop.permute.xlu0 %3386 }
0x2b49   :  { %3389 = vst.msk [vmem:[%s12286_s17] sm:$0xff] %vm134_vm1, %v3387_v1 }
0x2b50   :  { %v4470_v17 = vld [vmem:[%s12286_s17] sm:$0xff] }
0x2b51   :  { %4479 = vrot.lane.b32.xlu0 %v4470_v17, %s14296_s16 }
0x2bb9   :  { %v4095_v18 = vpop.permute.xlu1 %4094 }
0x2bba   :  { %9937 = vst.msk [vmem:[%s12022_s22 + $0x8] sm:$0xff] %vm129_vm2, %v4095_v18  ;;  %4103 = vst.msk [vmem:[#allocation2 + $0x18] sm:$0xff] %vm129_vm2, %v4095_v18  ;;  %10873 = vmatmul.mubr.msk.f32.vlgmr.msra.gmra.mxu0 %vm129_vm2, %v4095_v18 }
0x2bbb   :  { %10881 = vmatpush3.msra.mxu0 %v12770_v16  ;;  %10884 = vmatprep.mubr.msk.f32.mxu0 %vm11919_vm0, %v11917_v0  ;;  %v4394_v16 = vld [vmem:[%s11971_s10] sm:$0xff] }
0x2bbc   :  { %10882 = vmatprep.subr.mxu0 %v11917_v0 }
0x2bbd   :  { %10883 = vmatpush3.msra.mxu0 %v12778_v22  ;;  %v13027_v22 = vld [vmem:[%s12336_s26 + $0x18] sm:$0xff] }
0x2bbe   :  { %10894 = vmatprep.subr.mxu0 %v11917_v0  ;;  %10885 = vmatmul.mubr.msk.f32.vlgmr.msra.gmra.mxu0 %vm129_vm2, %v9925_v43 }
0x2bbf   :  { %10895 = vmatpush3.msra.mxu0 %v12784_v28  ;;  %10902 = vmatprep.mubr.msk.f32.mxu0 %vm11919_vm0, %v11917_v0  ;;  %v13034_v28 = vld [vmem:[%s12336_s26 + $0x10] sm:$0xff] }
0x2bc0   :  { %10896 = vmatprep.subr.mxu0 %v11917_v0 }
0x2bc1   :  { %10897 = vmatpush3.msra.mxu0 %v12791_v29  ;;  %v13039_v29 = vld [vmem:[%s12336_s26 + $0x8] sm:$0xff] }
0x2bc2   :  { %10898 = vmatprep.subr.mxu0 %v11917_v0 }
0x2bc3   :  { %10899 = vmatpush3.msra.mxu0 %v12796_v32  ;;  %v13044_v32 = vld [vmem:[%s12336_s26] sm:$0xff]  ;;  %v4480_v39 = vpop.permute.xlu0 %4479 }
0x2bc4   :  { %10900 = vmatprep.subr.mxu0 %v11917_v0 }
0x2bc5   :  { %10901 = vmatpush3.msra.mxu0 %v12801_v33  ;;  %v4243_v33 = vpop.f32.mrf.mxu1 }
0x2bc6   :  { %10903 = vmatmul.mubr.msk.f32.vlgmr.msra.gmra.mxu0 %vm134_vm1, %v4394_v16  ;;  %10916 = vmatprep.subr.mxu0 %v11917_v0 }
0x2bc7   :  { %10917 = vmatpush3.msra.mxu0 %v13027_v22  ;;  %10924 = vmatprep.mubr.msk.f32.mxu0 %vm11919_vm0, %v11917_v0  ;;  %v10879_v5 = vpop.f32.mrf.mxu1 }
0x2bc8   :  { %10918 = vmatprep.subr.mxu0 %v11917_v0 }
0x2bc9   :  { %10919 = vmatpush3.msra.mxu0 %v13034_v28 }
0x2bca   :  { %10920 = vmatprep.subr.mxu0 %v11917_v0 }
0x2bcb   :  { %10921 = vmatpush3.msra.mxu0 %v13039_v29 }
0x2bcc   :  { %10922 = vmatprep.subr.mxu0 %v11917_v0 }
0x2bcd   :  { %10923 = vmatpush3.msra.mxu0 %v13044_v32 }
0x2bce   :  { %10938 = vmatprep.subr.mxu0 %v11917_v0 }
0x2c7a   :  { %v4172_v52 = vpop.f32.mrf.mxu0 }
0x2c7b   :  { %v4173_v12 = vadd.f32 %v12818_v56, %v4172_v52  ;;  %v13059_v56 = vld [vmem:[%s12331_s30] sm:$0xff] }
0x2c7c   :  { %v10874_v42 = vpop.f32.mrf.mxu0 }
0x2c7d   :  { %11571 = vtanh.f32 %v4173_v12 }
0x2c7e   :  { %v4316_v4 = vpop.f32.mrf.mxu0 }
0x2c7f   :  { %v4317_v11 = vadd.f32 %v4316_v4, %v4243_v33 }
0x2c80   :  { %v10886_v21 = vpop.f32.mrf.mxu0 }
0x2c86   :  { %v4464_v6 = vpop.f32.mrf.mxu0 }
0x2c88   :  { %v10904_v31 = vpop.f32.mrf.mxu0 }
0x2c8a   :  { %v11572_v36 = vpop.eup %11571 }
0x2c8b   :  { %10892 = vmatmul.mubr.msk.f32.vlgmr.msra.gmra.mxu1 %vm129_vm2, %v11572_v36 }
0x2c8c   :  { %10906 = vmatpush3.msra.mxu1 %v12823_v51  ;;  %10913 = vmatprep.mubr.msk.f32.mxu1 %vm11919_vm0, %v11917_v0  ;;  %v13066_v51 = vld [vmem:[%s11964_s6 + $0x18] sm:$0xff] }
0x2c8d   :  { %10907 = vmatprep.subr.mxu1 %v11917_v0 }
0x2c8e   :  { %10908 = vmatpush3.msra.mxu1 %v12830_v19  ;;  %v13073_v19 = vld [vmem:[%s11964_s6 + $0x10] sm:$0xff] }
0x2c8f   :  { %10909 = vmatprep.subr.mxu1 %v11917_v0 }
0x2c90   :  { %10910 = vmatpush3.msra.mxu1 %v12835_v24  ;;  %v13078_v24 = vld [vmem:[%s11964_s6 + $0x8] sm:$0xff] }
0x2c91   :  { %10911 = vmatprep.subr.mxu1 %v11917_v0 }
0x2c92   :  { %10912 = vmatpush3.msra.mxu1 %v13059_v56 }
0x2c93   :  { %10914 = vmatmul.mubr.msk.f32.vlgmr.msra.gmra.mxu1 %vm134_vm1, %v12904_v59  ;;  %10927 = vmatprep.subr.mxu1 %v11917_v0  ;;  %v13083_v59 = vld [vmem:[%s11964_s6] sm:$0xff] }
0x2c94   :  { %10928 = vmatpush3.msra.mxu1 %v13066_v51  ;;  %10935 = vmatprep.mubr.msk.f32.mxu1 %vm11919_vm0, %v11917_v0 }
0x2c95   :  { %10929 = vmatprep.subr.mxu1 %v11917_v0 }
0x2c96   :  { %10930 = vmatpush3.msra.mxu1 %v13073_v19 }
0x2c97   :  { %10931 = vmatprep.subr.mxu1 %v11917_v0 }
0x2c98   :  { %10932 = vmatpush3.msra.mxu1 %v13078_v24 }
0x2c99   :  { %10933 = vmatprep.subr.mxu1 %v11917_v0 }
0x2c9a   :  { %10934 = vmatpush3.msra.mxu1 %v13083_v59 }
0x2c9b   :  { %10949 = vmatprep.subr.mxu1 %v11917_v0 }
0x2d4b   :  { %v4389_v7 = vpop.f32.mrf.mxu1 }
0x2d4c   :  { %v4393_v40 = vadd.f32 %v4389_v7, %v4317_v11 }
0x2d4d   :  { %v10893_v55 = vpop.f32.mrf.mxu1 }
0x2d4e   :  { %v4468_v10 = vadd.f32 %v4464_v6, %v4393_v40  ;;  %v13149_v40 = vld [vmem:[%s12017_s18] sm:$0xff] }
0x2d4f   :  { %v13155_v55 = vld [vmem:[%s12037_s25 + $0x20] sm:$0xff] }
0x2d50   :  { %v4469_v2 = vadd.f32 %v12854_v34, %v4468_v10  ;;  %v13161_v10 = vld [vmem:[%s12079_s3 + $0x8] sm:$0xff] }
0x2d52   :  { %11573 = vtanh.f32 %v4469_v2  ;;  %v9944_v50 = vmul.f32 -1.442695, %v4469_v2  ;;  %v13168_v2 = vld [vmem:[%s12079_s3] sm:$0xff] }
0x2d53   :  { %v4579_v47 = vpop.f32.mrf.mxu1 }
0x2d54   :  { %11575 = vpow2.f32 %v9944_v50 }
0x2d55   :  { %v10915_v44 = vpop.f32.mrf.mxu1 }
0x2d56   :  { %v13175_v44 = vld [vmem:[%s12133_s27 + $0x8] sm:$0xff] }
0x2d5f   :  { %v11574_v57 = vpop.eup %11573 }
0x2d60   :  { %4484 = vrot.lane.b32.xlu1 %v11574_v57, %s14295_s15  ;;  %v13182_v57 = vld [vmem:[%s12133_s27] sm:$0xff] }
0x2d61   :  { %v11576_v54 = vpop.eup %11575 }
0x2d62   :  { %v4474_v48 = vadd.f32 1.0, %v11576_v54  ;;  %v13187_v54 = vld [vmem:[%s12070_s29] ss:$0 sm:$0xff] }
0x2d64   :  { %11577 = vrcp.f32 %v4474_v48 }
0x2d71   :  { %v11578_v58 = vpop.eup %11577 }
0x2d72   :  { %v4482_v34 = vmul.f32 %v11578_v58, %v4480_v39 }
0x2dd2   :  { %v4485_v63 = vpop.permute.xlu1 %4484 }
0x2dd3   :  { %v4487_v49 = vmul.f32 %v11578_v58, %v4485_v63 }
0x2dd5   :  { %4489 = vrot.lane.b32.xlu1 %v4487_v49, %s14296_s16 }
0x2e47   :  { %v4490_v20 = vpop.permute.xlu1 %4489 }
0x2e48   :  { %v13090_v61 = vadd.f32 %v4490_v20, %v4482_v34 }
0x2e4a   :  { %11579 = vtanh.f32 %v13090_v61 }
0x2e57   :  { %v11580_v30 = vpop.eup %11579 }
0x2e58   :  { %4495 = vrot.lane.b32.xlu0 %v11580_v30, %s14295_s15  ;;  %v13192_v30 = vld [vmem:[%s12128_s21 + $0x8] sm:$0xff] }
0x2e5c   :  { %3572 = vrot.lane.b32.xlu0 %v12889_v13, %s14298_s11  ;;  %v13112_v13 = vld [vmem:[%s12012_s14 + $0x10] sm:$0xff] }
0x2eca   :  { %v4496_v37 = vpop.permute.xlu0 %4495 }
0x2ecb   :  { %v4498_v27 = vmul.f32 %v11578_v58, %v4496_v37  ;;  %v13199_v37 = vld [vmem:[%s12128_s21] sm:$0xff] }
0x2ecd   :  { %4500 = vrot.lane.b32.xlu1 %v4498_v27, %s14296_s16  ;;  %v9960_v27 = vld [vmem:[%s12022_s22 + $0x8] sm:$0xff] }
0x2ece   :  { %v3573_v3 = vpop.permute.xlu0 %3572 }
0x2ecf   :  { %9923 = vst.msk [vmem:[%s12286_s17 + $0x8] sm:$0xff] %vm134_vm1, %v3573_v3 }
0x2ed6   :  { %v9948_v60 = vld [vmem:[%s12286_s17 + $0x8] sm:$0xff] }
0x2ed7   :  { %4665 = vrot.lane.b32.xlu0 %v9948_v60, %s14296_s16 }
0x2f3f   :  { %v4501_v62 = vpop.permute.xlu1 %4500 }
0x2f40   :  { %4503 = vst.msk [vmem:[%s11971_s10] sm:$0xff] %vm134_vm1, %v4501_v62  ;;  %10925 = vmatmul.mubr.msk.f32.vlgmr.msra.gmra.mxu0 %vm134_vm1, %v4501_v62 }
0x2f41   :  { %10939 = vmatpush3.msra.mxu0 %v13105_v25  ;;  %10946 = vmatprep.mubr.msk.f32.mxu0 %vm11919_vm0, %v11917_v0 }
0x2f42   :  { %10940 = vmatprep.subr.mxu0 %v11917_v0 }
0x2f43   :  { %10941 = vmatpush3.msra.mxu0 %v13112_v13 }
0x2f44   :  { %10942 = vmatprep.subr.mxu0 %v11917_v0 }
0x2f45   :  { %10943 = vmatpush3.msra.mxu0 %v13117_v38 }
0x2f46   :  { %10944 = vmatprep.subr.mxu0 %v11917_v0 }
0x2f47   :  { %10945 = vmatpush3.msra.mxu0 %v13122_v26 }
0x2f48   :  { %10961 = vmatprep.subr.mxu0 %v11917_v0 }
0x2f49   :  { %v4666_v12 = vpop.permute.xlu0 %4665 }
0x3000   :  { %v4651_v35 = vpop.f32.mrf.mxu0 }
0x3001   :  { %v4652_v14 = vadd.f32 %v4651_v35, %v4579_v47  ;;  %v4921_v47 = vld [vmem:[%s12022_s22] sm:$0xff] }
0x3002   :  { %v10926_v8 = vpop.f32.mrf.mxu0 }
0x3003   :  { %v4655_v1 = vadd.f32 %v12884_v9, %v4652_v14  ;;  %v13212_v8 = vld [vmem:[%s12112_s13] ss:$0 sm:$0xff] }
0x3005   :  { %11581 = vtanh.f32 %v4655_v1  ;;  %v9949_v18 = vmul.f32 -1.442695, %v4655_v1 }
0x3007   :  { %11583 = vpow2.f32 %v9949_v18 }
0x3012   :  { %v11582_v17 = vpop.eup %11581 }
0x3013   :  { %4670 = vrot.lane.b32.xlu1 %v11582_v17, %s14295_s15 }
0x3014   :  { %v11584_v43 = vpop.eup %11583 }
0x3015   :  { %v4660_v16 = vadd.f32 1.0, %v11584_v43 }
0x3017   :  { %11585 = vrcp.f32 %v4660_v16 }
0x3024   :  { %v11586_v33 = vpop.eup %11585 }
0x3025   :  { %v4668_v42 = vmul.f32 %v11586_v33, %v4666_v12 }
0x3085   :  { %v4671_v5 = vpop.permute.xlu1 %4670 }
0x3086   :  { %v4673_v52 = vmul.f32 %v11586_v33, %v4671_v5 }
0x3088   :  { %4675 = vrot.lane.b32.xlu1 %v4673_v52, %s14296_s16 }
0x30fa   :  { %v4676_v9 = vpop.permute.xlu1 %4675 }
0x30fb   :  { %v13129_v4 = vadd.f32 %v4676_v9, %v4668_v42 }
0x30fd   :  { %11587 = vtanh.f32 %v13129_v4 }
0x310a   :  { %v11588_v21 = vpop.eup %11587 }
0x310b   :  { %4681 = vrot.lane.b32.xlu0 %v11588_v21, %s14295_s15 }
0x310f   :  { %3913 = vrot.lane.b32.xlu0 %v12956_v15, %s11946_s28 }
0x317d   :  { %v4682_v6 = vpop.permute.xlu0 %4681 }
0x317e   :  { %v4684_v31 = vmul.f32 %v11586_v33, %v4682_v6 }
0x3180   :  { %4686 = vrot.lane.b32.xlu1 %v4684_v31, %s14296_s16 }
0x3181   :  { %v3914_v36 = vpop.permute.xlu0 %3913 }
0x3182   :  { %3916 = vst.msk [vmem:[%s12101_s8] sm:$0xff] %vm129_vm2, %v3914_v36 }
0x3189   :  { %v4997_v11 = vld [vmem:[%s12101_s8] sm:$0xff] }
0x318a   :  { %5006 = vrot.lane.b32.xlu0 %v4997_v11, %s14297_s7 }
0x31f2   :  { %v4687_v7 = vpop.permute.xlu1 %4686 }
0x31f3   :  { %9950 = vst.msk [vmem:[%s11971_s10 + $0x8] sm:$0xff] %vm134_vm1, %v4687_v7  ;;  %4695 = vst.msk [vmem:[#allocation3 + $0x18] sm:$0xff] %vm134_vm1, %v4687_v7 }
0x31fa   :  { %v13144_v15 = vld [vmem:[%s11971_s10 + $0x8] sm:$0xff] }
0x31fb   :  { %10936 = vmatmul.mubr.msk.f32.vlgmr.msra.gmra.mxu1 %vm134_vm1, %v13144_v15 }
0x31fc   :  { %10950 = vmatpush3.msra.mxu1 %v13149_v40  ;;  %10951 = vmatprep.mubr.msk.f32.mxu1 %vm11919_vm0, %v11917_v0  ;;  %v5007_v52 = vpop.permute.xlu0 %5006 }
0x31fd   :  { %10954 = vmatprep.subr.mxu1 %v11917_v0 }
0x31ff   :  { %10952 = vmatmul.mubr.msk.f32.vlgmr.msra.gmra.mxu1 %vm337_vm3, %v13155_v55 }
0x3200   :  { %10955 = vmatpush3.msra.mxu1 %v13161_v10  ;;  %10958 = vmatprep.mubr.msk.f32.mxu1 %vm11919_vm0, %v11917_v0 }
0x3201   :  { %10956 = vmatprep.subr.mxu1 %v11917_v0 }
0x3202   :  { %10957 = vmatpush3.msra.mxu1 %v13168_v2 }
0x3203   :  { %10959 = vmatmul.mubr.msk.f32.vlgmr.msra.gmra.mxu1 %vm129_vm2, %v4921_v47  ;;  %10968 = vmatprep.subr.mxu1 %v11917_v0  ;;  %v13232_v47 = vld [vmem:[%s12214_s1] sm:$0xff] }
0x3204   :  { %10969 = vmatpush3.msra.mxu1 %v13175_v44  ;;  %10972 = vmatprep.mubr.msk.f32.mxu1 %vm11919_vm0, %v11917_v0 }
0x3205   :  { %10970 = vmatprep.subr.mxu1 %v11917_v0 }
0x3206   :  { %10971 = vmatpush3.msra.mxu1 %v13182_v57 }
0x3207   :  { %10982 = vmatprep.subr.mxu1 %v11917_v0 }
0x32bb   :  { %v4770_v50 = vpop.f32.mrf.mxu1 }
0x32bc   :  { %v4771_v48 = vadd.f32 %v13187_v54, %v4770_v50 }
0x32bd   :  { %v10937_v58 = vpop.f32.mrf.mxu1 }
0x32be   :  { %11589 = vtanh.f32 %v4771_v48  ;;  %v13247_v58 = vld [vmem:[%s12171_s5] ss:$0 sm:$0xff] }
0x32bf   :  { %v4917_v63 = vpop.f32.mrf.mxu1 }
0x32c1   :  { %v10953_v49 = vpop.f32.mrf.mxu1 }
0x32c3   :  { %v4991_v39 = vpop.f32.mrf.mxu1 }
0x32c5   :  { %v10960_v34 = vpop.f32.mrf.mxu1 }
0x32cb   :  { %v11590_v20 = vpop.eup %11589 }
0x32cc   :  { %10947 = vmatmul.mubr.msk.f32.vlgmr.msra.gmra.mxu0 %vm134_vm1, %v11590_v20 }
0x32cd   :  { %10962 = vmatpush3.msra.mxu0 %v13192_v30  ;;  %10965 = vmatprep.mubr.msk.f32.mxu0 %vm11919_vm0, %v11917_v0 }
0x32ce   :  { %10963 = vmatprep.subr.mxu0 %v11917_v0 }
0x32cf   :  { %10964 = vmatpush3.msra.mxu0 %v13199_v37 }
0x32d0   :  { %10966 = vmatmul.mubr.msk.f32.vlgmr.msra.gmra.mxu0 %vm129_vm2, %v9960_v27  ;;  %10975 = vmatprep.subr.mxu0 %v11917_v0 }
0x32d1   :  { %10976 = vmatpush3.msra.mxu0 %v12942_v23  ;;  %10979 = vmatprep.mubr.msk.f32.mxu0 %vm11919_vm0, %v11917_v0 }
0x32d2   :  { %10977 = vmatprep.subr.mxu0 %v11917_v0 }
0x32d3   :  { %10978 = vmatpush3.msra.mxu0 %v12949_v41 }
0x32d4   :  { %10987 = vmatprep.subr.mxu0 %v11917_v0 }
0x338c   :  { %v4844_v3 = vpop.f32.mrf.mxu0 }
0x338d   :  { %v4918_v60 = vadd.f32 %v4917_v63, %v4844_v3 }
0x338e   :  { %v10948_v62 = vpop.f32.mrf.mxu0 }
0x338f   :  { %v4995_v35 = vadd.f32 %v4991_v39, %v4918_v60 }
0x3390   :  { %v5106_v14 = vpop.f32.mrf.mxu0 }
0x3391   :  { %v4996_v1 = vadd.f32 %v13212_v8, %v4995_v35 }
0x3392   :  { %v10967_v17 = vpop.f32.mrf.mxu0 }
0x3393   :  { %11591 = vtanh.f32 %v4996_v1  ;;  %v9959_v18 = vmul.f32 -1.442695, %v4996_v1 }
0x3395   :  { %11593 = vpow2.f32 %v9959_v18 }
0x33a0   :  { %v11592_v23 = vpop.eup %11591 }
0x33a1   :  { %5011 = vrot.lane.b32.xlu1 %v11592_v23, %s14298_s11 }
0x33a2   :  { %v11594_v43 = vpop.eup %11593 }
0x33a3   :  { %v5001_v41 = vadd.f32 1.0, %v11594_v43  ;;  %v9953_v43 = vld [vmem:[%s12219_s9 + $0x20] sm:$0xff] }
0x33a5   :  { %11595 = vrcp.f32 %v5001_v41  ;;  %v13276_v41 = vld [vmem:[%s12208_s23] sm:$0xff] }
0x33b2   :  { %v11596_v16 = vpop.eup %11595 }
0x33b3   :  { %v5009_v12 = vmul.f32 %v11596_v16, %v5007_v52  ;;  %v13299_v52 = vld [vmem:[%s12230_s20] sm:$0xff] }
0x3413   :  { %v5012_v33 = vpop.permute.xlu1 %5011 }
0x3414   :  { %v5014_v5 = vmul.f32 %v11596_v16, %v5012_v33  ;;  %v13289_v33 = vld [vmem:[%s12230_s20 + $0x10] sm:$0xff] }
0x3416   :  { %5016 = vrot.lane.b32.xlu1 %v5014_v5, %s14297_s7  ;;  %v13294_v5 = vld [vmem:[%s12230_s20 + $0x8] sm:$0xff] }
0x3488   :  { %v5017_v42 = vpop.permute.xlu1 %5016 }
0x3489   :  { %v13217_v9 = vadd.f32 %v5017_v42, %v5009_v12  ;;  %v5513_v12 = vld [vmem:[%s11971_s10] sm:$0xff] }
0x348b   :  { %11597 = vtanh.f32 %v13217_v9 }
0x3498   :  { %v11598_v21 = vpop.eup %11597 }
0x3499   :  { %5022 = vrot.lane.b32.xlu0 %v11598_v21, %s14296_s16 }
0x349d   :  { %4099 = vrot.lane.b32.xlu0 %v12991_v45, %s11946_s28 }
0x350b   :  { %v5023_v6 = vpop.permute.xlu0 %5022 }
0x350c   :  { %v5025_v31 = vmul.f32 %v11596_v16, %v5023_v6  ;;  %v13282_v16 = vld [vmem:[%s12230_s20 + $0x18] sm:$0xff]  ;;  %v13316_v6 = vld [vmem:[%s12305_s4] ss:$0 sm:$0xff] }
0x350e   :  { %5027 = vrot.lane.b32.xlu1 %v5025_v31, %s14299_s0 }
0x350f   :  { %v4100_v36 = vpop.permute.xlu0 %4099 }
0x3510   :  { %9938 = vst.msk [vmem:[%s12101_s8 + $0x8] sm:$0xff] %vm129_vm2, %v4100_v36 }
0x3517   :  { %v9963_v11 = vld [vmem:[%s12101_s8 + $0x8] sm:$0xff] }
0x3518   :  { %5192 = vrot.lane.b32.xlu0 %v9963_v11, %s14297_s7 }
0x3580   :  { %v5028_v7 = vpop.permute.xlu1 %5027 }
0x3581   :  { %5030 = vst.msk [vmem:[%s12022_s22] sm:$0xff] %vm129_vm2, %v5028_v7  ;;  %10973 = vmatmul.mubr.msk.f32.vlgmr.msra.gmra.mxu1 %vm129_vm2, %v5028_v7 }
0x3582   :  { %10983 = vmatpush3.msra.mxu1 %v13232_v47  ;;  %10984 = vmatprep.mubr.msk.f32.mxu1 %vm11919_vm0, %v11917_v0 }
0x3583   :  { %10994 = vmatprep.subr.mxu1 %v11917_v0 }
0x3585   :  { %10985 = vmatmul.mubr.msk.f32.vlgmr.msra.gmra.mxu1 %vm337_vm3, %v13155_v55 }
0x3586   :  { %10995 = vmatpush3.msra.mxu1 %v12977_v53  ;;  %10998 = vmatprep.mubr.msk.f32.mxu1 %vm11919_vm0, %v11917_v0 }
0x3587   :  { %10996 = vmatprep.subr.mxu1 %v11917_v0 }
0x3588   :  { %10997 = vmatpush3.msra.mxu1 %v12984_v46 }
0x3589   :  { %11012 = vmatprep.subr.mxu1 %v11917_v0 }
0x358a   :  { %v5193_v27 = vpop.permute.xlu0 %5192 }
0x3641   :  { %v5178_v45 = vpop.f32.mrf.mxu1 }
0x3642   :  { %v5179_v50 = vadd.f32 %v5178_v45, %v5106_v14 }
0x3643   :  { %v10974_v48 = vpop.f32.mrf.mxu1 }
0x3644   :  { %v5182_v63 = vadd.f32 %v13247_v58, %v5179_v50  ;;  %v13328_v50 = vld [vmem:[%s12331_s30 + $0x10] sm:$0xff]  ;;  %v13333_v48 = vld [vmem:[%s12331_s30 + $0x8] sm:$0xff] }
0x3645   :  { %v5362_v42 = vpop.f32.mrf.mxu1 }
0x3646   :  { %11599 = vtanh.f32 %v5182_v63  ;;  %v9964_v53 = vmul.f32 -1.442695, %v5182_v63 }
0x3648   :  { %11601 = vpow2.f32 %v9964_v53  ;;  %v13352_v53 = vld [vmem:[%s12317_s24] ss:$0 sm:$0xff] }
0x3653   :  { %v11600_v55 = vpop.eup %11599 }
0x3654   :  { %5197 = vrot.lane.b32.xlu1 %v11600_v55, %s14298_s11 }
0x3655   :  { %v11602_v49 = vpop.eup %11601 }
0x3656   :  { %v5187_v39 = vadd.f32 1.0, %v11602_v49 }
0x3658   :  { %11603 = vrcp.f32 %v5187_v39 }
0x3665   :  { %v11604_v34 = vpop.eup %11603 }
0x3666   :  { %v5195_v3 = vmul.f32 %v11604_v34, %v5193_v27 }
0x36c6   :  { %v5198_v46 = vpop.permute.xlu1 %5197 }
0x36c7   :  { %v5200_v20 = vmul.f32 %v11604_v34, %v5198_v46 }
0x36c9   :  { %5202 = vrot.lane.b32.xlu1 %v5200_v20, %s14297_s7 }
0x373b   :  { %v5203_v60 = vpop.permute.xlu1 %5202 }
0x373c   :  { %v13252_v62 = vadd.f32 %v5203_v60, %v5195_v3 }
0x373e   :  { %11605 = vtanh.f32 %v13252_v62 }
0x374b   :  { %v11606_v35 = vpop.eup %11605 }
0x374c   :  { %5208 = vrot.lane.b32.xlu0 %v11606_v35, %s14296_s16 }
0x3750   :  { %4505 = vrot.lane.b32.xlu0 %v13090_v61, %s14298_s11  ;;  %v13268_v61 = vld [vmem:[%s12208_s23 + $0x8] sm:$0xff] }
0x37be   :  { %v5209_v14 = vpop.permute.xlu0 %5208 }
0x37bf   :  { %v5211_v1 = vmul.f32 %v11604_v34, %v5209_v14 }
0x37c1   :  { %5213 = vrot.lane.b32.xlu1 %v5211_v1, %s14299_s0 }
0x37c2   :  { %v4506_v17 = vpop.permute.xlu0 %4505 }
0x37c3   :  { %4508 = vst.msk [vmem:[%s12286_s17] sm:$0xff] %vm134_vm1, %v4506_v17 }
0x37ca   :  { %v5589_v23 = vld [vmem:[%s12286_s17] sm:$0xff] }
0x37cb   :  { %5598 = vrot.lane.b32.xlu0 %v5589_v23, %s14296_s16 }
0x3833   :  { %v5214_v18 = vpop.permute.xlu1 %5213 }
0x3834   :  { %9965 = vst.msk [vmem:[%s12022_s22 + $0x8] sm:$0xff] %vm129_vm2, %v5214_v18  ;;  %5222 = vst.msk [vmem:[#allocation2 + $0x20] sm:$0xff] %vm129_vm2, %v5214_v18  ;;  %10980 = vmatmul.mubr.msk.f32.vlgmr.msra.gmra.mxu0 %vm129_vm2, %v5214_v18 }
0x3835   :  { %10988 = vmatpush3.msra.mxu0 %v13268_v61  ;;  %10991 = vmatprep.mubr.msk.f32.mxu0 %vm11919_vm0, %v11917_v0 }
0x3836   :  { %10989 = vmatprep.subr.mxu0 %v11917_v0 }
0x3837   :  { %10990 = vmatpush3.msra.mxu0 %v13276_v41 }
0x3838   :  { %11001 = vmatprep.subr.mxu0 %v11917_v0  ;;  %10992 = vmatmul.mubr.msk.f32.vlgmr.msra.gmra.mxu0 %vm129_vm2, %v9953_v43 }
0x3839   :  { %11002 = vmatpush3.msra.mxu0 %v13282_v16  ;;  %11009 = vmatprep.mubr.msk.f32.mxu0 %vm11919_vm0, %v11917_v0 }
0x383a   :  { %11003 = vmatprep.subr.mxu0 %v11917_v0 }
0x383b   :  { %11004 = vmatpush3.msra.mxu0 %v13289_v33 }
0x383c   :  { %11005 = vmatprep.subr.mxu0 %v11917_v0 }
0x383d   :  { %11006 = vmatpush3.msra.mxu0 %v13294_v5  ;;  %v5599_v60 = vpop.permute.xlu0 %5598 }
0x383e   :  { %11007 = vmatprep.subr.mxu0 %v11917_v0 }
0x383f   :  { %11008 = vmatpush3.msra.mxu0 %v13299_v52 }
0x3840   :  { %11010 = vmatmul.mubr.msk.f32.vlgmr.msra.gmra.mxu0 %vm134_vm1, %v5513_v12  ;;  %11023 = vmatprep.subr.mxu0 %v11917_v0 }
0x3841   :  { %11024 = vmatpush3.msra.mxu0 %v13027_v22  ;;  %11031 = vmatprep.mubr.msk.f32.mxu0 %vm11919_vm0, %v11917_v0  ;;  %v10986_v22 = vpop.f32.mrf.mxu1 }
0x3842   :  { %11025 = vmatprep.subr.mxu0 %v11917_v0 }
0x3843   :  { %11026 = vmatpush3.msra.mxu0 %v13034_v28 }
0x3844   :  { %11027 = vmatprep.subr.mxu0 %v11917_v0 }
0x3845   :  { %11028 = vmatpush3.msra.mxu0 %v13039_v29 }
0x3846   :  { %11029 = vmatprep.subr.mxu0 %v11917_v0 }
0x3847   :  { %11030 = vmatpush3.msra.mxu0 %v13044_v32  ;;  %v13321_v32 = vld [vmem:[%s12331_s30 + $0x18] sm:$0xff] }
0x3848   :  { %11045 = vmatprep.subr.mxu0 %v11917_v0 }
0x38f4   :  { %v5291_v21 = vpop.f32.mrf.mxu0 }
0x38f5   :  { %v5292_v31 = vadd.f32 %v13316_v6, %v5291_v21  ;;  %v13382_v21 = vld [vmem:[%s12410_s19] ss:$0 sm:$0xff] }
0x38f6   :  { %v10981_v28 = vpop.f32.mrf.mxu0 }
0x38f7   :  { %11607 = vtanh.f32 %v5292_v31 }
0x38f8   :  { %v5435_v36 = vpop.f32.mrf.mxu0 }
0x38fa   :  { %v10993_v29 = vpop.f32.mrf.mxu0 }
0x3900   :  { %v5583_v11 = vpop.f32.mrf.mxu0 }
0x3902   :  { %v11011_v7 = vpop.f32.mrf.mxu0 }
0x3904   :  { %v11608_v45 = vpop.eup %11607 }
0x3905   :  { %10999 = vmatmul.mubr.msk.f32.vlgmr.msra.gmra.mxu1 %vm129_vm2, %v11608_v45 }
0x3906   :  { %11013 = vmatpush3.msra.mxu1 %v13321_v32  ;;  %11020 = vmatprep.mubr.msk.f32.mxu1 %vm11919_vm0, %v11917_v0 }
0x3907   :  { %11014 = vmatprep.subr.mxu1 %v11917_v0 }
0x3908   :  { %11015 = vmatpush3.msra.mxu1 %v13328_v50 }
0x3909   :  { %11016 = vmatprep.subr.mxu1 %v11917_v0 }
0x390a   :  { %11017 = vmatpush3.msra.mxu1 %v13333_v48 }
0x390b   :  { %11018 = vmatprep.subr.mxu1 %v11917_v0 }
0x390c   :  { %11019 = vmatpush3.msra.mxu1 %v13059_v56  ;;  %v5436_v56 = vadd.f32 %v5435_v36, %v5362_v42 }
0x390d   :  { %11021 = vmatmul.mubr.msk.f32.vlgmr.msra.gmra.mxu1 %vm134_vm1, %v13144_v15  ;;  %11034 = vmatprep.subr.mxu1 %v11917_v0 }
0x390e   :  { %11035 = vmatpush3.msra.mxu1 %v13066_v51  ;;  %11042 = vmatprep.mubr.msk.f32.mxu1 %vm11919_vm0, %v11917_v0 }
0x390f   :  { %11036 = vmatprep.subr.mxu1 %v11917_v0 }
0x3910   :  { %11037 = vmatpush3.msra.mxu1 %v13073_v19 }
0x3911   :  { %11038 = vmatprep.subr.mxu1 %v11917_v0 }
0x3912   :  { %11039 = vmatpush3.msra.mxu1 %v13078_v24 }
0x3913   :  { %11040 = vmatprep.subr.mxu1 %v11917_v0 }
0x3914   :  { %11041 = vmatpush3.msra.mxu1 %v13083_v59 }
0x3915   :  { %11056 = vmatprep.subr.mxu1 %v11917_v0 }
0x39c5   :  { %v5508_v15 = vpop.f32.mrf.mxu1 }
0x39c6   :  { %v5512_v51 = vadd.f32 %v5508_v15, %v5436_v56 }
0x39c7   :  { %v11000_v63 = vpop.f32.mrf.mxu1 }
0x39c8   :  { %v5587_v55 = vadd.f32 %v5583_v11, %v5512_v51 }
0x39ca   :  { %v5588_v49 = vadd.f32 %v13352_v53, %v5587_v55 }
0x39cc   :  { %11609 = vtanh.f32 %v5588_v49  ;;  %v9972_v24 = vmul.f32 -1.442695, %v5588_v49 }
0x39cd   :  { %v5698_v19 = vpop.f32.mrf.mxu1 }
0x39ce   :  { %11611 = vpow2.f32 %v9972_v24 }
0x39cf   :  { %v11022_v39 = vpop.f32.mrf.mxu1 }
0x39d9   :  { %v11610_v34 = vpop.eup %11609 }
0x39da   :  { %5603 = vrot.lane.b32.xlu1 %v11610_v34, %s14295_s15 }
0x39db   :  { %v11612_v59 = vpop.eup %11611 }
0x39dc   :  { %v5593_v46 = vadd.f32 1.0, %v11612_v59 }
0x39de   :  { %11613 = vrcp.f32 %v5593_v46 }
0x39eb   :  { %v11614_v20 = vpop.eup %11613 }
0x39ec   :  { %v5601_v35 = vmul.f32 %v11614_v20, %v5599_v60 }
0x3a4c   :  { %v5604_v27 = vpop.permute.xlu1 %5603 }
0x3a4d   :  { %v5606_v3 = vmul.f32 %v11614_v20, %v5604_v27 }
0x3a4f   :  { %5608 = vrot.lane.b32.xlu1 %v5606_v3, %s14296_s16 }
0x3ac1   :  { %v5609_v14 = vpop.permute.xlu1 %5608 }
0x3ac2   :  { %v13357_v1 = vadd.f32 %v5609_v14, %v5601_v35 }
0x3ac4   :  { %11615 = vtanh.f32 %v13357_v1 }
0x3ad1   :  { %v11616_v17 = vpop.eup %11615 }
0x3ad2   :  { %5614 = vrot.lane.b32.xlu0 %v11616_v17, %s14295_s15 }
0x3ad6   :  { %4691 = vrot.lane.b32.xlu0 %v13129_v4, %s14298_s11 }
0x3b44   :  { %v5615_v23 = vpop.permute.xlu0 %5614 }
0x3b45   :  { %v5617_v18 = vmul.f32 %v11614_v20, %v5615_v23 }
0x3b47   :  { %5619 = vrot.lane.b32.xlu1 %v5617_v18, %s14296_s16 }
0x3b48   :  { %v4692_v43 = vpop.permute.xlu0 %4691 }
0x3b49   :  { %9951 = vst.msk [vmem:[%s12286_s17 + $0x8] sm:$0xff] %vm134_vm1, %v4692_v43 }
0x3b50   :  { %v9976_v12 = vld [vmem:[%s12286_s17 + $0x8] sm:$0xff] }
0x3b51   :  { %5784 = vrot.lane.b32.xlu0 %v9976_v12, %s14296_s16 }
0x3bb9   :  { %v5620_v42 = vpop.permute.xlu1 %5619 }
0x3bba   :  { %5622 = vst.msk [vmem:[%s11971_s10] sm:$0xff] %vm134_vm1, %v5620_v42  ;;  %11032 = vmatmul.mubr.msk.f32.vlgmr.msra.gmra.mxu0 %vm134_vm1, %v5620_v42 }
0x3bbb   :  { %11046 = vmatpush3.msra.mxu0 %v13105_v25  ;;  %11053 = vmatprep.mubr.msk.f32.mxu0 %vm11919_vm0, %v11917_v0 }
0x3bbc   :  { %11047 = vmatprep.subr.mxu0 %v11917_v0 }
0x3bbd   :  { %11048 = vmatpush3.msra.mxu0 %v13112_v13 }
0x3bbe   :  { %11049 = vmatprep.subr.mxu0 %v11917_v0 }
0x3bbf   :  { %11050 = vmatpush3.msra.mxu0 %v13117_v38 }
0x3bc0   :  { %11051 = vmatprep.subr.mxu0 %v11917_v0 }
0x3bc1   :  { %11052 = vmatpush3.msra.mxu0 %v13122_v26 }
0x3bc2   :  { %11068 = vmatprep.subr.mxu0 %v11917_v0 }
0x3bc3   :  { %v5785_v7 = vpop.permute.xlu0 %5784 }
0x3c7a   :  { %v5770_v4 = vpop.f32.mrf.mxu0 }
0x3c7b   :  { %v5771_v22 = vadd.f32 %v5770_v4, %v5698_v19 }
0x3c7c   :  { %v11033_v25 = vpop.f32.mrf.mxu0 }
0x3c7d   :  { %v5774_v31 = vadd.f32 %v13382_v21, %v5771_v22 }
0x3c7f   :  { %11617 = vtanh.f32 %v5774_v31  ;;  %v9977_v13 = vmul.f32 -1.442695, %v5774_v31 }
0x3c81   :  { %11619 = vpow2.f32 %v9977_v13 }
0x3c8c   :  { %v11618_v28 = vpop.eup %11617 }
0x3c8d   :  { %5789 = vrot.lane.b32.xlu1 %v11618_v28, %s14295_s15 }
0x3c8e   :  { %v11620_v38 = vpop.eup %11619 }
0x3c8f   :  { %v5779_v36 = vadd.f32 1.0, %v11620_v38 }
0x3c91   :  { %11621 = vrcp.f32 %v5779_v36 }
0x3c9e   :  { %v11622_v29 = vpop.eup %11621 }
0x3c9f   :  { %v5787_v45 = vmul.f32 %v11622_v29, %v5785_v7 }
0x3cff   :  { %v5790_v26 = vpop.permute.xlu1 %5789 }
0x3d00   :  { %v5792_v11 = vmul.f32 %v11622_v29, %v5790_v26 }
0x3d02   :  { %5794 = vrot.lane.b32.xlu1 %v5792_v11, %s14296_s16 }
0x3d74   :  { %v5795_v56 = vpop.permute.xlu1 %5794 }
0x3d75   :  { %v13387_v15 = vadd.f32 %v5795_v56, %v5787_v45  ;;  %v13482_v45 = vld [vmem:[%s12236_s2] sm:$0xff] }
0x3d77   :  { %11623 = vtanh.f32 %v13387_v15 }
0x3d84   :  { %v11624_v51 = vpop.eup %11623 }
0x3d85   :  { %5800 = vrot.lane.b32.xlu0 %v11624_v51, %s14295_s15 }
0x3d89   :  { %5032 = vrot.lane.b32.xlu0 %v13217_v9, %s11946_s28  ;;  %v13410_v9 = vld [vmem:[%s12037_s25 + $0x28] sm:$0xff] }
0x3df7   :  { %v5801_v63 = vpop.permute.xlu0 %5800 }
0x3df8   :  { %v5803_v55 = vmul.f32 %v11622_v29, %v5801_v63 }
0x3dfa   :  { %5805 = vrot.lane.b32.xlu1 %v5803_v55, %s14296_s16 }
0x3dfb   :  { %v5033_v49 = vpop.permute.xlu0 %5032 }
0x3dfc   :  { %5035 = vst.msk [vmem:[%s12101_s8] sm:$0xff] %vm129_vm2, %v5033_v49 }
0x3e03   :  { %v6116_v19 = vld [vmem:[%s12101_s8] sm:$0xff] }
0x3e04   :  { %6125 = vrot.lane.b32.xlu0 %v6116_v19, %s14297_s7 }
0x3e6c   :  { %v5806_v39 = vpop.permute.xlu1 %5805 }
0x3e6d   :  { %9978 = vst.msk [vmem:[%s11971_s10 + $0x8] sm:$0xff] %vm134_vm1, %v5806_v39  ;;  %5814 = vst.msk [vmem:[#allocation3 + $0x20] sm:$0xff] %vm134_vm1, %v5806_v39 }
0x3e74   :  { %v13402_v34 = vld [vmem:[%s11971_s10 + $0x8] sm:$0xff] }
0x3e75   :  { %11043 = vmatmul.mubr.msk.f32.vlgmr.msra.gmra.mxu1 %vm134_vm1, %v13402_v34 }
0x3e76   :  { %11057 = vmatpush3.msra.mxu1 %v13149_v40  ;;  %11058 = vmatprep.mubr.msk.f32.mxu1 %vm11919_vm0, %v11917_v0  ;;  %v6040_v40 = vld [vmem:[%s12022_s22] sm:$0xff]  ;;  %v6126_v31 = vpop.permute.xlu0 %6125 }
0x3e77   :  { %11061 = vmatprep.subr.mxu1 %v11917_v0 }
0x3e79   :  { %11059 = vmatmul.mubr.msk.f32.vlgmr.msra.gmra.mxu1 %vm337_vm3, %v13410_v9 }
0x3e7a   :  { %11062 = vmatpush3.msra.mxu1 %v13161_v10  ;;  %11065 = vmatprep.mubr.msk.f32.mxu1 %vm11919_vm0, %v11917_v0 }
0x3e7b   :  { %11063 = vmatprep.subr.mxu1 %v11917_v0 }
0x3e7c   :  { %11064 = vmatpush3.msra.mxu1 %v13168_v2 }
0x3e7d   :  { %11066 = vmatmul.mubr.msk.f32.vlgmr.msra.gmra.mxu1 %vm129_vm2, %v6040_v40  ;;  %11075 = vmatprep.subr.mxu1 %v11917_v0 }
0x3e7e   :  { %11076 = vmatpush3.msra.mxu1 %v13175_v44  ;;  %11079 = vmatprep.mubr.msk.f32.mxu1 %vm11919_vm0, %v11917_v0 }
0x3e7f   :  { %11077 = vmatprep.subr.mxu1 %v11917_v0 }
0x3e80   :  { %11078 = vmatpush3.msra.mxu1 %v13182_v57  ;;  %v9988_v57 = vld [vmem:[%s12022_s22 + $0x8] sm:$0xff] }
0x3e81   :  { %11089 = vmatprep.subr.mxu1 %v11917_v0 }
0x3f35   :  { %v5889_v10 = vpop.f32.mrf.mxu1 }
0x3f36   :  { %v5890_v2 = vadd.f32 %v13187_v54, %v5889_v10  ;;  %v13440_v54 = vld [vmem:[%s12185_s12 + $0x8] sm:$0xff] }
0x3f37   :  { %v11044_v24 = vpop.f32.mrf.mxu1 }
0x3f38   :  { %11625 = vtanh.f32 %v5890_v2 }
0x3f39   :  { %v6036_v59 = vpop.f32.mrf.mxu1 }
0x3f3b   :  { %v11060_v46 = vpop.f32.mrf.mxu1 }
0x3f3d   :  { %v6110_v44 = vpop.f32.mrf.mxu1 }
0x3f3f   :  { %v11067_v20 = vpop.f32.mrf.mxu1 }
0x3f45   :  { %v11626_v27 = vpop.eup %11625 }
0x3f46   :  { %11054 = vmatmul.mubr.msk.f32.vlgmr.msra.gmra.mxu0 %vm134_vm1, %v11626_v27 }
0x3f47   :  { %11069 = vmatpush3.msra.mxu0 %v13192_v30  ;;  %11072 = vmatprep.mubr.msk.f32.mxu0 %vm11919_vm0, %v11917_v0  ;;  %v13447_v30 = vld [vmem:[%s12185_s12] sm:$0xff] }
0x3f48   :  { %11070 = vmatprep.subr.mxu0 %v11917_v0 }
0x3f49   :  { %11071 = vmatpush3.msra.mxu0 %v13199_v37 }
0x3f4a   :  { %11073 = vmatmul.mubr.msk.f32.vlgmr.msra.gmra.mxu0 %vm129_vm2, %v9988_v57  ;;  %11082 = vmatprep.subr.mxu0 %v11917_v0 }
0x3f4b   :  { %11083 = vmatpush3.msra.mxu0 %v13440_v54  ;;  %11086 = vmatprep.mubr.msk.f32.mxu0 %vm11919_vm0, %v11917_v0 }
0x3f4c   :  { %11084 = vmatprep.subr.mxu0 %v11917_v0 }
0x3f4d   :  { %11085 = vmatpush3.msra.mxu0 %v13447_v30 }
0x3f4e   :  { %11094 = vmatprep.subr.mxu0 %v11917_v0 }
0x4006   :  { %v5963_v37 = vpop.f32.mrf.mxu0 }
0x4007   :  { %v6037_v3 = vadd.f32 %v6036_v59, %v5963_v37 }
0x4008   :  { %v11055_v60 = vpop.f32.mrf.mxu0 }
0x4009   :  { %v6114_v35 = vadd.f32 %v6110_v44, %v6037_v3 }
0x400a   :  { %v6225_v14 = vpop.f32.mrf.mxu0 }
0x400b   :  { %v6115_v17 = vadd.f32 %v13212_v8, %v6114_v35 }
0x400c   :  { %v11074_v23 = vpop.f32.mrf.mxu0 }
0x400d   :  { %11627 = vtanh.f32 %v6115_v17  ;;  %v9987_v43 = vmul.f32 -1.442695, %v6115_v17 }
0x400f   :  { %11629 = vpow2.f32 %v9987_v43 }
0x401a   :  { %v11628_v18 = vpop.eup %11627 }
0x401b   :  { %6130 = vrot.lane.b32.xlu1 %v11628_v18, %s14298_s11 }
0x401c   :  { %v11630_v12 = vpop.eup %11629 }
0x401d   :  { %v6120_v42 = vadd.f32 1.0, %v11630_v12 }
0x401f   :  { %11631 = vrcp.f32 %v6120_v42 }
0x402c   :  { %v11632_v4 = vpop.eup %11631 }
0x402d   :  { %v6128_v8 = vmul.f32 %v11632_v4, %v6126_v31 }
0x408d   :  { %v6131_v22 = vpop.permute.xlu1 %6130 }
0x408e   :  { %v6133_v25 = vmul.f32 %v11632_v4, %v6131_v22 }
0x4090   :  { %6135 = vrot.lane.b32.xlu1 %v6133_v25, %s14297_s7 }
0x4102   :  { %v6136_v28 = vpop.permute.xlu1 %6135 }
0x4103   :  { %v13454_v13 = vadd.f32 %v6136_v28, %v6128_v8 }
0x4105   :  { %11633 = vtanh.f32 %v13454_v13 }
0x4112   :  { %v11634_v38 = vpop.eup %11633 }
0x4113   :  { %6141 = vrot.lane.b32.xlu0 %v11634_v38, %s14296_s16 }
0x4117   :  { %5218 = vrot.lane.b32.xlu0 %v13252_v62, %s11946_s28  ;;  %v13475_v62 = vld [vmem:[%s12236_s2 + $0x8] sm:$0xff] }
0x4185   :  { %v6142_v36 = vpop.permute.xlu0 %6141 }
0x4186   :  { %v6144_v29 = vmul.f32 %v11632_v4, %v6142_v36 }
0x4188   :  { %6146 = vrot.lane.b32.xlu1 %v6144_v29, %s14299_s0 }
0x4189   :  { %v5219_v26 = vpop.permute.xlu0 %5218 }
0x418a   :  { %9966 = vst.msk [vmem:[%s12101_s8 + $0x8] sm:$0xff] %vm129_vm2, %v5219_v26 }
0x4191   :  { %v9991_v11 = vld [vmem:[%s12101_s8 + $0x8] sm:$0xff] }
0x4192   :  { %6311 = vrot.lane.b32.xlu0 %v9991_v11, %s14297_s7 }
0x41fa   :  { %v6147_v7 = vpop.permute.xlu1 %6146 }
0x41fb   :  { %6149 = vst.msk [vmem:[%s12022_s22] sm:$0xff] %vm129_vm2, %v6147_v7  ;;  %11080 = vmatmul.mubr.msk.f32.vlgmr.msra.gmra.mxu1 %vm129_vm2, %v6147_v7 }
0x41fc   :  { %11090 = vmatpush3.msra.mxu1 %v13232_v47  ;;  %11091 = vmatprep.mubr.msk.f32.mxu1 %vm11919_vm0, %v11917_v0 }
0x41fd   :  { %11101 = vmatprep.subr.mxu1 %v11917_v0 }
0x41ff   :  { %11092 = vmatmul.mubr.msk.f32.vlgmr.msra.gmra.mxu1 %vm337_vm3, %v13410_v9 }
0x4200   :  { %11102 = vmatpush3.msra.mxu1 %v13475_v62  ;;  %11105 = vmatprep.mubr.msk.f32.mxu1 %vm11919_vm0, %v11917_v0 }
0x4201   :  { %11103 = vmatprep.subr.mxu1 %v11917_v0 }
0x4202   :  { %11104 = vmatpush3.msra.mxu1 %v13482_v45 }
0x4203   :  { %11119 = vmatprep.subr.mxu1 %v11917_v0 }
0x4204   :  { %v6312_v2 = vpop.permute.xlu0 %6311 }
0x42bb   :  { %v6297_v47 = vpop.f32.mrf.mxu1 }
0x42bc   :  { %v6298_v56 = vadd.f32 %v6297_v47, %v6225_v14 }
0x42bd   :  { %v11081_v51 = vpop.f32.mrf.mxu1 }
0x42be   :  { %v6301_v63 = vadd.f32 %v13247_v58, %v6298_v56 }
0x42c0   :  { %11635 = vtanh.f32 %v6301_v63  ;;  %v9992_v49 = vmul.f32 -1.442695, %v6301_v63 }
0x42c2   :  { %11637 = vpow2.f32 %v9992_v49 }
0x42cd   :  { %v11636_v55 = vpop.eup %11635 }
0x42ce   :  { %6316 = vrot.lane.b32.xlu1 %v11636_v55, %s14298_s11 }
0x42cf   :  { %v11638_v19 = vpop.eup %11637 }
0x42d0   :  { %v6306_v39 = vadd.f32 1.0, %v11638_v19 }
0x42d2   :  { %11639 = vrcp.f32 %v6306_v39 }
0x42df   :  { %v11640_v9 = vpop.eup %11639 }
0x42e0   :  { %v6314_v24 = vmul.f32 %v11640_v9, %v6312_v2  ;;  %v13603_v2 = vld [vmem:[%s12012_s14 + $0x18] sm:$0xff] }
0x4340   :  { %v6317_v40 = vpop.permute.xlu1 %6316 }
0x4341   :  { %v6319_v10 = vmul.f32 %v11640_v9, %v6317_v40 }
0x4343   :  { %6321 = vrot.lane.b32.xlu1 %v6319_v10, %s14297_s7 }
0x43b5   :  { %v6322_v58 = vpop.permute.xlu1 %6321 }
0x43b6   :  { %v13489_v59 = vadd.f32 %v6322_v58, %v6314_v24  ;;  %v13615_v24 = vld [vmem:[%s12012_s14 + $0x8] sm:$0xff]  ;;  %v13620_v58 = vld [vmem:[%s12012_s14] sm:$0xff] }
0x43b8   :  { %11641 = vtanh.f32 %v13489_v59 }
0x43c5   :  { %v11642_v46 = vpop.eup %11641 }
0x43c6   :  { %6327 = vrot.lane.b32.xlu0 %v11642_v46, %s14296_s16 }
0x43ca   :  { %5624 = vrot.lane.b32.xlu0 %v13357_v1, %s14298_s11  ;;  %v9981_v1 = vld [vmem:[%s12219_s9 + $0x28] sm:$0xff] }
0x4438   :  { %v6328_v44 = vpop.permute.xlu0 %6327 }
0x4439   :  { %v6330_v20 = vmul.f32 %v11640_v9, %v6328_v44 }
0x443b   :  { %6332 = vrot.lane.b32.xlu1 %v6330_v20, %s14299_s0 }
0x443c   :  { %v5625_v27 = vpop.permute.xlu0 %5624 }
0x443d   :  { %5627 = vst.msk [vmem:[%s12286_s17] sm:$0xff] %vm134_vm1, %v5625_v27 }
0x4444   :  { %v6708_v57 = vld [vmem:[%s12286_s17] sm:$0xff] }
0x4445   :  { %6717 = vrot.lane.b32.xlu0 %v6708_v57, %s14296_s16 }
0x44ad   :  { %v6333_v37 = vpop.permute.xlu1 %6332 }
0x44ae   :  { %9993 = vst.msk [vmem:[%s12022_s22 + $0x8] sm:$0xff] %vm129_vm2, %v6333_v37  ;;  %6341 = vst.msk [vmem:[#allocation2 + $0x28] sm:$0xff] %vm129_vm2, %v6333_v37  ;;  %11087 = vmatmul.mubr.msk.f32.vlgmr.msra.gmra.mxu0 %vm129_vm2, %v6333_v37 }
0x44af   :  { %11095 = vmatpush3.msra.mxu0 %v13268_v61  ;;  %11098 = vmatprep.mubr.msk.f32.mxu0 %vm11919_vm0, %v11917_v0  ;;  %v6632_v61 = vld [vmem:[%s11971_s10] sm:$0xff] }
0x44b0   :  { %11096 = vmatprep.subr.mxu0 %v11917_v0 }
0x44b1   :  { %11097 = vmatpush3.msra.mxu0 %v13276_v41  ;;  %v13525_v41 = vld [vmem:[%s12336_s26 + $0x18] sm:$0xff] }
0x44b2   :  { %11108 = vmatprep.subr.mxu0 %v11917_v0  ;;  %11099 = vmatmul.mubr.msk.f32.vlgmr.msra.gmra.mxu0 %vm129_vm2, %v9981_v1 }
0x44b3   :  { %11109 = vmatpush3.msra.mxu0 %v13282_v16  ;;  %11116 = vmatprep.mubr.msk.f32.mxu0 %vm11919_vm0, %v11917_v0  ;;  %v13532_v16 = vld [vmem:[%s12336_s26 + $0x10] sm:$0xff] }
0x44b4   :  { %11110 = vmatprep.subr.mxu0 %v11917_v0 }
0x44b5   :  { %11111 = vmatpush3.msra.mxu0 %v13289_v33  ;;  %v13537_v33 = vld [vmem:[%s12336_s26 + $0x8] sm:$0xff] }
0x44b6   :  { %11112 = vmatprep.subr.mxu0 %v11917_v0 }
0x44b7   :  { %11113 = vmatpush3.msra.mxu0 %v13294_v5  ;;  %v13542_v5 = vld [vmem:[%s12336_s26] sm:$0xff]  ;;  %v6718_v51 = vpop.permute.xlu0 %6717 }
0x44b8   :  { %11114 = vmatprep.subr.mxu0 %v11917_v0 }
0x44b9   :  { %11115 = vmatpush3.msra.mxu0 %v13299_v52  ;;  %v6481_v52 = vpop.f32.mrf.mxu1 }
0x44ba   :  { %11117 = vmatmul.mubr.msk.f32.vlgmr.msra.gmra.mxu0 %vm134_vm1, %v6632_v61  ;;  %11130 = vmatprep.subr.mxu0 %v11917_v0 }
0x44bb   :  { %11131 = vmatpush3.msra.mxu0 %v13525_v41  ;;  %11138 = vmatprep.mubr.msk.f32.mxu0 %vm11919_vm0, %v11917_v0  ;;  %v11093_v3 = vpop.f32.mrf.mxu1 }
0x44bc   :  { %11132 = vmatprep.subr.mxu0 %v11917_v0 }
0x44bd   :  { %11133 = vmatpush3.msra.mxu0 %v13532_v16 }
0x44be   :  { %11134 = vmatprep.subr.mxu0 %v11917_v0 }
0x44bf   :  { %11135 = vmatpush3.msra.mxu0 %v13537_v33 }
0x44c0   :  { %11136 = vmatprep.subr.mxu0 %v11917_v0 }
0x44c1   :  { %11137 = vmatpush3.msra.mxu0 %v13542_v5 }
0x44c2   :  { %11152 = vmatprep.subr.mxu0 %v11917_v0 }
0x456e   :  { %v6410_v60 = vpop.f32.mrf.mxu0 }
0x456f   :  { %v6411_v35 = vadd.f32 %v13316_v6, %v6410_v60  ;;  %v13557_v6 = vld [vmem:[%s12331_s30] sm:$0xff] }
0x4570   :  { %v11088_v14 = vpop.f32.mrf.mxu0 }
0x4571   :  { %11643 = vtanh.f32 %v6411_v35 }
0x4572   :  { %v6554_v17 = vpop.f32.mrf.mxu0 }
0x4573   :  { %v6555_v42 = vadd.f32 %v6554_v17, %v6481_v52 }
0x4574   :  { %v11100_v23 = vpop.f32.mrf.mxu0 }
0x457a   :  { %v6702_v18 = vpop.f32.mrf.mxu0 }
0x457c   :  { %v11118_v43 = vpop.f32.mrf.mxu0 }
0x457e   :  { %v11644_v12 = vpop.eup %11643 }
0x457f   :  { %11106 = vmatmul.mubr.msk.f32.vlgmr.msra.gmra.mxu1 %vm129_vm2, %v11644_v12 }
0x4580   :  { %11120 = vmatpush3.msra.mxu1 %v13321_v32  ;;  %11127 = vmatprep.mubr.msk.f32.mxu1 %vm11919_vm0, %v11917_v0  ;;  %v13564_v32 = vld [vmem:[%s11964_s6 + $0x18] sm:$0xff] }
0x4581   :  { %11121 = vmatprep.subr.mxu1 %v11917_v0 }
0x4582   :  { %11122 = vmatpush3.msra.mxu1 %v13328_v50  ;;  %v13571_v50 = vld [vmem:[%s11964_s6 + $0x10] sm:$0xff] }
0x4583   :  { %11123 = vmatprep.subr.mxu1 %v11917_v0 }
0x4584   :  { %11124 = vmatpush3.msra.mxu1 %v13333_v48  ;;  %v13576_v48 = vld [vmem:[%s11964_s6 + $0x8] sm:$0xff] }
0x4585   :  { %11125 = vmatprep.subr.mxu1 %v11917_v0 }
0x4586   :  { %11126 = vmatpush3.msra.mxu1 %v13557_v6 }
0x4587   :  { %11128 = vmatmul.mubr.msk.f32.vlgmr.msra.gmra.mxu1 %vm134_vm1, %v13402_v34  ;;  %11141 = vmatprep.subr.mxu1 %v11917_v0  ;;  %v13581_v34 = vld [vmem:[%s11964_s6] sm:$0xff] }
0x4588   :  { %11142 = vmatpush3.msra.mxu1 %v13564_v32  ;;  %11149 = vmatprep.mubr.msk.f32.mxu1 %vm11919_vm0, %v11917_v0 }
0x4589   :  { %11143 = vmatprep.subr.mxu1 %v11917_v0 }
0x458a   :  { %11144 = vmatpush3.msra.mxu1 %v13571_v50 }
0x458b   :  { %11145 = vmatprep.subr.mxu1 %v11917_v0 }
0x458c   :  { %11146 = vmatpush3.msra.mxu1 %v13576_v48 }
0x458d   :  { %11147 = vmatprep.subr.mxu1 %v11917_v0 }
0x458e   :  { %11148 = vmatpush3.msra.mxu1 %v13581_v34 }
0x458f   :  { %11163 = vmatprep.subr.mxu1 %v11917_v0 }
0x463f   :  { %v6627_v4 = vpop.f32.mrf.mxu1 }
0x4640   :  { %v6631_v22 = vadd.f32 %v6627_v4, %v6555_v42 }
0x4641   :  { %v11107_v25 = vpop.f32.mrf.mxu1 }
0x4642   :  { %v6706_v31 = vadd.f32 %v6702_v18, %v6631_v22  ;;  %v13647_v22 = vld [vmem:[%s12017_s18] sm:$0xff]  ;;  %v13653_v25 = vld [vmem:[%s12037_s25 + $0x30] sm:$0xff]  ;;  %s14300_s18 = sld [smem:[#allocation4_spill]] }
0x4644   :  { %v6707_v8 = vadd.f32 %v13352_v53, %v6706_v31  ;;  %v13659_v31 = vld [vmem:[%s12079_s3 + $0x8] sm:$0xff] }
0x4646   :  { %11645 = vtanh.f32 %v6707_v8  ;;  %v10000_v29 = vmul.f32 -1.442695, %v6707_v8  ;;  %v13666_v8 = vld [vmem:[%s12079_s3] sm:$0xff] }
0x4647   :  { %v6817_v28 = vpop.f32.mrf.mxu1 }
0x4648   :  { %11647 = vpow2.f32 %v10000_v29 }
0x4649   :  { %v11129_v38 = vpop.f32.mrf.mxu1 }
0x464a   :  { %v13673_v38 = vld [vmem:[%s12133_s27 + $0x8] sm:$0xff] }
0x4653   :  { %v11646_v36 = vpop.eup %11645 }
0x4654   :  { %6722 = vrot.lane.b32.xlu1 %v11646_v36, %s14295_s15  ;;  %v13680_v36 = vld [vmem:[%s12133_s27] sm:$0xff] }
0x4655   :  { %v11648_v26 = vpop.eup %11647 }
0x4656   :  { %v6712_v11 = vadd.f32 1.0, %v11648_v26  ;;  %v13685_v26 = vld [vmem:[%s12070_s29] ss:$0 sm:$0xff] }
0x4658   :  { %11649 = vrcp.f32 %v6712_v11 }
0x4665   :  { %v11650_v7 = vpop.eup %11649 }
0x4666   :  { %v6720_v53 = vmul.f32 %v11650_v7, %v6718_v51 }
0x46c6   :  { %v6723_v47 = vpop.permute.xlu1 %6722 }
0x46c7   :  { %v6725_v56 = vmul.f32 %v11650_v7, %v6723_v47 }
0x46c9   :  { %6727 = vrot.lane.b32.xlu1 %v6725_v56, %s14296_s16 }
0x473b   :  { %v6728_v63 = vpop.permute.xlu1 %6727 }
0x473c   :  { %v13588_v55 = vadd.f32 %v6728_v63, %v6720_v53 }
0x473e   :  { %11651 = vtanh.f32 %v13588_v55 }
0x474b   :  { %v11652_v49 = vpop.eup %11651 }
0x474c   :  { %6733 = vrot.lane.b32.xlu0 %v11652_v49, %s14295_s15  ;;  %v13690_v49 = vld [vmem:[%s12128_s21 + $0x8] sm:$0xff] }
0x4750   :  { %5810 = vrot.lane.b32.xlu0 %v13387_v15, %s14298_s11  ;;  %v13610_v15 = vld [vmem:[%s12012_s14 + $0x10] sm:$0xff]  ;;  %s11954_s14 = smov 28  }
0x4751   :  { %s14246_s29 = sld [smem:[%s14300_s18 + %s11954_s14]]  }
0x47be   :  { %v6734_v19 = vpop.permute.xlu0 %6733 }
0x47bf   :  { %v6736_v39 = vmul.f32 %v11650_v7, %v6734_v19  ;;  %v13697_v19 = vld [vmem:[%s12128_s21] sm:$0xff]  ;;  %s11949_s21 = smov 23  }
0x47c1   :  { %6738 = vrot.lane.b32.xlu1 %v6736_v39, %s14296_s16  ;;  %v10016_v39 = vld [vmem:[%s12022_s22 + $0x8] sm:$0xff] }
0x47c2   :  { %v5811_v9 = vpop.permute.xlu0 %5810 }
0x47c3   :  { %9979 = vst.msk [vmem:[%s12286_s17 + $0x8] sm:$0xff] %vm134_vm1, %v5811_v9 }
0x47ca   :  { %v10004_v40 = vld [vmem:[%s12286_s17 + $0x8] sm:$0xff] }
0x47cb   :  { %6903 = vrot.lane.b32.xlu0 %v10004_v40, %s14296_s16 }
0x4833   :  { %v6739_v10 = vpop.permute.xlu1 %6738 }
0x4834   :  { %6741 = vst.msk [vmem:[%s11971_s10] sm:$0xff] %vm134_vm1, %v6739_v10  ;;  %11139 = vmatmul.mubr.msk.f32.vlgmr.msra.gmra.mxu0 %vm134_vm1, %v6739_v10 }
0x4835   :  { %11153 = vmatpush3.msra.mxu0 %v13603_v2  ;;  %11160 = vmatprep.mubr.msk.f32.mxu0 %vm11919_vm0, %v11917_v0 }
0x4836   :  { %11154 = vmatprep.subr.mxu0 %v11917_v0 }
0x4837   :  { %11155 = vmatpush3.msra.mxu0 %v13610_v15 }
0x4838   :  { %11156 = vmatprep.subr.mxu0 %v11917_v0 }
0x4839   :  { %11157 = vmatpush3.msra.mxu0 %v13615_v24 }
0x483a   :  { %11158 = vmatprep.subr.mxu0 %v11917_v0 }
0x483b   :  { %11159 = vmatpush3.msra.mxu0 %v13620_v58 }
0x483c   :  { %11175 = vmatprep.subr.mxu0 %v11917_v0 }
0x483d   :  { %v6904_v35 = vpop.permute.xlu0 %6903 }
0x48f4   :  { %v6889_v46 = vpop.f32.mrf.mxu0 }
0x48f5   :  { %v6890_v44 = vadd.f32 %v6889_v46, %v6817_v28  ;;  %v7159_v28 = vld [vmem:[%s12022_s22] sm:$0xff] }
0x48f6   :  { %v11140_v20 = vpop.f32.mrf.mxu0 }
0x48f7   :  { %v6893_v27 = vadd.f32 %v13382_v21, %v6890_v44  ;;  %v13710_v20 = vld [vmem:[%s12112_s13] ss:$0 sm:$0xff] }
0x48f9   :  { %11653 = vtanh.f32 %v6893_v27  ;;  %v10005_v37 = vmul.f32 -1.442695, %v6893_v27 }
0x48fb   :  { %11655 = vpow2.f32 %v10005_v37 }
0x4906   :  { %v11654_v57 = vpop.eup %11653 }
0x4907   :  { %6908 = vrot.lane.b32.xlu1 %v11654_v57, %s14295_s15 }
0x4908   :  { %v11656_v1 = vpop.eup %11655 }
0x4909   :  { %v6898_v61 = vadd.f32 1.0, %v11656_v1 }
0x490b   :  { %11657 = vrcp.f32 %v6898_v61 }
0x4918   :  { %v11658_v52 = vpop.eup %11657 }
0x4919   :  { %v6906_v14 = vmul.f32 %v11658_v52, %v6904_v35 }
0x4979   :  { %v6909_v3 = vpop.permute.xlu1 %6908 }
0x497a   :  { %v6911_v60 = vmul.f32 %v11658_v52, %v6909_v3 }
0x497c   :  { %6913 = vrot.lane.b32.xlu1 %v6911_v60, %s14296_s16 }
0x49ee   :  { %v6914_v21 = vpop.permute.xlu1 %6913 }
0x49ef   :  { %v13627_v17 = vadd.f32 %v6914_v21, %v6906_v14 }
0x49f1   :  { %11659 = vtanh.f32 %v13627_v17 }
0x49fe   :  { %v11660_v23 = vpop.eup %11659 }
0x49ff   :  { %6919 = vrot.lane.b32.xlu0 %v11660_v23, %s14295_s15 }
0x4a03   :  { %6151 = vrot.lane.b32.xlu0 %v13454_v13, %s11946_s28 }
0x4a71   :  { %v6920_v18 = vpop.permute.xlu0 %6919 }
0x4a72   :  { %v6922_v43 = vmul.f32 %v11658_v52, %v6920_v18 }
0x4a74   :  { %6924 = vrot.lane.b32.xlu1 %v6922_v43, %s14296_s16 }
0x4a75   :  { %v6152_v12 = vpop.permute.xlu0 %6151 }
0x4a76   :  { %6154 = vst.msk [vmem:[%s12101_s8] sm:$0xff] %vm129_vm2, %v6152_v12 }
0x4a7d   :  { %v7235_v42 = vld [vmem:[%s12101_s8] sm:$0xff] }
0x4a7e   :  { %7244 = vrot.lane.b32.xlu0 %v7235_v42, %s14297_s7 }
0x4ae6   :  { %v6925_v4 = vpop.permute.xlu1 %6924 }
0x4ae7   :  { %10006 = vst.msk [vmem:[%s11971_s10 + $0x8] sm:$0xff] %vm134_vm1, %v6925_v4  ;;  %6933 = vst.msk [vmem:[#allocation3 + $0x28] sm:$0xff] %vm134_vm1, %v6925_v4 }
0x4aee   :  { %v13642_v13 = vld [vmem:[%s11971_s10 + $0x8] sm:$0xff] }
0x4aef   :  { %11150 = vmatmul.mubr.msk.f32.vlgmr.msra.gmra.mxu1 %vm134_vm1, %v13642_v13 }
0x4af0   :  { %11164 = vmatpush3.msra.mxu1 %v13647_v22  ;;  %11165 = vmatprep.mubr.msk.f32.mxu1 %vm11919_vm0, %v11917_v0  ;;  %v7245_v60 = vpop.permute.xlu0 %7244 }
0x4af1   :  { %11168 = vmatprep.subr.mxu1 %v11917_v0 }
0x4af3   :  { %11166 = vmatmul.mubr.msk.f32.vlgmr.msra.gmra.mxu1 %vm337_vm3, %v13653_v25 }
0x4af4   :  { %11169 = vmatpush3.msra.mxu1 %v13659_v31  ;;  %11172 = vmatprep.mubr.msk.f32.mxu1 %vm11919_vm0, %v11917_v0 }
0x4af5   :  { %11170 = vmatprep.subr.mxu1 %v11917_v0 }
0x4af6   :  { %11171 = vmatpush3.msra.mxu1 %v13666_v8 }
0x4af7   :  { %11173 = vmatmul.mubr.msk.f32.vlgmr.msra.gmra.mxu1 %vm129_vm2, %v7159_v28  ;;  %11182 = vmatprep.subr.mxu1 %v11917_v0  ;;  %v13730_v28 = vld [vmem:[%s12214_s1] sm:$0xff] }
0x4af8   :  { %11183 = vmatpush3.msra.mxu1 %v13673_v38  ;;  %11186 = vmatprep.mubr.msk.f32.mxu1 %vm11919_vm0, %v11917_v0 }
0x4af9   :  { %11184 = vmatprep.subr.mxu1 %v11917_v0 }
0x4afa   :  { %11185 = vmatpush3.msra.mxu1 %v13680_v36 }
0x4afb   :  { %11196 = vmatprep.subr.mxu1 %v11917_v0 }
0x4baf   :  { %v7008_v29 = vpop.f32.mrf.mxu1 }
0x4bb0   :  { %v7009_v11 = vadd.f32 %v13685_v26, %v7008_v29 }
0x4bb1   :  { %v11151_v7 = vpop.f32.mrf.mxu1 }
0x4bb2   :  { %11661 = vtanh.f32 %v7009_v11  ;;  %v13745_v7 = vld [vmem:[%s12171_s5] ss:$0 sm:$0xff]  ;;  %s9826_s5 = sld [smem:[%s14300_s18 + %s11949_s21]]  }
0x4bb3   :  { %v7155_v47 = vpop.f32.mrf.mxu1 }
0x4bb5   :  { %v11167_v56 = vpop.f32.mrf.mxu1 }
0x4bb7   :  { %v7229_v51 = vpop.f32.mrf.mxu1 }
0x4bb9   :  { %v11174_v53 = vpop.f32.mrf.mxu1 }
0x4bbf   :  { %v11662_v63 = vpop.eup %11661 }
0x4bc0   :  { %11161 = vmatmul.mubr.msk.f32.vlgmr.msra.gmra.mxu0 %vm134_vm1, %v11662_v63 }
0x4bc1   :  { %11176 = vmatpush3.msra.mxu0 %v13690_v49  ;;  %11179 = vmatprep.mubr.msk.f32.mxu0 %vm11919_vm0, %v11917_v0 }
0x4bc2   :  { %11177 = vmatprep.subr.mxu0 %v11917_v0 }
0x4bc3   :  { %11178 = vmatpush3.msra.mxu0 %v13697_v19 }
0x4bc4   :  { %11180 = vmatmul.mubr.msk.f32.vlgmr.msra.gmra.mxu0 %vm129_vm2, %v10016_v39  ;;  %11189 = vmatprep.subr.mxu0 %v11917_v0 }
0x4bc5   :  { %11190 = vmatpush3.msra.mxu0 %v13440_v54  ;;  %11193 = vmatprep.mubr.msk.f32.mxu0 %vm11919_vm0, %v11917_v0 }
0x4bc6   :  { %11191 = vmatprep.subr.mxu0 %v11917_v0 }
0x4bc7   :  { %11192 = vmatpush3.msra.mxu0 %v13447_v30 }
0x4bc8   :  { %11201 = vmatprep.subr.mxu0 %v11917_v0 }
0x4c80   :  { %v7082_v9 = vpop.f32.mrf.mxu0 }
0x4c81   :  { %v7156_v40 = vadd.f32 %v7155_v47, %v7082_v9 }
0x4c82   :  { %v11162_v10 = vpop.f32.mrf.mxu0 }
0x4c83   :  { %v7233_v46 = vadd.f32 %v7229_v51, %v7156_v40 }
0x4c84   :  { %v7344_v44 = vpop.f32.mrf.mxu0 }
0x4c85   :  { %v7234_v27 = vadd.f32 %v13710_v20, %v7233_v46 }
0x4c86   :  { %v11181_v57 = vpop.f32.mrf.mxu0 }
0x4c87   :  { %11663 = vtanh.f32 %v7234_v27  ;;  %v10015_v37 = vmul.f32 -1.442695, %v7234_v27 }
0x4c89   :  { %11665 = vpow2.f32 %v10015_v37 }
0x4c94   :  { %v11664_v54 = vpop.eup %11663 }
0x4c95   :  { %7249 = vrot.lane.b32.xlu1 %v11664_v54, %s14298_s11 }
0x4c96   :  { %v11666_v1 = vpop.eup %11665 }
0x4c97   :  { %v7239_v30 = vadd.f32 1.0, %v11666_v1  ;;  %v10009_v1 = vld [vmem:[%s12219_s9 + $0x30] sm:$0xff] }
0x4c99   :  { %11667 = vrcp.f32 %v7239_v30  ;;  %v13774_v30 = vld [vmem:[%s12208_s23] sm:$0xff] }
0x4ca6   :  { %v11668_v61 = vpop.eup %11667 }
0x4ca7   :  { %v7247_v35 = vmul.f32 %v11668_v61, %v7245_v60  ;;  %v13797_v60 = vld [vmem:[%s12230_s20] sm:$0xff] }
0x4d07   :  { %v7250_v52 = vpop.permute.xlu1 %7249 }
0x4d08   :  { %v7252_v3 = vmul.f32 %v11668_v61, %v7250_v52  ;;  %v13787_v52 = vld [vmem:[%s12230_s20 + $0x10] sm:$0xff] }
0x4d0a   :  { %7254 = vrot.lane.b32.xlu1 %v7252_v3, %s14297_s7  ;;  %v13792_v3 = vld [vmem:[%s12230_s20 + $0x8] sm:$0xff] }
0x4d7c   :  { %v7255_v14 = vpop.permute.xlu1 %7254 }
0x4d7d   :  { %v13715_v21 = vadd.f32 %v7255_v14, %v7247_v35  ;;  %v7751_v35 = vld [vmem:[%s11971_s10] sm:$0xff] }
0x4d7f   :  { %11669 = vtanh.f32 %v13715_v21 }
0x4d8c   :  { %v11670_v23 = vpop.eup %11669 }
0x4d8d   :  { %7260 = vrot.lane.b32.xlu0 %v11670_v23, %s14296_s16 }
0x4d91   :  { %6337 = vrot.lane.b32.xlu0 %v13489_v59, %s11946_s28 }
0x4dff   :  { %v7261_v18 = vpop.permute.xlu0 %7260 }
0x4e00   :  { %v7263_v43 = vmul.f32 %v11668_v61, %v7261_v18  ;;  %v13780_v61 = vld [vmem:[%s12230_s20 + $0x18] sm:$0xff]  ;;  %v13814_v18 = vld [vmem:[%s12305_s4] ss:$0 sm:$0xff]  ;;  %s11951_s20 = smov 24  }
0x4e02   :  { %7265 = vrot.lane.b32.xlu1 %v7263_v43, %s14299_s0 }
0x4e03   :  { %v6338_v12 = vpop.permute.xlu0 %6337 }
0x4e04   :  { %9994 = vst.msk [vmem:[%s12101_s8 + $0x8] sm:$0xff] %vm129_vm2, %v6338_v12 }
0x4e0b   :  { %v10019_v42 = vld [vmem:[%s12101_s8 + $0x8] sm:$0xff] }
0x4e0c   :  { %7430 = vrot.lane.b32.xlu0 %v10019_v42, %s14297_s7 }
0x4e74   :  { %v7266_v4 = vpop.permute.xlu1 %7265 }
0x4e75   :  { %7268 = vst.msk [vmem:[%s12022_s22] sm:$0xff] %vm129_vm2, %v7266_v4  ;;  %11187 = vmatmul.mubr.msk.f32.vlgmr.msra.gmra.mxu1 %vm129_vm2, %v7266_v4 }
0x4e76   :  { %11197 = vmatpush3.msra.mxu1 %v13730_v28  ;;  %11198 = vmatprep.mubr.msk.f32.mxu1 %vm11919_vm0, %v11917_v0 }
0x4e77   :  { %11208 = vmatprep.subr.mxu1 %v11917_v0 }
0x4e79   :  { %11199 = vmatmul.mubr.msk.f32.vlgmr.msra.gmra.mxu1 %vm337_vm3, %v13653_v25 }
0x4e7a   :  { %11209 = vmatpush3.msra.mxu1 %v13475_v62  ;;  %11212 = vmatprep.mubr.msk.f32.mxu1 %vm11919_vm0, %v11917_v0 }
0x4e7b   :  { %11210 = vmatprep.subr.mxu1 %v11917_v0 }
0x4e7c   :  { %11211 = vmatpush3.msra.mxu1 %v13482_v45 }
0x4e7d   :  { %11226 = vmatprep.subr.mxu1 %v11917_v0 }
0x4e7e   :  { %v7431_v39 = vpop.permute.xlu0 %7430 }
0x4f35   :  { %v7416_v59 = vpop.f32.mrf.mxu1 }
0x4f36   :  { %v7417_v29 = vadd.f32 %v7416_v59, %v7344_v44 }
0x4f37   :  { %v11188_v11 = vpop.f32.mrf.mxu1 }
0x4f38   :  { %v7420_v47 = vadd.f32 %v13745_v7, %v7417_v29  ;;  %v13826_v29 = vld [vmem:[%s12331_s30 + $0x10] sm:$0xff]  ;;  %v13831_v11 = vld [vmem:[%s12331_s30 + $0x8] sm:$0xff] }
0x4f39   :  { %v7600_v14 = vpop.f32.mrf.mxu1 }
0x4f3a   :  { %11671 = vtanh.f32 %v7420_v47  ;;  %v10020_v62 = vmul.f32 -1.442695, %v7420_v47 }
0x4f3c   :  { %11673 = vpow2.f32 %v10020_v62  ;;  %v13850_v62 = vld [vmem:[%s12317_s24] ss:$0 sm:$0xff]  ;;  %s9827_s24 = sld [smem:[%s14300_s18 + %s11951_s20]]  }
0x4f47   :  { %v11672_v25 = vpop.eup %11671 }
0x4f48   :  { %7435 = vrot.lane.b32.xlu1 %v11672_v25, %s14298_s11 }
0x4f49   :  { %v11674_v56 = vpop.eup %11673 }
0x4f4a   :  { %v7425_v51 = vadd.f32 1.0, %v11674_v56 }
0x4f4c   :  { %11675 = vrcp.f32 %v7425_v51 }
0x4f59   :  { %v11676_v53 = vpop.eup %11675 }
0x4f5a   :  { %v7433_v9 = vmul.f32 %v11676_v53, %v7431_v39 }
0x4fba   :  { %v7436_v45 = vpop.permute.xlu1 %7435 }
0x4fbb   :  { %v7438_v63 = vmul.f32 %v11676_v53, %v7436_v45 }
0x4fbd   :  { %7440 = vrot.lane.b32.xlu1 %v7438_v63, %s14297_s7 }
0x502f   :  { %v7441_v40 = vpop.permute.xlu1 %7440 }
0x5030   :  { %v13750_v10 = vadd.f32 %v7441_v40, %v7433_v9 }
0x5032   :  { %11677 = vtanh.f32 %v13750_v10 }
0x503f   :  { %v11678_v46 = vpop.eup %11677 }
0x5040   :  { %7446 = vrot.lane.b32.xlu0 %v11678_v46, %s14296_s16 }
0x5044   :  { %6743 = vrot.lane.b32.xlu0 %v13588_v55, %s14298_s11  ;;  %v13766_v55 = vld [vmem:[%s12208_s23 + $0x8] sm:$0xff] }
0x50b2   :  { %v7447_v44 = vpop.permute.xlu0 %7446 }
0x50b3   :  { %v7449_v27 = vmul.f32 %v11676_v53, %v7447_v44 }
0x50b5   :  { %7451 = vrot.lane.b32.xlu1 %v7449_v27, %s14299_s0 }
0x50b6   :  { %v6744_v57 = vpop.permute.xlu0 %6743 }
0x50b7   :  { %6746 = vst.msk [vmem:[%s12286_s17] sm:$0xff] %vm134_vm1, %v6744_v57 }
0x50be   :  { %v7827_v54 = vld [vmem:[%s12286_s17] sm:$0xff] }
0x50bf   :  { %7836 = vrot.lane.b32.xlu0 %v7827_v54, %s14296_s16 }
0x5127   :  { %v7452_v37 = vpop.permute.xlu1 %7451 }
0x5128   :  { %10021 = vst.msk [vmem:[%s12022_s22 + $0x8] sm:$0xff] %vm129_vm2, %v7452_v37  ;;  %7460 = vst.msk [vmem:[#allocation2 + $0x30] sm:$0xff] %vm129_vm2, %v7452_v37  ;;  %11194 = vmatmul.mubr.msk.f32.vlgmr.msra.gmra.mxu0 %vm129_vm2, %v7452_v37 }
0x5129   :  { %11202 = vmatpush3.msra.mxu0 %v13766_v55  ;;  %11205 = vmatprep.mubr.msk.f32.mxu0 %vm11919_vm0, %v11917_v0 }
0x512a   :  { %11203 = vmatprep.subr.mxu0 %v11917_v0 }
0x512b   :  { %11204 = vmatpush3.msra.mxu0 %v13774_v30 }
0x512c   :  { %11215 = vmatprep.subr.mxu0 %v11917_v0  ;;  %11206 = vmatmul.mubr.msk.f32.vlgmr.msra.gmra.mxu0 %vm129_vm2, %v10009_v1 }
0x512d   :  { %11216 = vmatpush3.msra.mxu0 %v13780_v61  ;;  %11223 = vmatprep.mubr.msk.f32.mxu0 %vm11919_vm0, %v11917_v0 }
0x512e   :  { %11217 = vmatprep.subr.mxu0 %v11917_v0 }
0x512f   :  { %11218 = vmatpush3.msra.mxu0 %v13787_v52 }
0x5130   :  { %11219 = vmatprep.subr.mxu0 %v11917_v0 }
0x5131   :  { %11220 = vmatpush3.msra.mxu0 %v13792_v3  ;;  %v7837_v40 = vpop.permute.xlu0 %7836 }
0x5132   :  { %11221 = vmatprep.subr.mxu0 %v11917_v0 }
0x5133   :  { %11222 = vmatpush3.msra.mxu0 %v13797_v60 }
0x5134   :  { %11224 = vmatmul.mubr.msk.f32.vlgmr.msra.gmra.mxu0 %vm134_vm1, %v7751_v35  ;;  %11237 = vmatprep.subr.mxu0 %v11917_v0 }
0x5135   :  { %11238 = vmatpush3.msra.mxu0 %v13525_v41  ;;  %11245 = vmatprep.mubr.msk.f32.mxu0 %vm11919_vm0, %v11917_v0  ;;  %v11200_v41 = vpop.f32.mrf.mxu1 }
0x5136   :  { %11239 = vmatprep.subr.mxu0 %v11917_v0 }
0x5137   :  { %11240 = vmatpush3.msra.mxu0 %v13532_v16 }
0x5138   :  { %11241 = vmatprep.subr.mxu0 %v11917_v0 }
0x5139   :  { %11242 = vmatpush3.msra.mxu0 %v13537_v33 }
0x513a   :  { %11243 = vmatprep.subr.mxu0 %v11917_v0 }
0x513b   :  { %11244 = vmatpush3.msra.mxu0 %v13542_v5  ;;  %v13819_v5 = vld [vmem:[%s12331_s30 + $0x18] sm:$0xff] }
0x513c   :  { %11259 = vmatprep.subr.mxu0 %v11917_v0 }
0x51e8   :  { %v7529_v23 = vpop.f32.mrf.mxu0 }
0x51e9   :  { %v7530_v43 = vadd.f32 %v13814_v18, %v7529_v23  ;;  %v13880_v23 = vld [vmem:[%s12410_s19] ss:$0 sm:$0xff] }
0x51ea   :  { %v11195_v16 = vpop.f32.mrf.mxu0 }
0x51eb   :  { %11679 = vtanh.f32 %v7530_v43 }
0x51ec   :  { %v7673_v12 = vpop.f32.mrf.mxu0 }
0x51ee   :  { %v11207_v33 = vpop.f32.mrf.mxu0 }
0x51f4   :  { %v7821_v42 = vpop.f32.mrf.mxu0 }
0x51f6   :  { %v11225_v4 = vpop.f32.mrf.mxu0 }
0x51f8   :  { %v11680_v59 = vpop.eup %11679 }
0x51f9   :  { %11213 = vmatmul.mubr.msk.f32.vlgmr.msra.gmra.mxu1 %vm129_vm2, %v11680_v59 }
0x51fa   :  { %11227 = vmatpush3.msra.mxu1 %v13819_v5  ;;  %11234 = vmatprep.mubr.msk.f32.mxu1 %vm11919_vm0, %v11917_v0 }
0x51fb   :  { %11228 = vmatprep.subr.mxu1 %v11917_v0 }
0x51fc   :  { %11229 = vmatpush3.msra.mxu1 %v13826_v29 }
0x51fd   :  { %11230 = vmatprep.subr.mxu1 %v11917_v0 }
0x51fe   :  { %11231 = vmatpush3.msra.mxu1 %v13831_v11 }
0x51ff   :  { %11232 = vmatprep.subr.mxu1 %v11917_v0 }
0x5200   :  { %11233 = vmatpush3.msra.mxu1 %v13557_v6  ;;  %v7674_v6 = vadd.f32 %v7673_v12, %v7600_v14 }
0x5201   :  { %11235 = vmatmul.mubr.msk.f32.vlgmr.msra.gmra.mxu1 %vm134_vm1, %v13642_v13  ;;  %11248 = vmatprep.subr.mxu1 %v11917_v0 }
0x5202   :  { %11249 = vmatpush3.msra.mxu1 %v13564_v32  ;;  %11256 = vmatprep.mubr.msk.f32.mxu1 %vm11919_vm0, %v11917_v0 }
0x5203   :  { %11250 = vmatprep.subr.mxu1 %v11917_v0 }
0x5204   :  { %11251 = vmatpush3.msra.mxu1 %v13571_v50 }
0x5205   :  { %11252 = vmatprep.subr.mxu1 %v11917_v0 }
0x5206   :  { %11253 = vmatpush3.msra.mxu1 %v13576_v48 }
0x5207   :  { %11254 = vmatprep.subr.mxu1 %v11917_v0 }
0x5208   :  { %11255 = vmatpush3.msra.mxu1 %v13581_v34 }
0x5209   :  { %11270 = vmatprep.subr.mxu1 %v11917_v0 }
0x52b9   :  { %v7746_v13 = vpop.f32.mrf.mxu1 }
0x52ba   :  { %v7750_v32 = vadd.f32 %v7746_v13, %v7674_v6 }
0x52bb   :  { %v11214_v47 = vpop.f32.mrf.mxu1 }
0x52bc   :  { %v7825_v25 = vadd.f32 %v7821_v42, %v7750_v32 }
0x52be   :  { %v7826_v56 = vadd.f32 %v13850_v62, %v7825_v25 }
0x52c0   :  { %11681 = vtanh.f32 %v7826_v56  ;;  %v10028_v48 = vmul.f32 -1.442695, %v7826_v56 }
0x52c1   :  { %v7936_v50 = vpop.f32.mrf.mxu1 }
0x52c2   :  { %11683 = vpow2.f32 %v10028_v48 }
0x52c3   :  { %v11236_v51 = vpop.f32.mrf.mxu1 }
0x52cd   :  { %v11682_v53 = vpop.eup %11681 }
0x52ce   :  { %7841 = vrot.lane.b32.xlu1 %v11682_v53, %s14295_s15 }
0x52cf   :  { %v11684_v34 = vpop.eup %11683 }
0x52d0   :  { %v7831_v45 = vadd.f32 1.0, %v11684_v34 }
0x52d2   :  { %11685 = vrcp.f32 %v7831_v45 }
0x52df   :  { %v11686_v63 = vpop.eup %11685 }
0x52e0   :  { %v7839_v46 = vmul.f32 %v11686_v63, %v7837_v40 }
0x5340   :  { %v7842_v39 = vpop.permute.xlu1 %7841 }
0x5341   :  { %v7844_v9 = vmul.f32 %v11686_v63, %v7842_v39 }
0x5343   :  { %7846 = vrot.lane.b32.xlu1 %v7844_v9, %s14296_s16 }
0x53b5   :  { %v7847_v44 = vpop.permute.xlu1 %7846 }
0x53b6   :  { %v13855_v27 = vadd.f32 %v7847_v44, %v7839_v46 }
0x53b8   :  { %11687 = vtanh.f32 %v13855_v27 }
0x53c5   :  { %v11688_v57 = vpop.eup %11687 }
0x53c6   :  { %7852 = vrot.lane.b32.xlu0 %v11688_v57, %s14295_s15 }
0x53ca   :  { %6929 = vrot.lane.b32.xlu0 %v13627_v17, %s14298_s11 }
0x5438   :  { %v7853_v54 = vpop.permute.xlu0 %7852 }
0x5439   :  { %v7855_v37 = vmul.f32 %v11686_v63, %v7853_v54 }
0x543b   :  { %7857 = vrot.lane.b32.xlu1 %v7855_v37, %s14296_s16 }
0x543c   :  { %v6930_v1 = vpop.permute.xlu0 %6929 }
0x543d   :  { %10007 = vst.msk [vmem:[%s12286_s17 + $0x8] sm:$0xff] %vm134_vm1, %v6930_v1 }
0x5444   :  { %v10032_v35 = vld [vmem:[%s12286_s17 + $0x8] sm:$0xff] }
0x5445   :  { %8022 = vrot.lane.b32.xlu0 %v10032_v35, %s14296_s16 }
0x54ad   :  { %v7858_v14 = vpop.permute.xlu1 %7857 }
0x54ae   :  { %7860 = vst.msk [vmem:[%s11971_s10] sm:$0xff] %vm134_vm1, %v7858_v14  ;;  %11246 = vmatmul.mubr.msk.f32.vlgmr.msra.gmra.mxu0 %vm134_vm1, %v7858_v14 }
0x54af   :  { %11260 = vmatpush3.msra.mxu0 %v13603_v2  ;;  %11267 = vmatprep.mubr.msk.f32.mxu0 %vm11919_vm0, %v11917_v0 }
0x54b0   :  { %11261 = vmatprep.subr.mxu0 %v11917_v0 }
0x54b1   :  { %11262 = vmatpush3.msra.mxu0 %v13610_v15 }
0x54b2   :  { %11263 = vmatprep.subr.mxu0 %v11917_v0 }
0x54b3   :  { %11264 = vmatpush3.msra.mxu0 %v13615_v24 }
0x54b4   :  { %11265 = vmatprep.subr.mxu0 %v11917_v0 }
0x54b5   :  { %11266 = vmatpush3.msra.mxu0 %v13620_v58 }
0x54b6   :  { %11282 = vmatprep.subr.mxu0 %v11917_v0 }
0x54b7   :  { %v8023_v4 = vpop.permute.xlu0 %8022 }
0x556e   :  { %v8008_v17 = vpop.f32.mrf.mxu0 }
0x556f   :  { %v8009_v41 = vadd.f32 %v8008_v17, %v7936_v50 }
0x5570   :  { %v11247_v2 = vpop.f32.mrf.mxu0 }
0x5571   :  { %v8012_v43 = vadd.f32 %v13880_v23, %v8009_v41 }
0x5573   :  { %11689 = vtanh.f32 %v8012_v43  ;;  %v10033_v15 = vmul.f32 -1.442695, %v8012_v43 }
0x5575   :  { %11691 = vpow2.f32 %v10033_v15 }
0x5580   :  { %v11690_v16 = vpop.eup %11689 }
0x5581   :  { %8027 = vrot.lane.b32.xlu1 %v11690_v16, %s14295_s15 }
0x5582   :  { %v11692_v24 = vpop.eup %11691 }
0x5583   :  { %v8017_v12 = vadd.f32 1.0, %v11692_v24 }
0x5585   :  { %11693 = vrcp.f32 %v8017_v12 }
0x5592   :  { %v11694_v33 = vpop.eup %11693 }
0x5593   :  { %v8025_v59 = vmul.f32 %v11694_v33, %v8023_v4 }
0x55f3   :  { %v8028_v58 = vpop.permute.xlu1 %8027 }
0x55f4   :  { %v8030_v42 = vmul.f32 %v11694_v33, %v8028_v58 }
0x55f6   :  { %8032 = vrot.lane.b32.xlu1 %v8030_v42, %s14296_s16 }
0x5668   :  { %v8033_v6 = vpop.permute.xlu1 %8032 }
0x5669   :  { %v13885_v13 = vadd.f32 %v8033_v6, %v8025_v59  ;;  %v11911_v59 = vld [vmem:[%s12236_s2] sm:$0xff] }
0x566b   :  { %11695 = vtanh.f32 %v13885_v13 }
0x5678   :  { %v11696_v32 = vpop.eup %11695 }
0x5679   :  { %8038 = vrot.lane.b32.xlu0 %v11696_v32, %s14295_s15 }
0x567d   :  { %7270 = vrot.lane.b32.xlu0 %v13715_v21, %s11946_s28  ;;  %v13908_v21 = vld [vmem:[%s12037_s25 + $0x38] sm:$0xff]  ;;  %s11948_s25 = smov 14  }
0x567e   :  { %s9817_s13 = sld [smem:[%s14300_s18 + %s11948_s25]]  }
0x56eb   :  { %v8039_v47 = vpop.permute.xlu0 %8038 }
0x56ec   :  { %v8041_v25 = vmul.f32 %v11694_v33, %v8039_v47 }
0x56ee   :  { %8043 = vrot.lane.b32.xlu1 %v8041_v25, %s14296_s16 }
0x56ef   :  { %v7271_v56 = vpop.permute.xlu0 %7270 }
0x56f0   :  { %7273 = vst.msk [vmem:[%s12101_s8] sm:$0xff] %vm129_vm2, %v7271_v56 }
0x56f7   :  { %v8354_v50 = vld [vmem:[%s12101_s8] sm:$0xff] }
0x56f8   :  { %8363 = vrot.lane.b32.xlu0 %v8354_v50, %s14297_s7 }
0x5760   :  { %v8044_v51 = vpop.permute.xlu1 %8043 }
0x5761   :  { %10034 = vst.msk [vmem:[%s11971_s10 + $0x8] sm:$0xff] %vm134_vm1, %v8044_v51  ;;  %8052 = vst.msk [vmem:[#allocation3 + $0x30] sm:$0xff] %vm134_vm1, %v8044_v51 }
0x5768   :  { %v13900_v53 = vld [vmem:[%s11971_s10 + $0x8] sm:$0xff] }
0x5769   :  { %11257 = vmatmul.mubr.msk.f32.vlgmr.msra.gmra.mxu1 %vm134_vm1, %v13900_v53 }
0x576a   :  { %11271 = vmatpush3.msra.mxu1 %v13647_v22  ;;  %11272 = vmatprep.mubr.msk.f32.mxu1 %vm11919_vm0, %v11917_v0  ;;  %v8278_v22 = vld [vmem:[%s12022_s22] sm:$0xff]  ;;  %v8364_v43 = vpop.permute.xlu0 %8363 }
0x576b   :  { %11275 = vmatprep.subr.mxu1 %v11917_v0 }
0x576d   :  { %11273 = vmatmul.mubr.msk.f32.vlgmr.msra.gmra.mxu1 %vm337_vm3, %v13908_v21 }
0x576e   :  { %11276 = vmatpush3.msra.mxu1 %v13659_v31  ;;  %11279 = vmatprep.mubr.msk.f32.mxu1 %vm11919_vm0, %v11917_v0 }
0x576f   :  { %11277 = vmatprep.subr.mxu1 %v11917_v0 }
0x5770   :  { %11278 = vmatpush3.msra.mxu1 %v13666_v8 }
0x5771   :  { %11280 = vmatmul.mubr.msk.f32.vlgmr.msra.gmra.mxu1 %vm129_vm2, %v8278_v22  ;;  %11289 = vmatprep.subr.mxu1 %v11917_v0 }
0x5772   :  { %11290 = vmatpush3.msra.mxu1 %v13673_v38  ;;  %11293 = vmatprep.mubr.msk.f32.mxu1 %vm11919_vm0, %v11917_v0 }
0x5773   :  { %11291 = vmatprep.subr.mxu1 %v11917_v0 }
0x5774   :  { %11292 = vmatpush3.msra.mxu1 %v13680_v36  ;;  %v10044_v36 = vld [vmem:[%s12022_s22 + $0x8] sm:$0xff] }
0x5775   :  { %11303 = vmatprep.subr.mxu1 %v11917_v0 }
0x5829   :  { %v8127_v31 = vpop.f32.mrf.mxu1 }
0x582a   :  { %v8128_v8 = vadd.f32 %v13685_v26, %v8127_v31  ;;  %v11908_v26 = vld [vmem:[%s12185_s12 + $0x8] sm:$0xff] }
0x582b   :  { %v11258_v48 = vpop.f32.mrf.mxu1 }
0x582c   :  { %11697 = vtanh.f32 %v8128_v8 }
0x582d   :  { %v8274_v34 = vpop.f32.mrf.mxu1 }
0x582f   :  { %v11274_v45 = vpop.f32.mrf.mxu1 }
0x5831   :  { %v8348_v38 = vpop.f32.mrf.mxu1 }
0x5833   :  { %v11281_v63 = vpop.f32.mrf.mxu1 }
0x5839   :  { %v11698_v39 = vpop.eup %11697 }
0x583a   :  { %11268 = vmatmul.mubr.msk.f32.vlgmr.msra.gmra.mxu0 %vm134_vm1, %v11698_v39 }
0x583b   :  { %11283 = vmatpush3.msra.mxu0 %v13690_v49  ;;  %11286 = vmatprep.mubr.msk.f32.mxu0 %vm11919_vm0, %v11917_v0  ;;  %v11909_v49 = vld [vmem:[%s12185_s12] sm:$0xff]  ;;  %s11950_s12 = smov 25  }
0x583c   :  { %11284 = vmatprep.subr.mxu0 %v11917_v0 }
0x583d   :  { %11285 = vmatpush3.msra.mxu0 %v13697_v19 }
0x583e   :  { %11287 = vmatmul.mubr.msk.f32.vlgmr.msra.gmra.mxu0 %vm129_vm2, %v10044_v36  ;;  %11296 = vmatprep.subr.mxu0 %v11917_v0 }
0x583f   :  { %11297 = vmatpush3.msra.mxu0 %v11908_v26  ;;  %11300 = vmatprep.mubr.msk.f32.mxu0 %vm11919_vm0, %v11917_v0 }
0x5840   :  { %11298 = vmatprep.subr.mxu0 %v11917_v0 }
0x5841   :  { %11299 = vmatpush3.msra.mxu0 %v11909_v49 }
0x5842   :  { %11308 = vmatprep.subr.mxu0 %v11917_v0 }
0x58fa   :  { %v8201_v9 = vpop.f32.mrf.mxu0 }
0x58fb   :  { %v8275_v40 = vadd.f32 %v8274_v34, %v8201_v9 }
0x58fc   :  { %v11269_v46 = vpop.f32.mrf.mxu0 }
0x58fd   :  { %v8352_v19 = vadd.f32 %v8348_v38, %v8275_v40 }
0x58fe   :  { %v8463_v44 = vpop.f32.mrf.mxu0 }
0x58ff   :  { %v8353_v57 = vadd.f32 %v13710_v20, %v8352_v19 }
0x5900   :  { %v11288_v54 = vpop.f32.mrf.mxu0 }
0x5901   :  { %11699 = vtanh.f32 %v8353_v57  ;;  %v10043_v1 = vmul.f32 -1.442695, %v8353_v57 }
0x5903   :  { %11701 = vpow2.f32 %v10043_v1  ;;  %v11916_v1 = vld [vmem:[%s12331_s30] sm:$0xff] }
0x590e   :  { %v11700_v37 = vpop.eup %11699 }
0x590f   :  { %8368 = vrot.lane.b32.xlu1 %v11700_v37, %s14298_s11 }
0x5910   :  { %v11702_v35 = vpop.eup %11701 }
0x5911   :  { %v8358_v14 = vadd.f32 1.0, %v11702_v35 }
0x5913   :  { %11703 = vrcp.f32 %v8358_v14  ;;  %v9176_v14 = vld [vmem:[#allocation2 + $0x20] sm:$0xff] }
0x5920   :  { %v11704_v17 = vpop.eup %11703 }
0x5921   :  { %v8366_v20 = vmul.f32 %v11704_v17, %v8364_v43 }
0x5981   :  { %v8369_v41 = vpop.permute.xlu1 %8368 }
0x5982   :  { %v8371_v2 = vmul.f32 %v11704_v17, %v8369_v41 }
0x5984   :  { %8373 = vrot.lane.b32.xlu1 %v8371_v2, %s14297_s7 }
0x59f6   :  { %v8374_v16 = vpop.permute.xlu1 %8373 }
0x59f7   :  { %v13946_v15 = vadd.f32 %v8374_v16, %v8366_v20 }
0x59f9   :  { %11705 = vtanh.f32 %v13946_v15 }
0x5a06   :  { %v11706_v24 = vpop.eup %11705 }
0x5a07   :  { %8379 = vrot.lane.b32.xlu0 %v11706_v24, %s14296_s16 }
0x5a0b   :  { %7456 = vrot.lane.b32.xlu0 %v13750_v10, %s11946_s28  ;;  %v11910_v10 = vld [vmem:[%s12236_s2 + $0x8] sm:$0xff] }
0x5a79   :  { %v8380_v12 = vpop.permute.xlu0 %8379 }
0x5a7a   :  { %v8382_v33 = vmul.f32 %v11704_v17, %v8380_v12  ;;  %v9178_v17 = vld [vmem:[#allocation2 + $0x30] sm:$0xff] }
0x5a7c   :  { %8384 = vrot.lane.b32.xlu1 %v8382_v33, %s14299_s0 }
0x5a7d   :  { %v7457_v58 = vpop.permute.xlu0 %7456 }
0x5a7e   :  { %10022 = vst.msk [vmem:[%s12101_s8 + $0x8] sm:$0xff] %vm129_vm2, %v7457_v58 }
0x5a85   :  { %v10047_v42 = vld [vmem:[%s12101_s8 + $0x8] sm:$0xff] }
0x5a86   :  { %8549 = vrot.lane.b32.xlu0 %v10047_v42, %s14297_s7  ;;  %v14049_v42 = vld [vmem:[%s9817_s13] ss:$0 sm:$0xff] }
0x5aee   :  { %v8385_v4 = vpop.permute.xlu1 %8384 }
0x5aef   :  { %8387 = vst.msk [vmem:[%s12022_s22] sm:$0xff] %vm129_vm2, %v8385_v4  ;;  %11294 = vmatmul.mubr.msk.f32.vlgmr.msra.gmra.mxu1 %vm129_vm2, %v8385_v4 }
0x5af0   :  { %11304 = vmatpush3.msra.mxu1 %v13730_v28  ;;  %11305 = vmatprep.mubr.msk.f32.mxu1 %vm11919_vm0, %v11917_v0 }
0x5af1   :  { %11315 = vmatprep.subr.mxu1 %v11917_v0 }
0x5af3   :  { %11306 = vmatmul.mubr.msk.f32.vlgmr.msra.gmra.mxu1 %vm337_vm3, %v13908_v21 }
0x5af4   :  { %11316 = vmatpush3.msra.mxu1 %v11910_v10  ;;  %11319 = vmatprep.mubr.msk.f32.mxu1 %vm11919_vm0, %v11917_v0 }
0x5af5   :  { %11317 = vmatprep.subr.mxu1 %v11917_v0 }
0x5af6   :  { %11318 = vmatpush3.msra.mxu1 %v11911_v59 }
0x5af7   :  { %11333 = vmatprep.subr.mxu1 %v11917_v0 }
0x5af8   :  { %v8550_v8 = vpop.permute.xlu0 %8549 }
0x5baf   :  { %v8535_v28 = vpop.f32.mrf.mxu1 }
0x5bb0   :  { %v8536_v6 = vadd.f32 %v8535_v28, %v8463_v44 }
0x5bb1   :  { %v11295_v32 = vpop.f32.mrf.mxu1 }
0x5bb2   :  { %v8539_v47 = vadd.f32 %v13745_v7, %v8536_v6 }
0x5bb4   :  { %11707 = vtanh.f32 %v8539_v47  ;;  %v10048_v56 = vmul.f32 -1.442695, %v8539_v47 }
0x5bb6   :  { %11709 = vpow2.f32 %v10048_v56 }
0x5bc1   :  { %v11708_v25 = vpop.eup %11707 }
0x5bc2   :  { %8554 = vrot.lane.b32.xlu1 %v11708_v25, %s14298_s11 }
0x5bc3   :  { %v11710_v50 = vpop.eup %11709 }
0x5bc4   :  { %v8544_v51 = vadd.f32 1.0, %v11710_v50 }
0x5bc6   :  { %11711 = vrcp.f32 %v8544_v51 }
0x5bd3   :  { %v11712_v21 = vpop.eup %11711 }
0x5bd4   :  { %v8552_v48 = vmul.f32 %v11712_v21, %v8550_v8 }
0x5c34   :  { %v8555_v22 = vpop.permute.xlu1 %8554 }
0x5c35   :  { %v8557_v31 = vmul.f32 %v11712_v21, %v8555_v22 }
0x5c37   :  { %8559 = vrot.lane.b32.xlu1 %v8557_v31, %s14297_s7 }
0x5ca9   :  { %v8560_v7 = vpop.permute.xlu1 %8559 }
0x5caa   :  { %v13975_v34 = vadd.f32 %v8560_v7, %v8552_v48 }
0x5cac   :  { %11713 = vtanh.f32 %v13975_v34 }
0x5cb9   :  { %v11714_v45 = vpop.eup %11713 }
0x5cba   :  { %8565 = vrot.lane.b32.xlu0 %v11714_v45, %s14296_s16 }
0x5cbe   :  { %7862 = vrot.lane.b32.xlu0 %v13855_v27, %s14298_s11  ;;  %v10037_v27 = vld [vmem:[%s12219_s9 + $0x38] sm:$0xff]  ;;  %s9828_s9 = sld [smem:[%s14300_s18 + %s11950_s12]]  }
0x5d2c   :  { %v8566_v38 = vpop.permute.xlu0 %8565 }
0x5d2d   :  { %v8568_v63 = vmul.f32 %v11712_v21, %v8566_v38 }
0x5d2f   :  { %8570 = vrot.lane.b32.xlu1 %v8568_v63, %s14299_s0  ;;  %s11947_s0 = smov 13   ;;  %v9417_v63 = vld [vmem:[%s9826_s5 + $0x18] sm:$0xff] }
0x5d30   :  { %v7863_v39 = vpop.permute.xlu0 %7862 }
0x5d31   :  { %7865 = vst.msk [vmem:[%s12286_s17] sm:$0xff] %vm134_vm1, %v7863_v39 }
0x5d38   :  { %v8946_v36 = vld [vmem:[%s12286_s17] sm:$0xff] }
0x5d39   :  { %8955 = vrot.lane.b32.xlu0 %v8946_v36, %s14296_s16 }
0x5da1   :  { %v8571_v26 = vpop.permute.xlu1 %8570 }
0x5da2   :  { %10049 = vst.msk [vmem:[%s12022_s22 + $0x8] sm:$0xff] %vm129_vm2, %v8571_v26  ;;  %8579 = vst.msk [vmem:[#allocation2 + $0x38] sm:$0xff] %vm129_vm2, %v8571_v26  ;;  %11301 = vmatmul.mubr.msk.f32.vlgmr.msra.gmra.mxu0 %vm129_vm2, %v8571_v26  ;;  %s9816_s22 = sld [smem:[%s14300_s18 + %s11947_s0]]  }
0x5da3   :  { %11309 = vmatpush3.msra.mxu0 %v13766_v55  ;;  %11312 = vmatprep.mubr.msk.f32.mxu0 %vm11919_vm0, %v11917_v0  ;;  %v8870_v55 = vld [vmem:[%s11971_s10] sm:$0xff] }
0x5da4   :  { %11310 = vmatprep.subr.mxu0 %v11917_v0 }
0x5da5   :  { %11311 = vmatpush3.msra.mxu0 %v13774_v30  ;;  %v11912_v30 = vld [vmem:[%s12336_s26 + $0x18] sm:$0xff] }
0x5da6   :  { %11322 = vmatprep.subr.mxu0 %v11917_v0  ;;  %11313 = vmatmul.mubr.msk.f32.vlgmr.msra.gmra.mxu0 %vm129_vm2, %v10037_v27 }
0x5da7   :  { %11323 = vmatpush3.msra.mxu0 %v13780_v61  ;;  %11330 = vmatprep.mubr.msk.f32.mxu0 %vm11919_vm0, %v11917_v0  ;;  %v11913_v61 = vld [vmem:[%s12336_s26 + $0x10] sm:$0xff] }
0x5da8   :  { %11324 = vmatprep.subr.mxu0 %v11917_v0  ;;  %v9188_v35 = vld [vmem:[%s9816_s22] sm:$0xff] }
0x5da9   :  { %11325 = vmatpush3.msra.mxu0 %v13787_v52  ;;  %v11914_v52 = vld [vmem:[%s12336_s26 + $0x8] sm:$0xff]  ;;  %v9179_v41 = vld [vmem:[#allocation2 + $0x38] sm:$0xff] }
0x5daa   :  { %11326 = vmatprep.subr.mxu0 %v11917_v0 }
0x5dab   :  { %11327 = vmatpush3.msra.mxu0 %v13792_v3  ;;  %v11915_v3 = vld [vmem:[%s12336_s26] sm:$0xff]  ;;  %v8956_v8 = vpop.permute.xlu0 %8955  ;;  %s11952_s26 = smov 26  }
0x5dac   :  { %11328 = vmatprep.subr.mxu0 %v11917_v0  ;;  %s9829_s0 = sld [smem:[%s14300_s18 + %s11952_s26]]  }
0x5dad   :  { %11329 = vmatpush3.msra.mxu0 %v13797_v60  ;;  %v8719_v60 = vpop.f32.mrf.mxu1 }
0x5dae   :  { %11331 = vmatmul.mubr.msk.f32.vlgmr.msra.gmra.mxu0 %vm134_vm1, %v8870_v55  ;;  %11344 = vmatprep.subr.mxu0 %v11917_v0 }
0x5daf   :  { %11345 = vmatpush3.msra.mxu0 %v11912_v30  ;;  %11352 = vmatprep.mubr.msk.f32.mxu0 %vm11919_vm0, %v11917_v0  ;;  %v11307_v49 = vpop.f32.mrf.mxu1  ;;  %v9416_v30 = vld [vmem:[%s9826_s5 + $0x10] sm:$0xff] }
0x5db0   :  { %11346 = vmatprep.subr.mxu0 %v11917_v0  ;;  %v9183_v49 = vld [vmem:[#allocation3 + $0x18] sm:$0xff] }
0x5db1   :  { %11347 = vmatpush3.msra.mxu0 %v11913_v61  ;;  %v9180_v61 = vld [vmem:[#allocation3] sm:$0xff] }
0x5db2   :  { %11348 = vmatprep.subr.mxu0 %v11917_v0 }
0x5db3   :  { %11349 = vmatpush3.msra.mxu0 %v11914_v52  ;;  %v9414_v52 = vld [vmem:[%s9826_s5] sm:$0xff] }
0x5db4   :  { %11350 = vmatprep.subr.mxu0 %v11917_v0 }
0x5db5   :  { %11351 = vmatpush3.msra.mxu0 %v11915_v3  ;;  %v9181_v3 = vld [vmem:[#allocation3 + $0x8] sm:$0xff] }
0x5db6   :  { %11371 = vmatprep.subr.mxu0 %v9417_v63 }
0x5e62   :  { %v8648_v9 = vpop.f32.mrf.mxu0 }
0x5e63   :  { %v8649_v40 = vadd.f32 %v13814_v18, %v8648_v9  ;;  %v9189_v18 = vld [vmem:[%s9816_s22 + $0x8] sm:$0xff]  ;;  %v9184_v9 = vld [vmem:[#allocation3 + $0x20] sm:$0xff] }
0x5e64   :  { %v11302_v46 = vpop.f32.mrf.mxu0 }
0x5e65   :  { %11715 = vtanh.f32 %v8649_v40  ;;  %v9185_v40 = vld [vmem:[#allocation3 + $0x28] sm:$0xff]  ;;  %v9186_v46 = vld [vmem:[#allocation3 + $0x30] sm:$0xff] }
0x5e66   :  { %v8792_v19 = vpop.f32.mrf.mxu0 }
0x5e67   :  { %v8793_v2 = vadd.f32 %v8792_v19, %v8719_v60  ;;  %v9182_v60 = vld [vmem:[#allocation3 + $0x10] sm:$0xff]  ;;  %v9555_v19 = vld [vmem:[%s9828_s9 + $0x8] sm:$0xff] }
0x5e68   :  { %v11314_v44 = vpop.f32.mrf.mxu0 }
0x5e69   :  { %v9554_v44 = vld [vmem:[%s9828_s9] sm:$0xff] }
0x5e6e   :  { %v8940_v57 = vpop.f32.mrf.mxu0 }
0x5e70   :  { %v11332_v54 = vpop.f32.mrf.mxu0 }
0x5e72   :  { %v11716_v37 = vpop.eup %11715 }
0x5e73   :  { %11320 = vmatmul.mubr.msk.f32.vlgmr.msra.gmra.mxu1 %vm129_vm2, %v11716_v37 }
0x5e74   :  { %11334 = vmatpush3.msra.mxu1 %v13819_v5  ;;  %11341 = vmatprep.mubr.msk.f32.mxu1 %vm11919_vm0, %v11917_v0  ;;  %v9172_v5 = vld [vmem:[#allocation2] sm:$0xff] }
0x5e75   :  { %11335 = vmatprep.subr.mxu1 %v11917_v0 }
0x5e76   :  { %11336 = vmatpush3.msra.mxu1 %v13826_v29  ;;  %v9173_v29 = vld [vmem:[#allocation2 + $0x8] sm:$0xff] }
0x5e77   :  { %11337 = vmatprep.subr.mxu1 %v11917_v0 }
0x5e78   :  { %11338 = vmatpush3.msra.mxu1 %v13831_v11  ;;  %v9174_v11 = vld [vmem:[#allocation2 + $0x10] sm:$0xff] }
0x5e79   :  { %11339 = vmatprep.subr.mxu1 %v11917_v0  ;;  %v9175_v0 = vld [vmem:[#allocation2 + $0x18] sm:$0xff] }
0x5e7a   :  { %11340 = vmatpush3.msra.mxu1 %v11916_v1 }
0x5e7b   :  { %11342 = vmatmul.mubr.msk.f32.vlgmr.msra.gmra.mxu1 %vm134_vm1, %v13900_v53  ;;  %11355 = vmatprep.subr.mxu1 %v9189_v18  ;;  %v9177_v53 = vld [vmem:[#allocation2 + $0x28] sm:$0xff] }
0x5e7c   :  { %11356 = vmatpush3.msra.mxu1 %v9189_v18  ;;  %11359 = vmatprep.mubr.msk.f32.mxu1 %vm129_vm2, %v9172_v5 }
0x5e7d   :  { %11357 = vmatprep.subr.mxu1 %v9188_v35 }
0x5e7e   :  { %11358 = vmatpush3.msra.mxu1 %v9188_v35  ;;  %v14099_v35 = vld [vmem:[%s9827_s24] ss:$0 sm:$0xff] }
0x5e7f   :  { %11360 = vmatmul.mubr.msk.f32.vlgmr.msra.gmra.mxu1 %vm129_vm2, %v9173_v29  ;;  %11391 = vmatprep.subr.mxu1 %v9555_v19 }
0x5e80   :  { %11362 = vmatprep.mubr.msk.f32.mxu1 %vm129_vm2, %v9174_v11  ;;  %11392 = vmatpush3.msra.mxu1 %v9555_v19 }
0x5e81   :  { %11393 = vmatprep.subr.mxu1 %v9554_v44 }
0x5e82   :  { %11394 = vmatpush3.msra.mxu1 %v9554_v44 }
0x5e83   :  { %11363 = vmatmul.mubr.msk.f32.gmra.mxu1 %vm129_vm2, %v9175_v0 }
0x5e84   :  { %11365 = vmatprep.mubr.msk.f32.mxu1 %vm129_vm2, %v9176_v14 }
0x5e87   :  { %11366 = vmatmul.mubr.msk.f32.gmra.mxu1 %vm129_vm2, %v9177_v53 }
0x5e88   :  { %11368 = vmatprep.mubr.msk.f32.mxu1 %vm129_vm2, %v9178_v17 }
0x5e8b   :  { %11369 = vmatmul.mubr.msk.f32.gmra.mxu1 %vm129_vm2, %v9179_v41 }
0x5f33   :  { %v8865_v43 = vpop.f32.mrf.mxu1 }
0x5f34   :  { %v8869_v20 = vadd.f32 %v8865_v43, %v8793_v2 }
0x5f35   :  { %v11321_v16 = vpop.f32.mrf.mxu1 }
0x5f36   :  { %v8944_v24 = vadd.f32 %v8940_v57, %v8869_v20 }
0x5f38   :  { %v8945_v12 = vadd.f32 %v13850_v62, %v8944_v24 }
0x5f3a   :  { %11717 = vtanh.f32 %v8945_v12  ;;  %v10056_v56 = vmul.f32 -1.442695, %v8945_v12 }
0x5f3b   :  { %v14047_v33 = vpop.f32.mrf.mxu1 }
0x5f3c   :  { %11719 = vpow2.f32 %v10056_v56 }
0x5f3d   :  { %v11343_v58 = vpop.f32.mrf.mxu1 }
0x5f3f   :  { %v11361_v4 = vpop.f32.mrf.mxu1 }
0x5f40   :  { %v14052_v10 = vadd.f32 %v11361_v4, %v14049_v42 }
0x5f41   :  { %v14054_v59 = vpop.f32.mrf.mxu1 }
0x5f43   :  { %v14056_v28 = vpop.f32.mrf.mxu1 }
0x5f45   :  { %v14058_v6 = vpop.f32.mrf.mxu1 }
0x5f47   :  { %v11718_v32 = vpop.eup %11717  ;;  %v14060_v47 = vpop.f32.mrf.mxu1 }
0x5f48   :  { %8960 = vrot.lane.b32.xlu1 %v11718_v32, %s14295_s15 }
0x5f49   :  { %v9307_v62 = vpop.f32.mrf.mxu1  ;;  %v11720_v50 = vpop.eup %11719 }
0x5f4a   :  { %v14064_v25 = vadd.f32 %v14049_v42, %v9307_v62  ;;  %v8950_v51 = vadd.f32 1.0, %v11720_v50 }
0x5f4c   :  { %11721 = vrcp.f32 %v8950_v51 }
0x5f59   :  { %v11722_v21 = vpop.eup %11721 }
0x5f5a   :  { %v8958_v48 = vmul.f32 %v11722_v21, %v8956_v8 }
0x5fba   :  { %v8961_v22 = vpop.permute.xlu1 %8960 }
0x5fbb   :  { %v8963_v31 = vmul.f32 %v11722_v21, %v8961_v22  ;;  %v11370_v22 = vpop.f32.mrf.mxu1 }
0x5fbd   :  { %8965 = vrot.lane.b32.xlu1 %v8963_v31, %s14296_s16  ;;  %v9298_v31 = vadd.f32 %v14049_v42, %v14058_v6  ;;  %v9317_v8 = vpop.f32.mrf.mxu1  ;;  %v14131_v6 = vld [vmem:[%s9829_s0] ss:$0 sm:$0xff] }
0x602f   :  { %v8966_v7 = vpop.permute.xlu1 %8965 }
0x6030   :  { %v14067_v45 = vadd.f32 %v8966_v7, %v8958_v48  ;;  %v9303_v48 = vadd.f32 %v14056_v28, %v14049_v42 }
0x6032   :  { %11723 = vtanh.f32 %v14067_v45 }
0x603f   :  { %v11724_v38 = vpop.eup %11723 }
0x6040   :  { %8971 = vrot.lane.b32.xlu0 %v11724_v38, %s14295_s15 }
0x6044   :  { %8048 = vrot.lane.b32.xlu0 %v13885_v13, %s14298_s11  ;;  %v9415_v13 = vld [vmem:[%s9826_s5 + $0x8] sm:$0xff] }
0x60b2   :  { %v8972_v39 = vpop.permute.xlu0 %8971 }
0x60b3   :  { %v8974_v36 = vmul.f32 %v11722_v21, %v8972_v39  ;;  %v9288_v21 = vadd.f32 %v14049_v42, %v14054_v59  ;;  %v9313_v59 = vadd.f32 %v14060_v47, %v14049_v42 }
0x60b5   :  { %8976 = vrot.lane.b32.xlu1 %v8974_v36, %s14296_s16 }
0x60b6   :  { %v8049_v26 = vpop.permute.xlu0 %8048 }
0x60b7   :  { %10035 = vst.msk [vmem:[%s12286_s17 + $0x8] sm:$0xff] %vm134_vm1, %v8049_v26 }
0x60be   :  { %v10060_v27 = vld [vmem:[%s12286_s17 + $0x8] sm:$0xff] }
0x60bf   :  { %9141 = vrot.lane.b32.xlu0 %v10060_v27, %s14296_s16 }
0x6127   :  { %v8977_v55 = vpop.permute.xlu1 %8976 }
0x6128   :  { %8979 = vst.msk [vmem:[%s11971_s10] sm:$0xff] %vm134_vm1, %v8977_v55  ;;  %11353 = vmatmul.mubr.msk.f32.vlgmr.msra.gmra.mxu0 %vm134_vm1, %v8977_v55 }
0x6129   :  { %11372 = vmatpush3.msra.mxu0 %v9417_v63  ;;  %11379 = vmatprep.mubr.msk.f32.mxu0 %vm134_vm1, %v9180_v61  ;;  %v9323_v63 = vadd.f32 %v11370_v22, %v14049_v42  ;;  %v9318_v61 = vadd.f32 %v14049_v42, %v9317_v8 }
0x612a   :  { %11373 = vmatprep.subr.mxu0 %v9416_v30 }
0x612b   :  { %11374 = vmatpush3.msra.mxu0 %v9416_v30 }
0x612c   :  { %11375 = vmatprep.subr.mxu0 %v9415_v13 }
0x612d   :  { %11376 = vmatpush3.msra.mxu0 %v9415_v13 }
0x612e   :  { %11377 = vmatprep.subr.mxu0 %v9414_v52 }
0x612f   :  { %11378 = vmatpush3.msra.mxu0 %v9414_v52 }
0x6130   :  { %11380 = vmatmul.mubr.msk.f32.vlgmr.msra.gmra.mxu0 %vm134_vm1, %v9181_v3 }
0x6131   :  { %11382 = vmatprep.mubr.msk.f32.mxu0 %vm134_vm1, %v9182_v60  ;;  %v9142_v32 = vpop.permute.xlu0 %9141 }
0x6134   :  { %11383 = vmatmul.mubr.msk.f32.gmra.mxu0 %vm134_vm1, %v9183_v49 }
0x6135   :  { %11385 = vmatprep.mubr.msk.f32.mxu0 %vm134_vm1, %v9184_v9 }
0x6138   :  { %11386 = vmatmul.mubr.msk.f32.gmra.mxu0 %vm134_vm1, %v9185_v40 }
0x6139   :  { %11388 = vmatprep.mubr.msk.f32.mxu0 %vm134_vm1, %v9186_v46 }
0x61e8   :  { %v9127_v57 = vpop.f32.mrf.mxu0 }
0x61e9   :  { %v9128_v54 = vadd.f32 %v9127_v57, %v14047_v33 }
0x61ea   :  { %v11354_v37 = vpop.f32.mrf.mxu0 }
0x61eb   :  { %v9131_v18 = vadd.f32 %v13880_v23, %v9128_v54 }
0x61ed   :  { %11725 = vtanh.f32 %v9131_v18  ;;  %v10061_v16 = vmul.f32 -1.442695, %v9131_v18 }
0x61ef   :  { %11727 = vpow2.f32 %v10061_v16 }
0x61f0   :  { %v11381_v1 = vpop.f32.mrf.mxu0 }
0x61f1   :  { %v9521_v11 = vadd.f32 %v11381_v1, %v14099_v35 }
0x61f2   :  { %v9515_v5 = vpop.f32.mrf.mxu0 }
0x61f3   :  { %v9516_v29 = vadd.f32 %v14099_v35, %v9515_v5 }
0x61f4   :  { %v11384_v0 = vpop.f32.mrf.mxu0 }
0x61f5   :  { %11395 = vmatprep.mubr.msk.f32.mxu1 %vm129_vm2, %v9516_v29  ;;  %v9531_v17 = vadd.f32 %v11384_v0, %v14099_v35 }
0x61f6   :  { %v9525_v14 = vpop.f32.mrf.mxu0  ;;  %11396 = vmatmul.mubr.msk.f32.vlgmr.msra.gmra.mxu1 %vm129_vm2, %v9521_v11 }
0x61f7   :  { %v9526_v53 = vadd.f32 %v14099_v35, %v9525_v14 }
0x61f8   :  { %v11387_v23 = vpop.f32.mrf.mxu0 }
0x61f9   :  { %11398 = vmatprep.mubr.msk.f32.mxu1 %vm129_vm2, %v9526_v53  ;;  %v9541_v20 = vadd.f32 %v11387_v23, %v14099_v35 }
0x61fa   :  { %v11726_v41 = vpop.eup %11725  ;;  %v9535_v2 = vpop.f32.mrf.mxu0  ;;  %11399 = vmatmul.mubr.msk.f32.gmra.mxu1 %vm129_vm2, %v9531_v17 }
0x61fb   :  { %v9536_v43 = vadd.f32 %v14099_v35, %v9535_v2  ;;  %9146 = vrot.lane.b32.xlu1 %v11726_v41, %s14295_s15 }
0x61fc   :  { %v11728_v24 = vpop.eup %11727 }
0x61fd   :  { %11401 = vmatprep.mubr.msk.f32.mxu1 %vm129_vm2, %v9536_v43  ;;  %v9136_v12 = vadd.f32 1.0, %v11728_v24 }
0x61fe   :  { %11402 = vmatmul.mubr.msk.f32.gmra.mxu1 %vm129_vm2, %v9541_v20 }
0x61ff   :  { %11729 = vrcp.f32 %v9136_v12 }
0x620c   :  { %v11730_v33 = vpop.eup %11729 }
0x620d   :  { %v9144_v62 = vmul.f32 %v11730_v33, %v9142_v32 }
0x626d   :  { %v9147_v58 = vpop.permute.xlu1 %9146 }
0x626e   :  { %v9149_v4 = vmul.f32 %v11730_v33, %v9147_v58 }
0x6270   :  { %9151 = vrot.lane.b32.xlu1 %v9149_v4, %s14296_s16 }
0x62b6   :  { %v11397_v7 = vpop.f32.mrf.mxu1 }
0x62b7   :  { %v14134_v28 = vadd.f32 %v11397_v7, %v14131_v6 }
0x62b8   :  { %v9653_v38 = vpop.f32.mrf.mxu1 }
0x62b9   :  { %v9654_v13 = vadd.f32 %v14131_v6, %v9653_v38 }
0x62ba   :  { %v11400_v39 = vpop.f32.mrf.mxu1 }
0x62bb   :  { %v14138_v26 = vadd.f32 %v11400_v39, %v14131_v6 }
0x62bc   :  { %v9663_v36 = vpop.f32.mrf.mxu1 }
0x62bd   :  { %v14151_v52 = vadd.f32 %v14131_v6, %v9663_v36 }
0x62be   :  { %v11403_v27 = vpop.f32.mrf.mxu1 }
0x62bf   :  { %v14142_v47 = vadd.f32 %v11403_v27, %v14131_v6 }
0x62c0   :  { %v9673_v3 = vpop.f32.mrf.mxu1 }
0x62c1   :  { %v14155_v60 = vadd.f32 %v14131_v6, %v9673_v3 }
0x62e2   :  { %v9152_v56 = vpop.permute.xlu1 %9151 }
0x62e3   :  { %v14115_v50 = vadd.f32 %v9152_v56, %v9144_v62 }
0x62e5   :  { %11731 = vtanh.f32 %v14115_v50 }
0x62f2   :  { %v11732_v51 = vpop.eup %11731 }
0x62f3   :  { %9157 = vrot.lane.b32.xlu0 %v11732_v51, %s14295_s15 }
0x6312   :  { %9326 = vmax.xlane.f32.xlu0 %v9288_v21 }
0x6316   :  { %9330 = vmax.xlane.f32.xlu0 %v9298_v31 }
0x631a   :  { %9332 = vmax.xlane.f32.xlu0 %v9303_v48 }
0x631e   :  { %9336 = vmax.xlane.f32.xlu0 %v9313_v59 }
0x6322   :  { %9340 = vmax.xlane.f32.xlu0 %v9323_v63 }
0x6326   :  { %9694 = vmax.xlane.f32.xlu0 %v14134_v28 }
0x632a   :  { %9698 = vmax.xlane.f32.xlu0 %v14138_v26 }
0x632e   :  { %9702 = vmax.xlane.f32.xlu0 %v14142_v47 }
0x6365   :  { %v9158_v55 = vpop.permute.xlu0 %9157 }
0x6366   :  { %v9160_v30 = vmul.f32 %v11730_v33, %v9158_v55 }
0x6368   :  { %9162 = vrot.lane.b32.xlu1 %v9160_v30, %s14296_s16 }
0x638c   :  { %9328 = vmax.xlane.f32.xlu1 %v14052_v10 }
0x6390   :  { %9334 = vmax.xlane.f32.xlu1 %v14064_v25 }
0x6394   :  { %9338 = vmax.xlane.f32.xlu1 %v9318_v61 }
0x6398   :  { %9692 = vmax.xlane.f32.xlu1 %v9654_v13 }
0x639b   :  { %v9327_v44 = vpop.xlane.xlu0 %9326 }
0x639c   :  { %9696 = vmax.xlane.f32.xlu1 %v14151_v52  ;;  %v14169_v29 = vsub.f32 %v9288_v21, %v9327_v44 }
0x639e   :  { %v9350_v53 = vmul.f32 1.442695, %v14169_v29 }
0x639f   :  { %v9331_v57 = vpop.xlane.xlu0 %9330 }
0x63a0   :  { %9700 = vmax.xlane.f32.xlu1 %v14155_v60  ;;  %v14175_v17 = vsub.f32 %v9298_v31, %v9331_v57 }
0x63a3   :  { %v9333_v54 = vpop.xlane.xlu0 %9332 }
0x63a4   :  { %v14171_v0 = vsub.f32 %v9303_v48, %v9333_v54 }
0x63a6   :  { %v9356_v23 = vmul.f32 1.442695, %v14171_v0 }
0x63a7   :  { %v9337_v18 = vpop.xlane.xlu0 %9336 }
0x63a8   :  { %v14178_v41 = vsub.f32 %v9313_v59, %v9337_v18 }
0x63aa   :  { %v9360_v16 = vmul.f32 1.442695, %v14178_v41 }
0x63ab   :  { %v9341_v11 = vpop.xlane.xlu0 %9340 }
0x63ac   :  { %v14185_v24 = vsub.f32 %v9323_v63, %v9341_v11 }
0x63ae   :  { %v9364_v32 = vmul.f32 1.442695, %v14185_v24 }
0x63af   :  { %v9695_v2 = vpop.xlane.xlu0 %9694 }
0x63b0   :  { %v14192_v62 = vsub.f32 %v14134_v28, %v9695_v2 }
0x63b2   :  { %v9718_v8 = vmul.f32 1.442695, %v14192_v62 }
0x63b3   :  { %v9699_v58 = vpop.xlane.xlu0 %9698 }
0x63b4   :  { %v14201_v48 = vsub.f32 %v14138_v26, %v9699_v58 }
0x63b7   :  { %v9703_v59 = vpop.xlane.xlu0 %9702 }
0x63b8   :  { %v14209_v36 = vsub.f32 %v14142_v47, %v9703_v59 }
0x63da   :  { %v9163_v49 = vpop.permute.xlu1 %9162 }
0x63db   :  { %10062 = vst.msk [vmem:[%s11971_s10 + $0x8] sm:$0xff] %vm134_vm1, %v9163_v49  ;;  %9171 = vst.msk [vmem:[#allocation3 + $0x38] sm:$0xff] %vm134_vm1, %v9163_v49  ;;  %s11953_s10 = smov 27  }
0x63dc   :  { %s14230_s6 = sld [smem:[%s14300_s18 + %s11953_s10]]  }
0x63e2   :  { %v9187_v42 = vld [vmem:[#allocation3 + $0x38] sm:$0xff] }
0x63e3   :  { %11389 = vmatmul.mubr.msk.f32.gmra.mxu0 %vm134_vm1, %v9187_v42 }
0x6415   :  { %v9329_v37 = vpop.xlane.xlu1 %9328 }
0x6416   :  { %v14167_v5 = vsub.f32 %v14052_v10, %v9329_v37  ;;  %v9354_v10 = vmul.f32 1.442695, %v14175_v17 }
0x6419   :  { %v9335_v1 = vpop.xlane.xlu1 %9334 }
0x641a   :  { %v14182_v43 = vsub.f32 %v14064_v25, %v9335_v1 }
0x641c   :  { %v9358_v12 = vmul.f32 1.442695, %v14182_v43 }
0x641d   :  { %v9339_v14 = vpop.xlane.xlu1 %9338 }
0x641e   :  { %v14188_v33 = vsub.f32 %v9318_v61, %v9339_v14  ;;  %v9726_v61 = vmul.f32 1.442695, %v14209_v36 }
0x6420   :  { %v9362_v21 = vmul.f32 1.442695, %v14188_v33 }
0x6421   :  { %v9693_v20 = vpop.xlane.xlu1 %9692 }
0x6422   :  { %v14196_v22 = vsub.f32 %v9654_v13, %v9693_v20 }
0x6424   :  { %v9716_v38 = vmul.f32 1.442695, %v14196_v22 }
0x6425   :  { %v9697_v56 = vpop.xlane.xlu1 %9696 }
0x6426   :  { %v14205_v63 = vsub.f32 %v14151_v52, %v9697_v56 }
0x6428   :  { %v9720_v27 = vmul.f32 1.442695, %v14205_v63 }
0x6429   :  { %v9701_v28 = vpop.xlane.xlu1 %9700 }
0x642a   :  { %v14213_v55 = vsub.f32 %v14155_v60, %v9701_v28 }
0x642c   :  { %v9724_v52 = vmul.f32 1.442695, %v14213_v55 }
0x64a3   :  { %v11390_v9 = vpop.f32.mrf.mxu0 }
0x64a4   :  { %v9551_v19 = vadd.f32 %v11390_v9, %v14099_v35 }
0x64a5   :  { %v9545_v40 = vpop.f32.mrf.mxu0 }
0x64a6   :  { %v9546_v46 = vadd.f32 %v14099_v35, %v9545_v40  ;;  %v9352_v35 = vmul.f32 1.442695, %v14167_v5 }
0x64a8   :  { %11404 = vmatprep.mubr.msk.f32.mxu1 %vm129_vm2, %v9546_v46  ;;  %11733 = vpow2.f32 %v9352_v35 }
0x64a9   :  { %11405 = vmatmul.mubr.msk.f32.gmra.mxu1 %vm129_vm2, %v9551_v19  ;;  %11735 = vpow2.f32 %v9350_v53 }
0x64aa   :  { %11737 = vpow2.f32 %v9356_v23 }
0x64ab   :  { %11739 = vpow2.f32 %v9354_v10 }
0x64ac   :  { %11741 = vpow2.f32 %v9360_v16 }
0x64ad   :  { %11743 = vpow2.f32 %v9358_v12 }
0x64ae   :  { %11745 = vpow2.f32 %v9364_v32 }
0x64af   :  { %11747 = vpow2.f32 %v9362_v21 }
0x64b0   :  { %11749 = vpow2.f32 %v9718_v8 }
0x64b1   :  { %11751 = vpow2.f32 %v9716_v38 }
0x64b5   :  { %v11734_v7 = vpop.eup %11733 }
0x64b6   :  { %v11736_v39 = vpop.eup %11735 }
0x64b7   :  { %v11738_v26 = vpop.eup %11737 }
0x64b8   :  { %v11740_v30 = vpop.eup %11739 }
0x64b9   :  { %v11742_v13 = vpop.eup %11741 }
0x64ba   :  { %v11744_v47 = vpop.eup %11743 }
0x64bb   :  { %v11746_v3 = vpop.eup %11745 }
0x64bc   :  { %v11748_v49 = vpop.eup %11747 }
0x64bd   :  { %v11750_v60 = vpop.eup %11749 }
0x64be   :  { %v11752_v42 = vpop.eup %11751 }
0x6569   :  { %v11406_v4 = vpop.f32.mrf.mxu1 }
0x656a   :  { %v9689_v25 = vadd.f32 %v11406_v4, %v14131_v6 }
0x656b   :  { %v9683_v51 = vpop.f32.mrf.mxu1 }
0x656c   :  { %v9684_v31 = vadd.f32 %v14131_v6, %v9683_v51  ;;  %9706 = vmax.xlane.f32.xlu0 %v9689_v25  ;;  %v9722_v6 = vmul.f32 1.442695, %v14201_v48 }
0x656e   :  { %9704 = vmax.xlane.f32.xlu1 %v9684_v31  ;;  %11753 = vpow2.f32 %v9722_v6 }
0x656f   :  { %11755 = vpow2.f32 %v9720_v27 }
0x6570   :  { %9368 = vadd.xlane.f32.xlu0 %v11734_v7  ;;  %11757 = vpow2.f32 %v9726_v61 }
0x6571   :  { %11759 = vpow2.f32 %v9724_v52 }
0x6572   :  { %9366 = vadd.xlane.f32.xlu1 %v11736_v39 }
0x6574   :  { %9372 = vadd.xlane.f32.xlu0 %v11738_v26 }
0x6576   :  { %9370 = vadd.xlane.f32.xlu1 %v11740_v30 }
0x6578   :  { %9376 = vadd.xlane.f32.xlu0 %v11742_v13 }
0x657a   :  { %9374 = vadd.xlane.f32.xlu1 %v11744_v47 }
0x657b   :  { %v11754_v9 = vpop.eup %11753 }
0x657c   :  { %9380 = vadd.xlane.f32.xlu0 %v11746_v3  ;;  %v11756_v40 = vpop.eup %11755 }
0x657d   :  { %v11758_v46 = vpop.eup %11757 }
0x657e   :  { %9378 = vadd.xlane.f32.xlu1 %v11748_v49  ;;  %v11760_v19 = vpop.eup %11759 }
0x6580   :  { %9734 = vadd.xlane.f32.xlu0 %v11750_v60 }
0x6582   :  { %9732 = vadd.xlane.f32.xlu1 %v11752_v42 }
0x6584   :  { %9738 = vadd.xlane.f32.xlu0 %v11754_v9 }
0x6586   :  { %9736 = vadd.xlane.f32.xlu1 %v11756_v40 }
0x6588   :  { %9742 = vadd.xlane.f32.xlu0 %v11758_v46 }
0x658a   :  { %9740 = vadd.xlane.f32.xlu1 %v11760_v19 }
0x659b   :  { %8389 = vrot.lane.b32.xlu1 %v13946_v15, %s11946_s28 }
0x659f   :  { %8981 = vrot.lane.b32.xlu1 %v14067_v45, %s14298_s11 }
0x65f5   :  { %v9707_v44 = vpop.xlane.xlu0 %9706 }
0x65f6   :  { %v14221_v57 = vsub.f32 %v9689_v25, %v9707_v44 }
0x65f7   :  { %v9705_v54 = vpop.xlane.xlu1 %9704 }
0x65f8   :  { %v9730_v37 = vmul.f32 1.442695, %v14221_v57  ;;  %v14224_v18 = vsub.f32 %v9684_v31, %v9705_v54 }
0x65f9   :  { %v9369_v1 = vpop.xlane.xlu0 %9368 }
0x65fa   :  { %11761 = vpow2.f32 %v9730_v37  ;;  %v9728_v11 = vmul.f32 1.442695, %v14224_v18 }
0x65fb   :  { %11763 = vlog2.f32 %v9369_v1  ;;  %v9367_v35 = vpop.xlane.xlu1 %9366 }
0x65fc   :  { %11765 = vpow2.f32 %v9728_v11 }
0x65fd   :  { %11767 = vlog2.f32 %v9367_v35  ;;  %v9373_v15 = vpop.xlane.xlu0 %9372 }
0x65fe   :  { %11769 = vlog2.f32 %v9373_v15 }
0x65ff   :  { %v9371_v14 = vpop.xlane.xlu1 %9370 }
0x6600   :  { %11771 = vlog2.f32 %v9371_v14 }
0x6601   :  { %v9377_v45 = vpop.xlane.xlu0 %9376 }
0x6602   :  { %11773 = vlog2.f32 %v9377_v45 }
0x6603   :  { %v9375_v53 = vpop.xlane.xlu1 %9374 }
0x6604   :  { %11775 = vlog2.f32 %v9375_v53 }
0x6605   :  { %v9381_v23 = vpop.xlane.xlu0 %9380 }
0x6606   :  { %11777 = vlog2.f32 %v9381_v23 }
0x6607   :  { %v11762_v2 = vpop.eup %11761  ;;  %v9379_v10 = vpop.xlane.xlu1 %9378 }
0x6608   :  { %v11764_v20 = vpop.eup %11763  ;;  %11779 = vlog2.f32 %v9379_v10  ;;  %9746 = vadd.xlane.f32.xlu0 %v11762_v2 }
0x6609   :  { %v11766_v16 = vpop.eup %11765  ;;  %v9385_v12 = vmul.f32 0.6931472, %v11764_v20  ;;  %v9735_v58 = vpop.xlane.xlu0 %9734 }
0x660a   :  { %v11768_v4 = vpop.eup %11767  ;;  %11781 = vlog2.f32 %v9735_v58  ;;  %9744 = vadd.xlane.f32.xlu1 %v11766_v16 }
0x660b   :  { %v11770_v32 = vpop.eup %11769  ;;  %v9399_v25 = vsub.f32 %v14167_v5, %v9385_v12  ;;  %v9383_v56 = vmul.f32 0.6931472, %v11768_v4  ;;  %v9733_v51 = vpop.xlane.xlu1 %9732 }
0x660c   :  { %v9389_v21 = vmul.f32 0.6931472, %v11770_v32  ;;  %11783 = vlog2.f32 %v9733_v51 }
0x660d   :  { %v11772_v31 = vpop.eup %11771  ;;  %9407 = vst [vmem:[%s14230_s6 + $0x8] sm:$0xff] %v9399_v25  ;;  %v9398_v8 = vsub.f32 %v14169_v29, %v9383_v56  ;;  %v9739_v7 = vpop.xlane.xlu0 %9738 }
0x660e   :  { %v9401_v59 = vsub.f32 %v14171_v0, %v9389_v21  ;;  %v9387_v38 = vmul.f32 0.6931472, %v11772_v31  ;;  %11785 = vlog2.f32 %v9739_v7 }
0x660f   :  { %v11774_v39 = vpop.eup %11773  ;;  %9406 = vst [vmem:[%s14230_s6] sm:$0xff] %v9398_v8  ;;  %v9737_v28 = vpop.xlane.xlu1 %9736 }
0x6610   :  { %9409 = vst [vmem:[%s14230_s6 + $0x18] sm:$0xff] %v9401_v59  ;;  %v9400_v5 = vsub.f32 %v14175_v17, %v9387_v38  ;;  %v9393_v6 = vmul.f32 0.6931472, %v11774_v39  ;;  %11787 = vlog2.f32 %v9737_v28 }
0x6611   :  { %v11776_v26 = vpop.eup %11775  ;;  %v9743_v27 = vpop.xlane.xlu0 %9742 }
0x6612   :  { %9408 = vst [vmem:[%s14230_s6 + $0x10] sm:$0xff] %v9400_v5  ;;  %v9403_v29 = vsub.f32 %v14178_v41, %v9393_v6  ;;  %v9391_v30 = vmul.f32 0.6931472, %v11776_v26  ;;  %11789 = vlog2.f32 %v9743_v27 }
0x6613   :  { %v11778_v0 = vpop.eup %11777  ;;  %v9741_v61 = vpop.xlane.xlu1 %9740 }
0x6614   :  { %9411 = vst [vmem:[%s14230_s6 + $0x28] sm:$0xff] %v9403_v29  ;;  %v9402_v13 = vsub.f32 %v14182_v43, %v9391_v30  ;;  %v9397_v52 = vmul.f32 0.6931472, %v11778_v0  ;;  %11791 = vlog2.f32 %v9741_v61 }
0x6615   :  { %v11780_v17 = vpop.eup %11779 }
0x6616   :  { %9410 = vst [vmem:[%s14230_s6 + $0x20] sm:$0xff] %v9402_v13  ;;  %v9405_v41 = vsub.f32 %v14185_v24, %v9397_v52  ;;  %v9395_v47 = vmul.f32 0.6931472, %v11780_v17 }
0x6617   :  { %v11782_v3 = vpop.eup %11781  ;;  %v8390_v49 = vpop.permute.xlu1 %8389 }
0x6618   :  { %9413 = vst [vmem:[%s14230_s6 + $0x38] sm:$0xff] %v9405_v41  ;;  %v9404_v43 = vsub.f32 %v14188_v33, %v9395_v47  ;;  %v9751_v60 = vmul.f32 0.6931472, %v11782_v3  ;;  %8392 = vst.msk [vmem:[%s12101_s8] sm:$0xff] %vm129_vm2, %v8390_v49 }
0x6619   :  { %v11784_v42 = vpop.eup %11783 }
0x661a   :  { %9412 = vst [vmem:[%s14230_s6 + $0x30] sm:$0xff] %v9404_v43  ;;  %v9765_v9 = vsub.f32 %v14192_v62, %v9751_v60  ;;  %v9749_v40 = vmul.f32 0.6931472, %v11784_v42 }
0x661b   :  { %v11786_v46 = vpop.eup %11785  ;;  %9167 = vrot.lane.b32.xlu1 %v14115_v50, %s14298_s11  ;;  %v8982_v24 = vpop.permute.xlu1 %8981 }
0x661c   :  { %9773 = vst [vmem:[%s14246_s29 + $0x8] sm:$0xff] %v9765_v9  ;;  %v9764_v19 = vsub.f32 %v14196_v22, %v9749_v40  ;;  %v9755_v33 = vmul.f32 0.6931472, %v11786_v46  ;;  %8984 = vst.msk [vmem:[%s12286_s17] sm:$0xff] %vm134_vm1, %v8982_v24 }
0x661d   :  { %v11788_v44 = vpop.eup %11787 }
0x661e   :  { %9772 = vst [vmem:[%s14246_s29] sm:$0xff] %v9764_v19  ;;  %v9767_v54 = vsub.f32 %v14201_v48, %v9755_v33  ;;  %v9753_v62 = vmul.f32 0.6931472, %v11788_v44  ;;  %8575 = vrot.lane.b32.xlu0 %v13975_v34, %s11946_s28 }
0x661f   :  { %v11790_v37 = vpop.eup %11789 }
0x6620   :  { %9775 = vst [vmem:[%s14246_s29 + $0x18] sm:$0xff] %v9767_v54  ;;  %v9766_v50 = vsub.f32 %v14205_v63, %v9753_v62  ;;  %v9759_v22 = vmul.f32 0.6931472, %v11790_v37 }
0x6621   :  { %v11792_v1 = vpop.eup %11791 }
0x6622   :  { %9774 = vst [vmem:[%s14246_s29 + $0x10] sm:$0xff] %v9766_v50  ;;  %v9769_v11 = vsub.f32 %v14209_v36, %v9759_v22  ;;  %v9757_v35 = vmul.f32 0.6931472, %v11792_v1 }
0x6624   :  { %9777 = vst [vmem:[%s14246_s29 + $0x28] sm:$0xff] %v9769_v11  ;;  %v9768_v48 = vsub.f32 %v14213_v55, %v9757_v35 }
0x6626   :  { %9776 = vst [vmem:[%s14246_s29 + $0x20] sm:$0xff] %v9768_v48 }
0x6691   :  { %v9747_v15 = vpop.xlane.xlu0 %9746 }
0x6692   :  { %11793 = vlog2.f32 %v9747_v15 }
0x6693   :  { %v9745_v34 = vpop.xlane.xlu1 %9744 }
0x6694   :  { %11795 = vlog2.f32 %v9745_v34 }
0x6695   :  { %v8576_v14 = vpop.permute.xlu0 %8575 }
0x6696   :  { %10050 = vst.msk [vmem:[%s12101_s8 + $0x8] sm:$0xff] %vm129_vm2, %v8576_v14 }
0x6697   :  { %v9168_v63 = vpop.permute.xlu1 %9167 }
0x6698   :  { %10063 = vst.msk [vmem:[%s12286_s17 + $0x8] sm:$0xff] %vm134_vm1, %v9168_v63 }
0x669f   :  { %v11794_v45 = vpop.eup %11793 }
0x66a0   :  { %v9763_v53 = vmul.f32 0.6931472, %v11794_v45 }
0x66a1   :  { %v11796_v36 = vpop.eup %11795 }
0x66a2   :  { %v9771_v23 = vsub.f32 %v14221_v57, %v9763_v53  ;;  %v9761_v2 = vmul.f32 0.6931472, %v11796_v36 }
0x66a4   :  { %9779 = vst [vmem:[%s14246_s29 + $0x38] sm:$0xff] %v9771_v23  ;;  %v9770_v55 = vsub.f32 %v14224_v18, %v9761_v2 }
0x66a6   :  { %9778 = vst [vmem:[%s14246_s29 + $0x30] sm:$0xff] %v9770_v55 }

</bundles_post_ra>
